<compile_context>
chip_gen: v6e
topology: v6e:2x2x1
jax: 0.10.0
libtpu: 0.0.40
codegen_flags: <defaults>
</compile_context>

<pallas_src>
import functools

import jax
import jax.numpy as jnp
from jax.experimental import pallas as pl
from jax.experimental.pallas import tpu as pltpu

NEG_SLOPE_GAT = 0.2    # GATv2Conv internal leaky_relu negative_slope
NEG_SLOPE_OUT = 0.01   # nn.LeakyReLU() default negative_slope

PEP_OUT = 30           # peptide feature width after peptide_conv_3 (3 heads * 10)
PROT_OUT = 4           # protein feature width after protein_conv_2 (2 heads * 2)

# (params key, heads, out_channels, uses peptide-bond graph?)
LAYER_CFGS = (
    ("pep1", 2, 5, True),
    ("pep2", 3, 5, True),
    ("pep3", 3, 10, True),
    ("prot1", 2, 2, False),
    ("prot2", 2, 2, False),
)


def _leaky(x, slope):
    return jnp.where(x > 0, x, slope * x)


# ----------------------------------------------------------------------------
# one GATv2Conv layer (+ the outer nn.LeakyReLU), heads fully batched
# ----------------------------------------------------------------------------
def _gatv2_layer(x, adj, eattr, wl, bl, wr, br, we, att_bd, bias, hmask,
                 *, heads, out_ch):
    n = x.shape[0]
    hc = heads * out_ch
    f32 = jnp.float32

    xl = jnp.dot(x, wl, preferred_element_type=f32) + bl            # (N, HC) source side
    xr = jnp.dot(x, wr, preferred_element_type=f32) + br            # (N, HC) target side

    # z[i, j, f] = xl[j, f] + xr[i, f] + eattr[i, j] * we[f]  -- all heads at once
    z = xl[None, :, :] + xr[:, None, :] + eattr[:, :, None] * we[None, :, :]
    z = _leaky(z, NEG_SLOPE_GAT)                                    # (N, N, HC)

    # all head logits with ONE matmul against the block-diagonal att matrix.
    # (reshapes only fold/unfold the leading two dims; N % 8 == 0 keeps them
    #  layout-trivial.)
    logits = jnp.dot(z.reshape(n * n, hc), att_bd,
                     preferred_element_type=f32).reshape(n, n, heads)   # (N, N, H)
    logits = jnp.where(adj[:, :, None] > 0, logits, jnp.float32(-1e30))

    # softmax over incoming edges (axis=1 == source nodes), batched over heads
    m = jnp.max(logits, axis=1, keepdims=True)                      # (N, 1, H)
    pexp = jnp.exp(logits - m)                                      # masked lanes underflow to 0
    denom = jnp.sum(pexp, axis=1, keepdims=True)                    # (N, 1, H)
    alpha = pexp * pl.reciprocal(denom, approx=True)                # (N, N, H)
    # TODO(synk): attention dropout(p=0.5) omitted (inference semantics).

    # aggregation, produced directly in (N, H*C) head-concat layout:
    # widen alpha to (N, N, HC) with the head mask, then contract over sources.
    alpha_w = jnp.dot(alpha.reshape(n * n, heads), hmask,
                      preferred_element_type=f32).reshape(n, n, hc)
    out = jnp.sum(alpha_w * xl[None, :, :], axis=1) + bias          # (N, HC)

    return _leaky(out, NEG_SLOPE_OUT)   # outer self.relu applied after every conv


# ----------------------------------------------------------------------------
# fully fused forward kernel: 5 GAT layers + interface gather + edge MLP + pool
# ----------------------------------------------------------------------------
def fused_forward_kernel(*refs, cfgs, n_int_edges):
    out_ref = refs[-1]
    it = iter(refs[:-1])

    def nxt():
        return next(it)[...]

    f32 = jnp.float32

    x = nxt()
    adj_pb = nxt()
    e_pb = nxt()
    adj_sp = nxt()
    e_sp = nxt()

    h = x
    p_feat = None
    for li, (heads, out_ch, use_pb) in enumerate(cfgs):
        wl = nxt()
        bl = nxt()
        wr = nxt()
        br = nxt()
        we = nxt()
        att_bd = nxt()
        bias = nxt()
        hmask = nxt()
        adj, ea = (adj_pb, e_pb) if use_pb else (adj_sp, e_sp)
        h = _gatv2_layer(h, adj, ea, wl, bl, wr, br, we, att_bd, bias, hmask,
                         heads=heads, out_ch=out_ch)
        if li == 2:
            p_feat = h          # (N, 30) peptide embedding
    q_feat = h                  # (N, 4)  protein embedding

    # interface-edge gather via one-hot matmuls (no in-kernel dynamic gather),
    # with edge_embed_1's weight pre-split so no (N,34)/(E,69) concats occur.
    one_hot_src = nxt()
    one_hot_dst = nxt()
    dist = nxt()                # (E, 1)
    w1_sp = nxt()
    w1_sq = nxt()
    w1_dp = nxt()
    w1_dq = nxt()
    w1_d = nxt()
    b1 = nxt()
    w2 = nxt()
    b2 = nxt()
    w3 = nxt()
    b3 = nxt()

    src_feat = jnp.dot(one_hot_src,
                       jnp.dot(p_feat, w1_sp, preferred_element_type=f32)
                       + jnp.dot(q_feat, w1_sq, preferred_element_type=f32),
                       preferred_element_type=f32)
    dst_feat = jnp.dot(one_hot_dst,
                       jnp.dot(p_feat, w1_dp, preferred_element_type=f32)
                       + jnp.dot(q_feat, w1_dq, preferred_element_type=f32),
                       preferred_element_type=f32)
    h1 = _leaky(src_feat + dst_feat + dist * w1_d + b1, NEG_SLOPE_OUT)      # (E, 25)
    h2 = _leaky(jnp.dot(h1, w2, preferred_element_type=f32) + b2, NEG_SLOPE_OUT)  # (E, 10)

    # global_add_pool with edge_embed_3 folded in: (sum_e h2) @ w3 + E*b3
    pooled = jnp.sum(h2, axis=0, keepdims=True)                             # (1, 10)
    out_ref[...] = jnp.dot(pooled, w3, preferred_element_type=f32) + n_int_edges * b3


# ----------------------------------------------------------------------------
# glue: densify sparse graphs (PyG add_self_loops with fill_value='mean')
# ----------------------------------------------------------------------------
def to_dense(edge_index, edge_attr, n):
    src, dst = edge_index[0], edge_index[1]
    adj = jnp.zeros((n, n), jnp.float32).at[dst, src].set(1.0)
    ea = jnp.zeros((n, n), jnp.float32).at[dst, src].set(edge_attr.astype(jnp.float32))
    # per-node mean over INCOMING edges (PyG fill_value='mean' scatters over edge_index[1])
    deg = jnp.sum(adj, axis=1, keepdims=True)
    mean_in = jnp.sum(ea, axis=1, keepdims=True) / jnp.maximum(deg, 1.0)
    eye = jnp.eye(n, dtype=jnp.float32)
    adj = adj * (1.0 - eye) + eye
    ea = ea * (1.0 - eye) + eye * mean_in
    return adj, ea


def residue_kp_gnn_forward(params, x, pb_ei, pb_ea, sp_ei, sp_ea, int_ei, int_dist):
    n = x.shape[0]
    n_edges = int_ei.shape[1]
    # keeps the in-kernel (N*N, H*C) reshapes layout-trivial on TPU.
    # TODO(synk): pad N to a multiple of 8 (masked dummy nodes) for general inputs.
    assert n % 8 == 0, "node count must be a multiple of 8 for this kernel"

    adj_pb, e_pb = to_dense(pb_ei, pb_ea, n)
    adj_sp, e_sp = to_dense(sp_ei, sp_ea, n)

    one_hot_src = jax.nn.one_hot(int_ei[0], n, dtype=jnp.float32)   # (E, N)
    one_hot_dst = jax.nn.one_hot(int_ei[1], n, dtype=jnp.float32)   # (E, N)
    dist = int_dist.astype(jnp.float32)[:, None]                    # (E, 1)

    flat = [x.astype(jnp.float32), adj_pb, e_pb, adj_sp, e_sp]
    kcfgs = []
    for name, heads, out_ch, use_pb in LAYER_CFGS:
        p = params[name]
        hc = heads * out_ch
        # block-diagonal attention matrix (HC, H) and head mask (H, HC)
        att_bd = (p["att"][:, :, None]
                  * jnp.eye(heads, dtype=jnp.float32)[:, None, :]).reshape(hc, heads)
        hmask = jnp.repeat(jnp.eye(heads, dtype=jnp.float32), out_ch, axis=1)
        flat += [p["w_l"], p["b_l"], p["w_r"], p["b_r"], p["w_e"], att_bd,
                 p["bias"], hmask]
        kcfgs.append((heads, out_ch, use_pb))

    # split edge_embed_1 weight rows: [src_pep(30), src_prot(4), dst_pep(30), dst_prot(4), dist(1)]
    w1 = params["ee1_w"]
    a, b = PEP_OUT, PROT_OUT
    flat += [one_hot_src, one_hot_dst, dist,
             w1[0:a], w1[a:a + b], w1[a + b:2 * a + b], w1[2 * a + b:2 * (a + b)],
             w1[2 * (a + b):],
             params["ee1_b"], params["ee2_w"], params["ee2_b"],
             params["ee3_w"], params["ee3_b"]]

    vmem = pl.BlockSpec(memory_space=pltpu.MemorySpace.VMEM)
    kern = functools.partial(fused_forward_kernel, cfgs=tuple(kcfgs),
                             n_int_edges=n_edges)
    return pl.pallas_call(
        kern,
        out_shape=jax.ShapeDtypeStruct((1, 1), jnp.float32),
        in_specs=[vmem] * len(flat),
        out_specs=vmem,
        compiler_params=pltpu.CompilerParams(vmem_limit_bytes=32 * 1024 * 1024),
    )(*flat)


# ----------------------------------------------------------------------------
# deterministic parameter init (synthetic, no checkpoint)
# ----------------------------------------------------------------------------
def init_gat_params(key, f_in, heads, out_ch):
    ks = jax.random.split(key, 4)
    hc = heads * out_ch
    s = 0.1
    return dict(
        w_l=jax.random.normal(ks[0], (f_in, hc), jnp.float32) * s,
        b_l=jnp.zeros((1, hc), jnp.float32),
        w_r=jax.random.normal(ks[1], (f_in, hc), jnp.float32) * s,
        b_r=jnp.zeros((1, hc), jnp.float32),
        w_e=jax.random.normal(ks[2], (1, hc), jnp.float32) * s,     # lin_edge (edge_dim=1)
        att=jax.random.normal(ks[3], (heads, out_ch), jnp.float32) * s,
        bias=jnp.zeros((1, hc), jnp.float32),
    )


if __name__ == "__main__":
    key = jax.random.PRNGKey(0)
    k = jax.random.split(key, 12)

    N = 16            # residues (nodes); protein A = 0..7, protein B = 8..15
    INPUT_DIM = 16    # residue feature dim

    x = jax.random.normal(k[0], (N, INPUT_DIM), jnp.float32)

    # peptide-bond edges: consecutive residues within each protein, both directions
    pb_src, pb_dst = [], []
    for base in (0, 8):
        for i in range(base, base + 7):
            pb_src += [i, i + 1]
            pb_dst += [i + 1, i]
    pb_ei = jnp.array([pb_src, pb_dst], jnp.int32)                     # (2, 28)
    pb_ea = jax.random.uniform(k[1], (pb_ei.shape[1],), jnp.float32, 0.5, 2.0)

    # same-protein edges: residues within distance 3 in sequence, same protein
    sp_src, sp_dst = [], []
    for base in (0, 8):
        for i in range(base, base + 8):
            for j in range(base, base + 8):
                if i != j and abs(i - j) <= 3:
                    sp_src.append(i)
                    sp_dst.append(j)
    sp_ei = jnp.array([sp_src, sp_dst], jnp.int32)                     # (2, 72)
    sp_ea = jax.random.uniform(k[2], (sp_ei.shape[1],), jnp.float32, 1.0, 8.0)

    # interface edges (cross-protein pairs) with distances < 5 A
    int_pairs = [(0, 8), (1, 9), (2, 10), (3, 11), (6, 14), (7, 15),
                 (8, 0), (9, 1), (14, 6), (15, 7)]
    int_ei = jnp.array(list(zip(*int_pairs)), jnp.int32)               # (2, 10)
    int_dist = jax.random.uniform(k[3], (int_ei.shape[1],), jnp.float32, 2.0, 5.0)

    params = {
        "pep1": init_gat_params(k[4], INPUT_DIM, heads=2, out_ch=5),
        "pep2": init_gat_params(k[5], 10, heads=3, out_ch=5),
        "pep3": init_gat_params(k[6], 15, heads=3, out_ch=10),
        "prot1": init_gat_params(k[7], 30, heads=2, out_ch=2),
        "prot2": init_gat_params(k[8], 4, heads=2, out_ch=2),
        "ee1_w": jax.random.normal(k[9], (2 * (PROT_OUT + PEP_OUT) + 1, 25), jnp.float32) * 0.1,
        "ee1_b": jnp.zeros((1, 25), jnp.float32),
        "ee2_w": jax.random.normal(k[10], (25, 10), jnp.float32) * 0.1,
        "ee2_b": jnp.zeros((1, 10), jnp.float32),
        "ee3_w": jax.random.normal(k[11], (10, 1), jnp.float32) * 0.1,
        "ee3_b": jnp.zeros((1, 1), jnp.float32),
    }

    affinity = jax.jit(residue_kp_gnn_forward)(
        params, x, pb_ei, pb_ea, sp_ei, sp_ea, int_ei, int_dist)
    jax.block_until_ready(affinity)
    assert affinity.shape == (1, 1) and bool(jnp.isfinite(affinity).all())
    print("KERNEL_OK")
</pallas_src>

<mosaic_0001>
module attributes {stable_mosaic.version = 11 : i64} {
  func.func @fused_forward_kernel(%arg0: memref<16x16xf32, #tpu.memory_space<vmem>>, %arg1: memref<16x16xf32, #tpu.memory_space<vmem>>, %arg2: memref<16x16xf32, #tpu.memory_space<vmem>>, %arg3: memref<16x16xf32, #tpu.memory_space<vmem>>, %arg4: memref<16x16xf32, #tpu.memory_space<vmem>>, %arg5: memref<16x10xf32, #tpu.memory_space<vmem>>, %arg6: memref<1x10xf32, #tpu.memory_space<vmem>>, %arg7: memref<16x10xf32, #tpu.memory_space<vmem>>, %arg8: memref<1x10xf32, #tpu.memory_space<vmem>>, %arg9: memref<1x10xf32, #tpu.memory_space<vmem>>, %arg10: memref<10x2xf32, #tpu.memory_space<vmem>>, %arg11: memref<1x10xf32, #tpu.memory_space<vmem>>, %arg12: memref<2x10xf32, #tpu.memory_space<vmem>>, %arg13: memref<10x15xf32, #tpu.memory_space<vmem>>, %arg14: memref<1x15xf32, #tpu.memory_space<vmem>>, %arg15: memref<10x15xf32, #tpu.memory_space<vmem>>, %arg16: memref<1x15xf32, #tpu.memory_space<vmem>>, %arg17: memref<1x15xf32, #tpu.memory_space<vmem>>, %arg18: memref<15x3xf32, #tpu.memory_space<vmem>>, %arg19: memref<1x15xf32, #tpu.memory_space<vmem>>, %arg20: memref<3x15xf32, #tpu.memory_space<vmem>>, %arg21: memref<15x30xf32, #tpu.memory_space<vmem>>, %arg22: memref<1x30xf32, #tpu.memory_space<vmem>>, %arg23: memref<15x30xf32, #tpu.memory_space<vmem>>, %arg24: memref<1x30xf32, #tpu.memory_space<vmem>>, %arg25: memref<1x30xf32, #tpu.memory_space<vmem>>, %arg26: memref<30x3xf32, #tpu.memory_space<vmem>>, %arg27: memref<1x30xf32, #tpu.memory_space<vmem>>, %arg28: memref<3x30xf32, #tpu.memory_space<vmem>>, %arg29: memref<30x4xf32, #tpu.memory_space<vmem>>, %arg30: memref<1x4xf32, #tpu.memory_space<vmem>>, %arg31: memref<30x4xf32, #tpu.memory_space<vmem>>, %arg32: memref<1x4xf32, #tpu.memory_space<vmem>>, %arg33: memref<1x4xf32, #tpu.memory_space<vmem>>, %arg34: memref<4x2xf32, #tpu.memory_space<vmem>>, %arg35: memref<1x4xf32, #tpu.memory_space<vmem>>, %arg36: memref<2x4xf32, #tpu.memory_space<vmem>>, %arg37: memref<4x4xf32, #tpu.memory_space<vmem>>, %arg38: memref<1x4xf32, #tpu.memory_space<vmem>>, %arg39: memref<4x4xf32, #tpu.memory_space<vmem>>, %arg40: memref<1x4xf32, #tpu.memory_space<vmem>>, %arg41: memref<1x4xf32, #tpu.memory_space<vmem>>, %arg42: memref<4x2xf32, #tpu.memory_space<vmem>>, %arg43: memref<1x4xf32, #tpu.memory_space<vmem>>, %arg44: memref<2x4xf32, #tpu.memory_space<vmem>>, %arg45: memref<10x16xf32, #tpu.memory_space<vmem>>, %arg46: memref<10x16xf32, #tpu.memory_space<vmem>>, %arg47: memref<10x1xf32, #tpu.memory_space<vmem>>, %arg48: memref<30x25xf32, #tpu.memory_space<vmem>>, %arg49: memref<4x25xf32, #tpu.memory_space<vmem>>, %arg50: memref<30x25xf32, #tpu.memory_space<vmem>>, %arg51: memref<4x25xf32, #tpu.memory_space<vmem>>, %arg52: memref<1x25xf32, #tpu.memory_space<vmem>>, %arg53: memref<1x25xf32, #tpu.memory_space<vmem>>, %arg54: memref<25x10xf32, #tpu.memory_space<vmem>>, %arg55: memref<1x10xf32, #tpu.memory_space<vmem>>, %arg56: memref<10x1xf32, #tpu.memory_space<vmem>>, %arg57: memref<1x1xf32, #tpu.memory_space<vmem>>, %arg58: memref<1x1xf32, #tpu.memory_space<vmem>>) attributes {dimension_semantics = [], scalar_prefetch = 0 : i64, scratch_operands = 0 : i64, tpu.core_type = #tpu.core_type<tc>} {
    %c0 = arith.constant 0 : index
    %c0_0 = arith.constant 0 : index
    %0 = vector.load %arg0[%c0, %c0_0] : memref<16x16xf32, #tpu.memory_space<vmem>>, vector<16x16xf32>
    %c0_1 = arith.constant 0 : index
    %c0_2 = arith.constant 0 : index
    %1 = vector.load %arg1[%c0_1, %c0_2] : memref<16x16xf32, #tpu.memory_space<vmem>>, vector<16x16xf32>
    %c0_3 = arith.constant 0 : index
    %c0_4 = arith.constant 0 : index
    %2 = vector.load %arg2[%c0_3, %c0_4] : memref<16x16xf32, #tpu.memory_space<vmem>>, vector<16x16xf32>
    %c0_5 = arith.constant 0 : index
    %c0_6 = arith.constant 0 : index
    %3 = vector.load %arg3[%c0_5, %c0_6] : memref<16x16xf32, #tpu.memory_space<vmem>>, vector<16x16xf32>
    %c0_7 = arith.constant 0 : index
    %c0_8 = arith.constant 0 : index
    %4 = vector.load %arg4[%c0_7, %c0_8] : memref<16x16xf32, #tpu.memory_space<vmem>>, vector<16x16xf32>
    %c0_9 = arith.constant 0 : index
    %c0_10 = arith.constant 0 : index
    %5 = vector.load %arg5[%c0_9, %c0_10] : memref<16x10xf32, #tpu.memory_space<vmem>>, vector<16x10xf32>
    %c0_11 = arith.constant 0 : index
    %c0_12 = arith.constant 0 : index
    %6 = vector.load %arg6[%c0_11, %c0_12] : memref<1x10xf32, #tpu.memory_space<vmem>>, vector<1x10xf32>
    %c0_13 = arith.constant 0 : index
    %c0_14 = arith.constant 0 : index
    %7 = vector.load %arg7[%c0_13, %c0_14] : memref<16x10xf32, #tpu.memory_space<vmem>>, vector<16x10xf32>
    %c0_15 = arith.constant 0 : index
    %c0_16 = arith.constant 0 : index
    %8 = vector.load %arg8[%c0_15, %c0_16] : memref<1x10xf32, #tpu.memory_space<vmem>>, vector<1x10xf32>
    %c0_17 = arith.constant 0 : index
    %c0_18 = arith.constant 0 : index
    %9 = vector.load %arg9[%c0_17, %c0_18] : memref<1x10xf32, #tpu.memory_space<vmem>>, vector<1x10xf32>
    %c0_19 = arith.constant 0 : index
    %c0_20 = arith.constant 0 : index
    %10 = vector.load %arg10[%c0_19, %c0_20] : memref<10x2xf32, #tpu.memory_space<vmem>>, vector<10x2xf32>
    %c0_21 = arith.constant 0 : index
    %c0_22 = arith.constant 0 : index
    %11 = vector.load %arg11[%c0_21, %c0_22] : memref<1x10xf32, #tpu.memory_space<vmem>>, vector<1x10xf32>
    %c0_23 = arith.constant 0 : index
    %c0_24 = arith.constant 0 : index
    %12 = vector.load %arg12[%c0_23, %c0_24] : memref<2x10xf32, #tpu.memory_space<vmem>>, vector<2x10xf32>
    %cst = arith.constant dense<0.000000e+00> : vector<16x10xf32>
    %13 = tpu.matmul %0, %5, %cst {dimension_numbers = #tpu.dot_dimension_numbers<[1], [0], [0], [1], [0, 0, 1, 1], [], []>} : vector<16x16xf32>, vector<16x10xf32>, vector<16x10xf32> -> vector<16x10xf32>
    %14 = vector.broadcast %6 : vector<1x10xf32> to vector<16x10xf32>
    %15 = arith.addf %13, %14 : vector<16x10xf32>
    %cst_25 = arith.constant dense<0.000000e+00> : vector<16x10xf32>
    %16 = tpu.matmul %0, %7, %cst_25 {dimension_numbers = #tpu.dot_dimension_numbers<[1], [0], [0], [1], [0, 0, 1, 1], [], []>} : vector<16x16xf32>, vector<16x10xf32>, vector<16x10xf32> -> vector<16x10xf32>
    %17 = vector.broadcast %8 : vector<1x10xf32> to vector<16x10xf32>
    %18 = arith.addf %16, %17 : vector<16x10xf32>
    %19 = vector.shape_cast %15 : vector<16x10xf32> to vector<1x16x10xf32>
    %20 = vector.shape_cast %18 : vector<16x10xf32> to vector<16x1x10xf32>
    %21 = vector.broadcast %19 : vector<1x16x10xf32> to vector<16x16x10xf32>
    %22 = vector.broadcast %20 : vector<16x1x10xf32> to vector<16x16x10xf32>
    %23 = arith.addf %21, %22 : vector<16x16x10xf32>
    %24 = vector.shape_cast %2 : vector<16x16xf32> to vector<16x16x1xf32>
    %25 = vector.shape_cast %9 : vector<1x10xf32> to vector<1x1x10xf32>
    %26 = vector.broadcast %24 : vector<16x16x1xf32> to vector<16x16x10xf32>
    %27 = vector.broadcast %25 : vector<1x1x10xf32> to vector<16x16x10xf32>
    %28 = arith.mulf %26, %27 : vector<16x16x10xf32>
    %29 = arith.addf %23, %28 : vector<16x16x10xf32>
    %cst_26 = arith.constant 0.000000e+00 : f32
    %30 = vector.broadcast %cst_26 : f32 to vector<16x16x10xf32>
    %31 = arith.cmpf ogt, %29, %30 : vector<16x16x10xf32>
    %cst_27 = arith.constant 2.000000e-01 : f32
    %32 = vector.broadcast %cst_27 : f32 to vector<16x16x10xf32>
    %33 = arith.mulf %32, %29 : vector<16x16x10xf32>
    %34 = arith.select %31, %29, %33 : vector<16x16x10xi1>, vector<16x16x10xf32>
    %35 = vector.shape_cast %34 : vector<16x16x10xf32> to vector<256x10xf32>
    %cst_28 = arith.constant dense<0.000000e+00> : vector<256x2xf32>
    %36 = tpu.matmul %35, %10, %cst_28 {dimension_numbers = #tpu.dot_dimension_numbers<[1], [0], [0], [1], [0, 0, 1, 1], [], []>} : vector<256x10xf32>, vector<10x2xf32>, vector<256x2xf32> -> vector<256x2xf32>
    %37 = vector.shape_cast %36 : vector<256x2xf32> to vector<16x16x2xf32>
    %38 = vector.shape_cast %1 : vector<16x16xf32> to vector<16x16x1xf32>
    %cst_29 = arith.constant 0.000000e+00 : f32
    %39 = vector.broadcast %cst_29 : f32 to vector<16x16x1xf32>
    %40 = arith.cmpf ogt, %38, %39 : vector<16x16x1xf32>
    %cst_30 = arith.constant -1.000000e+30 : f32
    %41 = vector.shape_cast %40 : vector<16x16x1xi1> to vector<16x16x1xi1>
    %42 = vector.broadcast %41 : vector<16x16x1xi1> to vector<16x16x2xi1>
    %43 = vector.broadcast %cst_30 : f32 to vector<16x16x2xf32>
    %44 = arith.select %42, %37, %43 : vector<16x16x2xi1>, vector<16x16x2xf32>
    %cst_31 = arith.constant dense<0xFF800000> : vector<16x2xf32>
    %45 = vector.multi_reduction <maximumf>, %44, %cst_31 [1] : vector<16x16x2xf32> to vector<16x2xf32>
    %46 = vector.shape_cast %45 : vector<16x2xf32> to vector<16x1x2xf32>
    %47 = vector.broadcast %46 : vector<16x1x2xf32> to vector<16x16x2xf32>
    %48 = arith.subf %44, %47 : vector<16x16x2xf32>
    %49 = math.exp %48 : vector<16x16x2xf32>
    %cst_32 = arith.constant dense<0.000000e+00> : vector<16x2xf32>
    %50 = vector.multi_reduction <add>, %49, %cst_32 [1] : vector<16x16x2xf32> to vector<16x2xf32>
    %51 = vector.shape_cast %50 : vector<16x2xf32> to vector<16x1x2xf32>
    %52 = tpu.reciprocal %51 {approx = true} : vector<16x1x2xf32> -> vector<16x1x2xf32>
    %53 = vector.broadcast %52 : vector<16x1x2xf32> to vector<16x16x2xf32>
    %54 = arith.mulf %49, %53 : vector<16x16x2xf32>
    %55 = vector.shape_cast %54 : vector<16x16x2xf32> to vector<256x2xf32>
    %cst_33 = arith.constant dense<0.000000e+00> : vector<256x10xf32>
    %56 = tpu.matmul %55, %12, %cst_33 {dimension_numbers = #tpu.dot_dimension_numbers<[1], [0], [0], [1], [0, 0, 1, 1], [], []>} : vector<256x2xf32>, vector<2x10xf32>, vector<256x10xf32> -> vector<256x10xf32>
    %57 = vector.shape_cast %56 : vector<256x10xf32> to vector<16x16x10xf32>
    %58 = vector.shape_cast %15 : vector<16x10xf32> to vector<1x16x10xf32>
    %59 = vector.broadcast %58 : vector<1x16x10xf32> to vector<16x16x10xf32>
    %60 = arith.mulf %57, %59 : vector<16x16x10xf32>
    %cst_34 = arith.constant dense<0.000000e+00> : vector<16x10xf32>
    %61 = vector.multi_reduction <add>, %60, %cst_34 [1] : vector<16x16x10xf32> to vector<16x10xf32>
    %62 = vector.broadcast %11 : vector<1x10xf32> to vector<16x10xf32>
    %63 = arith.addf %61, %62 : vector<16x10xf32>
    %cst_35 = arith.constant 0.000000e+00 : f32
    %64 = vector.broadcast %cst_35 : f32 to vector<16x10xf32>
    %65 = arith.cmpf ogt, %63, %64 : vector<16x10xf32>
    %cst_36 = arith.constant 0.00999999977 : f32
    %66 = vector.broadcast %cst_36 : f32 to vector<16x10xf32>
    %67 = arith.mulf %66, %63 : vector<16x10xf32>
    %68 = arith.select %65, %63, %67 : vector<16x10xi1>, vector<16x10xf32>
    %c0_37 = arith.constant 0 : index
    %c0_38 = arith.constant 0 : index
    %69 = vector.load %arg13[%c0_37, %c0_38] : memref<10x15xf32, #tpu.memory_space<vmem>>, vector<10x15xf32>
    %c0_39 = arith.constant 0 : index
    %c0_40 = arith.constant 0 : index
    %70 = vector.load %arg14[%c0_39, %c0_40] : memref<1x15xf32, #tpu.memory_space<vmem>>, vector<1x15xf32>
    %c0_41 = arith.constant 0 : index
    %c0_42 = arith.constant 0 : index
    %71 = vector.load %arg15[%c0_41, %c0_42] : memref<10x15xf32, #tpu.memory_space<vmem>>, vector<10x15xf32>
    %c0_43 = arith.constant 0 : index
    %c0_44 = arith.constant 0 : index
    %72 = vector.load %arg16[%c0_43, %c0_44] : memref<1x15xf32, #tpu.memory_space<vmem>>, vector<1x15xf32>
    %c0_45 = arith.constant 0 : index
    %c0_46 = arith.constant 0 : index
    %73 = vector.load %arg17[%c0_45, %c0_46] : memref<1x15xf32, #tpu.memory_space<vmem>>, vector<1x15xf32>
    %c0_47 = arith.constant 0 : index
    %c0_48 = arith.constant 0 : index
    %74 = vector.load %arg18[%c0_47, %c0_48] : memref<15x3xf32, #tpu.memory_space<vmem>>, vector<15x3xf32>
    %c0_49 = arith.constant 0 : index
    %c0_50 = arith.constant 0 : index
    %75 = vector.load %arg19[%c0_49, %c0_50] : memref<1x15xf32, #tpu.memory_space<vmem>>, vector<1x15xf32>
    %c0_51 = arith.constant 0 : index
    %c0_52 = arith.constant 0 : index
    %76 = vector.load %arg20[%c0_51, %c0_52] : memref<3x15xf32, #tpu.memory_space<vmem>>, vector<3x15xf32>
    %cst_53 = arith.constant dense<0.000000e+00> : vector<16x15xf32>
    %77 = tpu.matmul %68, %69, %cst_53 {dimension_numbers = #tpu.dot_dimension_numbers<[1], [0], [0], [1], [0, 0, 1, 1], [], []>} : vector<16x10xf32>, vector<10x15xf32>, vector<16x15xf32> -> vector<16x15xf32>
    %78 = vector.broadcast %70 : vector<1x15xf32> to vector<16x15xf32>
    %79 = arith.addf %77, %78 : vector<16x15xf32>
    %cst_54 = arith.constant dense<0.000000e+00> : vector<16x15xf32>
    %80 = tpu.matmul %68, %71, %cst_54 {dimension_numbers = #tpu.dot_dimension_numbers<[1], [0], [0], [1], [0, 0, 1, 1], [], []>} : vector<16x10xf32>, vector<10x15xf32>, vector<16x15xf32> -> vector<16x15xf32>
    %81 = vector.broadcast %72 : vector<1x15xf32> to vector<16x15xf32>
    %82 = arith.addf %80, %81 : vector<16x15xf32>
    %83 = vector.shape_cast %79 : vector<16x15xf32> to vector<1x16x15xf32>
    %84 = vector.shape_cast %82 : vector<16x15xf32> to vector<16x1x15xf32>
    %85 = vector.broadcast %83 : vector<1x16x15xf32> to vector<16x16x15xf32>
    %86 = vector.broadcast %84 : vector<16x1x15xf32> to vector<16x16x15xf32>
    %87 = arith.addf %85, %86 : vector<16x16x15xf32>
    %88 = vector.shape_cast %2 : vector<16x16xf32> to vector<16x16x1xf32>
    %89 = vector.shape_cast %73 : vector<1x15xf32> to vector<1x1x15xf32>
    %90 = vector.broadcast %88 : vector<16x16x1xf32> to vector<16x16x15xf32>
    %91 = vector.broadcast %89 : vector<1x1x15xf32> to vector<16x16x15xf32>
    %92 = arith.mulf %90, %91 : vector<16x16x15xf32>
    %93 = arith.addf %87, %92 : vector<16x16x15xf32>
    %cst_55 = arith.constant 0.000000e+00 : f32
    %94 = vector.broadcast %cst_55 : f32 to vector<16x16x15xf32>
    %95 = arith.cmpf ogt, %93, %94 : vector<16x16x15xf32>
    %cst_56 = arith.constant 2.000000e-01 : f32
    %96 = vector.broadcast %cst_56 : f32 to vector<16x16x15xf32>
    %97 = arith.mulf %96, %93 : vector<16x16x15xf32>
    %98 = arith.select %95, %93, %97 : vector<16x16x15xi1>, vector<16x16x15xf32>
    %99 = vector.shape_cast %98 : vector<16x16x15xf32> to vector<256x15xf32>
    %cst_57 = arith.constant dense<0.000000e+00> : vector<256x3xf32>
    %100 = tpu.matmul %99, %74, %cst_57 {dimension_numbers = #tpu.dot_dimension_numbers<[1], [0], [0], [1], [0, 0, 1, 1], [], []>} : vector<256x15xf32>, vector<15x3xf32>, vector<256x3xf32> -> vector<256x3xf32>
    %101 = vector.shape_cast %100 : vector<256x3xf32> to vector<16x16x3xf32>
    %102 = vector.shape_cast %1 : vector<16x16xf32> to vector<16x16x1xf32>
    %cst_58 = arith.constant 0.000000e+00 : f32
    %103 = vector.broadcast %cst_58 : f32 to vector<16x16x1xf32>
    %104 = arith.cmpf ogt, %102, %103 : vector<16x16x1xf32>
    %cst_59 = arith.constant -1.000000e+30 : f32
    %105 = vector.shape_cast %104 : vector<16x16x1xi1> to vector<16x16x1xi1>
    %106 = vector.broadcast %105 : vector<16x16x1xi1> to vector<16x16x3xi1>
    %107 = vector.broadcast %cst_59 : f32 to vector<16x16x3xf32>
    %108 = arith.select %106, %101, %107 : vector<16x16x3xi1>, vector<16x16x3xf32>
    %cst_60 = arith.constant dense<0xFF800000> : vector<16x3xf32>
    %109 = vector.multi_reduction <maximumf>, %108, %cst_60 [1] : vector<16x16x3xf32> to vector<16x3xf32>
    %110 = vector.shape_cast %109 : vector<16x3xf32> to vector<16x1x3xf32>
    %111 = vector.broadcast %110 : vector<16x1x3xf32> to vector<16x16x3xf32>
    %112 = arith.subf %108, %111 : vector<16x16x3xf32>
    %113 = math.exp %112 : vector<16x16x3xf32>
    %cst_61 = arith.constant dense<0.000000e+00> : vector<16x3xf32>
    %114 = vector.multi_reduction <add>, %113, %cst_61 [1] : vector<16x16x3xf32> to vector<16x3xf32>
    %115 = vector.shape_cast %114 : vector<16x3xf32> to vector<16x1x3xf32>
    %116 = tpu.reciprocal %115 {approx = true} : vector<16x1x3xf32> -> vector<16x1x3xf32>
    %117 = vector.broadcast %116 : vector<16x1x3xf32> to vector<16x16x3xf32>
    %118 = arith.mulf %113, %117 : vector<16x16x3xf32>
    %119 = vector.shape_cast %118 : vector<16x16x3xf32> to vector<256x3xf32>
    %cst_62 = arith.constant dense<0.000000e+00> : vector<256x15xf32>
    %120 = tpu.matmul %119, %76, %cst_62 {dimension_numbers = #tpu.dot_dimension_numbers<[1], [0], [0], [1], [0, 0, 1, 1], [], []>} : vector<256x3xf32>, vector<3x15xf32>, vector<256x15xf32> -> vector<256x15xf32>
    %121 = vector.shape_cast %120 : vector<256x15xf32> to vector<16x16x15xf32>
    %122 = vector.shape_cast %79 : vector<16x15xf32> to vector<1x16x15xf32>
    %123 = vector.broadcast %122 : vector<1x16x15xf32> to vector<16x16x15xf32>
    %124 = arith.mulf %121, %123 : vector<16x16x15xf32>
    %cst_63 = arith.constant dense<0.000000e+00> : vector<16x15xf32>
    %125 = vector.multi_reduction <add>, %124, %cst_63 [1] : vector<16x16x15xf32> to vector<16x15xf32>
    %126 = vector.broadcast %75 : vector<1x15xf32> to vector<16x15xf32>
    %127 = arith.addf %125, %126 : vector<16x15xf32>
    %cst_64 = arith.constant 0.000000e+00 : f32
    %128 = vector.broadcast %cst_64 : f32 to vector<16x15xf32>
    %129 = arith.cmpf ogt, %127, %128 : vector<16x15xf32>
    %cst_65 = arith.constant 0.00999999977 : f32
    %130 = vector.broadcast %cst_65 : f32 to vector<16x15xf32>
    %131 = arith.mulf %130, %127 : vector<16x15xf32>
    %132 = arith.select %129, %127, %131 : vector<16x15xi1>, vector<16x15xf32>
    %c0_66 = arith.constant 0 : index
    %c0_67 = arith.constant 0 : index
    %133 = vector.load %arg21[%c0_66, %c0_67] : memref<15x30xf32, #tpu.memory_space<vmem>>, vector<15x30xf32>
    %c0_68 = arith.constant 0 : index
    %c0_69 = arith.constant 0 : index
    %134 = vector.load %arg22[%c0_68, %c0_69] : memref<1x30xf32, #tpu.memory_space<vmem>>, vector<1x30xf32>
    %c0_70 = arith.constant 0 : index
    %c0_71 = arith.constant 0 : index
    %135 = vector.load %arg23[%c0_70, %c0_71] : memref<15x30xf32, #tpu.memory_space<vmem>>, vector<15x30xf32>
    %c0_72 = arith.constant 0 : index
    %c0_73 = arith.constant 0 : index
    %136 = vector.load %arg24[%c0_72, %c0_73] : memref<1x30xf32, #tpu.memory_space<vmem>>, vector<1x30xf32>
    %c0_74 = arith.constant 0 : index
    %c0_75 = arith.constant 0 : index
    %137 = vector.load %arg25[%c0_74, %c0_75] : memref<1x30xf32, #tpu.memory_space<vmem>>, vector<1x30xf32>
    %c0_76 = arith.constant 0 : index
    %c0_77 = arith.constant 0 : index
    %138 = vector.load %arg26[%c0_76, %c0_77] : memref<30x3xf32, #tpu.memory_space<vmem>>, vector<30x3xf32>
    %c0_78 = arith.constant 0 : index
    %c0_79 = arith.constant 0 : index
    %139 = vector.load %arg27[%c0_78, %c0_79] : memref<1x30xf32, #tpu.memory_space<vmem>>, vector<1x30xf32>
    %c0_80 = arith.constant 0 : index
    %c0_81 = arith.constant 0 : index
    %140 = vector.load %arg28[%c0_80, %c0_81] : memref<3x30xf32, #tpu.memory_space<vmem>>, vector<3x30xf32>
    %cst_82 = arith.constant dense<0.000000e+00> : vector<16x30xf32>
    %141 = tpu.matmul %132, %133, %cst_82 {dimension_numbers = #tpu.dot_dimension_numbers<[1], [0], [0], [1], [0, 0, 1, 1], [], []>} : vector<16x15xf32>, vector<15x30xf32>, vector<16x30xf32> -> vector<16x30xf32>
    %142 = vector.broadcast %134 : vector<1x30xf32> to vector<16x30xf32>
    %143 = arith.addf %141, %142 : vector<16x30xf32>
    %cst_83 = arith.constant dense<0.000000e+00> : vector<16x30xf32>
    %144 = tpu.matmul %132, %135, %cst_83 {dimension_numbers = #tpu.dot_dimension_numbers<[1], [0], [0], [1], [0, 0, 1, 1], [], []>} : vector<16x15xf32>, vector<15x30xf32>, vector<16x30xf32> -> vector<16x30xf32>
    %145 = vector.broadcast %136 : vector<1x30xf32> to vector<16x30xf32>
    %146 = arith.addf %144, %145 : vector<16x30xf32>
    %147 = vector.shape_cast %143 : vector<16x30xf32> to vector<1x16x30xf32>
    %148 = vector.shape_cast %146 : vector<16x30xf32> to vector<16x1x30xf32>
    %149 = vector.broadcast %147 : vector<1x16x30xf32> to vector<16x16x30xf32>
    %150 = vector.broadcast %148 : vector<16x1x30xf32> to vector<16x16x30xf32>
    %151 = arith.addf %149, %150 : vector<16x16x30xf32>
    %152 = vector.shape_cast %2 : vector<16x16xf32> to vector<16x16x1xf32>
    %153 = vector.shape_cast %137 : vector<1x30xf32> to vector<1x1x30xf32>
    %154 = vector.broadcast %152 : vector<16x16x1xf32> to vector<16x16x30xf32>
    %155 = vector.broadcast %153 : vector<1x1x30xf32> to vector<16x16x30xf32>
    %156 = arith.mulf %154, %155 : vector<16x16x30xf32>
    %157 = arith.addf %151, %156 : vector<16x16x30xf32>
    %cst_84 = arith.constant 0.000000e+00 : f32
    %158 = vector.broadcast %cst_84 : f32 to vector<16x16x30xf32>
    %159 = arith.cmpf ogt, %157, %158 : vector<16x16x30xf32>
    %cst_85 = arith.constant 2.000000e-01 : f32
    %160 = vector.broadcast %cst_85 : f32 to vector<16x16x30xf32>
    %161 = arith.mulf %160, %157 : vector<16x16x30xf32>
    %162 = arith.select %159, %157, %161 : vector<16x16x30xi1>, vector<16x16x30xf32>
    %163 = vector.shape_cast %162 : vector<16x16x30xf32> to vector<256x30xf32>
    %cst_86 = arith.constant dense<0.000000e+00> : vector<256x3xf32>
    %164 = tpu.matmul %163, %138, %cst_86 {dimension_numbers = #tpu.dot_dimension_numbers<[1], [0], [0], [1], [0, 0, 1, 1], [], []>} : vector<256x30xf32>, vector<30x3xf32>, vector<256x3xf32> -> vector<256x3xf32>
    %165 = vector.shape_cast %164 : vector<256x3xf32> to vector<16x16x3xf32>
    %166 = vector.shape_cast %1 : vector<16x16xf32> to vector<16x16x1xf32>
    %cst_87 = arith.constant 0.000000e+00 : f32
    %167 = vector.broadcast %cst_87 : f32 to vector<16x16x1xf32>
    %168 = arith.cmpf ogt, %166, %167 : vector<16x16x1xf32>
    %cst_88 = arith.constant -1.000000e+30 : f32
    %169 = vector.shape_cast %168 : vector<16x16x1xi1> to vector<16x16x1xi1>
    %170 = vector.broadcast %169 : vector<16x16x1xi1> to vector<16x16x3xi1>
    %171 = vector.broadcast %cst_88 : f32 to vector<16x16x3xf32>
    %172 = arith.select %170, %165, %171 : vector<16x16x3xi1>, vector<16x16x3xf32>
    %cst_89 = arith.constant dense<0xFF800000> : vector<16x3xf32>
    %173 = vector.multi_reduction <maximumf>, %172, %cst_89 [1] : vector<16x16x3xf32> to vector<16x3xf32>
    %174 = vector.shape_cast %173 : vector<16x3xf32> to vector<16x1x3xf32>
    %175 = vector.broadcast %174 : vector<16x1x3xf32> to vector<16x16x3xf32>
    %176 = arith.subf %172, %175 : vector<16x16x3xf32>
    %177 = math.exp %176 : vector<16x16x3xf32>
    %cst_90 = arith.constant dense<0.000000e+00> : vector<16x3xf32>
    %178 = vector.multi_reduction <add>, %177, %cst_90 [1] : vector<16x16x3xf32> to vector<16x3xf32>
    %179 = vector.shape_cast %178 : vector<16x3xf32> to vector<16x1x3xf32>
    %180 = tpu.reciprocal %179 {approx = true} : vector<16x1x3xf32> -> vector<16x1x3xf32>
    %181 = vector.broadcast %180 : vector<16x1x3xf32> to vector<16x16x3xf32>
    %182 = arith.mulf %177, %181 : vector<16x16x3xf32>
    %183 = vector.shape_cast %182 : vector<16x16x3xf32> to vector<256x3xf32>
    %cst_91 = arith.constant dense<0.000000e+00> : vector<256x30xf32>
    %184 = tpu.matmul %183, %140, %cst_91 {dimension_numbers = #tpu.dot_dimension_numbers<[1], [0], [0], [1], [0, 0, 1, 1], [], []>} : vector<256x3xf32>, vector<3x30xf32>, vector<256x30xf32> -> vector<256x30xf32>
    %185 = vector.shape_cast %184 : vector<256x30xf32> to vector<16x16x30xf32>
    %186 = vector.shape_cast %143 : vector<16x30xf32> to vector<1x16x30xf32>
    %187 = vector.broadcast %186 : vector<1x16x30xf32> to vector<16x16x30xf32>
    %188 = arith.mulf %185, %187 : vector<16x16x30xf32>
    %cst_92 = arith.constant dense<0.000000e+00> : vector<16x30xf32>
    %189 = vector.multi_reduction <add>, %188, %cst_92 [1] : vector<16x16x30xf32> to vector<16x30xf32>
    %190 = vector.broadcast %139 : vector<1x30xf32> to vector<16x30xf32>
    %191 = arith.addf %189, %190 : vector<16x30xf32>
    %cst_93 = arith.constant 0.000000e+00 : f32
    %192 = vector.broadcast %cst_93 : f32 to vector<16x30xf32>
    %193 = arith.cmpf ogt, %191, %192 : vector<16x30xf32>
    %cst_94 = arith.constant 0.00999999977 : f32
    %194 = vector.broadcast %cst_94 : f32 to vector<16x30xf32>
    %195 = arith.mulf %194, %191 : vector<16x30xf32>
    %196 = arith.select %193, %191, %195 : vector<16x30xi1>, vector<16x30xf32>
    %c0_95 = arith.constant 0 : index
    %c0_96 = arith.constant 0 : index
    %197 = vector.load %arg29[%c0_95, %c0_96] : memref<30x4xf32, #tpu.memory_space<vmem>>, vector<30x4xf32>
    %c0_97 = arith.constant 0 : index
    %c0_98 = arith.constant 0 : index
    %198 = vector.load %arg30[%c0_97, %c0_98] : memref<1x4xf32, #tpu.memory_space<vmem>>, vector<1x4xf32>
    %c0_99 = arith.constant 0 : index
    %c0_100 = arith.constant 0 : index
    %199 = vector.load %arg31[%c0_99, %c0_100] : memref<30x4xf32, #tpu.memory_space<vmem>>, vector<30x4xf32>
    %c0_101 = arith.constant 0 : index
    %c0_102 = arith.constant 0 : index
    %200 = vector.load %arg32[%c0_101, %c0_102] : memref<1x4xf32, #tpu.memory_space<vmem>>, vector<1x4xf32>
    %c0_103 = arith.constant 0 : index
    %c0_104 = arith.constant 0 : index
    %201 = vector.load %arg33[%c0_103, %c0_104] : memref<1x4xf32, #tpu.memory_space<vmem>>, vector<1x4xf32>
    %c0_105 = arith.constant 0 : index
    %c0_106 = arith.constant 0 : index
    %202 = vector.load %arg34[%c0_105, %c0_106] : memref<4x2xf32, #tpu.memory_space<vmem>>, vector<4x2xf32>
    %c0_107 = arith.constant 0 : index
    %c0_108 = arith.constant 0 : index
    %203 = vector.load %arg35[%c0_107, %c0_108] : memref<1x4xf32, #tpu.memory_space<vmem>>, vector<1x4xf32>
    %c0_109 = arith.constant 0 : index
    %c0_110 = arith.constant 0 : index
    %204 = vector.load %arg36[%c0_109, %c0_110] : memref<2x4xf32, #tpu.memory_space<vmem>>, vector<2x4xf32>
    %cst_111 = arith.constant dense<0.000000e+00> : vector<16x4xf32>
    %205 = tpu.matmul %196, %197, %cst_111 {dimension_numbers = #tpu.dot_dimension_numbers<[1], [0], [0], [1], [0, 0, 1, 1], [], []>} : vector<16x30xf32>, vector<30x4xf32>, vector<16x4xf32> -> vector<16x4xf32>
    %206 = vector.broadcast %198 : vector<1x4xf32> to vector<16x4xf32>
    %207 = arith.addf %205, %206 : vector<16x4xf32>
    %cst_112 = arith.constant dense<0.000000e+00> : vector<16x4xf32>
    %208 = tpu.matmul %196, %199, %cst_112 {dimension_numbers = #tpu.dot_dimension_numbers<[1], [0], [0], [1], [0, 0, 1, 1], [], []>} : vector<16x30xf32>, vector<30x4xf32>, vector<16x4xf32> -> vector<16x4xf32>
    %209 = vector.broadcast %200 : vector<1x4xf32> to vector<16x4xf32>
    %210 = arith.addf %208, %209 : vector<16x4xf32>
    %211 = vector.shape_cast %207 : vector<16x4xf32> to vector<1x16x4xf32>
    %212 = vector.shape_cast %210 : vector<16x4xf32> to vector<16x1x4xf32>
    %213 = vector.broadcast %211 : vector<1x16x4xf32> to vector<16x16x4xf32>
    %214 = vector.broadcast %212 : vector<16x1x4xf32> to vector<16x16x4xf32>
    %215 = arith.addf %213, %214 : vector<16x16x4xf32>
    %216 = vector.shape_cast %4 : vector<16x16xf32> to vector<16x16x1xf32>
    %217 = vector.shape_cast %201 : vector<1x4xf32> to vector<1x1x4xf32>
    %218 = vector.broadcast %216 : vector<16x16x1xf32> to vector<16x16x4xf32>
    %219 = vector.broadcast %217 : vector<1x1x4xf32> to vector<16x16x4xf32>
    %220 = arith.mulf %218, %219 : vector<16x16x4xf32>
    %221 = arith.addf %215, %220 : vector<16x16x4xf32>
    %cst_113 = arith.constant 0.000000e+00 : f32
    %222 = vector.broadcast %cst_113 : f32 to vector<16x16x4xf32>
    %223 = arith.cmpf ogt, %221, %222 : vector<16x16x4xf32>
    %cst_114 = arith.constant 2.000000e-01 : f32
    %224 = vector.broadcast %cst_114 : f32 to vector<16x16x4xf32>
    %225 = arith.mulf %224, %221 : vector<16x16x4xf32>
    %226 = arith.select %223, %221, %225 : vector<16x16x4xi1>, vector<16x16x4xf32>
    %227 = vector.shape_cast %226 : vector<16x16x4xf32> to vector<256x4xf32>
    %cst_115 = arith.constant dense<0.000000e+00> : vector<256x2xf32>
    %228 = tpu.matmul %227, %202, %cst_115 {dimension_numbers = #tpu.dot_dimension_numbers<[1], [0], [0], [1], [0, 0, 1, 1], [], []>} : vector<256x4xf32>, vector<4x2xf32>, vector<256x2xf32> -> vector<256x2xf32>
    %229 = vector.shape_cast %228 : vector<256x2xf32> to vector<16x16x2xf32>
    %230 = vector.shape_cast %3 : vector<16x16xf32> to vector<16x16x1xf32>
    %cst_116 = arith.constant 0.000000e+00 : f32
    %231 = vector.broadcast %cst_116 : f32 to vector<16x16x1xf32>
    %232 = arith.cmpf ogt, %230, %231 : vector<16x16x1xf32>
    %cst_117 = arith.constant -1.000000e+30 : f32
    %233 = vector.shape_cast %232 : vector<16x16x1xi1> to vector<16x16x1xi1>
    %234 = vector.broadcast %233 : vector<16x16x1xi1> to vector<16x16x2xi1>
    %235 = vector.broadcast %cst_117 : f32 to vector<16x16x2xf32>
    %236 = arith.select %234, %229, %235 : vector<16x16x2xi1>, vector<16x16x2xf32>
    %cst_118 = arith.constant dense<0xFF800000> : vector<16x2xf32>
    %237 = vector.multi_reduction <maximumf>, %236, %cst_118 [1] : vector<16x16x2xf32> to vector<16x2xf32>
    %238 = vector.shape_cast %237 : vector<16x2xf32> to vector<16x1x2xf32>
    %239 = vector.broadcast %238 : vector<16x1x2xf32> to vector<16x16x2xf32>
    %240 = arith.subf %236, %239 : vector<16x16x2xf32>
    %241 = math.exp %240 : vector<16x16x2xf32>
    %cst_119 = arith.constant dense<0.000000e+00> : vector<16x2xf32>
    %242 = vector.multi_reduction <add>, %241, %cst_119 [1] : vector<16x16x2xf32> to vector<16x2xf32>
    %243 = vector.shape_cast %242 : vector<16x2xf32> to vector<16x1x2xf32>
    %244 = tpu.reciprocal %243 {approx = true} : vector<16x1x2xf32> -> vector<16x1x2xf32>
    %245 = vector.broadcast %244 : vector<16x1x2xf32> to vector<16x16x2xf32>
    %246 = arith.mulf %241, %245 : vector<16x16x2xf32>
    %247 = vector.shape_cast %246 : vector<16x16x2xf32> to vector<256x2xf32>
    %cst_120 = arith.constant dense<0.000000e+00> : vector<256x4xf32>
    %248 = tpu.matmul %247, %204, %cst_120 {dimension_numbers = #tpu.dot_dimension_numbers<[1], [0], [0], [1], [0, 0, 1, 1], [], []>} : vector<256x2xf32>, vector<2x4xf32>, vector<256x4xf32> -> vector<256x4xf32>
    %249 = vector.shape_cast %248 : vector<256x4xf32> to vector<16x16x4xf32>
    %250 = vector.shape_cast %207 : vector<16x4xf32> to vector<1x16x4xf32>
    %251 = vector.broadcast %250 : vector<1x16x4xf32> to vector<16x16x4xf32>
    %252 = arith.mulf %249, %251 : vector<16x16x4xf32>
    %cst_121 = arith.constant dense<0.000000e+00> : vector<16x4xf32>
    %253 = vector.multi_reduction <add>, %252, %cst_121 [1] : vector<16x16x4xf32> to vector<16x4xf32>
    %254 = vector.broadcast %203 : vector<1x4xf32> to vector<16x4xf32>
    %255 = arith.addf %253, %254 : vector<16x4xf32>
    %cst_122 = arith.constant 0.000000e+00 : f32
    %256 = vector.broadcast %cst_122 : f32 to vector<16x4xf32>
    %257 = arith.cmpf ogt, %255, %256 : vector<16x4xf32>
    %cst_123 = arith.constant 0.00999999977 : f32
    %258 = vector.broadcast %cst_123 : f32 to vector<16x4xf32>
    %259 = arith.mulf %258, %255 : vector<16x4xf32>
    %260 = arith.select %257, %255, %259 : vector<16x4xi1>, vector<16x4xf32>
    %c0_124 = arith.constant 0 : index
    %c0_125 = arith.constant 0 : index
    %261 = vector.load %arg37[%c0_124, %c0_125] : memref<4x4xf32, #tpu.memory_space<vmem>>, vector<4x4xf32>
    %c0_126 = arith.constant 0 : index
    %c0_127 = arith.constant 0 : index
    %262 = vector.load %arg38[%c0_126, %c0_127] : memref<1x4xf32, #tpu.memory_space<vmem>>, vector<1x4xf32>
    %c0_128 = arith.constant 0 : index
    %c0_129 = arith.constant 0 : index
    %263 = vector.load %arg39[%c0_128, %c0_129] : memref<4x4xf32, #tpu.memory_space<vmem>>, vector<4x4xf32>
    %c0_130 = arith.constant 0 : index
    %c0_131 = arith.constant 0 : index
    %264 = vector.load %arg40[%c0_130, %c0_131] : memref<1x4xf32, #tpu.memory_space<vmem>>, vector<1x4xf32>
    %c0_132 = arith.constant 0 : index
    %c0_133 = arith.constant 0 : index
    %265 = vector.load %arg41[%c0_132, %c0_133] : memref<1x4xf32, #tpu.memory_space<vmem>>, vector<1x4xf32>
    %c0_134 = arith.constant 0 : index
    %c0_135 = arith.constant 0 : index
    %266 = vector.load %arg42[%c0_134, %c0_135] : memref<4x2xf32, #tpu.memory_space<vmem>>, vector<4x2xf32>
    %c0_136 = arith.constant 0 : index
    %c0_137 = arith.constant 0 : index
    %267 = vector.load %arg43[%c0_136, %c0_137] : memref<1x4xf32, #tpu.memory_space<vmem>>, vector<1x4xf32>
    %c0_138 = arith.constant 0 : index
    %c0_139 = arith.constant 0 : index
    %268 = vector.load %arg44[%c0_138, %c0_139] : memref<2x4xf32, #tpu.memory_space<vmem>>, vector<2x4xf32>
    %cst_140 = arith.constant dense<0.000000e+00> : vector<16x4xf32>
    %269 = tpu.matmul %260, %261, %cst_140 {dimension_numbers = #tpu.dot_dimension_numbers<[1], [0], [0], [1], [0, 0, 1, 1], [], []>} : vector<16x4xf32>, vector<4x4xf32>, vector<16x4xf32> -> vector<16x4xf32>
    %270 = vector.broadcast %262 : vector<1x4xf32> to vector<16x4xf32>
    %271 = arith.addf %269, %270 : vector<16x4xf32>
    %cst_141 = arith.constant dense<0.000000e+00> : vector<16x4xf32>
    %272 = tpu.matmul %260, %263, %cst_141 {dimension_numbers = #tpu.dot_dimension_numbers<[1], [0], [0], [1], [0, 0, 1, 1], [], []>} : vector<16x4xf32>, vector<4x4xf32>, vector<16x4xf32> -> vector<16x4xf32>
    %273 = vector.broadcast %264 : vector<1x4xf32> to vector<16x4xf32>
    %274 = arith.addf %272, %273 : vector<16x4xf32>
    %275 = vector.shape_cast %271 : vector<16x4xf32> to vector<1x16x4xf32>
    %276 = vector.shape_cast %274 : vector<16x4xf32> to vector<16x1x4xf32>
    %277 = vector.broadcast %275 : vector<1x16x4xf32> to vector<16x16x4xf32>
    %278 = vector.broadcast %276 : vector<16x1x4xf32> to vector<16x16x4xf32>
    %279 = arith.addf %277, %278 : vector<16x16x4xf32>
    %280 = vector.shape_cast %4 : vector<16x16xf32> to vector<16x16x1xf32>
    %281 = vector.shape_cast %265 : vector<1x4xf32> to vector<1x1x4xf32>
    %282 = vector.broadcast %280 : vector<16x16x1xf32> to vector<16x16x4xf32>
    %283 = vector.broadcast %281 : vector<1x1x4xf32> to vector<16x16x4xf32>
    %284 = arith.mulf %282, %283 : vector<16x16x4xf32>
    %285 = arith.addf %279, %284 : vector<16x16x4xf32>
    %cst_142 = arith.constant 0.000000e+00 : f32
    %286 = vector.broadcast %cst_142 : f32 to vector<16x16x4xf32>
    %287 = arith.cmpf ogt, %285, %286 : vector<16x16x4xf32>
    %cst_143 = arith.constant 2.000000e-01 : f32
    %288 = vector.broadcast %cst_143 : f32 to vector<16x16x4xf32>
    %289 = arith.mulf %288, %285 : vector<16x16x4xf32>
    %290 = arith.select %287, %285, %289 : vector<16x16x4xi1>, vector<16x16x4xf32>
    %291 = vector.shape_cast %290 : vector<16x16x4xf32> to vector<256x4xf32>
    %cst_144 = arith.constant dense<0.000000e+00> : vector<256x2xf32>
    %292 = tpu.matmul %291, %266, %cst_144 {dimension_numbers = #tpu.dot_dimension_numbers<[1], [0], [0], [1], [0, 0, 1, 1], [], []>} : vector<256x4xf32>, vector<4x2xf32>, vector<256x2xf32> -> vector<256x2xf32>
    %293 = vector.shape_cast %292 : vector<256x2xf32> to vector<16x16x2xf32>
    %294 = vector.shape_cast %3 : vector<16x16xf32> to vector<16x16x1xf32>
    %cst_145 = arith.constant 0.000000e+00 : f32
    %295 = vector.broadcast %cst_145 : f32 to vector<16x16x1xf32>
    %296 = arith.cmpf ogt, %294, %295 : vector<16x16x1xf32>
    %cst_146 = arith.constant -1.000000e+30 : f32
    %297 = vector.shape_cast %296 : vector<16x16x1xi1> to vector<16x16x1xi1>
    %298 = vector.broadcast %297 : vector<16x16x1xi1> to vector<16x16x2xi1>
    %299 = vector.broadcast %cst_146 : f32 to vector<16x16x2xf32>
    %300 = arith.select %298, %293, %299 : vector<16x16x2xi1>, vector<16x16x2xf32>
    %cst_147 = arith.constant dense<0xFF800000> : vector<16x2xf32>
    %301 = vector.multi_reduction <maximumf>, %300, %cst_147 [1] : vector<16x16x2xf32> to vector<16x2xf32>
    %302 = vector.shape_cast %301 : vector<16x2xf32> to vector<16x1x2xf32>
    %303 = vector.broadcast %302 : vector<16x1x2xf32> to vector<16x16x2xf32>
    %304 = arith.subf %300, %303 : vector<16x16x2xf32>
    %305 = math.exp %304 : vector<16x16x2xf32>
    %cst_148 = arith.constant dense<0.000000e+00> : vector<16x2xf32>
    %306 = vector.multi_reduction <add>, %305, %cst_148 [1] : vector<16x16x2xf32> to vector<16x2xf32>
    %307 = vector.shape_cast %306 : vector<16x2xf32> to vector<16x1x2xf32>
    %308 = tpu.reciprocal %307 {approx = true} : vector<16x1x2xf32> -> vector<16x1x2xf32>
    %309 = vector.broadcast %308 : vector<16x1x2xf32> to vector<16x16x2xf32>
    %310 = arith.mulf %305, %309 : vector<16x16x2xf32>
    %311 = vector.shape_cast %310 : vector<16x16x2xf32> to vector<256x2xf32>
    %cst_149 = arith.constant dense<0.000000e+00> : vector<256x4xf32>
    %312 = tpu.matmul %311, %268, %cst_149 {dimension_numbers = #tpu.dot_dimension_numbers<[1], [0], [0], [1], [0, 0, 1, 1], [], []>} : vector<256x2xf32>, vector<2x4xf32>, vector<256x4xf32> -> vector<256x4xf32>
    %313 = vector.shape_cast %312 : vector<256x4xf32> to vector<16x16x4xf32>
    %314 = vector.shape_cast %271 : vector<16x4xf32> to vector<1x16x4xf32>
    %315 = vector.broadcast %314 : vector<1x16x4xf32> to vector<16x16x4xf32>
    %316 = arith.mulf %313, %315 : vector<16x16x4xf32>
    %cst_150 = arith.constant dense<0.000000e+00> : vector<16x4xf32>
    %317 = vector.multi_reduction <add>, %316, %cst_150 [1] : vector<16x16x4xf32> to vector<16x4xf32>
    %318 = vector.broadcast %267 : vector<1x4xf32> to vector<16x4xf32>
    %319 = arith.addf %317, %318 : vector<16x4xf32>
    %cst_151 = arith.constant 0.000000e+00 : f32
    %320 = vector.broadcast %cst_151 : f32 to vector<16x4xf32>
    %321 = arith.cmpf ogt, %319, %320 : vector<16x4xf32>
    %cst_152 = arith.constant 0.00999999977 : f32
    %322 = vector.broadcast %cst_152 : f32 to vector<16x4xf32>
    %323 = arith.mulf %322, %319 : vector<16x4xf32>
    %324 = arith.select %321, %319, %323 : vector<16x4xi1>, vector<16x4xf32>
    %c0_153 = arith.constant 0 : index
    %c0_154 = arith.constant 0 : index
    %325 = vector.load %arg45[%c0_153, %c0_154] : memref<10x16xf32, #tpu.memory_space<vmem>>, vector<10x16xf32>
    %c0_155 = arith.constant 0 : index
    %c0_156 = arith.constant 0 : index
    %326 = vector.load %arg46[%c0_155, %c0_156] : memref<10x16xf32, #tpu.memory_space<vmem>>, vector<10x16xf32>
    %c0_157 = arith.constant 0 : index
    %c0_158 = arith.constant 0 : index
    %327 = vector.load %arg47[%c0_157, %c0_158] : memref<10x1xf32, #tpu.memory_space<vmem>>, vector<10x1xf32>
    %c0_159 = arith.constant 0 : index
    %c0_160 = arith.constant 0 : index
    %328 = vector.load %arg48[%c0_159, %c0_160] : memref<30x25xf32, #tpu.memory_space<vmem>>, vector<30x25xf32>
    %c0_161 = arith.constant 0 : index
    %c0_162 = arith.constant 0 : index
    %329 = vector.load %arg49[%c0_161, %c0_162] : memref<4x25xf32, #tpu.memory_space<vmem>>, vector<4x25xf32>
    %c0_163 = arith.constant 0 : index
    %c0_164 = arith.constant 0 : index
    %330 = vector.load %arg50[%c0_163, %c0_164] : memref<30x25xf32, #tpu.memory_space<vmem>>, vector<30x25xf32>
    %c0_165 = arith.constant 0 : index
    %c0_166 = arith.constant 0 : index
    %331 = vector.load %arg51[%c0_165, %c0_166] : memref<4x25xf32, #tpu.memory_space<vmem>>, vector<4x25xf32>
    %c0_167 = arith.constant 0 : index
    %c0_168 = arith.constant 0 : index
    %332 = vector.load %arg52[%c0_167, %c0_168] : memref<1x25xf32, #tpu.memory_space<vmem>>, vector<1x25xf32>
    %c0_169 = arith.constant 0 : index
    %c0_170 = arith.constant 0 : index
    %333 = vector.load %arg53[%c0_169, %c0_170] : memref<1x25xf32, #tpu.memory_space<vmem>>, vector<1x25xf32>
    %c0_171 = arith.constant 0 : index
    %c0_172 = arith.constant 0 : index
    %334 = vector.load %arg54[%c0_171, %c0_172] : memref<25x10xf32, #tpu.memory_space<vmem>>, vector<25x10xf32>
    %c0_173 = arith.constant 0 : index
    %c0_174 = arith.constant 0 : index
    %335 = vector.load %arg55[%c0_173, %c0_174] : memref<1x10xf32, #tpu.memory_space<vmem>>, vector<1x10xf32>
    %c0_175 = arith.constant 0 : index
    %c0_176 = arith.constant 0 : index
    %336 = vector.load %arg56[%c0_175, %c0_176] : memref<10x1xf32, #tpu.memory_space<vmem>>, vector<10x1xf32>
    %c0_177 = arith.constant 0 : index
    %c0_178 = arith.constant 0 : index
    %337 = vector.load %arg57[%c0_177, %c0_178] : memref<1x1xf32, #tpu.memory_space<vmem>>, vector<1x1xf32>
    %cst_179 = arith.constant dense<0.000000e+00> : vector<16x25xf32>
    %338 = tpu.matmul %196, %328, %cst_179 {dimension_numbers = #tpu.dot_dimension_numbers<[1], [0], [0], [1], [0, 0, 1, 1], [], []>} : vector<16x30xf32>, vector<30x25xf32>, vector<16x25xf32> -> vector<16x25xf32>
    %cst_180 = arith.constant dense<0.000000e+00> : vector<16x25xf32>
    %339 = tpu.matmul %324, %329, %cst_180 {dimension_numbers = #tpu.dot_dimension_numbers<[1], [0], [0], [1], [0, 0, 1, 1], [], []>} : vector<16x4xf32>, vector<4x25xf32>, vector<16x25xf32> -> vector<16x25xf32>
    %340 = arith.addf %338, %339 : vector<16x25xf32>
    %cst_181 = arith.constant dense<0.000000e+00> : vector<10x25xf32>
    %341 = tpu.matmul %325, %340, %cst_181 {dimension_numbers = #tpu.dot_dimension_numbers<[1], [0], [0], [1], [0, 0, 1, 1], [], []>} : vector<10x16xf32>, vector<16x25xf32>, vector<10x25xf32> -> vector<10x25xf32>
    %cst_182 = arith.constant dense<0.000000e+00> : vector<16x25xf32>
    %342 = tpu.matmul %196, %330, %cst_182 {dimension_numbers = #tpu.dot_dimension_numbers<[1], [0], [0], [1], [0, 0, 1, 1], [], []>} : vector<16x30xf32>, vector<30x25xf32>, vector<16x25xf32> -> vector<16x25xf32>
    %cst_183 = arith.constant dense<0.000000e+00> : vector<16x25xf32>
    %343 = tpu.matmul %324, %331, %cst_183 {dimension_numbers = #tpu.dot_dimension_numbers<[1], [0], [0], [1], [0, 0, 1, 1], [], []>} : vector<16x4xf32>, vector<4x25xf32>, vector<16x25xf32> -> vector<16x25xf32>
    %344 = arith.addf %342, %343 : vector<16x25xf32>
    %cst_184 = arith.constant dense<0.000000e+00> : vector<10x25xf32>
    %345 = tpu.matmul %326, %344, %cst_184 {dimension_numbers = #tpu.dot_dimension_numbers<[1], [0], [0], [1], [0, 0, 1, 1], [], []>} : vector<10x16xf32>, vector<16x25xf32>, vector<10x25xf32> -> vector<10x25xf32>
    %346 = arith.addf %341, %345 : vector<10x25xf32>
    %347 = vector.broadcast %327 : vector<10x1xf32> to vector<10x25xf32>
    %348 = vector.broadcast %332 : vector<1x25xf32> to vector<10x25xf32>
    %349 = arith.mulf %347, %348 : vector<10x25xf32>
    %350 = arith.addf %346, %349 : vector<10x25xf32>
    %351 = vector.broadcast %333 : vector<1x25xf32> to vector<10x25xf32>
    %352 = arith.addf %350, %351 : vector<10x25xf32>
    %cst_185 = arith.constant 0.000000e+00 : f32
    %353 = vector.broadcast %cst_185 : f32 to vector<10x25xf32>
    %354 = arith.cmpf ogt, %352, %353 : vector<10x25xf32>
    %cst_186 = arith.constant 0.00999999977 : f32
    %355 = vector.broadcast %cst_186 : f32 to vector<10x25xf32>
    %356 = arith.mulf %355, %352 : vector<10x25xf32>
    %357 = arith.select %354, %352, %356 : vector<10x25xi1>, vector<10x25xf32>
    %cst_187 = arith.constant dense<0.000000e+00> : vector<10x10xf32>
    %358 = tpu.matmul %357, %334, %cst_187 {dimension_numbers = #tpu.dot_dimension_numbers<[1], [0], [0], [1], [0, 0, 1, 1], [], []>} : vector<10x25xf32>, vector<25x10xf32>, vector<10x10xf32> -> vector<10x10xf32>
    %359 = vector.broadcast %335 : vector<1x10xf32> to vector<10x10xf32>
    %360 = arith.addf %358, %359 : vector<10x10xf32>
    %cst_188 = arith.constant 0.000000e+00 : f32
    %361 = vector.broadcast %cst_188 : f32 to vector<10x10xf32>
    %362 = arith.cmpf ogt, %360, %361 : vector<10x10xf32>
    %cst_189 = arith.constant 0.00999999977 : f32
    %363 = vector.broadcast %cst_189 : f32 to vector<10x10xf32>
    %364 = arith.mulf %363, %360 : vector<10x10xf32>
    %365 = arith.select %362, %360, %364 : vector<10x10xi1>, vector<10x10xf32>
    %cst_190 = arith.constant dense<0.000000e+00> : vector<10xf32>
    %366 = vector.multi_reduction <add>, %365, %cst_190 [0] : vector<10x10xf32> to vector<10xf32>
    %367 = vector.shape_cast %366 : vector<10xf32> to vector<1x10xf32>
    %cst_191 = arith.constant dense<0.000000e+00> : vector<1x1xf32>
    %368 = tpu.matmul %367, %336, %cst_191 {dimension_numbers = #tpu.dot_dimension_numbers<[1], [0], [0], [1], [0, 0, 1, 1], [], []>} : vector<1x10xf32>, vector<10x1xf32>, vector<1x1xf32> -> vector<1x1xf32>
    %cst_192 = arith.constant 1.000000e+01 : f32
    %369 = vector.broadcast %cst_192 : f32 to vector<1x1xf32>
    %370 = arith.mulf %369, %337 : vector<1x1xf32>
    %371 = arith.addf %368, %370 : vector<1x1xf32>
    %c0_193 = arith.constant 0 : index
    %c0_194 = arith.constant 0 : index
    %372 = vector.load %arg58[%c0_193, %c0_194] : memref<1x1xf32, #tpu.memory_space<vmem>>, vector<1x1xf32>
    tpu.vector_store %arg58[%c0_193, %c0_194], %371 {strides = array<i32>} : memref<1x1xf32, #tpu.memory_space<vmem>>, vector<1x1xf32>,
    return
  }
}

</mosaic_0001>

<bundles_post_ra>
// kernel: residue_kp_gnn_forward.1
= control target key start
LH: loop header
LB: loop body
LE: loop exit
PB: predicated region body
PF: predicated region fallthrough
CT: control target
= control target key end

     0   :  { %s13805_s6 = smov 1   ;;  %s13806_s10 = smov 2   ;;  %s18506_s0 = inlined_call_operand.smem [shape: u32[59], index: -1, kind: input, shape index: {}] }
   0x1   :  { %s13876_s5 = sld [smem:[%s18506_s0]]   ;;  %s13807_s14 = smov 3  }
   0x2   :  { %s13881_s9 = sld [smem:[%s18506_s0 + %s13805_s6]]   ;;  %s13808_s18 = smov 4  }
   0x3   :  { %s13886_s13 = sld [smem:[%s18506_s0 + %s13806_s10]]   ;;  %s13809_s22 = smov 5  }
   0x4   :  { %s13891_s17 = sld [smem:[%s18506_s0 + %s13807_s14]]   ;;  %s13810_s26 = smov 6  }
   0x5   :  { %s13896_s21 = sld [smem:[%s18506_s0 + %s13808_s18]]   ;;  %s13811_s30 = smov 7  }
   0x6   :  { %s13901_s25 = sld [smem:[%s18506_s0 + %s13809_s22]]   ;;  %s13812_s4 = smov 8  }
   0x7   :  { %s13906_s29 = sld [smem:[%s18506_s0 + %s13810_s26]]   ;;  %s13813_s10 = smov 9  }
   0x8   :  { %s13911_s3 = sld [smem:[%s18506_s0 + %s13811_s30]]   ;;  %s13814_s15 = smov 10  }
   0x9   :  { %s13916_s8 = sld [smem:[%s18506_s0 + %s13812_s4]]   ;;  %s13815_s20 = smov 11  }
   0xa   :  { %18807 = sst [smem:[#allocation6_spill]] %s13891_s17  ;;  %s13816_s26 = smov 12  }
   0xb   :  { %18808 = sst [smem:[#allocation7_spill]] %s13896_s21  ;;  %s13817_s1 = smov 13  }
   0xc   :  { %s13921_s14 = sld [smem:[%s18506_s0 + %s13813_s10]]   ;;  %s13818_s7 = smov 14  }
   0xd   :  { %s13926_s19 = sld [smem:[%s18506_s0 + %s13814_s15]]   ;;  %s13819_s15 = smov 15  }
   0xe   :  { %s13931_s24 = sld [smem:[%s18506_s0 + %s13815_s20]]   ;;  %s13820_s22 = smov 16  }
   0xf   :  { %s13936_s30 = sld [smem:[%s18506_s0 + %s13816_s26]]   ;;  %s13821_s28 = smov 17  }
  0x10   :  { %s13941_s6 = sld [smem:[%s18506_s0 + %s13817_s1]]   ;;  %s13862_s10 = smov 58  }
  0x11   :  { %s13946_s12 = sld [smem:[%s18506_s0 + %s13818_s7]]   ;;  %s13822_s7 = smov 18  }
  0x12   :  { %s13951_s20 = sld [smem:[%s18506_s0 + %s13819_s15]]   ;;  %s13823_s15 = smov 19  }
  0x13   :  { %s13956_s27 = sld [smem:[%s18506_s0 + %s13820_s22]]   ;;  %s13824_s22 = smov 20  }
  0x14   :  { %s13961_s4 = sld [smem:[%s18506_s0 + %s13821_s28]]   ;;  %s13825_s28 = smov 21  }
  0x15   :  { %s13966_s17 = sld [smem:[%s18506_s0 + %s13822_s7]]   ;;  %s13826_s7 = smov 22  }
  0x16   :  { %s13971_s21 = sld [smem:[%s18506_s0 + %s13823_s15]]   ;;  %s13827_s15 = smov 23  }
  0x17   :  { %18809 = sst [smem:[#allocation8_spill]] %s13946_s12 }
  0x18   :  { %s13976_s12 = sld [smem:[%s18506_s0 + %s13824_s22]]   ;;  %s13828_s22 = smov 24  }
  0x19   :  { %18810 = sst [smem:[#allocation9_spill]] %s13956_s27 }
  0x1a   :  { %18811 = sst [smem:[#allocation10_spill]] %s13961_s4 }
  0x1b   :  { %s13981_s4 = sld [smem:[%s18506_s0 + %s13825_s28]]   ;;  %s13829_s28 = smov 25  }
  0x1c   :  { %18812 = sst [smem:[#allocation11_spill]] %s13971_s21 }
  0x1d   :  { %s13986_s27 = sld [smem:[%s18506_s0 + %s13826_s7]]   ;;  %s13830_s7 = smov 26  }
  0x1e   :  { %18813 = sst [smem:[#allocation12_spill]] %s13976_s12 }
  0x1f   :  { %s13991_s21 = sld [smem:[%s18506_s0 + %s13827_s15]]   ;;  %s13831_s15 = smov 27  }
  0x20   :  { %s13996_s12 = sld [smem:[%s18506_s0 + %s13828_s22]]   ;;  %s13832_s22 = smov 28  }
  0x21   :  { %18814 = sst [smem:[#allocation13_spill]] %s13981_s4 }
  0x22   :  { %s14001_s4 = sld [smem:[%s18506_s0 + %s13829_s28]]   ;;  %s13833_s28 = smov 29  }
  0x23   :  { %18815 = sst [smem:[#allocation14_spill]] %s13986_s27 }
  0x24   :  { %s14006_s27 = sld [smem:[%s18506_s0 + %s13830_s7]]   ;;  %s13834_s7 = smov 30  }
  0x25   :  { %18816 = sst [smem:[#allocation15_spill]] %s13991_s21 }
  0x26   :  { %18817 = sst [smem:[#allocation16_spill]] %s13996_s12 }
  0x27   :  { %s14011_s21 = sld [smem:[%s18506_s0 + %s13831_s15]]   ;;  %s13835_s15 = smov 31  }
  0x28   :  { %18818 = sst [smem:[#allocation17_spill]] %s14001_s4 }
  0x29   :  { %s14016_s12 = sld [smem:[%s18506_s0 + %s13832_s22]]   ;;  %s13836_s22 = smov 32  }
  0x2a   :  { %18819 = sst [smem:[#allocation18_spill]] %s14006_s27 }
  0x2b   :  { %s14021_s4 = sld [smem:[%s18506_s0 + %s13833_s28]]   ;;  %s13837_s28 = smov 33  }
  0x2c   :  { %s14026_s27 = sld [smem:[%s18506_s0 + %s13834_s7]]   ;;  %s13838_s7 = smov 34  }
  0x2d   :  { %18820 = sst [smem:[#allocation19_spill]] %s14011_s21 }
  0x2e   :  { %s14031_s21 = sld [smem:[%s18506_s0 + %s13835_s15]]   ;;  %s13839_s15 = smov 35  }
  0x2f   :  { %18821 = sst [smem:[#allocation20_spill]] %s14016_s12 }
  0x30   :  { %s14036_s12 = sld [smem:[%s18506_s0 + %s13836_s22]]   ;;  %s13840_s22 = smov 36  }
  0x31   :  { %18822 = sst [smem:[#allocation21_spill]] %s14021_s4 }
  0x32   :  { %18823 = sst [smem:[#allocation22_spill]] %s14026_s27 }
  0x33   :  { %s14041_s4 = sld [smem:[%s18506_s0 + %s13837_s28]]   ;;  %s13841_s28 = smov 37  }
  0x34   :  { %18824 = sst [smem:[#allocation23_spill]] %s14031_s21 }
  0x35   :  { %s14046_s27 = sld [smem:[%s18506_s0 + %s13838_s7]]   ;;  %s13842_s7 = smov 38  }
  0x36   :  { %18825 = sst [smem:[#allocation24_spill]] %s14036_s12 }
  0x37   :  { %s14051_s21 = sld [smem:[%s18506_s0 + %s13839_s15]]   ;;  %s13843_s15 = smov 39  }
  0x38   :  { %s14056_s12 = sld [smem:[%s18506_s0 + %s13840_s22]]   ;;  %s13844_s22 = smov 40  }
  0x39   :  { %18826 = sst [smem:[#allocation25_spill]] %s14041_s4 }
  0x3a   :  { %s14061_s4 = sld [smem:[%s18506_s0 + %s13841_s28]]   ;;  %s13845_s28 = smov 41  }
  0x3b   :  { %18827 = sst [smem:[#allocation26_spill]] %s14046_s27 }
  0x3c   :  { %s14066_s27 = sld [smem:[%s18506_s0 + %s13842_s7]]   ;;  %s13846_s7 = smov 42  }
  0x3d   :  { %18828 = sst [smem:[#allocation27_spill]] %s14051_s21 }
  0x3e   :  { %18829 = sst [smem:[#allocation28_spill]] %s14056_s12 }
  0x3f   :  { %s14071_s21 = sld [smem:[%s18506_s0 + %s13843_s15]]   ;;  %s13847_s15 = smov 43  }
  0x40   :  { %18830 = sst [smem:[#allocation29_spill]] %s14061_s4 }
  0x41   :  { %s14076_s12 = sld [smem:[%s18506_s0 + %s13844_s22]]   ;;  %s13848_s22 = smov 44  }
  0x42   :  { %18831 = sst [smem:[#allocation30_spill]] %s14066_s27 }
  0x43   :  { %s14081_s4 = sld [smem:[%s18506_s0 + %s13845_s28]]   ;;  %s13849_s28 = smov 45  }
  0x44   :  { %s14086_s27 = sld [smem:[%s18506_s0 + %s13846_s7]]   ;;  %s13850_s7 = smov 46  }
  0x45   :  { %18832 = sst [smem:[#allocation31_spill]] %s14071_s21 }
  0x46   :  { %s14091_s21 = sld [smem:[%s18506_s0 + %s13847_s15]]   ;;  %s13851_s15 = smov 47  }
  0x47   :  { %18833 = sst [smem:[#allocation32_spill]] %s14076_s12 }
  0x48   :  { %s14096_s12 = sld [smem:[%s18506_s0 + %s13848_s22]]   ;;  %s13852_s22 = smov 48  }
  0x49   :  { %18834 = sst [smem:[#allocation33_spill]] %s14081_s4 }
  0x4a   :  { %18835 = sst [smem:[#allocation34_spill]] %s14086_s27 }
  0x4b   :  { %s14101_s4 = sld [smem:[%s18506_s0 + %s13849_s28]]   ;;  %s13853_s28 = smov 49  }
  0x4c   :  { %18836 = sst [smem:[#allocation35_spill]] %s14091_s21 }
  0x4d   :  { %s14106_s27 = sld [smem:[%s18506_s0 + %s13850_s7]]   ;;  %s13854_s7 = smov 50  }
  0x4e   :  { %18837 = sst [smem:[#allocation36_spill]] %s14096_s12 }
  0x4f   :  { %s14111_s21 = sld [smem:[%s18506_s0 + %s13851_s15]]   ;;  %s13855_s15 = smov 51  }
  0x50   :  { %s14116_s12 = sld [smem:[%s18506_s0 + %s13852_s22]]   ;;  %s13856_s22 = smov 52  }
  0x51   :  { %18838 = sst [smem:[#allocation37_spill]] %s14101_s4 }
  0x52   :  { %s14121_s4 = sld [smem:[%s18506_s0 + %s13853_s28]]   ;;  %s13857_s28 = smov 53  }
  0x53   :  { %18839 = sst [smem:[#allocation38_spill]] %s14106_s27 }
  0x54   :  { %s14126_s27 = sld [smem:[%s18506_s0 + %s13854_s7]]   ;;  %s13858_s7 = smov 54  }
  0x55   :  { %18840 = sst [smem:[#allocation39_spill]] %s14111_s21 }
  0x56   :  { %18841 = sst [smem:[#allocation40_spill]] %s14116_s12 }
  0x57   :  { %s14131_s21 = sld [smem:[%s18506_s0 + %s13855_s15]]   ;;  %s13859_s15 = smov 55  }
  0x58   :  { %18842 = sst [smem:[#allocation41_spill]] %s14121_s4 }
  0x59   :  { %s14136_s12 = sld [smem:[%s18506_s0 + %s13856_s22]]   ;;  %s13860_s22 = smov 56  }
  0x5a   :  { %18843 = sst [smem:[#allocation42_spill]] %s14126_s27 }
  0x5b   :  { %s14141_s4 = sld [smem:[%s18506_s0 + %s13857_s28]]   ;;  %s13861_s28 = smov 57  }
  0x5c   :  { %s14146_s27 = sld [smem:[%s18506_s0 + %s13858_s7]]  }
  0x5d   :  { %18844 = sst [smem:[#allocation43_spill]] %s14131_s21 }
  0x5e   :  { %s14151_s21 = sld [smem:[%s18506_s0 + %s13859_s15]]  }
  0x5f   :  { %18845 = sst [smem:[#allocation44_spill]] %s14136_s12 }
  0x60   :  { %s14156_s12 = sld [smem:[%s18506_s0 + %s13860_s22]]  }
  0x61   :  { %18846 = sst [smem:[#allocation45_spill]] %s14141_s4 }
  0x62   :  { %18847 = sst [smem:[#allocation46_spill]] %s14146_s27 }
  0x63   :  { %s11774_s4 = sld [smem:[%s18506_s0 + %s13861_s28]]  }
  0x64   :  { %s14164_s27 = sld [smem:[%s18506_s0 + %s13862_s10]]  }
  0x69   :  { %v122_v0 = vstv %s11774_s4 }
  0x6a   :  { %123 = vst [vmem:[#allocation2] sm:$0x1] %v122_v0 }
  0x6b   :  { %v255_v1 = vld [vmem:[%s13911_s3 + $0x8] sm:$0xff]  ;;  %v254_v2 = vld [vmem:[%s13911_s3] sm:$0xff]  ;;  %vm18556_vm0 = vcmask 130048   ;;  %v437_v4 = vlaneseq }
  0x6c   :  { %v241_v3 = vld [vmem:[%s13876_s5] sm:$0xff]  ;;  %12597 = vmatprep.subr.mxu1 %v255_v1  ;;  %v252_v5 = vld [vmem:[%s13901_s25 + $0x8] sm:$0xff] }
  0x6d   :  { %12601 = vmatprep.mubr.msk.f32.mxu1 %vm18556_vm0, %v241_v3  ;;  %v251_v6 = vld [vmem:[%s13901_s25] sm:$0xff]  ;;  %12598 = vmatpush3.msra.mxu1 %v255_v1  ;;  %v242_v7 = vld [vmem:[%s13876_s5 + $0x8] sm:$0xff]  ;;  %v14173_v8 = vshrl.u32 %v437_v4, 7 }
  0x6e   :  { %12590 = vmatprep.subr.mxu0 %v252_v5  ;;  %12599 = vmatprep.subr.mxu1 %v254_v2  ;;  %v245_v9 = vld [vmem:[%s13886_s13] sm:$0xff] }
  0x6f   :  { %12591 = vmatpush3.msra.mxu0 %v252_v5 }
  0x70   :  { %124 = vsyncpa [#allocation4], 0  ;;  %12600 = vmatpush3.msra.mxu1 %v254_v2  ;;  %12592 = vmatprep.subr.mxu0 %v251_v6  ;;  %v14177_v10 = vsub.s32 0, %v14173_v8  ;;  %v14180_v11 = vsub.s32 1, %v14173_v8  ;;  %v14188_v14 = vsub.s32 2, %v14173_v8  ;;  %v14192_v16 = vsub.s32 3, %v14173_v8 }
  0x71   :  { %12602 = vmatmul.mubr.msk.f32.vlgmr.msra.gmra.mxu1 %vm18556_vm0, %v242_v7  ;;  %12593 = vmatpush3.msra.mxu0 %v251_v6  ;;  %v14196_v18 = vsub.s32 4, %v14173_v8  ;;  %v14200_v20 = vsub.s32 5, %v14173_v8  ;;  %v14204_v22 = vsub.s32 6, %v14173_v8  ;;  %v14208_v24 = vsub.s32 7, %v14173_v8  ;;  %v246_v26 = vld [vmem:[%s13886_s13 + $0x8] sm:$0xff]  ;;  %v258_v36 = vld [vmem:[%s13926_s19] sm:$0xff] }
  0x72   :  { %18848 = vst [vmem:[#allocation47_spill] sm:$0xff] %v14177_v10  ;;  %18849 = vst [vmem:[#allocation48_spill] sm:$0xff] %v14180_v11  ;;  %12594 = vmatprep.mubr.msk.f32.mxu0 %vm18556_vm0, %v241_v3  ;;  %v657_v12 = vrot.slane %v245_v9, %v14180_v11  ;;  %v646_v13 = vrot.slane %v245_v9, %v14177_v10  ;;  %v668_v15 = vrot.slane %v245_v9, %v14188_v14  ;;  %v259_v35 = vld [vmem:[%s13926_s19 + $0x8] sm:$0x3]  ;;  %vm18679_vm1 = vcmask 1041408   ;;  %v243_v37 = vld [vmem:[%s13881_s9] sm:$0xff] }
  0x73   :  { %12595 = vmatmul.mubr.msk.f32.vlgmr.msra.gmra.mxu0 %vm18556_vm0, %v242_v7  ;;  %18850 = vst [vmem:[#allocation49_spill] sm:$0xff] %v14188_v14  ;;  %18851 = vst [vmem:[#allocation50_spill] sm:$0xff] %v14192_v16  ;;  %v679_v17 = vrot.slane %v245_v9, %v14192_v16  ;;  %v690_v19 = vrot.slane %v245_v9, %v14196_v18  ;;  %v701_v21 = vrot.slane %v245_v9, %v14200_v20  ;;  %v14244_v51 = vld [vmem:[%s13881_s9 + $0x8] sm:$0xff]  ;;  %v13863_v56 = vmov 1966171168   ;;  %s18917_s0 = sld [smem:[#allocation9_spill]] }
  0x74   :  { %659 = vbcast.lane.b32.xlu1 %v657_v12, 256  ;;  %648 = vbcast.lane.b32.xlu0 %v646_v13, 256  ;;  %18852 = vst [vmem:[#allocation51_spill] sm:$0xff] %v14196_v18  ;;  %18853 = vst [vmem:[#allocation52_spill] sm:$0xff] %v14200_v20  ;;  %v712_v23 = vrot.slane %v245_v9, %v14204_v22  ;;  %v723_v25 = vrot.slane %v245_v9, %v14208_v24  ;;  %v435_v57 = vunpack.c.l.s4 %v13863_v56  ;;  %v11779_v1 = vld [vmem:[%s13916_s8] ss:$0 sm:$0xff] }
  0x75   :  { %18854 = vst [vmem:[#allocation53_spill] sm:$0xff] %v14204_v22  ;;  %18855 = vst [vmem:[#allocation54_spill] sm:$0xff] %v14208_v24  ;;  %v734_v27 = vrot.slane %v246_v26, %v14177_v10  ;;  %v745_v28 = vrot.slane %v246_v26, %v14180_v11  ;;  %v756_v29 = vrot.slane %v246_v26, %v14188_v14  ;;  %12604 = vmatprep.subr.msk.mxu0 %vm18679_vm1, %v259_v35  ;;  %vm18698_vm2 = vcmask 80896   ;;  %s18918_s5 = sld [smem:[#allocation10_spill]] }
  0x76   :  { %v767_v30 = vrot.slane %v246_v26, %v14192_v16  ;;  %v778_v31 = vrot.slane %v246_v26, %v14196_v18  ;;  %v789_v32 = vrot.slane %v246_v26, %v14200_v20  ;;  %v800_v33 = vrot.slane %v246_v26, %v14204_v22  ;;  %12605 = vmatpush3.msk.msra.mxu0 %vm18679_vm1, %v259_v35  ;;  %s18919_s9 = sld [smem:[#allocation8_spill]] }
  0x77   :  { %v811_v34 = vrot.slane %v246_v26, %v14208_v24  ;;  %12606 = vmatprep.subr.mxu0 %v258_v36  ;;  %v1314_v38 = vrot.slane %v243_v37, %v14177_v10  ;;  %v1325_v39 = vrot.slane %v243_v37, %v14180_v11  ;;  %v1336_v40 = vrot.slane %v243_v37, %v14188_v14  ;;  %s18956_s13 = sld [smem:[#allocation12_spill]] }
  0x78   :  { %663 = vbcast.lane.b32.xlu1 %v657_v12, 264  ;;  %652 = vbcast.lane.b32.xlu0 %v646_v13, 264  ;;  %v1347_v41 = vrot.slane %v243_v37, %v14192_v16  ;;  %v1358_v42 = vrot.slane %v243_v37, %v14196_v18  ;;  %v1369_v44 = vrot.slane %v243_v37, %v14200_v20  ;;  %v436_v61 = vunpack.c.0.s8 %v435_v57  ;;  %s19017_s25 = sld [smem:[#allocation13_spill]] }
  0x79   :  { %12607 = vmatpush3.msra.mxu0 %v258_v36  ;;  %v1380_v47 = vrot.slane %v243_v37, %v14204_v22  ;;  %v1391_v49 = vrot.slane %v243_v37, %v14208_v24  ;;  %v1402_v52 = vrot.slane %v14244_v51, %v14177_v10  ;;  %v1413_v55 = vrot.slane %v14244_v51, %v14180_v11  ;;  %s19021_s3 = sld [smem:[#allocation18_spill]] }
  0x7a   :  { %v1424_v59 = vrot.slane %v14244_v51, %v14188_v14  ;;  %v1435_v63 = vrot.slane %v14244_v51, %v14192_v16  ;;  %v14266_v4 = vsub.s32 %v436_v61, %v14173_v8  ;;  %v1446_v6 = vrot.slane %v14244_v51, %v14196_v18  ;;  %s19022_s8 = sld [smem:[#allocation16_spill]] }
  0x7b   :  { %v1457_v8 = vrot.slane %v14244_v51, %v14200_v20  ;;  %s19024_s19 = sld [smem:[#allocation14_spill]] }
  0x7c   :  { %674 = vbcast.lane.b32.xlu1 %v668_v15, 264  ;;  %670 = vbcast.lane.b32.xlu0 %v668_v15, 256  ;;  %18866 = vst [vmem:[#allocation65_spill] sm:$0xff] %v14266_v4  ;;  %s19219_s4 = sld [smem:[#allocation19_spill]] }
  0x7d   :  { %s19221_s15 = sld [smem:[#allocation26_spill]] }
  0x7e   :  { %s19222_s16 = sld [smem:[#allocation6_spill]] }
  0x7f   :  { %s19228_s18 = sld [smem:[#allocation24_spill]] }
  0x80   :  { %685 = vbcast.lane.b32.xlu1 %v679_v17, 264  ;;  %681 = vbcast.lane.b32.xlu0 %v679_v17, 256  ;;  %s19234_s22 = sld [smem:[#allocation22_spill]] }
  0x81   :  { %s19236_s23 = sld [smem:[#allocation25_spill]] }
  0x82   :  { %s19259_s26 = sld [smem:[#allocation28_spill]] }
  0x83   :  { %s19363_s28 = sld [smem:[#allocation31_spill]] }
  0x84   :  { %696 = vbcast.lane.b32.xlu1 %v690_v19, 264  ;;  %692 = vbcast.lane.b32.xlu0 %v690_v19, 256  ;;  %v14279_v19 = vld [vmem:[%s13921_s14] ss:$0 sm:$0xff]  ;;  %s19023_s14 = sld [smem:[#allocation17_spill]] }
  0x85   :  { %s19365_s1 = sld [smem:[#allocation29_spill]] }
  0x86   :  { %s19371_s2 = sld [smem:[#allocation27_spill]] }
  0x87   :  { %s19374_s10 = sld [smem:[#allocation34_spill]] }
  0x88   :  { %707 = vbcast.lane.b32.xlu1 %v701_v21, 264  ;;  %703 = vbcast.lane.b32.xlu0 %v701_v21, 256  ;;  %s19375_s7 = sld [smem:[#allocation32_spill]] }
  0x89   :  { %s19376_s11 = sld [smem:[#allocation33_spill]] }
  0x8c   :  { %718 = vbcast.lane.b32.xlu1 %v712_v23, 264  ;;  %714 = vbcast.lane.b32.xlu0 %v712_v23, 256 }
  0x90   :  { %729 = vbcast.lane.b32.xlu1 %v723_v25, 264  ;;  %725 = vbcast.lane.b32.xlu0 %v723_v25, 256  ;;  %v11776_v25 = vld [vmem:[%s13906_s29] ss:$0 sm:$0xff]  ;;  %s19020_s29 = sld [smem:[#allocation11_spill]] }
  0x94   :  { %740 = vbcast.lane.b32.xlu1 %v734_v27, 264  ;;  %736 = vbcast.lane.b32.xlu0 %v734_v27, 256 }
  0x98   :  { %751 = vbcast.lane.b32.xlu1 %v745_v28, 264  ;;  %747 = vbcast.lane.b32.xlu0 %v745_v28, 256 }
  0x9c   :  { %762 = vbcast.lane.b32.xlu1 %v756_v29, 264  ;;  %758 = vbcast.lane.b32.xlu0 %v756_v29, 256 }
  0xa0   :  { %773 = vbcast.lane.b32.xlu1 %v767_v30, 264  ;;  %769 = vbcast.lane.b32.xlu0 %v767_v30, 256 }
  0xa4   :  { %784 = vbcast.lane.b32.xlu1 %v778_v31, 264  ;;  %780 = vbcast.lane.b32.xlu0 %v778_v31, 256 }
  0xa8   :  { %795 = vbcast.lane.b32.xlu1 %v789_v32, 264  ;;  %791 = vbcast.lane.b32.xlu0 %v789_v32, 256  ;;  %v1468_v32 = vrot.slane %v14244_v51, %v14204_v22 }
  0xac   :  { %806 = vbcast.lane.b32.xlu1 %v800_v33, 264  ;;  %802 = vbcast.lane.b32.xlu0 %v800_v33, 256 }
  0xb0   :  { %817 = vbcast.lane.b32.xlu1 %v811_v34, 264  ;;  %813 = vbcast.lane.b32.xlu0 %v811_v34, 256 }
  0xb4   :  { %1320 = vbcast.lane.b32.xlu1 %v1314_v38, 264  ;;  %1316 = vbcast.lane.b32.xlu0 %v1314_v38, 256 }
  0xb8   :  { %1331 = vbcast.lane.b32.xlu1 %v1325_v39, 264  ;;  %1327 = vbcast.lane.b32.xlu0 %v1325_v39, 256 }
  0xbc   :  { %1342 = vbcast.lane.b32.xlu1 %v1336_v40, 264  ;;  %1338 = vbcast.lane.b32.xlu0 %v1336_v40, 256 }
  0xc0   :  { %1353 = vbcast.lane.b32.xlu1 %v1347_v41, 264  ;;  %1349 = vbcast.lane.b32.xlu0 %v1347_v41, 256 }
  0xc4   :  { %1364 = vbcast.lane.b32.xlu1 %v1358_v42, 264  ;;  %1360 = vbcast.lane.b32.xlu0 %v1358_v42, 256 }
  0xc8   :  { %1375 = vbcast.lane.b32.xlu1 %v1369_v44, 264  ;;  %1371 = vbcast.lane.b32.xlu0 %v1369_v44, 256 }
  0xcc   :  { %1386 = vbcast.lane.b32.xlu1 %v1380_v47, 264  ;;  %1382 = vbcast.lane.b32.xlu0 %v1380_v47, 256 }
  0xd0   :  { %1397 = vbcast.lane.b32.xlu1 %v1391_v49, 264  ;;  %1393 = vbcast.lane.b32.xlu0 %v1391_v49, 256 }
  0xd4   :  { %1408 = vbcast.lane.b32.xlu1 %v1402_v52, 264  ;;  %1404 = vbcast.lane.b32.xlu0 %v1402_v52, 256 }
  0xd8   :  { %1419 = vbcast.lane.b32.xlu1 %v1413_v55, 264  ;;  %1415 = vbcast.lane.b32.xlu0 %v1413_v55, 256 }
  0xdc   :  { %1430 = vbcast.lane.b32.xlu1 %v1424_v59, 264  ;;  %1426 = vbcast.lane.b32.xlu0 %v1424_v59, 256  ;;  %v1479_v59 = vrot.slane %v14244_v51, %v14208_v24 }
  0xe0   :  { %1441 = vbcast.lane.b32.xlu1 %v1435_v63, 264  ;;  %1437 = vbcast.lane.b32.xlu0 %v1435_v63, 256 }
  0xe4   :  { %1452 = vbcast.lane.b32.xlu1 %v1446_v6, 264  ;;  %1448 = vbcast.lane.b32.xlu0 %v1446_v6, 256 }
  0xe6   :  { %v14230_v43 = vpop.permute.xlu0 %648  ;;  %v14233_v45 = vpop.permute.xlu1 %659 }
  0xe7   :  { %18856 = vst [vmem:[#allocation55_spill] sm:$0xff] %v14230_v43  ;;  %18857 = vst [vmem:[#allocation56_spill] sm:$0xff] %v14233_v45  ;;  %v827_v27 = vmul.f32 %v14279_v19, %v14233_v45  ;;  %v825_v29 = vmul.f32 %v14279_v19, %v14230_v43 }
  0xe8   :  { %1463 = vbcast.lane.b32.xlu1 %v1457_v8, 264  ;;  %1459 = vbcast.lane.b32.xlu0 %v1457_v8, 256 }
  0xea   :  { %v14235_v46 = vpop.permute.xlu0 %652  ;;  %v14238_v48 = vpop.permute.xlu1 %663 }
  0xeb   :  { %18858 = vst [vmem:[#allocation57_spill] sm:$0xff] %v14235_v46  ;;  %18859 = vst [vmem:[#allocation58_spill] sm:$0xff] %v14238_v48  ;;  %v826_v33 = vmul.f32 %v14279_v19, %v14235_v46  ;;  %v828_v38 = vmul.f32 %v14279_v19, %v14238_v48 }
  0xec   :  { %1474 = vbcast.lane.b32.xlu1 %v1468_v32, 264  ;;  %1470 = vbcast.lane.b32.xlu0 %v1468_v32, 256 }
  0xee   :  { %v14241_v50 = vpop.permute.xlu0 %670  ;;  %v14248_v53 = vpop.permute.xlu1 %674 }
  0xef   :  { %18860 = vst [vmem:[#allocation59_spill] sm:$0xff] %v14241_v50  ;;  %18861 = vst [vmem:[#allocation60_spill] sm:$0xff] %v14248_v53  ;;  %v830_v39 = vmul.f32 %v14279_v19, %v14248_v53  ;;  %v829_v55 = vmul.f32 %v14279_v19, %v14241_v50 }
  0xf0   :  { %1485 = vbcast.lane.b32.xlu1 %v1479_v59, 264  ;;  %1481 = vbcast.lane.b32.xlu0 %v1479_v59, 256 }
  0xf2   :  { %v14250_v54 = vpop.permute.xlu0 %681  ;;  %v14254_v58 = vpop.permute.xlu1 %685 }
  0xf3   :  { %18862 = vst [vmem:[#allocation61_spill] sm:$0xff] %v14250_v54  ;;  %18863 = vst [vmem:[#allocation62_spill] sm:$0xff] %v14254_v58  ;;  %v832_v56 = vmul.f32 %v14279_v19, %v14254_v58  ;;  %v831_v57 = vmul.f32 %v14279_v19, %v14250_v54 }
  0xf6   :  { %v14258_v60 = vpop.permute.xlu0 %692  ;;  %v14262_v0 = vpop.permute.xlu1 %696 }
  0xf7   :  { %18864 = vst [vmem:[#allocation63_spill] sm:$0xff] %v14258_v60  ;;  %18865 = vst [vmem:[#allocation64_spill] sm:$0xff] %v14262_v0 }
  0xfa   :  { %v14268_v5 = vpop.permute.xlu0 %703  ;;  %v14273_v13 = vpop.permute.xlu1 %707 }
  0xfb   :  { %18867 = vst [vmem:[#allocation66_spill] sm:$0xff] %v14268_v5  ;;  %18868 = vst [vmem:[#allocation67_spill] sm:$0xff] %v14273_v13  ;;  %v14331_v6 = vmul.f32 %v14279_v19, %v14268_v5 }
  0xfe   :  { %v14281_v21 = vpop.permute.xlu0 %714  ;;  %v14297_v34 = vpop.permute.xlu1 %718 }
  0xff   :  { %18869 = vst [vmem:[#allocation68_spill] sm:$0xff] %v14281_v21  ;;  %18870 = vst [vmem:[#allocation69_spill] sm:$0xff] %v14297_v34 }
 0x102   :  { %v14307_v42 = vpop.permute.xlu0 %725 }
 0x103   :  { %18871 = vst [vmem:[#allocation70_spill] sm:$0xff] %v14307_v42 }
 0x131   :  { %v12603_v62 = vpop.f32.mrf.mxu1 }
 0x132   :  { %v14309_v44 = vadd.f32 %v12603_v62, %v11779_v1 }
 0x133   :  { %v422_v2 = vpop.f32.mrf.mxu1  ;;  %v12596_v12 = vpop.f32.mrf.mxu0 }
 0x134   :  { %v423_v3 = vadd.f32 %v11779_v1, %v422_v2  ;;  %v14291_v31 = vadd.f32 %v12596_v12, %v11776_v25  ;;  %v834_v2 = vmul.f32 %v14279_v19, %v14262_v0 }
 0x135   :  { %v341_v26 = vpop.f32.mrf.mxu0 }
 0x136   :  { %v433_v7 = vcombine.high %v423_v3, %v423_v3  ;;  %v440_v9 = vrot.slane %v423_v3, %v14266_v4  ;;  %v14299_v37 = vadd.f32 %v11776_v25, %v341_v26  ;;  %v833_v3 = vmul.f32 %v14279_v19, %v14258_v60  ;;  %v14342_v25 = vpop.permute.xlu0 %736 }
 0x137   :  { %18873 = vst [vmem:[#allocation72_spill] sm:$0xff] %v14342_v25 }
 0x138   :  { %v448_v15 = vcombine.high %v440_v9, %v440_v9  ;;  %v456_v17 = vrot.slane %v440_v9, %v14266_v4  ;;  %v447_v23 = vrot.slane %v433_v7, %v14266_v4  ;;  %v14334_v7 = vpop.permute.xlu1 %729  ;;  %v14338_v9 = vrot.slane %v14309_v44, %v14266_v4 }
 0x139   :  { %18872 = vst [vmem:[#allocation71_spill] sm:$0xff] %v14334_v7 }
 0x13a   :  { %v470_v28 = vrot.slane %v448_v15, %v14266_v4  ;;  %v534_v30 = vrot.slane %v456_v17, %v14177_v10  ;;  %v449_v35 = vcombine.high %v447_v23, %v447_v23  ;;  %v478_v36 = vcombine.high %v456_v17, %v456_v17 }
 0x13b   :  { %v463_v47 = vrot.slane %v447_v23, %v14266_v4 }
 0x13c   :  { %v538_v40 = vrot.slane %v470_v28, %v14177_v10  ;;  %v612_v41 = vadd.f32 %v534_v30, %v14291_v31  ;;  %v480_v49 = vcombine.high %v470_v28, %v470_v28  ;;  %v611_v52 = vadd.f32 %v534_v30, %v14299_v37 }
 0x13d   :  { %v14322_v61 = vrot.slane %v449_v35, %v14266_v4  ;;  %v542_v62 = vrot.slane %v478_v36, %v14177_v10  ;;  %v550_v15 = vrot.slane %v463_v47, %v14177_v10  ;;  %v479_v26 = vcombine.high %v463_v47, %v463_v47 }
 0x13e   :  { %v857_v63 = vadd.f32 %v825_v29, %v611_v52  ;;  %v858_v1 = vadd.f32 %v826_v33, %v612_v41  ;;  %v613_v51 = vadd.f32 %v538_v40, %v14299_v37  ;;  %v546_v12 = vrot.slane %v480_v49, %v14177_v10 }
 0x13f   :  { %v481_v28 = vcombine.high %v14322_v61, %v14322_v61  ;;  %v614_v29 = vadd.f32 %v538_v40, %v14291_v31  ;;  %v615_v30 = vadd.f32 %v542_v62, %v14299_v37  ;;  %v616_v41 = vadd.f32 %v542_v62, %v14291_v31 }
 0x140   :  { %vm889_vm3 = vcmp.gt.f32.partialorder %v857_v63, 0.0  ;;  %v921_v17 = vmul.f32 0.2, %v857_v63  ;;  %vm890_vm4 = vcmp.gt.f32.partialorder %v858_v1, 0.0  ;;  %v922_v8 = vmul.f32 0.2, %v858_v1 }
 0x141   :  { %v859_v23 = vadd.f32 %v827_v27, %v613_v51  ;;  %v860_v36 = vadd.f32 %v828_v38, %v614_v29  ;;  %v861_v27 = vadd.f32 %v829_v55, %v615_v30  ;;  %v617_v47 = vadd.f32 %v546_v12, %v14299_v37 }
 0x142   :  { %v953_v32 = vsel %vm889_vm3, %v857_v63, %v921_v17  ;;  %v954_v33 = vsel %vm890_vm4, %v858_v1, %v922_v8  ;;  %v554_v49 = vrot.slane %v14322_v61, %v14177_v10  ;;  %v618_v52 = vadd.f32 %v546_v12, %v14291_v31  ;;  %v14356_v63 = vpop.permute.xlu1 %740  ;;  %v14360_v17 = vpop.permute.xlu0 %747 }
 0x143   :  { %vm891_vm5 = vcmp.gt.f32.partialorder %v859_v23, 0.0  ;;  %v923_v35 = vmul.f32 0.2, %v859_v23  ;;  %12608 = vmatprep.mubr.msk.f32.mxu0 %vm18698_vm2, %v953_v32  ;;  %v619_v59 = vadd.f32 %v550_v15, %v14299_v37  ;;  %18874 = vst [vmem:[#allocation73_spill] sm:$0xff] %v14356_v63  ;;  %vm892_vm6 = vcmp.gt.f32.partialorder %v860_v36, 0.0  ;;  %18875 = vst [vmem:[#allocation74_spill] sm:$0xff] %v14360_v17 }
 0x144   :  { %12609 = vmatmul.mubr.msk.f32.vlgmr.msra.gmra.mxu0 %vm18698_vm2, %v954_v33  ;;  %v924_v38 = vmul.f32 0.2, %v860_v36  ;;  %vm893_vm7 = vcmp.gt.f32.partialorder %v861_v27, 0.0  ;;  %v925_v55 = vmul.f32 0.2, %v861_v27  ;;  %v862_v62 = vadd.f32 %v830_v39, %v616_v41 }
 0x145   :  { %v955_v40 = vsel %vm891_vm5, %v859_v23, %v923_v35  ;;  %v863_v1 = vadd.f32 %v831_v57, %v617_v47  ;;  %v864_v51 = vadd.f32 %v832_v56, %v618_v52  ;;  %v620_v61 = vadd.f32 %v550_v15, %v14291_v31 }
 0x146   :  { %12611 = vmatprep.mubr.msk.f32.mxu0 %vm18698_vm2, %v955_v40  ;;  %v558_v8 = vrot.slane %v479_v26, %v14177_v10  ;;  %v956_v12 = vsel %vm892_vm6, %v860_v36, %v924_v38  ;;  %v957_v23 = vsel %vm893_vm7, %v861_v27, %v925_v55  ;;  %v865_v29 = vadd.f32 %v833_v3, %v619_v59  ;;  %v14374_v26 = vpop.permute.xlu1 %751 }
 0x147   :  { %vm894_vm8 = vcmp.gt.f32.partialorder %v862_v62, 0.0  ;;  %v926_v30 = vmul.f32 0.2, %v862_v62  ;;  %v927_v32 = vmul.f32 0.2, %v863_v1  ;;  %v621_v33 = vadd.f32 %v554_v49, %v14299_v37  ;;  %18876 = vst [vmem:[#allocation75_spill] sm:$0xff] %v14374_v26 }
 0x148   :  { %12612 = vmatmul.mubr.msk.f32.gmra.mxu0 %vm18698_vm2, %v956_v12  ;;  %v836_v39 = vmul.f32 %v14279_v19, %v14273_v13  ;;  %v837_v56 = vmul.f32 %v14279_v19, %v14281_v21  ;;  %vm895_vm9 = vcmp.gt.f32.partialorder %v863_v1, 0.0  ;;  %v497_v57 = vcombine.high %v14338_v9, %v14338_v9 }
 0x149   :  { %12614 = vmatprep.mubr.msk.f32.mxu0 %vm18698_vm2, %v957_v23  ;;  %v505_v3 = vrot.slane %v14338_v9, %v14266_v4  ;;  %vm896_vm10 = vcmp.gt.f32.partialorder %v864_v51, 0.0  ;;  %v866_v15 = vadd.f32 %v834_v2, %v620_v61  ;;  %v958_v35 = vsel %vm894_vm8, %v862_v62, %v926_v30  ;;  %v14383_v2 = vpop.permute.xlu0 %758 }
 0x14a   :  { %v928_v36 = vmul.f32 0.2, %v864_v51  ;;  %v929_v27 = vmul.f32 0.2, %v865_v29  ;;  %v622_v41 = vadd.f32 %v554_v49, %v14291_v31  ;;  %v959_v47 = vsel %vm895_vm9, %v863_v1, %v927_v32  ;;  %18877 = vst [vmem:[#allocation76_spill] sm:$0xff] %v14383_v2 }
 0x14b   :  { %v867_v40 = vadd.f32 %v14331_v6, %v621_v33  ;;  %v623_v52 = vadd.f32 %v558_v8, %v14299_v37  ;;  %v562_v59 = vrot.slane %v481_v28, %v14177_v10  ;;  %v838_v9 = vmul.f32 %v14279_v19, %v14297_v34  ;;  %v14396_v33 = vpop.permute.xlu1 %762 }
 0x14c   :  { %12615 = vmatmul.mubr.msk.f32.gmra.mxu0 %vm18698_vm2, %v958_v35  ;;  %vm897_vm11 = vcmp.gt.f32.partialorder %v865_v29, 0.0  ;;  %v839_v49 = vmul.f32 %v14279_v19, %v14307_v42  ;;  %v519_v38 = vrot.slane %v497_v57, %v14266_v4  ;;  %v566_v55 = vrot.slane %v505_v3, %v14177_v10  ;;  %18878 = vst [vmem:[#allocation77_spill] sm:$0xff] %v14396_v33 }
 0x14d   :  { %12617 = vmatprep.mubr.msk.f32.mxu0 %vm18698_vm2, %v959_v47  ;;  %vm898_vm12 = vcmp.gt.f32.partialorder %v866_v15, 0.0  ;;  %v960_v6 = vsel %vm896_vm10, %v864_v51, %v928_v36  ;;  %v930_v62 = vmul.f32 0.2, %v866_v15  ;;  %v868_v28 = vadd.f32 %v836_v39, %v622_v41 }
 0x14e   :  { %v624_v1 = vadd.f32 %v558_v8, %v14291_v31  ;;  %v961_v61 = vsel %vm897_vm11, %v865_v29, %v929_v27  ;;  %v931_v12 = vmul.f32 0.2, %v867_v40  ;;  %v869_v23 = vadd.f32 %v837_v56, %v623_v52  ;;  %v14405_v56 = vpop.permute.xlu0 %769 }
 0x14f   :  { %v625_v30 = vadd.f32 %v562_v59, %v14299_v37  ;;  %v840_v32 = vmul.f32 %v14279_v19, %v14334_v7  ;;  %v482_v57 = vcombine.high %v14309_v44, %v14309_v44  ;;  %vm899_vm13 = vcmp.gt.f32.partialorder %v867_v40, 0.0  ;;  %18879 = vst [vmem:[#allocation78_spill] sm:$0xff] %v14405_v56 }
 0x150   :  { %12618 = vmatmul.mubr.msk.f32.gmra.mxu0 %vm18698_vm2, %v960_v6  ;;  %v841_v51 = vmul.f32 %v14279_v19, %v14342_v25  ;;  %v527_v8 = vcombine.high %v505_v3, %v505_v3  ;;  %v570_v29 = vrot.slane %v519_v38, %v14177_v10  ;;  %v627_v39 = vadd.f32 %v566_v55, %v14299_v37 }
 0x151   :  { %12620 = vmatprep.mubr.msk.f32.mxu0 %vm18698_vm2, %v961_v61  ;;  %v962_v35 = vsel %vm898_vm12, %v866_v15, %v930_v62  ;;  %v932_v36 = vmul.f32 0.2, %v868_v28  ;;  %v870_v27 = vadd.f32 %v838_v9, %v624_v1  ;;  %v626_v41 = vadd.f32 %v562_v59, %v14291_v31  ;;  %v14417_v1 = vpop.permute.xlu1 %773 }
 0x152   :  { %v963_v44 = vsel %vm899_vm13, %v867_v40, %v931_v12  ;;  %vm900_vm14 = vcmp.gt.f32.partialorder %v868_v28, 0.0  ;;  %v933_v47 = vmul.f32 0.2, %v869_v23  ;;  %v871_v52 = vadd.f32 %v839_v49, %v625_v30  ;;  %18880 = vst [vmem:[#allocation79_spill] sm:$0xff] %v14417_v1 }
 0x153   :  { %v842_v3 = vmul.f32 %v14279_v19, %v14356_v63  ;;  %v496_v6 = vrot.slane %v482_v57, %v14266_v4  ;;  %vm901_vm15 = vcmp.gt.f32.partialorder %v869_v23, 0.0  ;;  %v843_v15 = vmul.f32 %v14279_v19, %v14360_v17 }
 0x154   :  { %12621 = vmatmul.mubr.msk.f32.gmra.mxu0 %vm18698_vm2, %v962_v35  ;;  %v529_v9 = vcombine.high %v519_v38, %v519_v38  ;;  %v574_v59 = vrot.slane %v527_v8, %v14177_v10  ;;  %v873_v62 = vadd.f32 %v841_v51, %v627_v39  ;;  %v628_v40 = vadd.f32 %v566_v55, %v14291_v31  ;;  %v14426_v39 = vpop.permute.xlu0 %780 }
 0x155   :  { %12623 = vmatprep.mubr.msk.f32.mxu0 %vm18698_vm2, %v963_v44  ;;  %v964_v49 = vsel %vm900_vm14, %v868_v28, %v932_v36  ;;  %v934_v61 = vmul.f32 0.2, %v870_v27  ;;  %v872_v12 = vadd.f32 %v840_v32, %v626_v41  ;;  %v965_v30 = vsel %vm901_vm15, %v869_v23, %v933_v47  ;;  %18881 = vst [vmem:[#allocation80_spill] sm:$0xff] %v14426_v39 }
 0x156   :  { %vm902_vm3 = vcmp.gt.f32.partialorder %v870_v27, 0.0  ;;  %v935_v57 = vmul.f32 0.2, %v871_v52  ;;  %v629_v35 = vadd.f32 %v570_v29, %v14299_v37  ;;  %v844_v38 = vmul.f32 %v14279_v19, %v14374_v26 }
 0x157   :  { %v845_v51 = vmul.f32 %v14279_v19, %v14383_v2  ;;  %v498_v8 = vcombine.high %v496_v6, %v496_v6  ;;  %vm903_vm4 = vcmp.gt.f32.partialorder %v871_v52, 0.0  ;;  %v512_v55 = vrot.slane %v496_v6, %v14266_v4  ;;  %v14436_v6 = vpop.permute.xlu1 %784 }
 0x158   :  { %12624 = vmatmul.mubr.msk.f32.gmra.mxu0 %vm18698_vm2, %v964_v49  ;;  %v578_v28 = vrot.slane %v529_v9, %v14177_v10  ;;  %vm905_vm5 = vcmp.gt.f32.partialorder %v873_v62, 0.0  ;;  %v937_v23 = vmul.f32 0.2, %v873_v62  ;;  %v966_v32 = vsel %vm902_vm3, %v870_v27, %v934_v61  ;;  %18882 = vst [vmem:[#allocation81_spill] sm:$0xff] %v14436_v6  ;;  %v14444_v9 = vpop.permute.xlu0 %791 }
 0x159   :  { %12626 = vmatprep.mubr.msk.f32.mxu0 %vm18698_vm2, %v965_v30  ;;  %v936_v36 = vmul.f32 0.2, %v872_v12  ;;  %v874_v41 = vadd.f32 %v842_v3, %v628_v40  ;;  %v630_v44 = vadd.f32 %v570_v29, %v14291_v31  ;;  %v967_v47 = vsel %vm903_vm4, %v871_v52, %v935_v57  ;;  %18883 = vst [vmem:[#allocation82_spill] sm:$0xff] %v14444_v9 }
 0x15a   :  { %vm904_vm6 = vcmp.gt.f32.partialorder %v872_v12, 0.0  ;;  %v875_v49 = vadd.f32 %v843_v15, %v629_v35  ;;  %v631_v24 = vadd.f32 %v574_v59, %v14299_v37  ;;  %v846_v30 = vmul.f32 %v14279_v19, %v14396_v33 }
 0x15b   :  { %v847_v27 = vmul.f32 %v14279_v19, %v14405_v56  ;;  %v526_v3 = vrot.slane %v498_v8, %v14266_v4  ;;  %v582_v29 = vrot.slane %v512_v55, %v14177_v10  ;;  %v969_v52 = vsel %vm905_vm5, %v873_v62, %v937_v23  ;;  %v14456_v23 = vpop.permute.xlu1 %795 }
 0x15c   :  { %12627 = vmatmul.mubr.msk.f32.gmra.mxu0 %vm18698_vm2, %v966_v32  ;;  %v968_v15 = vsel %vm904_vm6, %v872_v12, %v936_v36  ;;  %v938_v40 = vmul.f32 0.2, %v874_v41  ;;  %v876_v61 = vadd.f32 %v844_v38, %v630_v44  ;;  %v632_v57 = vadd.f32 %v574_v59, %v14291_v31  ;;  %18884 = vst [vmem:[#allocation83_spill] sm:$0xff] %v14456_v23  ;;  %v14462_v20 = vpop.permute.xlu0 %802 }
 0x15d   :  { %12629 = vmatprep.mubr.msk.f32.mxu0 %vm18698_vm2, %v967_v47  ;;  %vm906_vm7 = vcmp.gt.f32.partialorder %v874_v41, 0.0  ;;  %v939_v35 = vmul.f32 0.2, %v875_v49  ;;  %v877_v32 = vadd.f32 %v845_v51, %v631_v24  ;;  %v633_v47 = vadd.f32 %v578_v28, %v14299_v37  ;;  %18885 = vst [vmem:[#allocation84_spill] sm:$0xff] %v14462_v20 }
 0x15e   :  { %v848_v8 = vmul.f32 %v14279_v19, %v14417_v1  ;;  %vm907_vm8 = vcmp.gt.f32.partialorder %v875_v49, 0.0  ;;  %v528_v62 = vcombine.high %v512_v55, %v512_v55  ;;  %v586_v12 = vrot.slane %v526_v3, %v14177_v10 }
 0x15f   :  { %v849_v38 = vmul.f32 %v14279_v19, %v14426_v39  ;;  %v635_v59 = vadd.f32 %v582_v29, %v14299_v37  ;;  %v970_v36 = vsel %vm906_vm7, %v874_v41, %v938_v40  ;;  %v940_v24 = vmul.f32 0.2, %v876_v61 }
 0x160   :  { %12630 = vmatmul.mubr.msk.f32.gmra.mxu0 %vm18698_vm2, %v968_v15  ;;  %v878_v51 = vadd.f32 %v846_v30, %v632_v57  ;;  %v634_v44 = vadd.f32 %v578_v28, %v14291_v31  ;;  %v971_v15 = vsel %vm907_vm8, %v875_v49, %v939_v35  ;;  %vm908_vm9 = vcmp.gt.f32.partialorder %v876_v61, 0.0 }
 0x161   :  { %12632 = vmatprep.mubr.msk.f32.mxu0 %vm18698_vm2, %v969_v52  ;;  %v941_v52 = vmul.f32 0.2, %v877_v32  ;;  %v879_v55 = vadd.f32 %v847_v27, %v633_v47  ;;  %v850_v22 = vmul.f32 %v14279_v19, %v14436_v6  ;;  %vm909_vm10 = vcmp.gt.f32.partialorder %v877_v32, 0.0 }
 0x162   :  { %v530_v18 = vcombine.high %v526_v3, %v526_v3  ;;  %v590_v41 = vrot.slane %v528_v62, %v14177_v10  ;;  %v636_v30 = vadd.f32 %v582_v29, %v14291_v31  ;;  %v851_v28 = vmul.f32 %v14279_v19, %v14444_v9 }
 0x163   :  { %v637_v49 = vadd.f32 %v586_v12, %v14299_v37  ;;  %v972_v40 = vsel %vm908_vm9, %v876_v61, %v940_v24  ;;  %v942_v27 = vmul.f32 0.2, %v878_v51  ;;  %v880_v57 = vadd.f32 %v848_v8, %v634_v44 }
 0x164   :  { %12633 = vmatmul.mubr.msk.f32.gmra.mxu0 %vm18698_vm2, %v970_v36  ;;  %v881_v35 = vadd.f32 %v849_v38, %v635_v59  ;;  %v973_v47 = vsel %vm909_vm10, %v877_v32, %v941_v52  ;;  %vm910_vm11 = vcmp.gt.f32.partialorder %v878_v51, 0.0  ;;  %v943_v36 = vmul.f32 0.2, %v879_v55  ;;  %v14481_v38 = vpop.permute.xlu0 %813 }
 0x165   :  { %12635 = vmatprep.mubr.msk.f32.mxu0 %vm18698_vm2, %v971_v15  ;;  %v14471_v15 = vpop.permute.xlu1 %806  ;;  %vm911_vm12 = vcmp.gt.f32.partialorder %v879_v55, 0.0  ;;  %v638_v3 = vadd.f32 %v586_v12, %v14291_v31  ;;  %v852_v29 = vmul.f32 %v14279_v19, %v14456_v23  ;;  %v882_v62 = vadd.f32 %v850_v22, %v636_v30  ;;  %18887 = vst [vmem:[#allocation86_spill] sm:$0xff] %v14481_v38 }
 0x166   :  { %18886 = vst [vmem:[#allocation85_spill] sm:$0xff] %v14471_v15  ;;  %v853_v61 = vmul.f32 %v14279_v19, %v14462_v20  ;;  %v639_v8 = vadd.f32 %v590_v41, %v14299_v37  ;;  %v594_v32 = vrot.slane %v530_v18, %v14177_v10  ;;  %v974_v59 = vsel %vm910_vm11, %v878_v51, %v942_v27 }
 0x167   :  { %v944_v24 = vmul.f32 0.2, %v880_v57  ;;  %v883_v44 = vadd.f32 %v851_v28, %v637_v49  ;;  %v975_v52 = vsel %vm911_vm12, %v879_v55, %v943_v36  ;;  %vm912_vm13 = vcmp.gt.f32.partialorder %v880_v57, 0.0 }
 0x168   :  { %12636 = vmatmul.mubr.msk.f32.gmra.mxu0 %vm18698_vm2, %v972_v40  ;;  %v945_v12 = vmul.f32 0.2, %v881_v35  ;;  %vm913_vm14 = vcmp.gt.f32.partialorder %v881_v35, 0.0  ;;  %v884_v22 = vadd.f32 %v852_v29, %v638_v3  ;;  %v854_v30 = vmul.f32 %v14279_v19, %v14471_v15 }
 0x169   :  { %12638 = vmatprep.mubr.msk.f32.mxu0 %vm18698_vm2, %v973_v47  ;;  %v855_v18 = vmul.f32 %v14279_v19, %v14481_v38  ;;  %v640_v40 = vadd.f32 %v590_v41, %v14291_v31  ;;  %v885_v51 = vadd.f32 %v853_v61, %v639_v8  ;;  %v14490_v27 = vpop.permute.xlu1 %817  ;;  %v976_v28 = vsel %vm912_vm13, %v880_v57, %v944_v24 }
 0x16a   :  { %18888 = vst [vmem:[#allocation87_spill] sm:$0xff] %v14490_v27  ;;  %v946_v49 = vmul.f32 0.2, %v882_v62  ;;  %v641_v55 = vadd.f32 %v594_v32, %v14299_v37  ;;  %v977_v47 = vsel %vm913_vm14, %v881_v35, %v945_v12  ;;  %vm914_vm15 = vcmp.gt.f32.partialorder %v882_v62, 0.0 }
 0x16b   :  { %v947_v36 = vmul.f32 0.2, %v883_v44  ;;  %vm915_vm3 = vcmp.gt.f32.partialorder %v883_v44, 0.0  ;;  %v856_v3 = vmul.f32 %v14279_v19, %v14490_v27  ;;  %v886_v29 = vadd.f32 %v854_v30, %v640_v40 }
 0x16c   :  { %12639 = vmatmul.mubr.msk.f32.gmra.mxu0 %vm18698_vm2, %v974_v59  ;;  %v642_v41 = vadd.f32 %v594_v32, %v14291_v31  ;;  %v978_v61 = vsel %vm914_vm15, %v882_v62, %v946_v49  ;;  %v948_v8 = vmul.f32 0.2, %v884_v22  ;;  %v887_v57 = vadd.f32 %v855_v18, %v641_v55 }
 0x16d   :  { %12641 = vmatprep.mubr.msk.f32.mxu0 %vm18698_vm2, %v975_v52  ;;  %v979_v59 = vsel %vm915_vm3, %v883_v44, %v947_v36  ;;  %vm916_vm4 = vcmp.gt.f32.partialorder %v884_v22, 0.0  ;;  %v949_v24 = vmul.f32 0.2, %v885_v51  ;;  %vm917_vm5 = vcmp.gt.f32.partialorder %v885_v51, 0.0  ;;  %v14508_v40 = vpop.permute.xlu1 %1320 }
 0x16e   :  { %v888_v35 = vadd.f32 %v856_v3, %v642_v41  ;;  %v980_v52 = vsel %vm916_vm4, %v884_v22, %v948_v8  ;;  %v950_v12 = vmul.f32 0.2, %v886_v29  ;;  %vm918_vm6 = vcmp.gt.f32.partialorder %v886_v29, 0.0  ;;  %v261_v22 = vld [vmem:[%s13936_s30] sm:$0x3]  ;;  %18889 = vst [vmem:[#allocation88_spill] sm:$0xff] %v14508_v40 }
 0x16f   :  { %v981_v19 = vsel %vm917_vm5, %v885_v51, %v949_v24  ;;  %v951_v32 = vmul.f32 0.2, %v887_v57  ;;  %vm919_vm7 = vcmp.gt.f32.partialorder %v887_v57, 0.0  ;;  %12656 = vmatprep.subr.msk.mxu1 %vm18679_vm1, %v261_v22  ;;  %v14510_v51 = vpop.permute.xlu0 %1316  ;;  %vm18700_vm9 = vcmp.gt.f32.partialorder %v14508_v40, 0.0  ;;  %s19200_s30 = sld [smem:[#allocation23_spill]] }
 0x170   :  { %12642 = vmatmul.mubr.msk.f32.gmra.mxu0 %vm18698_vm2, %v976_v28  ;;  %v982_v62 = vsel %vm918_vm6, %v886_v29, %v950_v12  ;;  %v952_v30 = vmul.f32 0.2, %v888_v35  ;;  %vm920_vm8 = vcmp.gt.f32.partialorder %v888_v35, 0.0  ;;  %12657 = vmatpush3.msk.msra.mxu1 %vm18679_vm1, %v261_v22  ;;  %18890 = vst [vmem:[#allocation89_spill] sm:$0xff] %v14510_v51  ;;  %vm18691_vm10 = vcmp.gt.f32.partialorder %v14510_v51, 0.0 }
 0x171   :  { %12644 = vmatprep.mubr.msk.f32.mxu0 %vm18698_vm2, %v977_v47  ;;  %v983_v44 = vsel %vm919_vm7, %v887_v57, %v951_v32  ;;  %v14512_v28 = vpop.permute.xlu1 %1331  ;;  %vm18678_vm11 = vcmask 15360  }
 0x172   :  { %v984_v18 = vsel %vm920_vm8, %v888_v35, %v952_v30  ;;  %18891 = vst [vmem:[#allocation90_spill] sm:$0xff] %v14512_v28  ;;  %vm18690_vm12 = vcmp.gt.f32.partialorder %v14512_v28, 0.0 }
 0x173   :  { %v14514_v49 = vpop.permute.xlu0 %1327 }
 0x174   :  { %12645 = vmatmul.mubr.msk.f32.gmra.mxu0 %vm18698_vm2, %v978_v61  ;;  %18892 = vst [vmem:[#allocation91_spill] sm:$0xff] %v14514_v49  ;;  %vm18689_vm13 = vcmp.gt.f32.partialorder %v14514_v49, 0.0 }
 0x175   :  { %12647 = vmatprep.mubr.msk.f32.mxu0 %vm18698_vm2, %v979_v59  ;;  %v14516_v55 = vpop.permute.xlu1 %1342 }
 0x176   :  { %18893 = vst [vmem:[#allocation92_spill] sm:$0xff] %v14516_v55  ;;  %vm18688_vm14 = vcmp.gt.f32.partialorder %v14516_v55, 0.0 }
 0x177   :  { %v14518_v47 = vpop.permute.xlu0 %1338 }
 0x178   :  { %12648 = vmatmul.mubr.msk.f32.gmra.mxu0 %vm18698_vm2, %v980_v52  ;;  %18894 = vst [vmem:[#allocation93_spill] sm:$0xff] %v14518_v47  ;;  %vm18687_vm15 = vcmp.gt.f32.partialorder %v14518_v47, 0.0 }
 0x179   :  { %12650 = vmatprep.mubr.msk.f32.mxu0 %vm18698_vm2, %v981_v19  ;;  %v14520_v36 = vpop.permute.xlu1 %1353 }
 0x17a   :  { %18895 = vst [vmem:[#allocation94_spill] sm:$0xff] %v14520_v36  ;;  %vm18568_vm3 = vcmp.gt.f32.partialorder %v14520_v36, 0.0 }
 0x17b   :  { %v14522_v3 = vpop.permute.xlu0 %1349 }
 0x17c   :  { %12651 = vmatmul.mubr.msk.f32.gmra.mxu0 %vm18698_vm2, %v982_v62  ;;  %18896 = vst [vmem:[#allocation95_spill] sm:$0xff] %v14522_v3  ;;  %vm18562_vm4 = vcmp.gt.f32.partialorder %v14522_v3, 0.0 }
 0x17d   :  { %12653 = vmatprep.mubr.msk.f32.mxu0 %vm18698_vm2, %v983_v44  ;;  %v14524_v29 = vpop.permute.xlu1 %1364 }
 0x17e   :  { %18897 = vst [vmem:[#allocation96_spill] sm:$0xff] %v14524_v29  ;;  %vm18561_vm5 = vcmp.gt.f32.partialorder %v14524_v29, 0.0 }
 0x17f   :  { %v14532_v8 = vpop.permute.xlu0 %1360 }
 0x180   :  { %12654 = vmatmul.mubr.msk.f32.gmra.mxu0 %vm18698_vm2, %v984_v18  ;;  %18898 = vst [vmem:[#allocation97_spill] sm:$0xff] %v14532_v8  ;;  %vm18567_vm6 = vcmp.gt.f32.partialorder %v14532_v8, 0.0 }
 0x181   :  { %v14534_v57 = vpop.permute.xlu1 %1375 }
 0x182   :  { %18899 = vst [vmem:[#allocation98_spill] sm:$0xff] %v14534_v57  ;;  %vm18619_vm7 = vcmp.gt.f32.partialorder %v14534_v57, 0.0 }
 0x183   :  { %v14555_v18 = vpop.permute.xlu0 %1371 }
 0x184   :  { %18900 = vst [vmem:[#allocation99_spill] sm:$0xff] %v14555_v18  ;;  %vm18575_vm8 = vcmp.gt.f32.partialorder %v14555_v18, 0.0 }
 0x185   :  { %v14557_v22 = vpop.permute.xlu1 %1386 }
 0x186   :  { %18901 = vst [vmem:[#allocation100_spill] sm:$0xff] %v14557_v22  ;;  %vm18616_vm0 = vcmp.gt.f32.partialorder %v14557_v22, 0.0 }
 0x187   :  { %v14582_v51 = vpop.permute.xlu0 %1382 }
 0x188   :  { %18902 = vst [vmem:[#allocation101_spill] sm:$0xff] %v14582_v51 }
 0x204   :  { %v12610_v41 = vpop.f32.mrf.mxu0 }
 0x205   :  { %v14530_v61 = vsel %vm18700_vm9, %v12610_v41, -1e+30 }
 0x206   :  { %v1152_v59 = vpop.f32.mrf.mxu0  ;;  %v1617_v35 = vsel %vm18678_vm11, %v14530_v61, -inf }
 0x207   :  { %v14539_v24 = vsel %vm18691_vm10, %v1152_v59, -1e+30 }
 0x208   :  { %v1616_v52 = vsel %vm18678_vm11, %v14539_v24, -inf  ;;  %v12613_v12 = vpop.f32.mrf.mxu0 }
 0x209   :  { %v1618_v19 = vmax.f32 %v1616_v52, %v1617_v35  ;;  %v14548_v32 = vsel %vm18690_vm12, %v12613_v12, -1e+30 }
 0x20a   :  { %v1162_v62 = vpop.f32.mrf.mxu0  ;;  %v1626_v41 = vsel %vm18678_vm11, %v14548_v32, -inf }
 0x20b   :  { %v1619_v30 = vrot.slane %v1618_v19, 4  ;;  %v14553_v44 = vsel %vm18689_vm13, %v1162_v62, -1e+30 }
 0x20c   :  { %v1625_v59 = vsel %vm18678_vm11, %v14553_v44, -inf  ;;  %v12616_v35 = vpop.f32.mrf.mxu0 }
 0x20d   :  { %v1620_v52 = vmax.f32 %v1618_v19, %v1619_v30  ;;  %v1627_v12 = vmax.f32 %v1625_v59, %v1626_v41  ;;  %v14566_v16 = vsel %vm18688_vm14, %v12616_v35, -1e+30 }
 0x20e   :  { %v1172_v62 = vpop.f32.mrf.mxu0  ;;  %v1635_v28 = vsel %vm18678_vm11, %v14566_v16, -inf }
 0x20f   :  { %v1621_v14 = vrot.slane %v1620_v52, 2  ;;  %v1628_v11 = vrot.slane %v1627_v12, 4  ;;  %v14571_v49 = vsel %vm18687_vm15, %v1172_v62, -1e+30  ;;  %v14584_v62 = vpop.permute.xlu1 %1397  ;;  %vm18740_vm15 = vcmask 1047559  }
 0x210   :  { %v1634_v19 = vsel %vm18678_vm11, %v14571_v49, -inf  ;;  %v12619_v30 = vpop.f32.mrf.mxu0  ;;  %18903 = vst [vmem:[#allocation102_spill] sm:$0xff] %v14584_v62 }
 0x211   :  { %v1622_v41 = vmax.f32 %v1620_v52, %v1621_v14  ;;  %v1629_v59 = vmax.f32 %v1627_v12, %v1628_v11  ;;  %v1636_v35 = vmax.f32 %v1634_v19, %v1635_v28  ;;  %v14580_v55 = vsel %vm18568_vm3, %v12619_v30, -1e+30 }
 0x212   :  { %v1182_v47 = vpop.f32.mrf.mxu0  ;;  %v1644_v11 = vsel %vm18678_vm11, %v14580_v55, -inf }
 0x213   :  { %v1623_v40 = vrot.slane %v1622_v41, 1  ;;  %v1630_v27 = vrot.slane %v1629_v59, 2  ;;  %v1637_v38 = vrot.slane %v1636_v35, 4  ;;  %v14589_v15 = vsel %vm18562_vm4, %v1182_v47, -1e+30 }
 0x214   :  { %v1643_v14 = vsel %vm18678_vm11, %v14589_v15, -inf  ;;  %v12622_v28 = vpop.f32.mrf.mxu0  ;;  %vm18607_vm4 = vcmp.gt.f32.partialorder %v14584_v62, 0.0 }
 0x215   :  { %v1624_v52 = vmax.f32 %v1622_v41, %v1623_v40  ;;  %v1631_v12 = vmax.f32 %v1629_v59, %v1630_v27  ;;  %v1638_v19 = vmax.f32 %v1636_v35, %v1637_v38  ;;  %v1645_v30 = vmax.f32 %v1643_v14, %v1644_v11  ;;  %v14605_v27 = vpop.permute.xlu0 %1393  ;;  %v14607_v38 = vpop.permute.xlu1 %1408 }
 0x216   :  { %v14598_v36 = vsel %vm18561_vm5, %v12622_v28, -1e+30  ;;  %v1192_v3 = vpop.f32.mrf.mxu0  ;;  %18904 = vst [vmem:[#allocation103_spill] sm:$0xff] %v14605_v27  ;;  %18905 = vst [vmem:[#allocation104_spill] sm:$0xff] %v14607_v38  ;;  %vm18610_vm5 = vcmp.gt.f32.partialorder %v14582_v51, 0.0  ;;  %vm18597_vm3 = vcmp.gt.f32.partialorder %v14607_v38, 0.0 }
 0x217   :  { %v1760_v47 = vsub.f32 %v14539_v24, %v1624_v52  ;;  %v1761_v20 = vsub.f32 %v14530_v61, %v1624_v52  ;;  %v1632_v23 = vrot.slane %v1631_v12, 1  ;;  %v1639_v40 = vrot.slane %v1638_v19, 2 }
 0x218   :  { %v1646_v41 = vrot.slane %v1645_v30, 4  ;;  %v14611_v59 = vsel %vm18567_vm6, %v1192_v3, -1e+30  ;;  %v12625_v35 = vpop.f32.mrf.mxu0  ;;  %v1653_v52 = vsel %vm18678_vm11, %v14598_v36, -inf  ;;  %vm18606_vm6 = vcmp.gt.f32.partialorder %v14605_v27, 0.0 }
 0x219   :  { %v1792_v11 = vmul.f32 1.442695, %v1760_v47  ;;  %v1794_v24 = vmul.f32 1.442695, %v1761_v20  ;;  %v1633_v14 = vmax.f32 %v1631_v12, %v1632_v23  ;;  %v1640_v61 = vmax.f32 %v1638_v19, %v1639_v40 }
 0x21a   :  { %v1647_v28 = vmax.f32 %v1645_v30, %v1646_v41  ;;  %v1652_v29 = vsel %vm18678_vm11, %v14611_v59, -inf  ;;  %v14621_v3 = vsel %vm18619_vm7, %v12625_v35, -1e+30  ;;  %v1202_v8 = vpop.f32.mrf.mxu0 }
 0x21b   :  { %13303 = vpow2.f32 %v1792_v11  ;;  %v1762_v20 = vsub.f32 %v14553_v44, %v1633_v14  ;;  %v1763_v23 = vsub.f32 %v14548_v32, %v1633_v14  ;;  %v1641_v12 = vrot.slane %v1640_v61, 1  ;;  %v14633_v11 = vpop.permute.xlu0 %1404 }
 0x21c   :  { %13305 = vpow2.f32 %v1794_v24  ;;  %v1648_v19 = vrot.slane %v1647_v28, 2  ;;  %v1654_v30 = vmax.f32 %v1652_v29, %v1653_v52  ;;  %v1662_v47 = vsel %vm18678_vm11, %v14621_v3, -inf  ;;  %v12628_v40 = vpop.f32.mrf.mxu0  ;;  %18906 = vst [vmem:[#allocation105_spill] sm:$0xff] %v14633_v11 }
 0x21d   :  { %v1796_v41 = vmul.f32 1.442695, %v1762_v20  ;;  %v1798_v35 = vmul.f32 1.442695, %v1763_v23  ;;  %v1642_v57 = vmax.f32 %v1640_v61, %v1641_v12  ;;  %v14631_v9 = vsel %vm18575_vm8, %v1202_v8, -1e+30 }
 0x21e   :  { %v1649_v44 = vmax.f32 %v1647_v28, %v1648_v19  ;;  %v1655_v6 = vrot.slane %v1654_v30, 4  ;;  %v1661_v32 = vsel %vm18678_vm11, %v14631_v9, -inf  ;;  %v14639_v29 = vsel %vm18616_vm0, %v12628_v40, -1e+30  ;;  %v1212_v24 = vpop.f32.mrf.mxu0 }
 0x21f   :  { %13307 = vpow2.f32 %v1796_v41  ;;  %v1764_v14 = vsub.f32 %v14571_v49, %v1642_v57  ;;  %v1765_v61 = vsub.f32 %v14566_v16, %v1642_v57  ;;  %v1663_v52 = vmax.f32 %v1661_v32, %v1662_v47  ;;  %v14658_v41 = vpop.permute.xlu1 %1419 }
 0x220   :  { %13309 = vpow2.f32 %v1798_v35  ;;  %v1650_v8 = vrot.slane %v1649_v44, 1  ;;  %v1656_v20 = vmax.f32 %v1654_v30, %v1655_v6  ;;  %v12631_v23 = vpop.f32.mrf.mxu0  ;;  %vm18580_vm8 = vcmp.gt.f32.partialorder %v14633_v11, 0.0  ;;  %18907 = vst [vmem:[#allocation106_spill] sm:$0xff] %v14658_v41 }
 0x221   :  { %v1800_v28 = vmul.f32 1.442695, %v1764_v14  ;;  %v1802_v12 = vmul.f32 1.442695, %v1765_v61  ;;  %v1664_v19 = vrot.slane %v1663_v52, 4  ;;  %v1671_v40 = vsel %vm18678_vm11, %v14639_v29, -inf }
 0x222   :  { %v1651_v22 = vmax.f32 %v1649_v44, %v1650_v8  ;;  %v1657_v18 = vrot.slane %v1656_v20, 2  ;;  %v14648_v49 = vsel %vm18610_vm5, %v1212_v24, -1e+30  ;;  %v14652_v16 = vsel %vm18607_vm4, %v12631_v23, -1e+30  ;;  %v1222_v6 = vpop.f32.mrf.mxu0 }
 0x223   :  { %13311 = vpow2.f32 %v1800_v28  ;;  %v1665_v57 = vmax.f32 %v1663_v52, %v1664_v19  ;;  %v1670_v30 = vsel %vm18678_vm11, %v14648_v49, -inf  ;;  %v1680_v47 = vsel %vm18678_vm11, %v14652_v16, -inf }
 0x224   :  { %13313 = vpow2.f32 %v1802_v12  ;;  %v1766_v35 = vsub.f32 %v14589_v15, %v1651_v22  ;;  %v1767_v44 = vsub.f32 %v14580_v55, %v1651_v22  ;;  %v1658_v32 = vmax.f32 %v1656_v20, %v1657_v18  ;;  %v12634_v24 = vpop.f32.mrf.mxu0  ;;  %v14672_v55 = vpop.permute.xlu0 %1415 }
 0x225   :  { %v1666_v14 = vrot.slane %v1665_v57, 2  ;;  %v1672_v61 = vmax.f32 %v1670_v30, %v1671_v40  ;;  %v14664_v52 = vsel %vm18606_vm6, %v1222_v6, -1e+30  ;;  %v14668_v8 = vsel %vm18597_vm3, %v12634_v24, -1e+30  ;;  %18908 = vst [vmem:[#allocation107_spill] sm:$0xff] %v14672_v55 }
 0x226   :  { %v1804_v23 = vmul.f32 1.442695, %v1766_v35  ;;  %v1806_v28 = vmul.f32 1.442695, %v1767_v44  ;;  %v1659_v19 = vrot.slane %v1658_v32, 1  ;;  %v1679_v15 = vsel %vm18678_vm11, %v14664_v52, -inf  ;;  %v1232_v12 = vpop.f32.mrf.mxu0 }
 0x227   :  { %v1667_v18 = vmax.f32 %v1665_v57, %v1666_v14  ;;  %v1673_v22 = vrot.slane %v1672_v61, 4  ;;  %v1681_v20 = vmax.f32 %v1679_v15, %v1680_v47  ;;  %v1689_v30 = vsel %vm18678_vm11, %v14668_v8, -inf  ;;  %v14688_v15 = vpop.permute.xlu1 %1430 }
 0x228   :  { %v14674_v40 = vpop.eup %13303  ;;  %13315 = vpow2.f32 %v1804_v23  ;;  %v1660_v6 = vmax.f32 %v1658_v32, %v1659_v19  ;;  %v14680_v35 = vsel %vm18580_vm8, %v1232_v12, -1e+30  ;;  %v14682_v44 = vpop.f32.mrf.mxu0  ;;  %18909 = vst [vmem:[#allocation108_spill] sm:$0xff] %v14688_v15  ;;  %vm18611_vm8 = vcmp.gt.f32.partialorder %v14658_v41, 0.0 }
 0x229   :  { %v14684_v24 = vpop.eup %13305  ;;  %v1856_v57 = vsel %vm18678_vm11, %v14674_v40, 0.0  ;;  %13317 = vpow2.f32 %v1806_v28  ;;  %v1668_v47 = vrot.slane %v1667_v18, 1  ;;  %v1674_v14 = vmax.f32 %v1672_v61, %v1673_v22 }
 0x22a   :  { %v1857_v32 = vsel %vm18678_vm11, %v14684_v24, 0.0  ;;  %v1768_v23 = vsub.f32 %v14611_v59, %v1660_v6  ;;  %v1769_v19 = vsub.f32 %v14598_v36, %v1660_v6  ;;  %v1682_v12 = vrot.slane %v1681_v20, 4  ;;  %v14695_v11 = vpop.f32.mrf.mxu0  ;;  %v14703_v36 = vpop.permute.xlu0 %1426 }
 0x22b   :  { %v1858_v38 = vadd.f32 %v1857_v32, %v1856_v57  ;;  %v1669_v27 = vmax.f32 %v1667_v18, %v1668_v47  ;;  %v1675_v62 = vrot.slane %v1674_v14, 2  ;;  %v1688_v61 = vsel %vm18678_vm11, %v14680_v35, -inf  ;;  %18910 = vst [vmem:[#allocation109_spill] sm:$0xff] %v14703_v36 }
 0x22c   :  { %v14699_v28 = vpop.eup %13307  ;;  %v1808_v22 = vmul.f32 1.442695, %v1768_v23  ;;  %v1810_v51 = vmul.f32 1.442695, %v1769_v19  ;;  %v1683_v39 = vmax.f32 %v1681_v20, %v1682_v12  ;;  %v1690_v56 = vmax.f32 %v1688_v61, %v1689_v30  ;;  %v14701_v59 = vpop.f32.mrf.mxu0 }
 0x22d   :  { %v14705_v6 = vpop.eup %13309  ;;  %v1859_v1 = vrot.slane %v1858_v38, 4  ;;  %v1865_v18 = vsel %vm18678_vm11, %v14699_v28, 0.0  ;;  %v1770_v57 = vsub.f32 %v14631_v9, %v1669_v27  ;;  %v1771_v47 = vsub.f32 %v14621_v3, %v1669_v27  ;;  %v14716_v61 = vpop.permute.xlu1 %1441 }
 0x22e   :  { %v1866_v32 = vsel %vm18678_vm11, %v14705_v6, 0.0  ;;  %13319 = vpow2.f32 %v1808_v22  ;;  %v1676_v20 = vmax.f32 %v1674_v14, %v1675_v62  ;;  %v1684_v30 = vrot.slane %v1683_v39, 2  ;;  %v14713_v23 = vpop.f32.mrf.mxu0  ;;  %18911 = vst [vmem:[#allocation110_spill] sm:$0xff] %v14716_v61 }
 0x22f   :  { %v1867_v19 = vadd.f32 %v1866_v32, %v1865_v18  ;;  %13321 = vpow2.f32 %v1810_v51  ;;  %v1812_v12 = vmul.f32 1.442695, %v1770_v57  ;;  %vm18686_vm3 = vcmp.gt.f32.partialorder %v14672_v55, 0.0 }
 0x230   :  { %v14718_v33 = vpop.eup %13311  ;;  %v1814_v9 = vmul.f32 1.442695, %v1771_v47  ;;  %v1677_v2 = vrot.slane %v1676_v20, 1  ;;  %v1685_v27 = vmax.f32 %v1683_v39, %v1684_v30  ;;  %v1691_v3 = vrot.slane %v1690_v56, 4  ;;  %v14726_v32 = vpop.f32.mrf.mxu0 }
 0x231   :  { %v14720_v17 = vpop.eup %13313  ;;  %v1860_v22 = vadd.f32 %v1859_v1, %v1858_v38  ;;  %v1868_v62 = vrot.slane %v1867_v19, 4  ;;  %v1874_v14 = vsel %vm18678_vm11, %v14718_v33, 0.0  ;;  %13323 = vpow2.f32 %v1812_v12  ;;  %v14728_v47 = vpop.permute.xlu0 %1437 }
 0x232   :  { %v1875_v51 = vsel %vm18678_vm11, %v14720_v17, 0.0  ;;  %13325 = vpow2.f32 %v1814_v9  ;;  %v1678_v18 = vmax.f32 %v1676_v20, %v1677_v2  ;;  %v1686_v57 = vrot.slane %v1685_v27, 1  ;;  %18912 = vst [vmem:[#allocation111_spill] sm:$0xff] %v14728_v47 }
 0x233   :  { %v1869_v39 = vadd.f32 %v1868_v62, %v1867_v19  ;;  %v1876_v30 = vadd.f32 %v1875_v51, %v1874_v14  ;;  %v1692_v26 = vmax.f32 %v1690_v56, %v1691_v3  ;;  %vm18622_vm6 = vcmp.gt.f32.partialorder %v14688_v15, 0.0  ;;  %v14742_v56 = vpop.permute.xlu1 %1452  ;;  %v1262_v62 = vpop.f32.mrf.mxu0 }
 0x234   :  { %v1772_v1 = vsub.f32 %v14648_v49, %v1678_v18  ;;  %v1773_v38 = vsub.f32 %v14639_v29, %v1678_v18  ;;  %v1687_v12 = vmax.f32 %v1685_v27, %v1686_v57  ;;  %vm18635_vm4 = vcmp.gt.f32.partialorder %v14703_v36, 0.0  ;;  %18913 = vst [vmem:[#allocation112_spill] sm:$0xff] %v14742_v56 }
 0x235   :  { %v14734_v25 = vpop.eup %13315  ;;  %v1861_v2 = vrot.slane %v1860_v22, 2  ;;  %v1693_v20 = vrot.slane %v1692_v26, 2  ;;  %v14739_v9 = vsel %vm18611_vm8, %v14682_v44, -1e+30  ;;  %vm18685_vm5 = vcmp.gt.f32.partialorder %v14716_v61, 0.0 }
 0x236   :  { %v14744_v19 = vpop.eup %13317  ;;  %v1883_v29 = vsel %vm18678_vm11, %v14734_v25, 0.0  ;;  %v1816_v49 = vmul.f32 1.442695, %v1772_v1  ;;  %v1818_v27 = vmul.f32 1.442695, %v1773_v38  ;;  %v1774_v3 = vsub.f32 %v14664_v52, %v1687_v12  ;;  %v14754_v1 = vpop.permute.xlu0 %1448 }
 0x237   :  { %v1870_v14 = vrot.slane %v1869_v39, 2  ;;  %v1877_v51 = vrot.slane %v1876_v30, 4  ;;  %v1884_v44 = vsel %vm18678_vm11, %v14744_v19, 0.0  ;;  %v1775_v18 = vsub.f32 %v14652_v16, %v1687_v12  ;;  %18914 = vst [vmem:[#allocation113_spill] sm:$0xff] %v14754_v1 }
 0x238   :  { %vm18640_vm8 = vcmp.gt.f32.partialorder %v14728_v47, 0.0  ;;  %v1885_v57 = vadd.f32 %v1884_v44, %v1883_v29  ;;  %13327 = vpow2.f32 %v1816_v49  ;;  %v1820_v41 = vmul.f32 1.442695, %v1774_v3  ;;  %v14770_v3 = vpop.permute.xlu1 %1463 }
 0x239   :  { %v1694_v63 = vmax.f32 %v1692_v26, %v1693_v20  ;;  %vm18670_vm0 = vcmp.gt.f32.partialorder %v14742_v56, 0.0  ;;  %13329 = vpow2.f32 %v1818_v27  ;;  %v1822_v52 = vmul.f32 1.442695, %v1775_v18  ;;  %v12646_v20 = vpop.f32.mrf.mxu0  ;;  %18915 = vst [vmem:[#allocation114_spill] sm:$0xff] %v14770_v3 }
 0x23a   :  { %v1698_v38 = vsel %vm18678_vm11, %v14739_v9, -inf  ;;  %v14761_v7 = vsel %vm18686_vm3, %v14695_v11, -1e+30  ;;  %v1886_v16 = vrot.slane %v1885_v57, 4  ;;  %13331 = vpow2.f32 %v1820_v41 }
 0x23b   :  { %v1695_v12 = vrot.slane %v1694_v63, 1  ;;  %v1697_v26 = vsel %vm18678_vm11, %v14761_v7, -inf  ;;  %v14765_v29 = vpop.eup %13319  ;;  %v14767_v49 = vadd.f32 %v1861_v2, %v1860_v22  ;;  %13333 = vpow2.f32 %v1822_v52 }
 0x23c   :  { %v1699_v27 = vmax.f32 %v1697_v26, %v1698_v38  ;;  %vm18657_vm7 = vcmp.gt.f32.partialorder %v14754_v1, 0.0  ;;  %v14772_v44 = vpop.eup %13321  ;;  %v14774_v11 = vadd.f32 %v1870_v14, %v1869_v39  ;;  %v1892_v41 = vsel %vm18678_vm11, %v14765_v29, 0.0  ;;  %v14816_v42 = vpop.permute.xlu1 %1474 }
 0x23d   :  { %v1696_v18 = vmax.f32 %v1694_v63, %v1695_v12  ;;  %v14781_v55 = vsel %vm18622_vm6, %v14701_v59, -1e+30  ;;  %v14783_v22 = vadd.f32 %v1877_v51, %v1876_v30  ;;  %v1893_v2 = vsel %vm18678_vm11, %v14772_v44, 0.0  ;;  %v1272_v30 = vpop.f32.mrf.mxu0 }
 0x23e   :  { %v1700_v52 = vrot.slane %v1699_v27, 4  ;;  %v14790_v39 = vsel %vm18635_vm4, %v14713_v23, -1e+30  ;;  %v14792_v14 = vpop.eup %13323  ;;  %v14794_v38 = vadd.f32 %v1886_v16, %v1885_v57  ;;  %v1894_v63 = vadd.f32 %v1893_v2, %v1892_v41  ;;  %v14807_v16 = vpop.permute.xlu0 %1459 }
 0x23f   :  { %v1776_v12 = vsub.f32 %v14680_v35, %v1696_v18  ;;  %v1777_v59 = vsub.f32 %v14668_v8, %v1696_v18  ;;  %vm18675_vm6 = vcmp.gt.f32.partialorder %v14770_v3, 0.0  ;;  %v14799_v51 = vpop.eup %13325  ;;  %v1901_v26 = vsel %vm18678_vm11, %v14792_v14, 0.0 }
 0x240   :  { %v1701_v36 = vmax.f32 %v1699_v27, %v1700_v52  ;;  %v1707_v23 = vsel %vm18678_vm11, %v14781_v55, -inf  ;;  %v1706_v57 = vsel %vm18678_vm11, %v14790_v39, -inf  ;;  %v1895_v35 = vrot.slane %v1894_v63, 4  ;;  %v14859_v50 = vpop.permute.xlu1 %1485 }
 0x241   :  { %v1902_v8 = vsel %vm18678_vm11, %v14799_v51, 0.0  ;;  %v1824_v41 = vmul.f32 1.442695, %v1776_v12  ;;  %v14814_v18 = vsel %vm18685_vm5, %v14726_v32, -1e+30  ;;  %v1708_v15 = vmax.f32 %v1706_v57, %v1707_v23  ;;  %v12649_v12 = vpop.f32.mrf.mxu0 }
 0x242   :  { %v1903_v2 = vadd.f32 %v1902_v8, %v1901_v26  ;;  %v1826_v27 = vmul.f32 1.442695, %v1777_v59  ;;  %v1702_v52 = vrot.slane %v1701_v36, 2  ;;  %v1879_v34 = vrot.slane %v14783_v22, 2  ;;  %v14840_v8 = vpop.permute.xlu0 %1470 }
 0x243   :  { %v1896_v21 = vadd.f32 %v1895_v35, %v1894_v63  ;;  %13335 = vpow2.f32 %v1824_v41  ;;  %v14821_v13 = vsel %vm18640_vm8, %v1262_v62, -1e+30  ;;  %vm18684_vm4 = vcmp.gt.f32.partialorder %v14807_v16, 0.0  ;;  %18916 = vst [vmem:[#allocation115_spill] sm:$0xff] %v14840_v8  ;;  %v1282_v56 = vpop.f32.mrf.mxu0 }
 0x244   :  { %v1904_v61 = vrot.slane %v1903_v2, 4  ;;  %v1703_v32 = vmax.f32 %v1701_v36, %v1702_v52  ;;  %v1709_v5 = vrot.slane %v1708_v15, 4  ;;  %v14826_v59 = vsel %vm18670_vm0, %v12646_v20, -1e+30 }
 0x245   :  { %13337 = vpow2.f32 %v1826_v27  ;;  %v1716_v26 = vsel %vm18678_vm11, %v14814_v18, -inf  ;;  %v1715_v63 = vsel %vm18678_vm11, %v14821_v13, -inf  ;;  %v14834_v62 = vsel %vm18657_vm7, %v1272_v30, -1e+30  ;;  %v14837_v23 = vpop.eup %13327 }
 0x246   :  { %vm18683_vm8 = vcmp.gt.f32.partialorder %v14816_v42, 0.0  ;;  %v1888_v36 = vrot.slane %v14794_v38, 2  ;;  %v1704_v57 = vrot.slane %v1703_v32, 1  ;;  %v1710_v20 = vmax.f32 %v1708_v15, %v1709_v5  ;;  %v14842_v41 = vpop.eup %13329 }
 0x247   :  { %v1717_v35 = vmax.f32 %v1715_v63, %v1716_v26  ;;  %v1897_v27 = vrot.slane %v1896_v21, 2  ;;  %v1910_v52 = vsel %vm18678_vm11, %v14837_v23, 0.0  ;;  %v1725_v30 = vsel %vm18678_vm11, %v14826_v59, -inf  ;;  %v14850_v47 = vpop.eup %13331 }
 0x248   :  { %v1724_v1 = vsel %vm18678_vm11, %v14834_v62, -inf  ;;  %v1905_v0 = vadd.f32 %v1904_v61, %v1903_v2  ;;  %v1911_v5 = vsel %vm18678_vm11, %v14842_v41, 0.0  ;;  %v1705_v15 = vmax.f32 %v1703_v32, %v1704_v57  ;;  %v14854_v63 = vpop.eup %13333 }
 0x249   :  { %v1711_v26 = vrot.slane %v1710_v20, 2  ;;  %v1912_v60 = vadd.f32 %v1911_v5, %v1910_v52  ;;  %v1919_v54 = vsel %vm18678_vm11, %v14850_v47, 0.0  ;;  %v1718_v58 = vrot.slane %v1717_v35, 4 }
 0x24a   :  { %v1726_v10 = vmax.f32 %v1724_v1, %v1725_v30  ;;  %vm18682_vm7 = vcmp.gt.f32.partialorder %v14840_v8, 0.0  ;;  %v1920_v61 = vsel %vm18678_vm11, %v14854_v63, 0.0  ;;  %v1778_v2 = vsub.f32 %v14761_v7, %v1705_v15  ;;  %v12652_v1 = vpop.f32.mrf.mxu0  ;;  %v14873_v7 = vpop.permute.xlu0 %1481 }
 0x24b   :  { %v1779_v32 = vsub.f32 %v14739_v9, %v1705_v15  ;;  %v14867_v57 = vsel %vm18675_vm6, %v12649_v12, -1e+30  ;;  %v1913_v52 = vrot.slane %v1912_v60, 4  ;;  %v1921_v5 = vadd.f32 %v1920_v61, %v1919_v54 }
 0x24c   :  { %v1712_v53 = vmax.f32 %v1710_v20, %v1711_v26  ;;  %v1719_v46 = vmax.f32 %v1717_v35, %v1718_v58  ;;  %v14870_v30 = vadd.f32 %v1879_v34, %v14783_v22  ;;  %v1828_v48 = vmul.f32 1.442695, %v1778_v2  ;;  %v1292_v35 = vpop.f32.mrf.mxu0 }
 0x24d   :  { %v1830_v43 = vmul.f32 1.442695, %v1779_v32  ;;  %v1727_v45 = vrot.slane %v1726_v10, 4  ;;  %vm18681_vm0 = vcmp.gt.f32.partialorder %v14859_v50, 0.0  ;;  %v1906_v9 = vrot.slane %v1905_v0, 2 }
 0x24e   :  { %v1914_v15 = vadd.f32 %v1913_v52, %v1912_v60  ;;  %v1713_v3 = vrot.slane %v1712_v53, 1  ;;  %v1720_v12 = vrot.slane %v1719_v46, 2  ;;  %v1922_v4 = vrot.slane %v1921_v5, 4 }
 0x24f   :  { %13339 = vpow2.f32 %v1828_v48  ;;  %v1728_v54 = vmax.f32 %v1726_v10, %v1727_v45  ;;  %v14877_v58 = vsel %vm18684_vm4, %v1282_v56, -1e+30  ;;  %v14880_v34 = vadd.f32 %v1888_v36, %v14794_v38 }
 0x250   :  { %v14882_v22 = vadd.f32 %v1897_v27, %v1896_v21  ;;  %13341 = vpow2.f32 %v1830_v43  ;;  %v1714_v20 = vmax.f32 %v1712_v53, %v1713_v3  ;;  %vm18680_vm6 = vcmp.gt.f32.partialorder %v14873_v7, 0.0  ;;  %v14885_v60 = vpop.eup %13335 }
 0x251   :  { %v1721_v26 = vmax.f32 %v1719_v46, %v1720_v12  ;;  %v1729_v61 = vrot.slane %v1728_v54, 2  ;;  %v1733_v10 = vsel %vm18678_vm11, %v14877_v58, -inf  ;;  %v14891_v45 = vsel %vm18683_vm8, %v12652_v1, -1e+30 }
 0x252   :  { %v14893_v48 = vadd.f32 %v1906_v9, %v1905_v0  ;;  %v1915_v21 = vrot.slane %v1914_v15, 2  ;;  %v1780_v43 = vsub.f32 %v14790_v39, %v1714_v20  ;;  %v1734_v53 = vsel %vm18678_vm11, %v14867_v57, -inf  ;;  %v14898_v56 = vpop.eup %13337  ;;  %v12655_v39 = vpop.f32.mrf.mxu0 }
 0x253   :  { %v14900_v3 = vadd.f32 %v1922_v4, %v1921_v5  ;;  %v1781_v46 = vsub.f32 %v14781_v55, %v1714_v20  ;;  %v1722_v38 = vrot.slane %v1721_v26, 1  ;;  %v1730_v36 = vmax.f32 %v1728_v54, %v1729_v61 }
 0x254   :  { %v1928_v27 = vsel %vm18678_vm11, %v14885_v60, 0.0  ;;  %v1832_v2 = vmul.f32 1.442695, %v1780_v43  ;;  %v1735_v0 = vmax.f32 %v1733_v10, %v1734_v53  ;;  %v1743_v32 = vsel %vm18678_vm11, %v14891_v45, -inf  ;;  %v1302_v53 = vpop.f32.mrf.mxu0 }
 0x255   :  { %v1834_v52 = vmul.f32 1.442695, %v1781_v46  ;;  %v1723_v1 = vmax.f32 %v1721_v26, %v1722_v38  ;;  %v1731_v9 = vrot.slane %v1730_v36, 1  ;;  %v14909_v4 = vsel %vm18682_vm7, %v1292_v35, -1e+30 }
 0x256   :  { %v1929_v55 = vsel %vm18678_vm11, %v14898_v56, 0.0  ;;  %13343 = vpow2.f32 %v1832_v2  ;;  %v1736_v5 = vrot.slane %v1735_v0, 4  ;;  %v1742_v12 = vsel %vm18678_vm11, %v14909_v4, -inf }
 0x257   :  { %13345 = vpow2.f32 %v1834_v52  ;;  %v1782_v54 = vsub.f32 %v14821_v13, %v1723_v1  ;;  %v1783_v20 = vsub.f32 %v14814_v18, %v1723_v1  ;;  %v1732_v61 = vmax.f32 %v1730_v36, %v1731_v9 }
 0x258   :  { %v14917_v26 = vadd.f32 %v1915_v21, %v1914_v15  ;;  %v1737_v10 = vmax.f32 %v1735_v0, %v1736_v5  ;;  %v1744_v43 = vmax.f32 %v1742_v12, %v1743_v32  ;;  %v14921_v35 = vsel %vm18681_vm0, %v12655_v39, -1e+30 }
 0x259   :  { %v1836_v46 = vmul.f32 1.442695, %v1782_v54  ;;  %v1838_v38 = vmul.f32 1.442695, %v1783_v20  ;;  %v1784_v2 = vsub.f32 %v14834_v62, %v1732_v61  ;;  %v1785_v52 = vsub.f32 %v14826_v59, %v1732_v61 }
 0x25a   :  { %v1924_v13 = vrot.slane %v14900_v3, 2  ;;  %v1930_v8 = vadd.f32 %v1929_v55, %v1928_v27  ;;  %v1738_v18 = vrot.slane %v1737_v10, 2  ;;  %v1745_v36 = vrot.slane %v1744_v43, 4 }
 0x25b   :  { %13347 = vpow2.f32 %v1836_v46  ;;  %v1840_v15 = vmul.f32 1.442695, %v1784_v2  ;;  %v1842_v21 = vmul.f32 1.442695, %v1785_v52  ;;  %v14928_v0 = vsel %vm18680_vm6, %v1302_v53, -1e+30 }
 0x25c   :  { %v14930_v32 = vpop.eup %13339  ;;  %13349 = vpow2.f32 %v1838_v38  ;;  %v1739_v39 = vmax.f32 %v1737_v10, %v1738_v18  ;;  %v1746_v1 = vmax.f32 %v1744_v43, %v1745_v36  ;;  %v1752_v59 = vsel %vm18678_vm11, %v14921_v35, -inf }
 0x25d   :  { %v14934_v62 = vpop.eup %13341  ;;  %v1937_v27 = vsel %vm18678_vm11, %v14930_v32, 0.0  ;;  %13351 = vpow2.f32 %v1840_v15  ;;  %v1751_v9 = vsel %vm18678_vm11, %v14928_v0, -inf  ;;  %v1863_v55 = vrot.slane %v14767_v49, 1 }
 0x25e   :  { %v1938_v5 = vsel %vm18678_vm11, %v14934_v62, 0.0  ;;  %13353 = vpow2.f32 %v1842_v21  ;;  %v1740_v12 = vrot.slane %v1739_v39, 1  ;;  %v1747_v54 = vrot.slane %v1746_v1, 2 }
 0x25f   :  { %v1931_v20 = vrot.slane %v1930_v8, 4  ;;  %v1753_v61 = vmax.f32 %v1751_v9, %v1752_v59  ;;  %v1864_v10 = vadd.f32 %v1863_v55, %v14767_v49  ;;  %v1872_v43 = vrot.slane %v14774_v11, 1 }
 0x260   :  { %v1741_v53 = vmax.f32 %v1739_v39, %v1740_v12  ;;  %v1748_v46 = vmax.f32 %v1746_v1, %v1747_v54  ;;  %v1881_v38 = vrot.slane %v14870_v30, 1  ;;  %v1890_v2 = vrot.slane %v14880_v34, 1 }
 0x261   :  { %v1939_v52 = vadd.f32 %v1938_v5, %v1937_v27  ;;  %v1754_v18 = vrot.slane %v1753_v61, 4  ;;  %13355 = vrcp.f32 %v1864_v10  ;;  %v1873_v36 = vadd.f32 %v1872_v43, %v14774_v11 }
 0x262   :  { %v1786_v15 = vsub.f32 %v14877_v58, %v1741_v53  ;;  %v1787_v21 = vsub.f32 %v14867_v57, %v1741_v53  ;;  %v1749_v59 = vrot.slane %v1748_v46, 1  ;;  %v1882_v49 = vadd.f32 %v1881_v38, %v14870_v30 }
 0x263   :  { %v14951_v9 = vpop.eup %13343  ;;  %v1932_v39 = vadd.f32 %v1931_v20, %v1930_v8  ;;  %v1755_v1 = vmax.f32 %v1753_v61, %v1754_v18  ;;  %13357 = vrcp.f32 %v1873_v36  ;;  %v1891_v55 = vadd.f32 %v1890_v2, %v14880_v34 }
 0x264   :  { %v14954_v12 = vpop.eup %13345  ;;  %v1946_v27 = vsel %vm18678_vm11, %v14951_v9, 0.0  ;;  %v1844_v11 = vmul.f32 1.442695, %v1786_v15  ;;  %v1846_v5 = vmul.f32 1.442695, %v1787_v21  ;;  %v1750_v58 = vmax.f32 %v1748_v46, %v1749_v59 }
 0x265   :  { %v1940_v54 = vrot.slane %v1939_v52, 4  ;;  %v1947_v57 = vsel %vm18678_vm11, %v14954_v12, 0.0  ;;  %v1756_v30 = vrot.slane %v1755_v1, 2  ;;  %13359 = vrcp.f32 %v1882_v49 }
 0x266   :  { %v1948_v10 = vadd.f32 %v1947_v57, %v1946_v27  ;;  %13361 = vpow2.f32 %v1844_v11  ;;  %v1788_v8 = vsub.f32 %v14909_v4, %v1750_v58  ;;  %v1789_v34 = vsub.f32 %v14891_v45, %v1750_v58 }
 0x267   :  { %v1925_v20 = vadd.f32 %v1924_v13, %v14900_v3  ;;  %13363 = vpow2.f32 %v1846_v5  ;;  %v1757_v61 = vmax.f32 %v1755_v1, %v1756_v30  ;;  %v1899_v43 = vrot.slane %v14882_v22, 1 }
 0x268   :  { %v14964_v53 = vpop.eup %13347  ;;  %v1933_v46 = vrot.slane %v1932_v39, 2  ;;  %v1848_v38 = vmul.f32 1.442695, %v1788_v8  ;;  %v1850_v2 = vmul.f32 1.442695, %v1789_v34  ;;  %13365 = vrcp.f32 %v1891_v55 }
 0x269   :  { %v14966_v18 = vpop.eup %13349  ;;  %v1955_v36 = vsel %vm18678_vm11, %v14964_v53, 0.0  ;;  %v1758_v4 = vrot.slane %v1757_v61, 1  ;;  %v1900_v45 = vadd.f32 %v1899_v43, %v14882_v22  ;;  %v1908_v3 = vrot.slane %v14893_v48, 1 }
 0x26a   :  { %v14972_v13 = vpop.eup %13351  ;;  %v1941_v15 = vadd.f32 %v1940_v54, %v1939_v52  ;;  %v1949_v21 = vrot.slane %v1948_v10, 4  ;;  %v1956_v59 = vsel %vm18678_vm11, %v14966_v18, 0.0  ;;  %13367 = vpow2.f32 %v1848_v38 }
 0x26b   :  { %v14976_v49 = vpop.eup %13353  ;;  %v1957_v1 = vadd.f32 %v1956_v59, %v1955_v36  ;;  %v1964_v55 = vsel %vm18678_vm11, %v14972_v13, 0.0  ;;  %13369 = vpow2.f32 %v1850_v2  ;;  %v1759_v27 = vmax.f32 %v1757_v61, %v1758_v4 }
 0x26c   :  { %v1965_v22 = vsel %vm18678_vm11, %v14976_v49, 0.0  ;;  %13371 = vrcp.f32 %v1900_v45  ;;  %v1909_v11 = vadd.f32 %v1908_v3, %v14893_v48  ;;  %v1917_v52 = vrot.slane %v14917_v26, 1 }
 0x26d   :  { %v1790_v5 = vsub.f32 %v14928_v0, %v1759_v27  ;;  %v1791_v58 = vsub.f32 %v14921_v35, %v1759_v27  ;;  %v1934_v57 = vadd.f32 %v1933_v46, %v1932_v39  ;;  %v1942_v30 = vrot.slane %v1941_v15, 2 }
 0x26e   :  { %v13356_v54 = vpop.eup %13355  ;;  %v1958_v8 = vrot.slane %v1957_v1, 4  ;;  %v1966_v34 = vadd.f32 %v1965_v22, %v1964_v55  ;;  %v1950_v43 = vadd.f32 %v1949_v21, %v1948_v10  ;;  %v1926_v2 = vrot.slane %v1925_v20, 1 }
 0x26f   :  { %v1852_v38 = vmul.f32 1.442695, %v1790_v5  ;;  %v1854_v61 = vmul.f32 1.442695, %v1791_v58  ;;  %v2016_v4 = vmul.f32 %v13356_v54, %v14674_v40  ;;  %v2017_v48 = vmul.f32 %v13356_v54, %v14684_v24 }
 0x270   :  { %v13358_v36 = vpop.eup %13357  ;;  %13373 = vrcp.f32 %v1909_v11  ;;  %v1918_v45 = vadd.f32 %v1917_v52, %v14917_v26  ;;  %v1959_v39 = vadd.f32 %v1958_v8, %v1957_v1  ;;  %v1967_v46 = vrot.slane %v1966_v34, 4 }
 0x271   :  { %13375 = vpow2.f32 %v1852_v38  ;;  %v2018_v35 = vmul.f32 %v13358_v36, %v14699_v28  ;;  %12658 = vmatprep.mubr.msk.f32.mxu1 %vm18678_vm11, %v2016_v4  ;;  %v1943_v3 = vadd.f32 %v1942_v30, %v1941_v15  ;;  %v1951_v21 = vrot.slane %v1950_v43, 2 }
 0x272   :  { %v13360_v0 = vpop.eup %13359  ;;  %13377 = vpow2.f32 %v1854_v61  ;;  %12659 = vmatmul.mubr.msk.f32.vlgmr.msra.gmra.mxu1 %vm18678_vm11, %v2017_v48  ;;  %v2019_v40 = vmul.f32 %v13358_v36, %v14705_v6  ;;  %v1927_v24 = vadd.f32 %v1926_v2, %v1925_v20  ;;  %v1935_v1 = vrot.slane %v1934_v57, 1 }
 0x273   :  { %v14991_v10 = vpop.eup %13361  ;;  %12661 = vmatprep.mubr.msk.f32.mxu1 %vm18678_vm11, %v2018_v35  ;;  %v2020_v26 = vmul.f32 %v13360_v0, %v14718_v33  ;;  %13379 = vrcp.f32 %v1918_v45  ;;  %v1960_v27 = vrot.slane %v1959_v39, 2  ;;  %v1968_v22 = vadd.f32 %v1967_v46, %v1966_v34 }
 0x274   :  { %v14995_v59 = vpop.eup %13363  ;;  %v1973_v28 = vsel %vm18678_vm11, %v14991_v10, 0.0  ;;  %v1952_v20 = vadd.f32 %v1951_v21, %v1950_v43  ;;  %v2021_v52 = vmul.f32 %v13360_v0, %v14720_v17  ;;  %13381 = vrcp.f32 %v1927_v24 }
 0x275   :  { %v13366_v55 = vpop.eup %13365  ;;  %v1974_v15 = vsel %vm18678_vm11, %v14995_v59, 0.0  ;;  %v1944_v5 = vrot.slane %v1943_v3, 1  ;;  %v1936_v8 = vadd.f32 %v1935_v1, %v1934_v57  ;;  %v1961_v38 = vadd.f32 %v1960_v27, %v1959_v39 }
 0x276   :  { %v1975_v11 = vadd.f32 %v1974_v15, %v1973_v28  ;;  %12662 = vmatmul.mubr.msk.f32.gmra.mxu1 %vm18678_vm11, %v2019_v40  ;;  %v2022_v30 = vmul.f32 %v13366_v55, %v14734_v25  ;;  %v1969_v61 = vrot.slane %v1968_v22, 2  ;;  %v2023_v2 = vmul.f32 %v13366_v55, %v14744_v19 }
 0x277   :  { %v15003_v6 = vpop.eup %13367  ;;  %12664 = vmatprep.mubr.msk.f32.mxu1 %vm18678_vm11, %v2020_v26  ;;  %v1945_v36 = vadd.f32 %v1944_v5, %v1943_v3  ;;  %v1953_v4 = vrot.slane %v1952_v20, 1  ;;  %13383 = vrcp.f32 %v1936_v8  ;;  %v1962_v39 = vrot.slane %v1961_v38, 1 }
 0x278   :  { %v15007_v58 = vpop.eup %13369  ;;  %v1976_v33 = vrot.slane %v1975_v11, 4  ;;  %v1982_v54 = vsel %vm18678_vm11, %v15003_v6, 0.0  ;;  %v1970_v0 = vadd.f32 %v1969_v61, %v1968_v22  ;;  %vm2655_vm0 = vcmask 1042434  }
 0x279   :  { %v13372_v34 = vpop.eup %13371  ;;  %v1983_v43 = vsel %vm18678_vm11, %v15007_v58, 0.0  ;;  %13385 = vrcp.f32 %v1945_v36  ;;  %v1954_v3 = vadd.f32 %v1953_v4, %v1952_v20  ;;  %v1963_v27 = vadd.f32 %v1962_v39, %v1961_v38 }
 0x27a   :  { %v1984_v17 = vadd.f32 %v1983_v43, %v1982_v54  ;;  %12665 = vmatmul.mubr.msk.f32.gmra.mxu1 %vm18678_vm11, %v2021_v52  ;;  %v1977_v48 = vadd.f32 %v1976_v33, %v1975_v11  ;;  %v2024_v25 = vmul.f32 %v13372_v34, %v14765_v29  ;;  %v2025_v19 = vmul.f32 %v13372_v34, %v14772_v44 }
 0x27b   :  { %12667 = vmatprep.mubr.msk.f32.mxu1 %vm18678_vm11, %v2022_v30  ;;  %v1971_v44 = vrot.slane %v1970_v0, 1  ;;  %13387 = vrcp.f32 %v1954_v3  ;;  %vm2661_vm4 = vcmask 1044484   ;;  %vm2664_vm5 = vcmask 1045509  }
 0x27c   :  { %v1985_v45 = vrot.slane %v1984_v17, 4  ;;  %v1978_v40 = vrot.slane %v1977_v48, 2  ;;  %13389 = vrcp.f32 %v1963_v27 }
 0x27d   :  { %v13374_v57 = vpop.eup %13373  ;;  %v1972_v33 = vadd.f32 %v1971_v44, %v1970_v0 }
 0x27e   :  { %v15019_v35 = vpop.eup %13375  ;;  %12668 = vmatmul.mubr.msk.f32.gmra.mxu1 %vm18678_vm11, %v2023_v2  ;;  %v1986_v24 = vadd.f32 %v1985_v45, %v1984_v17  ;;  %v2026_v28 = vmul.f32 %v13374_v57, %v14792_v14  ;;  %v2027_v15 = vmul.f32 %v13374_v57, %v14799_v51  ;;  %v1979_v11 = vadd.f32 %v1978_v40, %v1977_v48 }
 0x27f   :  { %v15021_v46 = vpop.eup %13377  ;;  %v1991_v21 = vsel %vm18678_vm11, %v15019_v35, 0.0  ;;  %12670 = vmatprep.mubr.msk.f32.mxu1 %vm18678_vm11, %v2024_v25  ;;  %13391 = vrcp.f32 %v1972_v33 }
 0x280   :  { %v1992_v29 = vsel %vm18678_vm11, %v15021_v46, 0.0  ;;  %v13380_v26 = vpop.eup %13379  ;;  %v1987_v20 = vrot.slane %v1986_v24, 2  ;;  %v1980_v8 = vrot.slane %v1979_v11, 1 }
 0x281   :  { %v1993_v1 = vadd.f32 %v1992_v29, %v1991_v21  ;;  %v13382_v22 = vpop.eup %13381  ;;  %v2028_v52 = vmul.f32 %v13380_v26, %v14837_v23  ;;  %v2029_v14 = vmul.f32 %v13380_v26, %v14842_v41 }
 0x282   :  { %12671 = vmatmul.mubr.msk.f32.gmra.mxu1 %vm18678_vm11, %v2025_v19  ;;  %v1988_v54 = vadd.f32 %v1987_v20, %v1986_v24  ;;  %v2030_v51 = vmul.f32 %v13382_v22, %v14850_v47  ;;  %v2031_v23 = vmul.f32 %v13382_v22, %v14854_v63  ;;  %v1981_v61 = vadd.f32 %v1980_v8, %v1979_v11 }
 0x283   :  { %v1994_v55 = vrot.slane %v1993_v1, 4  ;;  %12673 = vmatprep.mubr.msk.f32.mxu1 %vm18678_vm11, %v2026_v28 }
 0x284   :  { %v13384_v34 = vpop.eup %13383  ;;  %v1989_v17 = vrot.slane %v1988_v54, 1  ;;  %13393 = vrcp.f32 %v1981_v61 }
 0x285   :  { %v1995_v5 = vadd.f32 %v1994_v55, %v1993_v1  ;;  %v2032_v41 = vmul.f32 %v13384_v34, %v14885_v60  ;;  %v2033_v2 = vmul.f32 %v13384_v34, %v14898_v56 }
 0x286   :  { %12674 = vmatmul.mubr.msk.f32.gmra.mxu1 %vm18678_vm11, %v2027_v15  ;;  %v13386_v43 = vpop.eup %13385  ;;  %v1990_v36 = vadd.f32 %v1989_v17, %v1988_v54 }
 0x287   :  { %v1996_v30 = vrot.slane %v1995_v5, 2  ;;  %12676 = vmatprep.mubr.msk.f32.mxu1 %vm18678_vm11, %v2028_v52  ;;  %v2034_v47 = vmul.f32 %v13386_v43, %v14930_v32  ;;  %v2035_v48 = vmul.f32 %v13386_v43, %v14934_v62 }
 0x288   :  { %v13388_v4 = vpop.eup %13387  ;;  %13395 = vrcp.f32 %v1990_v36 }
 0x289   :  { %v1997_v38 = vadd.f32 %v1996_v30, %v1995_v5  ;;  %v13390_v45 = vpop.eup %13389  ;;  %v2036_v60 = vmul.f32 %v13388_v4, %v14951_v9  ;;  %v2037_v56 = vmul.f32 %v13388_v4, %v14954_v12 }
 0x28a   :  { %12677 = vmatmul.mubr.msk.f32.gmra.mxu1 %vm18678_vm11, %v2029_v14  ;;  %v2038_v57 = vmul.f32 %v13390_v45, %v14964_v53  ;;  %v2039_v62 = vmul.f32 %v13390_v45, %v14966_v18 }
 0x28b   :  { %12679 = vmatprep.mubr.msk.f32.mxu1 %vm18678_vm11, %v2030_v51  ;;  %v1998_v63 = vrot.slane %v1997_v38, 1 }
 0x28c   :  { %v13392_v32 = vpop.eup %13391 }
 0x28d   :  { %v1999_v25 = vadd.f32 %v1998_v63, %v1997_v38  ;;  %v2040_v9 = vmul.f32 %v13392_v32, %v14972_v13  ;;  %v2041_v39 = vmul.f32 %v13392_v32, %v14976_v49 }
 0x28e   :  { %12680 = vmatmul.mubr.msk.f32.gmra.mxu1 %vm18678_vm11, %v2031_v23 }
 0x28f   :  { %12682 = vmatprep.mubr.msk.f32.mxu1 %vm18678_vm11, %v2032_v41  ;;  %13397 = vrcp.f32 %v1999_v25 }
 0x291   :  { %v13394_v0 = vpop.eup %13393 }
 0x292   :  { %12683 = vmatmul.mubr.msk.f32.gmra.mxu1 %vm18678_vm11, %v2033_v2  ;;  %v2042_v12 = vmul.f32 %v13394_v0, %v14991_v10  ;;  %v2043_v18 = vmul.f32 %v13394_v0, %v14995_v59  ;;  %v2622_v59 = vld [vmem:[%s13951_s20 + $0x8] sm:$0x3] }
 0x293   :  { %12685 = vmatprep.mubr.msk.f32.mxu1 %vm18678_vm11, %v2034_v47  ;;  %12713 = vmatprep.subr.msk.mxu1 %vm18679_vm1, %v2622_v59 }
 0x294   :  { %12714 = vmatpush3.msk.msra.mxu1 %vm18679_vm1, %v2622_v59 }
 0x295   :  { %v13396_v53 = vpop.eup %13395 }
 0x296   :  { %12686 = vmatmul.mubr.msk.f32.gmra.mxu1 %vm18678_vm11, %v2035_v48  ;;  %v2044_v13 = vmul.f32 %v13396_v53, %v15003_v6  ;;  %v2045_v49 = vmul.f32 %v13396_v53, %v15007_v58  ;;  %v2619_v6 = vld [vmem:[%s13941_s6 + $0x8] sm:$0x3]  ;;  %v2621_v58 = vld [vmem:[%s13951_s20] sm:$0xff]  ;;  %s19208_s20 = sld [smem:[#allocation7_spill]] }
 0x297   :  { %12688 = vmatprep.mubr.msk.f32.mxu1 %vm18678_vm11, %v2036_v60  ;;  %12706 = vmatprep.subr.msk.mxu0 %vm18679_vm1, %v2619_v6 }
 0x298   :  { %12707 = vmatpush3.msk.msra.mxu0 %vm18679_vm1, %v2619_v6  ;;  %12715 = vmatprep.subr.mxu1 %v2621_v58  ;;  %vm2652_vm1 = vcmask 1041409  }
 0x299   :  { %12716 = vmatpush3.msra.mxu1 %v2621_v58 }
 0x29a   :  { %12689 = vmatmul.mubr.msk.f32.gmra.mxu1 %vm18678_vm11, %v2037_v56 }
 0x29b   :  { %12691 = vmatprep.mubr.msk.f32.mxu1 %vm18678_vm11, %v2038_v57 }
 0x29c   :  { %v13398_v21 = vpop.eup %13397 }
 0x29d   :  { %v2046_v10 = vmul.f32 %v13398_v21, %v15019_v35  ;;  %v2047_v19 = vmul.f32 %v13398_v21, %v15021_v46  ;;  %v2618_v35 = vld [vmem:[%s13941_s6] sm:$0xff]  ;;  %s19202_s6 = sld [smem:[#allocation21_spill]] }
 0x29e   :  { %12692 = vmatmul.mubr.msk.f32.gmra.mxu1 %vm18678_vm11, %v2039_v62  ;;  %12708 = vmatprep.subr.mxu0 %v2618_v35 }
 0x29f   :  { %12694 = vmatprep.mubr.msk.f32.mxu1 %vm18678_vm11, %v2040_v9  ;;  %12709 = vmatpush3.msra.mxu0 %v2618_v35 }
 0x2a2   :  { %12695 = vmatmul.mubr.msk.f32.gmra.mxu1 %vm18678_vm11, %v2041_v39 }
 0x2a3   :  { %12697 = vmatprep.mubr.msk.f32.mxu1 %vm18678_vm11, %v2042_v12 }
 0x2a6   :  { %12698 = vmatmul.mubr.msk.f32.gmra.mxu1 %vm18678_vm11, %v2043_v18 }
 0x2a7   :  { %12700 = vmatprep.mubr.msk.f32.mxu1 %vm18678_vm11, %v2044_v13 }
 0x2aa   :  { %12701 = vmatmul.mubr.msk.f32.gmra.mxu1 %vm18678_vm11, %v2045_v49 }
 0x2ab   :  { %12703 = vmatprep.mubr.msk.f32.mxu1 %vm18678_vm11, %v2046_v10 }
 0x2ae   :  { %12704 = vmatmul.mubr.msk.f32.gmra.mxu1 %vm18678_vm11, %v2047_v19 }
 0x332   :  { %v12660_v46 = vpop.f32.mrf.mxu1 }
 0x333   :  { %v2373_v3 = vmul.f32 %v12660_v46, %v14291_v31  ;;  %v15107_v46 = vld [vmem:[%s13931_s24] ss:$0 sm:$0xff]  ;;  %s19061_s24 = sld [smem:[#allocation20_spill]] }
 0x334   :  { %v2213_v40 = vpop.f32.mrf.mxu1 }
 0x335   :  { %v2372_v24 = vmul.f32 %v2213_v40, %v14299_v37  ;;  %v2405_v28 = vsel %vm18698_vm2, %v2373_v3, 0.0 }
 0x336   :  { %v12663_v29 = vpop.f32.mrf.mxu1 }
 0x337   :  { %v2404_v26 = vsel %vm18698_vm2, %v2372_v24, 0.0  ;;  %v2375_v1 = vmul.f32 %v12663_v29, %v14291_v31 }
 0x338   :  { %v2406_v55 = vadd.f32 %v2405_v28, %v2404_v26  ;;  %v2223_v15 = vpop.f32.mrf.mxu1 }
 0x339   :  { %v2374_v27 = vmul.f32 %v2223_v15, %v14299_v37  ;;  %v2414_v11 = vsel %vm18698_vm2, %v2375_v1, 0.0 }
 0x33a   :  { %v2407_v44 = vrot.slane %v2406_v55, 4  ;;  %v12666_v22 = vpop.f32.mrf.mxu1 }
 0x33b   :  { %v2413_v20 = vsel %vm18698_vm2, %v2374_v27, 0.0  ;;  %v2377_v52 = vmul.f32 %v12666_v22, %v14291_v31 }
 0x33c   :  { %v2415_v5 = vadd.f32 %v2414_v11, %v2413_v20  ;;  %v2233_v14 = vpop.f32.mrf.mxu1  ;;  %v2408_v54 = vadd.f32 %v2407_v44, %v2406_v55 }
 0x33d   :  { %v2376_v33 = vmul.f32 %v2233_v14, %v14299_v37  ;;  %v2423_v8 = vsel %vm18698_vm2, %v2377_v52, 0.0 }
 0x33e   :  { %v2416_v30 = vrot.slane %v2415_v5, 4  ;;  %v12669_v51 = vpop.f32.mrf.mxu1  ;;  %v2409_v17 = vrot.slane %v2408_v54, 2 }
 0x33f   :  { %v2422_v34 = vsel %vm18698_vm2, %v2376_v33, 0.0  ;;  %v2379_v23 = vmul.f32 %v12669_v51, %v14291_v31 }
 0x340   :  { %v2417_v43 = vadd.f32 %v2416_v30, %v2415_v5  ;;  %v2424_v38 = vadd.f32 %v2423_v8, %v2422_v34  ;;  %v2243_v41 = vpop.f32.mrf.mxu1  ;;  %v2410_v57 = vadd.f32 %v2409_v17, %v2408_v54 }
 0x341   :  { %v2378_v61 = vmul.f32 %v2243_v41, %v14299_v37  ;;  %v2432_v63 = vsel %vm18698_vm2, %v2379_v23, 0.0 }
 0x342   :  { %v2418_v2 = vrot.slane %v2417_v43, 2  ;;  %v2425_v47 = vrot.slane %v2424_v38, 4  ;;  %v12672_v36 = vpop.f32.mrf.mxu1  ;;  %v2411_v6 = vrot.slane %v2410_v57, 1 }
 0x343   :  { %v2431_v4 = vsel %vm18698_vm2, %v2378_v61, 0.0  ;;  %v2381_v25 = vmul.f32 %v12672_v36, %v14291_v31 }
 0x344   :  { %v2419_v48 = vadd.f32 %v2418_v2, %v2417_v43  ;;  %v2426_v45 = vadd.f32 %v2425_v47, %v2424_v38  ;;  %v2433_v60 = vadd.f32 %v2432_v63, %v2431_v4  ;;  %v2253_v56 = vpop.f32.mrf.mxu1  ;;  %v2412_v20 = vadd.f32 %v2411_v6, %v2410_v57 }
 0x345   :  { %v2380_v32 = vmul.f32 %v2253_v56, %v14299_v37  ;;  %v2441_v13 = vsel %vm18698_vm2, %v2381_v25, 0.0 }
 0x346   :  { %v2420_v62 = vrot.slane %v2419_v48, 1  ;;  %v2427_v9 = vrot.slane %v2426_v45, 2  ;;  %v2434_v0 = vrot.slane %v2433_v60, 4  ;;  %v12675_v39 = vpop.f32.mrf.mxu1  ;;  %v2554_v2 = vadd.f32 %v15107_v46, %v2412_v20 }
 0x347   :  { %v2440_v12 = vsel %vm18698_vm2, %v2380_v32, 0.0  ;;  %v2383_v53 = vmul.f32 %v12675_v39, %v14291_v31 }
 0x348   :  { %v2421_v18 = vadd.f32 %v2420_v62, %v2419_v48  ;;  %v2263_v21 = vpop.f32.mrf.mxu1  ;;  %v2428_v49 = vadd.f32 %v2427_v9, %v2426_v45  ;;  %v2435_v10 = vadd.f32 %v2434_v0, %v2433_v60  ;;  %v2442_v19 = vadd.f32 %v2441_v13, %v2440_v12 }
 0x349   :  { %v2382_v59 = vmul.f32 %v2263_v21, %v14299_v37  ;;  %v2450_v58 = vsel %vm18698_vm2, %v2383_v53, 0.0  ;;  %vm2570_vm6 = vcmp.gt.f32.partialorder %v2554_v2, 0.0  ;;  %v2586_v39 = vmul.f32 0.01, %v2554_v2 }
 0x34a   :  { %v12678_v35 = vpop.f32.mrf.mxu1  ;;  %v2436_v3 = vrot.slane %v2435_v10, 2  ;;  %v2443_v40 = vrot.slane %v2442_v19, 4  ;;  %v2555_v28 = vadd.f32 %v15107_v46, %v2421_v18  ;;  %v2429_v55 = vrot.slane %v2428_v49, 1 }
 0x34b   :  { %v2449_v24 = vsel %vm18698_vm2, %v2382_v59, 0.0  ;;  %v2385_v29 = vmul.f32 %v12678_v35, %v14291_v31 }
 0x34c   :  { %v2451_v26 = vadd.f32 %v2450_v58, %v2449_v24  ;;  %v2273_v1 = vpop.f32.mrf.mxu1  ;;  %v2437_v15 = vadd.f32 %v2436_v3, %v2435_v10  ;;  %v2444_v27 = vadd.f32 %v2443_v40, %v2442_v19  ;;  %v2587_v33 = vmul.f32 0.01, %v2555_v28 }
 0x34d   :  { %v2384_v44 = vmul.f32 %v2273_v1, %v14299_v37  ;;  %v2459_v5 = vsel %vm18698_vm2, %v2385_v29, 0.0  ;;  %v2430_v8 = vadd.f32 %v2429_v55, %v2428_v49  ;;  %vm2571_vm11 = vcmp.gt.f32.partialorder %v2555_v28, 0.0 }
 0x34e   :  { %v2452_v22 = vrot.slane %v2451_v26, 4  ;;  %v12681_v11 = vpop.f32.mrf.mxu1  ;;  %v2445_v52 = vrot.slane %v2444_v27, 2  ;;  %v2438_v34 = vrot.slane %v2437_v15, 1  ;;  %v2603_v45 = vsel %vm2571_vm11, %v2555_v28, %v2587_v33 }
 0x34f   :  { %v2458_v14 = vsel %vm18698_vm2, %v2384_v44, 0.0  ;;  %v2387_v23 = vmul.f32 %v12681_v11, %v14291_v31  ;;  %v2556_v60 = vadd.f32 %v15107_v46, %v2430_v8  ;;  %v2651_v18 = vrot.slane %v2603_v45, 7 }
 0x350   :  { %v2453_v54 = vadd.f32 %v2452_v22, %v2451_v26  ;;  %v2460_v30 = vadd.f32 %v2459_v5, %v2458_v14  ;;  %v2283_v51 = vpop.f32.mrf.mxu1  ;;  %v2446_v38 = vadd.f32 %v2445_v52, %v2444_v27  ;;  %v2439_v25 = vadd.f32 %v2438_v34, %v2437_v15 }
 0x351   :  { %v2386_v43 = vmul.f32 %v2283_v51, %v14299_v37  ;;  %v2468_v63 = vsel %vm18698_vm2, %v2387_v23, 0.0  ;;  %vm2572_vm11 = vcmp.gt.f32.partialorder %v2556_v60, 0.0  ;;  %v2588_v19 = vmul.f32 0.01, %v2556_v60 }
 0x352   :  { %v2454_v41 = vrot.slane %v2453_v54, 2  ;;  %v2461_v61 = vrot.slane %v2460_v30, 4  ;;  %v12684_v17 = vpop.f32.mrf.mxu1  ;;  %v2447_v32 = vrot.slane %v2446_v38, 1  ;;  %v2557_v59 = vadd.f32 %v15107_v46, %v2439_v25 }
 0x353   :  { %v2467_v4 = vsel %vm18698_vm2, %v2386_v43, 0.0  ;;  %v2389_v62 = vmul.f32 %v12684_v17, %v14291_v31  ;;  %v2602_v29 = vsel %vm2570_vm6, %v2554_v2, %v2586_v39  ;;  %v2604_v11 = vsel %vm2572_vm11, %v2556_v60, %v2588_v19 }
 0x354   :  { %v2455_v47 = vadd.f32 %v2454_v41, %v2453_v54  ;;  %v2462_v36 = vadd.f32 %v2461_v61, %v2460_v30  ;;  %v2293_v48 = vpop.f32.mrf.mxu1  ;;  %v2469_v56 = vadd.f32 %v2468_v63, %v2467_v4  ;;  %v2448_v58 = vadd.f32 %v2447_v32, %v2446_v38 }
 0x355   :  { %v2388_v9 = vmul.f32 %v2293_v48, %v14299_v37  ;;  %v2477_v3 = vsel %vm18698_vm2, %v2389_v62, 0.0  ;;  %v2653_v5 = vsel %vm2652_vm1, %v2651_v18, %v2602_v29  ;;  %vm2573_vm7 = vcmp.gt.f32.partialorder %v2557_v59, 0.0 }
 0x356   :  { %v2463_v57 = vrot.slane %v2462_v36, 2  ;;  %v12687_v0 = vpop.f32.mrf.mxu1  ;;  %v2456_v12 = vrot.slane %v2455_v47, 1  ;;  %v2470_v53 = vrot.slane %v2469_v56, 4  ;;  %v2589_v14 = vmul.f32 0.01, %v2557_v59 }
 0x357   :  { %v2476_v21 = vsel %vm18698_vm2, %v2388_v9, 0.0  ;;  %v2391_v49 = vmul.f32 %v12687_v0, %v14291_v31  ;;  %v2558_v33 = vadd.f32 %v15107_v46, %v2448_v58  ;;  %v2654_v2 = vrot.slane %v2604_v11, 6 }
 0x358   :  { %v2464_v13 = vadd.f32 %v2463_v57, %v2462_v36  ;;  %v2303_v10 = vpop.f32.mrf.mxu1  ;;  %v2471_v6 = vadd.f32 %v2470_v53, %v2469_v56  ;;  %v2457_v28 = vadd.f32 %v2456_v12, %v2455_v47  ;;  %v2478_v1 = vadd.f32 %v2477_v3, %v2476_v21 }
 0x359   :  { %v2390_v40 = vmul.f32 %v2303_v10, %v14299_v37  ;;  %v2486_v15 = vsel %vm18698_vm2, %v2391_v49, 0.0  ;;  %v2590_v4 = vmul.f32 0.01, %v2558_v33  ;;  %vm2574_vm6 = vcmp.gt.f32.partialorder %v2558_v33, 0.0 }
 0x35a   :  { %v2465_v35 = vrot.slane %v2464_v13, 1  ;;  %v12690_v24 = vpop.f32.mrf.mxu1  ;;  %v2472_v26 = vrot.slane %v2471_v6, 2  ;;  %v2559_v51 = vadd.f32 %v15107_v46, %v2457_v28  ;;  %v2479_v34 = vrot.slane %v2478_v1, 4 }
 0x35b   :  { %v2485_v27 = vsel %vm18698_vm2, %v2390_v40, 0.0  ;;  %v2393_v44 = vmul.f32 %v12690_v24, %v14291_v31  ;;  %v2605_v60 = vsel %vm2573_vm7, %v2557_v59, %v2589_v14  ;;  %vm2658_vm11 = vcmask 1043459  }
 0x35c   :  { %v2466_v55 = vadd.f32 %v2465_v35, %v2464_v13  ;;  %v2313_v22 = vpop.f32.mrf.mxu1  ;;  %v2473_v20 = vadd.f32 %v2472_v26, %v2471_v6  ;;  %v2487_v52 = vadd.f32 %v2486_v15, %v2485_v27  ;;  %v2480_v25 = vadd.f32 %v2479_v34, %v2478_v1 }
 0x35d   :  { %v2392_v54 = vmul.f32 %v2313_v22, %v14299_v37  ;;  %v2495_v38 = vsel %vm18698_vm2, %v2393_v44, 0.0  ;;  %vm2575_vm8 = vcmp.gt.f32.partialorder %v2559_v51, 0.0  ;;  %v2591_v32 = vmul.f32 0.01, %v2559_v51 }
 0x35e   :  { %v12693_v30 = vpop.f32.mrf.mxu1  ;;  %v2474_v8 = vrot.slane %v2473_v20, 1  ;;  %v2488_v23 = vrot.slane %v2487_v52, 4  ;;  %v2560_v43 = vadd.f32 %v15107_v46, %v2466_v55  ;;  %vm18741_vm7 = vcmask 1046534  }
 0x35f   :  { %v2494_v41 = vsel %vm18698_vm2, %v2392_v54, 0.0  ;;  %v2395_v61 = vmul.f32 %v12693_v30, %v14291_v31  ;;  %v2606_v10 = vsel %vm2574_vm6, %v2558_v33, %v2590_v4  ;;  %v2656_v19 = vsel %vm2655_vm0, %v2654_v2, %v2653_v5 }
 0x360   :  { %v2323_v17 = vpop.f32.mrf.mxu1  ;;  %v2475_v47 = vadd.f32 %v2474_v8, %v2473_v20  ;;  %v2489_v36 = vadd.f32 %v2488_v23, %v2487_v52  ;;  %v2496_v63 = vadd.f32 %v2495_v38, %v2494_v41  ;;  %v2592_v39 = vmul.f32 0.01, %v2560_v43 }
 0x361   :  { %v2394_v48 = vmul.f32 %v2323_v17, %v14299_v37  ;;  %v2504_v57 = vsel %vm18698_vm2, %v2395_v61, 0.0  ;;  %vm2576_vm3 = vcmp.gt.f32.partialorder %v2560_v43, 0.0  ;;  %v2607_v35 = vsel %vm2575_vm8, %v2559_v51, %v2591_v32 }
 0x362   :  { %v12696_v45 = vpop.f32.mrf.mxu1  ;;  %v2497_v56 = vrot.slane %v2496_v63, 4  ;;  %v2561_v0 = vadd.f32 %v15107_v46, %v2475_v47  ;;  %v2490_v12 = vrot.slane %v2489_v36, 2  ;;  %v2657_v29 = vrot.slane %v2605_v60, 5 }
 0x363   :  { %v2503_v62 = vsel %vm18698_vm2, %v2394_v48, 0.0  ;;  %v2397_v13 = vmul.f32 %v12696_v45, %v14291_v31  ;;  %v2481_v28 = vrot.slane %v2480_v25, 2  ;;  %v2608_v55 = vsel %vm2576_vm3, %v2560_v43, %v2592_v39 }
 0x364   :  { %v2333_v9 = vpop.f32.mrf.mxu1  ;;  %v2498_v53 = vadd.f32 %v2497_v56, %v2496_v63  ;;  %v2505_v18 = vadd.f32 %v2504_v57, %v2503_v62  ;;  %v2593_v58 = vmul.f32 0.01, %v2561_v0  ;;  %vm2577_vm14 = vcmp.gt.f32.partialorder %v2561_v0, 0.0 }
 0x365   :  { %v2396_v21 = vmul.f32 %v2333_v9, %v14299_v37  ;;  %v2491_v26 = vadd.f32 %v2490_v12, %v2489_v36  ;;  %v2513_v1 = vsel %vm18698_vm2, %v2397_v13, 0.0  ;;  %v2660_v11 = vrot.slane %v2606_v10, 4 }
 0x366   :  { %v12699_v49 = vpop.f32.mrf.mxu1  ;;  %v2499_v59 = vrot.slane %v2498_v53, 2  ;;  %v2506_v6 = vrot.slane %v2505_v18, 4  ;;  %v2609_v5 = vsel %vm2577_vm14, %v2561_v0, %v2593_v58  ;;  %v2663_v14 = vrot.slane %v2607_v35, 3 }
 0x367   :  { %v2512_v3 = vsel %vm18698_vm2, %v2396_v21, 0.0  ;;  %v2399_v40 = vmul.f32 %v12699_v49, %v14291_v31  ;;  %v2666_v51 = vrot.slane %v2608_v55, 2  ;;  %v2482_v34 = vadd.f32 %v2481_v28, %v2480_v25 }
 0x368   :  { %v2343_v24 = vpop.f32.mrf.mxu1  ;;  %v2507_v15 = vadd.f32 %v2506_v6, %v2505_v18  ;;  %v2514_v27 = vadd.f32 %v2513_v1, %v2512_v3  ;;  %v2500_v20 = vadd.f32 %v2499_v59, %v2498_v53  ;;  %v2492_v23 = vrot.slane %v2491_v26, 1 }
 0x369   :  { %v2398_v44 = vmul.f32 %v2343_v24, %v14299_v37  ;;  %v2522_v52 = vsel %vm18698_vm2, %v2399_v40, 0.0  ;;  %v2659_v38 = vsel %vm2658_vm11, %v2657_v29, %v2656_v19  ;;  %v2669_v48 = vrot.slane %v2609_v5, 1 }
 0x36a   :  { %v12702_v22 = vpop.f32.mrf.mxu1  ;;  %v2508_v33 = vrot.slane %v2507_v15, 2  ;;  %v2515_v54 = vrot.slane %v2514_v27, 4  ;;  %v2662_v2 = vsel %vm2661_vm4, %v2660_v11, %v2659_v38  ;;  %v2501_v36 = vrot.slane %v2500_v20, 1 }
 0x36b   :  { %v2521_v30 = vsel %vm18698_vm2, %v2398_v44, 0.0  ;;  %v2401_v17 = vmul.f32 %v12702_v22, %v14291_v31  ;;  %v2665_v4 = vsel %vm2664_vm5, %v2663_v14, %v2662_v2  ;;  %v2493_v57 = vadd.f32 %v2492_v23, %v2491_v26 }
 0x36c   :  { %v2353_v8 = vpop.f32.mrf.mxu1  ;;  %v2523_v43 = vadd.f32 %v2522_v52, %v2521_v30  ;;  %v2509_v41 = vadd.f32 %v2508_v33, %v2507_v15  ;;  %v2516_v61 = vadd.f32 %v2515_v54, %v2514_v27  ;;  %v2668_v25 = vsel %vm18741_vm7, %v2666_v51, %v2665_v4 }
 0x36d   :  { %v2400_v56 = vmul.f32 %v2353_v8, %v14299_v37  ;;  %v2671_v9 = vsel %vm18740_vm15, %v2669_v48, %v2668_v25  ;;  %v2531_v39 = vsel %vm18698_vm2, %v2401_v17, 0.0  ;;  %v2502_v18 = vadd.f32 %v2501_v36, %v2500_v20 }
 0x36e   :  { %v12705_v47 = vpop.f32.mrf.mxu1  ;;  %v2524_v63 = vrot.slane %v2523_v43, 4  ;;  %v2510_v45 = vrot.slane %v2509_v41, 1  ;;  %v2517_v60 = vrot.slane %v2516_v61, 2  ;;  %12710 = vmatprep.mubr.msk.f32.mxu0 %vm18698_vm2, %v2671_v9  ;;  %12717 = vmatprep.mubr.msk.f32.mxu1 %vm18698_vm2, %v2671_v9  ;;  %v2483_v10 = vrot.slane %v2482_v34, 1 }
 0x36f   :  { %v2530_v12 = vsel %vm18698_vm2, %v2400_v56, 0.0  ;;  %v2403_v53 = vmul.f32 %v12705_v47, %v14291_v31  ;;  %v2563_v40 = vadd.f32 %v15107_v46, %v2493_v57  ;;  %v2564_v31 = vadd.f32 %v15107_v46, %v2502_v18 }
 0x370   :  { %v2363_v32 = vpop.f32.mrf.mxu1  ;;  %v2525_v62 = vadd.f32 %v2524_v63, %v2523_v43  ;;  %v2518_v0 = vadd.f32 %v2517_v60, %v2516_v61  ;;  %v2532_v21 = vadd.f32 %v2531_v39, %v2530_v12  ;;  %v2511_v19 = vadd.f32 %v2510_v45, %v2509_v41 }
 0x371   :  { %v2402_v49 = vmul.f32 %v2363_v32, %v14299_v37  ;;  %v2540_v35 = vsel %vm18698_vm2, %v2403_v53, 0.0  ;;  %v2484_v1 = vadd.f32 %v2483_v10, %v2482_v34  ;;  %v2595_v22 = vmul.f32 0.01, %v2563_v40 }
 0x372   :  { %v2526_v13 = vrot.slane %v2525_v62, 2  ;;  %v2519_v59 = vrot.slane %v2518_v0, 1  ;;  %v2533_v58 = vrot.slane %v2532_v21, 4  ;;  %v2565_v37 = vadd.f32 %v15107_v46, %v2511_v19  ;;  %v2626_v19 = vld [vmem:[%s13966_s17 + $0x8] sm:$0x7f] }
 0x373   :  { %v2539_v3 = vsel %vm18698_vm2, %v2402_v49, 0.0  ;;  %vm2579_vm14 = vcmp.gt.f32.partialorder %v2563_v40, 0.0  ;;  %v2596_v20 = vmul.f32 0.01, %v2564_v31  ;;  %v2562_v14 = vadd.f32 %v15107_v46, %v2484_v1 }
 0x374   :  { %v2527_v6 = vadd.f32 %v2526_v13, %v2525_v62  ;;  %v2520_v24 = vadd.f32 %v2519_v59, %v2518_v0  ;;  %v2541_v29 = vadd.f32 %v2540_v35, %v2539_v3  ;;  %v2534_v26 = vadd.f32 %v2533_v58, %v2532_v21  ;;  %v2625_v59 = vld [vmem:[%s13966_s17] sm:$0xff]  ;;  %s19016_s17 = sld [smem:[#allocation15_spill]] }
 0x375   :  { %vm2580_vm3 = vcmp.gt.f32.partialorder %v2564_v31, 0.0  ;;  %v2597_v33 = vmul.f32 0.01, %v2565_v37  ;;  %vm2581_vm8 = vcmp.gt.f32.partialorder %v2565_v37, 0.0  ;;  %v2611_v8 = vsel %vm2579_vm14, %v2563_v40, %v2595_v22  ;;  %v11854_v58 = vld [vmem:[%s18917_s0] ss:$0 sm:$0xff] }
 0x376   :  { %v2528_v28 = vrot.slane %v2527_v6, 1  ;;  %v2542_v55 = vrot.slane %v2541_v29, 4  ;;  %v2566_v15 = vadd.f32 %v15107_v46, %v2520_v24  ;;  %v2535_v44 = vrot.slane %v2534_v26, 2  ;;  %v18922_v22 = vld [vmem:[#allocation55_spill] sm:$0xff]  ;;  %s19379_s0 = sld [smem:[#allocation30_spill]] }
 0x377   :  { %v2612_v43 = vsel %vm2580_vm3, %v2564_v31, %v2596_v20  ;;  %v2594_v41 = vmul.f32 0.01, %v2562_v14  ;;  %v2613_v61 = vsel %vm2581_vm8, %v2565_v37, %v2597_v33  ;;  %vm2578_vm12 = vcmp.gt.f32.partialorder %v2562_v14, 0.0  ;;  %v11850_v37 = vld [vmem:[%s18919_s9] ss:$0 sm:$0xff]  ;;  %v18925_v33 = vld [vmem:[#allocation60_spill] sm:$0xff] }
 0x378   :  { %v2529_v27 = vadd.f32 %v2528_v28, %v2527_v6  ;;  %v2543_v11 = vadd.f32 %v2542_v55, %v2541_v29  ;;  %v2536_v5 = vadd.f32 %v2535_v44, %v2534_v26  ;;  %v2598_v30 = vmul.f32 0.01, %v2566_v15  ;;  %v18920_v29 = vld [vmem:[#allocation65_spill] sm:$0xff]  ;;  %v15197_v28 = vld [vmem:[%s18918_s5] ss:$0 sm:$0xff]  ;;  %s19412_s5 = sld [smem:[#allocation36_spill]] }
 0x379   :  { %vm2582_vm6 = vcmp.gt.f32.partialorder %v2566_v15, 0.0  ;;  %v2672_v2 = vrot.slane %v2611_v8, 7  ;;  %v2674_v63 = vrot.slane %v2612_v43, 6  ;;  %v2676_v45 = vrot.slane %v2613_v61, 5  ;;  %v18923_v20 = vld [vmem:[#allocation58_spill] sm:$0xff]  ;;  %v18926_v8 = vld [vmem:[#allocation59_spill] sm:$0xff] }
 0x37a   :  { %v2567_v52 = vadd.f32 %v15107_v46, %v2529_v27  ;;  %v2544_v54 = vrot.slane %v2543_v11, 2  ;;  %v2537_v51 = vrot.slane %v2536_v5, 1  ;;  %v2614_v47 = vsel %vm2582_vm6, %v2566_v15, %v2598_v30  ;;  %v18921_v27 = vld [vmem:[#allocation56_spill] sm:$0xff]  ;;  %v18930_v61 = vld [vmem:[#allocation62_spill] sm:$0xff]  ;;  %s19450_s9 = sld [smem:[#allocation40_spill]] }
 0x37b   :  { %v2610_v25 = vsel %vm2578_vm12, %v2562_v14, %v2594_v41  ;;  %v2678_v56 = vrot.slane %v2614_v47, 4  ;;  %v3072_v44 = vmul.f32 %v15197_v28, %v18921_v27  ;;  %vm3230_vm12 = vcmask 121856  }
 0x37c   :  { %v2599_v34 = vmul.f32 0.01, %v2567_v52  ;;  %v2545_v23 = vadd.f32 %v2544_v54, %v2543_v11  ;;  %vm2583_vm13 = vcmp.gt.f32.partialorder %v2567_v52, 0.0  ;;  %v2538_v38 = vadd.f32 %v2537_v51, %v2536_v5  ;;  %v18924_v5 = vld [vmem:[#allocation57_spill] sm:$0xff] }
 0x37d   :  { %v2673_v62 = vsel %vm2652_vm1, %v2672_v2, %v2610_v25  ;;  %v3070_v11 = vmul.f32 %v15197_v28, %v18922_v22  ;;  %v3071_v14 = vmul.f32 %v15197_v28, %v18924_v5  ;;  %v3075_v54 = vmul.f32 %v15197_v28, %v18925_v33 }
 0x37e   :  { %v2546_v17 = vrot.slane %v2545_v23, 1  ;;  %v2568_v36 = vadd.f32 %v15107_v46, %v2538_v38  ;;  %v2615_v4 = vsel %vm2583_vm13, %v2567_v52, %v2599_v34  ;;  %v2675_v39 = vsel %vm2655_vm0, %v2674_v63, %v2673_v62  ;;  %v18929_v38 = vld [vmem:[#allocation47_spill] sm:$0xff]  ;;  %v18931_v63 = vld [vmem:[#allocation61_spill] sm:$0xff] }
 0x37f   :  { %v2680_v9 = vrot.slane %v2615_v4, 3  ;;  %v2677_v53 = vsel %vm2658_vm11, %v2676_v45, %v2675_v39  ;;  %v3073_v52 = vmul.f32 %v15197_v28, %v18923_v20  ;;  %v3074_v34 = vmul.f32 %v15197_v28, %v18926_v8 }
 0x380   :  { %v2547_v48 = vadd.f32 %v2546_v17, %v2545_v23  ;;  %vm2584_vm10 = vcmp.gt.f32.partialorder %v2568_v36, 0.0  ;;  %v2600_v60 = vmul.f32 0.01, %v2568_v36  ;;  %v2679_v13 = vsel %vm2661_vm4, %v2678_v56, %v2677_v53 }
 0x381   :  { %v2681_v21 = vsel %vm2664_vm5, %v2680_v9, %v2679_v13  ;;  %v3077_v17 = vmul.f32 %v15197_v28, %v18930_v61  ;;  %v3076_v4 = vmul.f32 %v15197_v28, %v18931_v63 }
 0x382   :  { %v2569_v32 = vadd.f32 %v15107_v46, %v2547_v48  ;;  %v2616_v57 = vsel %vm2584_vm10, %v2568_v36, %v2600_v60  ;;  %vm3327_vm10 = vcmask 1046528  }
 0x383   :  { %v2682_v12 = vrot.slane %v2616_v57, 2  ;;  %12720 = vmatprep.subr.msk.mxu0 %vm3327_vm10, %v2626_v19 }
 0x384   :  { %v2601_v0 = vmul.f32 0.01, %v2569_v32  ;;  %vm2585_vm14 = vcmp.gt.f32.partialorder %v2569_v32, 0.0 }
 0x385   :  { %v2683_v49 = vsel %vm18741_vm7, %v2682_v12, %v2681_v21 }
 0x386   :  { %v2617_v18 = vsel %vm2585_vm14, %v2569_v32, %v2601_v0 }
 0x387   :  { %v2684_v46 = vrot.slane %v2617_v18, 1 }
 0x389   :  { %v2685_v10 = vsel %vm18740_vm15, %v2684_v46, %v2683_v49 }
 0x38a   :  { %12711 = vmatmul.mubr.msk.f32.vlgmr.msra.gmra.mxu0 %vm18698_vm2, %v2685_v10  ;;  %12718 = vmatmul.mubr.msk.f32.vlgmr.msra.gmra.mxu1 %vm18698_vm2, %v2685_v10 }
 0x38b   :  { %12721 = vmatpush3.msk.msra.mxu0 %vm3327_vm10, %v2626_v19 }
 0x38c   :  { %12722 = vmatprep.subr.mxu0 %v2625_v59 }
 0x38d   :  { %12723 = vmatpush3.msra.mxu0 %v2625_v59 }
 0x44a   :  { %v12719_v6 = vpop.f32.mrf.mxu1  ;;  %v12712_v40 = vpop.f32.mrf.mxu0 }
 0x44b   :  { %v15215_v23 = vadd.f32 %v12712_v40, %v11850_v37  ;;  %v15228_v25 = vadd.f32 %v12719_v6, %v11854_v58 }
 0x44c   :  { %v2843_v35 = vpop.f32.mrf.mxu1  ;;  %v2759_v55 = vpop.f32.mrf.mxu0 }
 0x44d   :  { %v2844_v3 = vadd.f32 %v11854_v58, %v2843_v35  ;;  %18927 = vst [vmem:[#allocation116_spill] sm:$0xff] %v15215_v23  ;;  %v15217_v43 = vadd.f32 %v11850_v37, %v2759_v55  ;;  %v18932_v37 = vld [vmem:[#allocation63_spill] sm:$0xff] }
 0x44e   :  { %v3078_v55 = vmul.f32 %v15197_v28, %v18932_v37  ;;  %v19004_v37 = vld [vmem:[#allocation112_spill] sm:$0xff] }
 0x44f   :  { %v2854_v24 = vcombine.high %v2844_v3, %v2844_v3  ;;  %v2861_v31 = vrot.slane %v2844_v3, %v18920_v29  ;;  %18928 = vst [vmem:[#allocation117_spill] sm:$0xff] %v15217_v43 }
 0x451   :  { %v2869_v26 = vcombine.high %v2861_v31, %v2861_v31  ;;  %v2877_v1 = vrot.slane %v2861_v31, %v18920_v29  ;;  %v2868_v15 = vrot.slane %v2854_v24, %v18920_v29 }
 0x453   :  { %v2891_v30 = vrot.slane %v2869_v26, %v18920_v29  ;;  %v2899_v51 = vcombine.high %v2877_v1, %v2877_v1  ;;  %v2955_v41 = vrot.slane %v2877_v1, %v18929_v38  ;;  %v2870_v2 = vcombine.high %v2868_v15, %v2868_v15 }
 0x454   :  { %v2884_v56 = vrot.slane %v2868_v15, %v18920_v29 }
 0x455   :  { %v2901_v47 = vcombine.high %v2891_v30, %v2891_v30  ;;  %v2959_v36 = vrot.slane %v2891_v30, %v18929_v38  ;;  %v2963_v48 = vrot.slane %v2899_v51, %v18929_v38  ;;  %v3032_v45 = vadd.f32 %v2955_v41, %v15217_v43 }
 0x456   :  { %v3033_v60 = vadd.f32 %v2955_v41, %v15215_v23  ;;  %v2898_v39 = vrot.slane %v2870_v2, %v18920_v29  ;;  %v2900_v46 = vcombine.high %v2884_v56, %v2884_v56  ;;  %v2971_v3 = vrot.slane %v2884_v56, %v18929_v38 }
 0x457   :  { %v2967_v32 = vrot.slane %v2901_v47, %v18929_v38  ;;  %v3102_v57 = vadd.f32 %v3070_v11, %v3032_v45  ;;  %v3034_v9 = vadd.f32 %v2959_v36, %v15217_v43  ;;  %v3035_v0 = vadd.f32 %v2959_v36, %v15215_v23  ;;  %v18933_v36 = vld [vmem:[#allocation64_spill] sm:$0xff] }
 0x458   :  { %v3103_v62 = vadd.f32 %v3071_v14, %v3033_v60  ;;  %v3036_v12 = vadd.f32 %v2963_v48, %v15217_v43  ;;  %v3037_v53 = vadd.f32 %v2963_v48, %v15215_v23  ;;  %v2975_v31 = vrot.slane %v2898_v39, %v18929_v38  ;;  %v18934_v48 = vld [vmem:[#allocation66_spill] sm:$0xff] }
 0x459   :  { %v3038_v18 = vadd.f32 %v2967_v32, %v15217_v43  ;;  %vm3134_vm13 = vcmp.gt.f32.partialorder %v3102_v57, 0.0  ;;  %v3166_v13 = vmul.f32 0.2, %v3102_v57  ;;  %v3104_v49 = vadd.f32 %v3072_v44, %v3034_v9 }
 0x45a   :  { %vm3135_vm3 = vcmp.gt.f32.partialorder %v3103_v62, 0.0  ;;  %v3167_v21 = vmul.f32 0.2, %v3103_v62  ;;  %v3105_v10 = vadd.f32 %v3073_v52, %v3035_v0  ;;  %v3106_v19 = vadd.f32 %v3074_v34, %v3036_v12 }
 0x45b   :  { %v3198_v59 = vsel %vm3134_vm13, %v3102_v57, %v3166_v13  ;;  %v3107_v58 = vadd.f32 %v3075_v54, %v3037_v53  ;;  %v3039_v35 = vadd.f32 %v2967_v32, %v15215_v23  ;;  %vm3136_vm8 = vcmp.gt.f32.partialorder %v3104_v49, 0.0  ;;  %v18935_v13 = vld [vmem:[#allocation67_spill] sm:$0xff] }
 0x45c   :  { %v3199_v6 = vsel %vm3135_vm3, %v3103_v62, %v3167_v21  ;;  %12724 = vmatprep.mubr.msk.f32.mxu0 %vm3230_vm12, %v3198_v59  ;;  %v3168_v40 = vmul.f32 0.2, %v3104_v49  ;;  %v3169_v24 = vmul.f32 0.2, %v3105_v10  ;;  %vm3137_vm6 = vcmp.gt.f32.partialorder %v3105_v10, 0.0 }
 0x45d   :  { %12725 = vmatmul.mubr.msk.f32.vlgmr.msra.gmra.mxu0 %vm3230_vm12, %v3199_v6  ;;  %v3170_v26 = vmul.f32 0.2, %v3106_v19  ;;  %v3108_v1 = vadd.f32 %v3076_v4, %v3038_v18  ;;  %vm3138_vm14 = vcmp.gt.f32.partialorder %v3106_v19, 0.0  ;;  %v2910_v44 = vrot.slane %v15228_v25, %v18920_v29 }
 0x45e   :  { %v3200_v15 = vsel %vm3136_vm8, %v3104_v49, %v3168_v40  ;;  %v2979_v11 = vrot.slane %v2900_v46, %v18929_v38  ;;  %v3171_v52 = vmul.f32 0.2, %v3107_v58  ;;  %v3109_v14 = vadd.f32 %v3077_v17, %v3039_v35  ;;  %v18936_v46 = vld [vmem:[#allocation68_spill] sm:$0xff] }
 0x45f   :  { %12727 = vmatprep.mubr.msk.f32.mxu0 %vm3230_vm12, %v3200_v15  ;;  %v3201_v54 = vsel %vm3137_vm6, %v3105_v10, %v3169_v24  ;;  %vm3139_vm13 = vcmp.gt.f32.partialorder %v3107_v58, 0.0  ;;  %v3040_v30 = vadd.f32 %v2971_v3, %v15217_v43  ;;  %v3041_v51 = vadd.f32 %v2971_v3, %v15215_v23 }
 0x460   :  { %v2902_v34 = vcombine.high %v2898_v39, %v2898_v39  ;;  %v3202_v41 = vsel %vm3138_vm14, %v3106_v19, %v3170_v26  ;;  %v3172_v2 = vmul.f32 0.2, %v3108_v1  ;;  %v3042_v47 = vadd.f32 %v2975_v31, %v15217_v43  ;;  %v18937_v26 = vld [vmem:[#allocation69_spill] sm:$0xff] }
 0x461   :  { %12728 = vmatmul.mubr.msk.f32.gmra.mxu0 %vm3230_vm12, %v3201_v54  ;;  %v3079_v4 = vmul.f32 %v15197_v28, %v18933_v36  ;;  %v3080_v45 = vmul.f32 %v15197_v28, %v18934_v48  ;;  %vm3140_vm3 = vcmp.gt.f32.partialorder %v3108_v1, 0.0  ;;  %v3110_v17 = vadd.f32 %v3078_v55, %v3040_v30  ;;  %v18938_v55 = vld [vmem:[#allocation70_spill] sm:$0xff] }
 0x462   :  { %12730 = vmatprep.mubr.msk.f32.mxu0 %vm3230_vm12, %v3202_v41  ;;  %v2918_v60 = vcombine.high %v2910_v44, %v2910_v44  ;;  %v2926_v56 = vrot.slane %v2910_v44, %v18920_v29  ;;  %v3203_v32 = vsel %vm3139_vm13, %v3107_v58, %v3171_v52  ;;  %v3173_v57 = vmul.f32 0.2, %v3109_v14 }
 0x463   :  { %vm3141_vm8 = vcmp.gt.f32.partialorder %v3109_v14, 0.0  ;;  %v3111_v62 = vadd.f32 %v3079_v4, %v3041_v51  ;;  %v3043_v9 = vadd.f32 %v2975_v31, %v15215_v23  ;;  %v3044_v0 = vadd.f32 %v2979_v11, %v15217_v43  ;;  %v18939_v4 = vld [vmem:[#allocation71_spill] sm:$0xff] }
 0x464   :  { %v3204_v39 = vsel %vm3140_vm3, %v3108_v1, %v3172_v2  ;;  %v3174_v12 = vmul.f32 0.2, %v3110_v17  ;;  %v3112_v53 = vadd.f32 %v3080_v45, %v3042_v47  ;;  %v2983_v18 = vrot.slane %v2902_v34, %v18929_v38 }
 0x465   :  { %12731 = vmatmul.mubr.msk.f32.gmra.mxu0 %vm3230_vm12, %v3203_v32  ;;  %v3081_v21 = vmul.f32 %v15197_v28, %v18935_v13  ;;  %v3082_v49 = vmul.f32 %v15197_v28, %v18936_v46  ;;  %vm3142_vm6 = vcmp.gt.f32.partialorder %v3110_v17, 0.0  ;;  %v2940_v10 = vrot.slane %v2918_v60, %v18920_v29  ;;  %v18941_v60 = vld [vmem:[#allocation72_spill] sm:$0xff] }
 0x466   :  { %12733 = vmatprep.mubr.msk.f32.mxu0 %vm3230_vm12, %v3204_v39  ;;  %v2987_v19 = vrot.slane %v2926_v56, %v18929_v38  ;;  %v3205_v59 = vsel %vm3141_vm8, %v3109_v14, %v3173_v57  ;;  %v3175_v6 = vmul.f32 0.2, %v3111_v62  ;;  %v3045_v3 = vadd.f32 %v2979_v11, %v15215_v23 }
 0x467   :  { %v3113_v58 = vadd.f32 %v3081_v21, %v3043_v9  ;;  %v3114_v35 = vadd.f32 %v3082_v49, %v3044_v0  ;;  %v3206_v40 = vsel %vm3142_vm6, %v3110_v17, %v3174_v12  ;;  %vm3143_vm14 = vcmp.gt.f32.partialorder %v3111_v62, 0.0 }
 0x468   :  { %v3176_v24 = vmul.f32 0.2, %v3112_v53  ;;  %v3046_v31 = vadd.f32 %v2983_v18, %v15217_v43  ;;  %v3083_v1 = vmul.f32 %v15197_v28, %v18937_v26  ;;  %v3084_v15 = vmul.f32 %v15197_v28, %v18938_v55  ;;  %v19002_v26 = vld [vmem:[#allocation111_spill] sm:$0xff] }
 0x469   :  { %12734 = vmatmul.mubr.msk.f32.gmra.mxu0 %vm3230_vm12, %v3205_v59  ;;  %vm3144_vm13 = vcmp.gt.f32.partialorder %v3112_v53, 0.0  ;;  %v2903_v44 = vcombine.high %v15228_v25, %v15228_v25  ;;  %v2948_v11 = vcombine.high %v2926_v56, %v2926_v56  ;;  %v2991_v52 = vrot.slane %v2940_v10, %v18929_v38  ;;  %v18940_v25 = vld [vmem:[#allocation73_spill] sm:$0xff]  ;;  %v18942_v59 = vld [vmem:[#allocation75_spill] sm:$0xff] }
 0x46a   :  { %12736 = vmatprep.mubr.msk.f32.mxu0 %vm3230_vm12, %v3206_v40  ;;  %v3048_v14 = vadd.f32 %v2987_v19, %v15217_v43  ;;  %v3207_v54 = vsel %vm3143_vm14, %v3111_v62, %v3175_v6  ;;  %v3177_v30 = vmul.f32 0.2, %v3113_v58  ;;  %v3115_v51 = vadd.f32 %v3083_v1, %v3045_v3  ;;  %v18943_v3 = vld [vmem:[#allocation74_spill] sm:$0xff] }
 0x46b   :  { %v3047_v34 = vadd.f32 %v2983_v18, %v15215_v23  ;;  %v3208_v41 = vsel %vm3144_vm13, %v3112_v53, %v3176_v24  ;;  %vm3145_vm3 = vcmp.gt.f32.partialorder %v3113_v58, 0.0  ;;  %v3178_v2 = vmul.f32 0.2, %v3114_v35 }
 0x46c   :  { %v3116_v47 = vadd.f32 %v3084_v15, %v3046_v31  ;;  %v3085_v45 = vmul.f32 %v15197_v28, %v18939_v4  ;;  %v3087_v17 = vmul.f32 %v15197_v28, %v18940_v25  ;;  %v3086_v56 = vmul.f32 %v15197_v28, %v18941_v60 }
 0x46d   :  { %12737 = vmatmul.mubr.msk.f32.gmra.mxu0 %vm3230_vm12, %v3207_v54  ;;  %vm3146_vm8 = vcmp.gt.f32.partialorder %v3114_v35, 0.0  ;;  %v2917_v32 = vrot.slane %v2903_v44, %v18920_v29  ;;  %v2950_v57 = vcombine.high %v2940_v10, %v2940_v10  ;;  %v2995_v62 = vrot.slane %v2948_v11, %v18929_v38  ;;  %v18944_v54 = vld [vmem:[#allocation76_spill] sm:$0xff] }
 0x46e   :  { %12739 = vmatprep.mubr.msk.f32.mxu0 %vm3230_vm12, %v3208_v41  ;;  %v3049_v9 = vadd.f32 %v2987_v19, %v15215_v23  ;;  %v3209_v0 = vsel %vm3145_vm3, %v3113_v58, %v3177_v30  ;;  %v3179_v39 = vmul.f32 0.2, %v3115_v51  ;;  %v3117_v12 = vadd.f32 %v3085_v45, %v3047_v34 }
 0x46f   :  { %v3118_v53 = vadd.f32 %v3086_v56, %v3048_v14  ;;  %v3210_v18 = vsel %vm3146_vm8, %v3114_v35, %v3178_v2  ;;  %vm3147_vm6 = vcmp.gt.f32.partialorder %v3115_v51, 0.0  ;;  %v3180_v21 = vmul.f32 0.2, %v3116_v47 }
 0x470   :  { %v3050_v49 = vadd.f32 %v2991_v52, %v15217_v43  ;;  %v3089_v6 = vmul.f32 %v15197_v28, %v18942_v59  ;;  %v3088_v10 = vmul.f32 %v15197_v28, %v18943_v3  ;;  %vm3148_vm14 = vcmp.gt.f32.partialorder %v3116_v47, 0.0 }
 0x471   :  { %12740 = vmatmul.mubr.msk.f32.gmra.mxu0 %vm3230_vm12, %v3209_v0  ;;  %v2919_v19 = vcombine.high %v2917_v32, %v2917_v32  ;;  %v2933_v58 = vrot.slane %v2917_v32, %v18920_v29  ;;  %v3119_v40 = vadd.f32 %v3087_v17, %v3049_v9  ;;  %v3051_v24 = vadd.f32 %v2991_v52, %v15215_v23  ;;  %v18946_v0 = vld [vmem:[#allocation79_spill] sm:$0xff] }
 0x472   :  { %12742 = vmatprep.mubr.msk.f32.mxu0 %vm3230_vm12, %v3210_v18  ;;  %v2999_v35 = vrot.slane %v2950_v57, %v18929_v38  ;;  %v3211_v31 = vsel %vm3147_vm6, %v3115_v51, %v3179_v39  ;;  %v3181_v1 = vmul.f32 0.2, %v3117_v12  ;;  %v3052_v15 = vadd.f32 %v2995_v62, %v15217_v43  ;;  %v18945_v57 = vld [vmem:[#allocation77_spill] sm:$0xff] }
 0x473   :  { %v3212_v44 = vsel %vm3148_vm14, %v3116_v47, %v3180_v21  ;;  %vm3149_vm13 = vcmp.gt.f32.partialorder %v3117_v12, 0.0  ;;  %v3182_v11 = vmul.f32 0.2, %v3118_v53  ;;  %v3120_v14 = vadd.f32 %v3088_v10, %v3050_v49 }
 0x474   :  { %v3090_v30 = vmul.f32 %v15197_v28, %v18944_v54  ;;  %vm3150_vm3 = vcmp.gt.f32.partialorder %v3118_v53, 0.0  ;;  %vm3151_vm8 = vcmp.gt.f32.partialorder %v3119_v40, 0.0  ;;  %v3183_v52 = vmul.f32 0.2, %v3119_v40 }
 0x475   :  { %12743 = vmatmul.mubr.msk.f32.gmra.mxu0 %vm3230_vm12, %v3211_v31  ;;  %v3121_v34 = vadd.f32 %v3089_v6, %v3051_v24  ;;  %v3213_v41 = vsel %vm3149_vm13, %v3117_v12, %v3181_v1  ;;  %v3053_v2 = vadd.f32 %v2995_v62, %v15215_v23  ;;  %v3054_v45 = vadd.f32 %v2999_v35, %v15217_v43  ;;  %v18947_v12 = vld [vmem:[#allocation78_spill] sm:$0xff] }
 0x476   :  { %12745 = vmatprep.mubr.msk.f32.mxu0 %vm3230_vm12, %v3212_v44  ;;  %v3122_v51 = vadd.f32 %v3090_v30, %v3052_v15  ;;  %v2947_v47 = vrot.slane %v2919_v19, %v18920_v29  ;;  %v3003_v17 = vrot.slane %v2933_v58, %v18929_v38  ;;  %v3214_v56 = vsel %vm3150_vm3, %v3118_v53, %v3182_v11  ;;  %v18948_v15 = vld [vmem:[#allocation80_spill] sm:$0xff] }
 0x477   :  { %v3184_v32 = vmul.f32 0.2, %v3120_v14  ;;  %v3091_v9 = vmul.f32 %v15197_v28, %v18945_v57  ;;  %v3093_v39 = vmul.f32 %v15197_v28, %v18946_v0  ;;  %v3092_v18 = vmul.f32 %v15197_v28, %v18947_v12 }
 0x478   :  { %vm3152_vm6 = vcmp.gt.f32.partialorder %v3120_v14, 0.0  ;;  %v2949_v62 = vcombine.high %v2933_v58, %v2933_v58  ;;  %v3215_v21 = vsel %vm3151_vm8, %v3119_v40, %v3183_v52  ;;  %v3185_v49 = vmul.f32 0.2, %v3121_v34 }
 0x479   :  { %12746 = vmatmul.mubr.msk.f32.gmra.mxu0 %vm3230_vm12, %v3213_v41  ;;  %v3055_v6 = vadd.f32 %v2999_v35, %v15215_v23  ;;  %vm3153_vm14 = vcmp.gt.f32.partialorder %v3121_v34, 0.0  ;;  %v3186_v53 = vmul.f32 0.2, %v3122_v51  ;;  %v3123_v10 = vadd.f32 %v3091_v9, %v3053_v2 }
 0x47a   :  { %12748 = vmatprep.mubr.msk.f32.mxu0 %vm3230_vm12, %v3214_v56  ;;  %v3124_v19 = vadd.f32 %v3092_v18, %v3054_v45  ;;  %v3007_v24 = vrot.slane %v2947_v47, %v18929_v38  ;;  %v3216_v31 = vsel %vm3152_vm6, %v3120_v14, %v3184_v32  ;;  %vm3154_vm13 = vcmp.gt.f32.partialorder %v3122_v51, 0.0  ;;  %v18949_v56 = vld [vmem:[#allocation81_spill] sm:$0xff] }
 0x47b   :  { %v3056_v1 = vadd.f32 %v3003_v17, %v15217_v43  ;;  %v3094_v58 = vmul.f32 %v15197_v28, %v18948_v15  ;;  %v2951_v40 = vcombine.high %v2947_v47, %v2947_v47  ;;  %v3011_v35 = vrot.slane %v2949_v62, %v18929_v38  ;;  %v18950_v47 = vld [vmem:[#allocation82_spill] sm:$0xff] }
 0x47c   :  { %v3217_v44 = vsel %vm3153_vm14, %v3121_v34, %v3185_v49  ;;  %v3125_v11 = vadd.f32 %v3093_v39, %v3055_v6  ;;  %v3218_v30 = vsel %vm3154_vm13, %v3122_v51, %v3186_v53  ;;  %v3187_v52 = vmul.f32 0.2, %v3123_v10  ;;  %v18951_v53 = vld [vmem:[#allocation83_spill] sm:$0xff] }
 0x47d   :  { %12749 = vmatmul.mubr.msk.f32.gmra.mxu0 %vm3230_vm12, %v3215_v21  ;;  %v3188_v41 = vmul.f32 0.2, %v3124_v19  ;;  %v3057_v2 = vadd.f32 %v3003_v17, %v15215_v23  ;;  %vm3155_vm3 = vcmp.gt.f32.partialorder %v3123_v10, 0.0  ;;  %vm3156_vm8 = vcmp.gt.f32.partialorder %v3124_v19, 0.0 }
 0x47e   :  { %12751 = vmatprep.mubr.msk.f32.mxu0 %vm3230_vm12, %v3216_v31  ;;  %v3126_v14 = vadd.f32 %v3094_v58, %v3056_v1  ;;  %v3058_v45 = vadd.f32 %v3007_v24, %v15217_v43  ;;  %v3095_v32 = vmul.f32 %v15197_v28, %v18949_v56  ;;  %v3096_v34 = vmul.f32 %v15197_v28, %v18950_v47  ;;  %v18952_v1 = vld [vmem:[#allocation84_spill] sm:$0xff]  ;;  %v18974_v47 = vld [vmem:[#allocation97_spill] sm:$0xff] }
 0x47f   :  { %vm3157_vm6 = vcmp.gt.f32.partialorder %v3125_v11, 0.0  ;;  %v3189_v51 = vmul.f32 0.2, %v3125_v11  ;;  %v3219_v9 = vsel %vm3155_vm3, %v3123_v10, %v3187_v52  ;;  %v3220_v39 = vsel %vm3156_vm8, %v3124_v19, %v3188_v41 }
 0x480   :  { %v3127_v17 = vadd.f32 %v3095_v32, %v3057_v2  ;;  %v3059_v18 = vadd.f32 %v3007_v24, %v15215_v23  ;;  %v3190_v62 = vmul.f32 0.2, %v3126_v14  ;;  %v3128_v21 = vadd.f32 %v3096_v34, %v3058_v45  ;;  %v18953_v2 = vld [vmem:[#allocation85_spill] sm:$0xff]  ;;  %v18954_v32 = vld [vmem:[#allocation86_spill] sm:$0xff] }
 0x481   :  { %12752 = vmatmul.mubr.msk.f32.gmra.mxu0 %vm3230_vm12, %v3217_v44  ;;  %v3060_v49 = vadd.f32 %v3011_v35, %v15217_v43  ;;  %v3015_v6 = vrot.slane %v2951_v40, %v18929_v38  ;;  %v3097_v31 = vmul.f32 %v15197_v28, %v18951_v53  ;;  %vm3158_vm14 = vcmp.gt.f32.partialorder %v3126_v14, 0.0 }
 0x482   :  { %12754 = vmatprep.mubr.msk.f32.mxu0 %vm3230_vm12, %v3218_v30  ;;  %v3098_v10 = vmul.f32 %v15197_v28, %v18952_v1  ;;  %v3221_v19 = vsel %vm3157_vm6, %v3125_v11, %v3189_v51  ;;  %vm3159_vm13 = vcmp.gt.f32.partialorder %v3127_v17, 0.0  ;;  %v3191_v24 = vmul.f32 0.2, %v3127_v17 }
 0x483   :  { %v3129_v58 = vadd.f32 %v3097_v31, %v3059_v18  ;;  %v3061_v44 = vadd.f32 %v3011_v35, %v15215_v23  ;;  %v3222_v30 = vsel %vm3158_vm14, %v3126_v14, %v3190_v62  ;;  %v3192_v52 = vmul.f32 0.2, %v3128_v21  ;;  %v18955_v62 = vld [vmem:[#allocation87_spill] sm:$0xff] }
 0x484   :  { %v3130_v40 = vadd.f32 %v3098_v10, %v3060_v49  ;;  %v3062_v41 = vadd.f32 %v3015_v6, %v15217_v43  ;;  %v3099_v45 = vmul.f32 %v15197_v28, %v18953_v2  ;;  %vm3160_vm3 = vcmp.gt.f32.partialorder %v3128_v21, 0.0 }
 0x485   :  { %12755 = vmatmul.mubr.msk.f32.gmra.mxu0 %vm3230_vm12, %v3219_v9  ;;  %v3100_v11 = vmul.f32 %v15197_v28, %v18954_v32  ;;  %v3223_v34 = vsel %vm3159_vm13, %v3127_v17, %v3191_v24  ;;  %v3193_v51 = vmul.f32 0.2, %v3129_v58  ;;  %v3063_v35 = vadd.f32 %v3015_v6, %v15215_v23 }
 0x486   :  { %12757 = vmatprep.mubr.msk.f32.mxu0 %vm3230_vm12, %v3220_v39  ;;  %v3131_v9 = vadd.f32 %v3099_v45, %v3061_v44  ;;  %v3224_v14 = vsel %vm3160_vm3, %v3128_v21, %v3192_v52  ;;  %vm3161_vm8 = vcmp.gt.f32.partialorder %v3129_v58, 0.0  ;;  %v3194_v39 = vmul.f32 0.2, %v3130_v40  ;;  %v2628_v44 = vld [vmem:[%s18956_s13] sm:$0x7]  ;;  %v18958_v45 = vld [vmem:[#allocation89_spill] sm:$0xff] }
 0x487   :  { %v3132_v18 = vadd.f32 %v3100_v11, %v3062_v41  ;;  %v3101_v49 = vmul.f32 %v15197_v28, %v18955_v62  ;;  %vm3162_vm6 = vcmp.gt.f32.partialorder %v3130_v40, 0.0  ;;  %v3225_v31 = vsel %vm3161_vm8, %v3129_v58, %v3193_v51  ;;  %s19534_s13 = sld [smem:[#allocation42_spill]] }
 0x488   :  { %v3195_v10 = vmul.f32 0.2, %v3131_v9  ;;  %vm3163_vm14 = vcmp.gt.f32.partialorder %v3131_v9, 0.0  ;;  %vm4117_vm8 = vcmask 1042432  }
 0x489   :  { %12758 = vmatmul.mubr.msk.f32.gmra.mxu0 %vm3230_vm12, %v3221_v19  ;;  %v3133_v17 = vadd.f32 %v3101_v49, %v3063_v35  ;;  %v3226_v19 = vsel %vm3162_vm6, %v3130_v40, %v3194_v39  ;;  %v3196_v6 = vmul.f32 0.2, %v3132_v18  ;;  %vm3164_vm13 = vcmp.gt.f32.partialorder %v3132_v18, 0.0  ;;  %12772 = vmatprep.subr.msk.mxu1 %vm4117_vm8, %v2628_v44 }
 0x48a   :  { %12760 = vmatprep.mubr.msk.f32.mxu0 %vm3230_vm12, %v3222_v30  ;;  %v3227_v21 = vsel %vm3163_vm14, %v3131_v9, %v3195_v10  ;;  %12773 = vmatpush3.msk.msra.mxu1 %vm4117_vm8, %v2628_v44  ;;  %vm18699_vm6 = vcmask 23552   ;;  %vm18959_vm14 = vcmp.gt.f32.partialorder %v18958_v45, 0.0 }
 0x48b   :  { %v3197_v24 = vmul.f32 0.2, %v3133_v17  ;;  %v3228_v28 = vsel %vm3164_vm13, %v3132_v18, %v3196_v6  ;;  %vm3165_vm3 = vcmp.gt.f32.partialorder %v3133_v17, 0.0 }
 0x48d   :  { %12761 = vmatmul.mubr.msk.f32.gmra.mxu0 %vm3230_vm12, %v3223_v34  ;;  %v3229_v58 = vsel %vm3165_vm3, %v3133_v17, %v3197_v24 }
 0x48e   :  { %12763 = vmatprep.mubr.msk.f32.mxu0 %vm3230_vm12, %v3224_v14  ;;  %v18960_v14 = vld [vmem:[#allocation90_spill] sm:$0xff] }
 0x48f   :  { %vm18961_vm13 = vcmp.gt.f32.partialorder %v18960_v14, 0.0 }
 0x491   :  { %12764 = vmatmul.mubr.msk.f32.gmra.mxu0 %vm3230_vm12, %v3225_v31  ;;  %v18962_v31 = vld [vmem:[#allocation91_spill] sm:$0xff] }
 0x492   :  { %12766 = vmatprep.mubr.msk.f32.mxu0 %vm3230_vm12, %v3226_v19  ;;  %vm18963_vm3 = vcmp.gt.f32.partialorder %v18962_v31, 0.0 }
 0x495   :  { %12767 = vmatmul.mubr.msk.f32.gmra.mxu0 %vm3230_vm12, %v3227_v21 }
 0x496   :  { %12769 = vmatprep.mubr.msk.f32.mxu0 %vm3230_vm12, %v3228_v28  ;;  %v18964_v28 = vld [vmem:[#allocation92_spill] sm:$0xff] }
 0x499   :  { %12770 = vmatmul.mubr.msk.f32.gmra.mxu0 %vm3230_vm12, %v3229_v58 }
 0x51d   :  { %v12726_v30 = vpop.f32.mrf.mxu0 }
 0x51e   :  { %v3557_v40 = vsel %vm18700_vm9, %v12726_v30, -1e+30 }
 0x51f   :  { %v3397_v41 = vpop.f32.mrf.mxu0  ;;  %v3590_v34 = vsel %vm18699_vm6, %v3557_v40, -inf }
 0x520   :  { %v3556_v11 = vsel %vm18959_vm14, %v3397_v41, -1e+30  ;;  %vm18965_vm14 = vcmp.gt.f32.partialorder %v18964_v28, 0.0 }
 0x521   :  { %v3589_v51 = vsel %vm18699_vm6, %v3556_v11, -inf  ;;  %v12729_v9 = vpop.f32.mrf.mxu0 }
 0x522   :  { %v3591_v35 = vmax.f32 %v3589_v51, %v3590_v34  ;;  %v3559_v39 = vsel %vm18961_vm13, %v12729_v9, -1e+30  ;;  %v18966_v34 = vld [vmem:[#allocation93_spill] sm:$0xff] }
 0x523   :  { %v3407_v18 = vpop.f32.mrf.mxu0  ;;  %v3599_v17 = vsel %vm18699_vm6, %v3559_v39, -inf  ;;  %vm18967_vm13 = vcmp.gt.f32.partialorder %v18966_v34, 0.0 }
 0x524   :  { %v3592_v49 = vrot.slane %v3591_v35, 4  ;;  %v3558_v10 = vsel %vm18963_vm3, %v3407_v18, -1e+30 }
 0x525   :  { %v3598_v19 = vsel %vm18699_vm6, %v3558_v10, -inf  ;;  %v12732_v6 = vpop.f32.mrf.mxu0 }
 0x526   :  { %v3593_v21 = vmax.f32 %v3591_v35, %v3592_v49  ;;  %v3600_v24 = vmax.f32 %v3598_v19, %v3599_v17  ;;  %v15382_v58 = vsel %vm18965_vm14, %v12732_v6, -1e+30  ;;  %v18968_v19 = vld [vmem:[#allocation94_spill] sm:$0xff] }
 0x527   :  { %v3417_v44 = vpop.f32.mrf.mxu0  ;;  %v3608_v9 = vsel %vm18699_vm6, %v15382_v58, -inf  ;;  %vm18969_vm3 = vcmp.gt.f32.partialorder %v18968_v19, 0.0 }
 0x528   :  { %v3594_v30 = vrot.slane %v3593_v21, 2  ;;  %v3601_v41 = vrot.slane %v3600_v24, 4  ;;  %v15386_v51 = vsel %vm18967_vm13, %v3417_v44, -1e+30  ;;  %v18970_v44 = vld [vmem:[#allocation95_spill] sm:$0xff] }
 0x529   :  { %v3607_v18 = vsel %vm18699_vm6, %v15386_v51, -inf  ;;  %v12735_v31 = vpop.f32.mrf.mxu0  ;;  %vm18971_vm14 = vcmp.gt.f32.partialorder %v18970_v44, 0.0 }
 0x52a   :  { %v3595_v35 = vmax.f32 %v3593_v21, %v3594_v30  ;;  %v3602_v49 = vmax.f32 %v3600_v24, %v3601_v41  ;;  %v3609_v17 = vmax.f32 %v3607_v18, %v3608_v9  ;;  %v15394_v6 = vsel %vm18969_vm3, %v12735_v31, -1e+30  ;;  %v18972_v18 = vld [vmem:[#allocation96_spill] sm:$0xff] }
 0x52b   :  { %v3427_v28 = vpop.f32.mrf.mxu0  ;;  %v3617_v62 = vsel %vm18699_vm6, %v15394_v6, -inf  ;;  %vm18973_vm13 = vcmp.gt.f32.partialorder %v18972_v18, 0.0  ;;  %vm18975_vm3 = vcmp.gt.f32.partialorder %v18974_v47, 0.0 }
 0x52c   :  { %v3596_v14 = vrot.slane %v3595_v35, 1  ;;  %v3603_v45 = vrot.slane %v3602_v49, 2  ;;  %v3610_v34 = vrot.slane %v3609_v17, 4  ;;  %v15398_v52 = vsel %vm18971_vm14, %v3427_v28, -1e+30 }
 0x52d   :  { %v3616_v21 = vsel %vm18699_vm6, %v15398_v52, -inf  ;;  %v12738_v24 = vpop.f32.mrf.mxu0 }
 0x52e   :  { %v3597_v30 = vmax.f32 %v3595_v35, %v3596_v14  ;;  %v3604_v41 = vmax.f32 %v3602_v49, %v3603_v45  ;;  %v3611_v9 = vmax.f32 %v3609_v17, %v3610_v34  ;;  %v3618_v31 = vmax.f32 %v3616_v21, %v3617_v62 }
 0x52f   :  { %v15406_v19 = vsel %vm18973_vm13, %v12738_v24, -1e+30  ;;  %v3437_v32 = vpop.f32.mrf.mxu0 }
 0x530   :  { %v3733_v2 = vsub.f32 %v3556_v11, %v3597_v30  ;;  %v3734_v44 = vsub.f32 %v3557_v40, %v3597_v30  ;;  %v3605_v28 = vrot.slane %v3604_v41, 1  ;;  %v3612_v1 = vrot.slane %v3611_v9, 2  ;;  %v18976_v40 = vld [vmem:[#allocation98_spill] sm:$0xff] }
 0x531   :  { %v3619_v53 = vrot.slane %v3618_v31, 4  ;;  %v15410_v56 = vsel %vm18975_vm3, %v3437_v32, -1e+30  ;;  %v12741_v15 = vpop.f32.mrf.mxu0  ;;  %v3626_v35 = vsel %vm18699_vm6, %v15406_v19, -inf  ;;  %vm18977_vm14 = vcmp.gt.f32.partialorder %v18976_v40, 0.0 }
 0x532   :  { %v3765_v12 = vmul.f32 1.442695, %v3733_v2  ;;  %v3767_v14 = vmul.f32 1.442695, %v3734_v44  ;;  %v3606_v45 = vmax.f32 %v3604_v41, %v3605_v28  ;;  %v3613_v34 = vmax.f32 %v3611_v9, %v3612_v1 }
 0x533   :  { %v3620_v62 = vmax.f32 %v3618_v31, %v3619_v53  ;;  %v3625_v11 = vsel %vm18699_vm6, %v15410_v56, -inf  ;;  %v15418_v49 = vsel %vm18977_vm14, %v12741_v15, -1e+30  ;;  %v3447_v17 = vpop.f32.mrf.mxu0  ;;  %v18978_v31 = vld [vmem:[#allocation99_spill] sm:$0xff] }
 0x534   :  { %13399 = vpow2.f32 %v3765_v12  ;;  %v3735_v32 = vsub.f32 %v3558_v10, %v3606_v45  ;;  %v3736_v21 = vsub.f32 %v3559_v39, %v3606_v45  ;;  %v3614_v24 = vrot.slane %v3613_v34, 1  ;;  %v18980_v39 = vld [vmem:[#allocation100_spill] sm:$0xff] }
 0x535   :  { %13401 = vpow2.f32 %v3767_v14  ;;  %v3621_v2 = vrot.slane %v3620_v62, 2  ;;  %v3627_v44 = vmax.f32 %v3625_v11, %v3626_v35  ;;  %v3635_v53 = vsel %vm18699_vm6, %v15418_v49, -inf  ;;  %v12744_v1 = vpop.f32.mrf.mxu0 }
 0x536   :  { %v3769_v30 = vmul.f32 1.442695, %v3735_v32  ;;  %v3771_v41 = vmul.f32 1.442695, %v3736_v21  ;;  %v3615_v9 = vmax.f32 %v3613_v34, %v3614_v24  ;;  %vm18979_vm13 = vcmp.gt.f32.partialorder %v18978_v31, 0.0  ;;  %v18982_v31 = vld [vmem:[#allocation101_spill] sm:$0xff] }
 0x537   :  { %v15424_v28 = vsel %vm18979_vm13, %v3447_v17, -1e+30  ;;  %v3622_v15 = vmax.f32 %v3620_v62, %v3621_v2  ;;  %v3628_v40 = vrot.slane %v3627_v44, 4  ;;  %vm18981_vm3 = vcmp.gt.f32.partialorder %v18980_v39, 0.0  ;;  %v3457_v14 = vpop.f32.mrf.mxu0 }
 0x538   :  { %v3634_v12 = vsel %vm18699_vm6, %v15424_v28, -inf  ;;  %v15430_v10 = vsel %vm18981_vm3, %v12744_v1, -1e+30  ;;  %13403 = vpow2.f32 %v3769_v30  ;;  %v3737_v45 = vsub.f32 %v15386_v51, %v3615_v9  ;;  %v18984_v51 = vld [vmem:[#allocation102_spill] sm:$0xff] }
 0x539   :  { %v3738_v35 = vsub.f32 %v15382_v58, %v3615_v9  ;;  %v3636_v34 = vmax.f32 %v3634_v12, %v3635_v53  ;;  %13405 = vpow2.f32 %v3771_v41  ;;  %v3623_v11 = vrot.slane %v3622_v15, 1  ;;  %v12747_v32 = vpop.f32.mrf.mxu0 }
 0x53a   :  { %v3629_v17 = vmax.f32 %v3627_v44, %v3628_v40  ;;  %v3773_v62 = vmul.f32 1.442695, %v3737_v45  ;;  %v3644_v2 = vsel %vm18699_vm6, %v15430_v10, -inf  ;;  %vm18983_vm14 = vcmp.gt.f32.partialorder %v18982_v31, 0.0 }
 0x53b   :  { %v3775_v21 = vmul.f32 1.442695, %v3738_v35  ;;  %v3637_v24 = vrot.slane %v3636_v34, 4  ;;  %v3624_v39 = vmax.f32 %v3622_v15, %v3623_v11  ;;  %v15438_v30 = vsel %vm18983_vm14, %v3457_v14, -1e+30  ;;  %v3467_v53 = vpop.f32.mrf.mxu0  ;;  %v18986_v11 = vld [vmem:[#allocation103_spill] sm:$0xff] }
 0x53c   :  { %v3630_v1 = vrot.slane %v3629_v17, 2  ;;  %vm18985_vm13 = vcmp.gt.f32.partialorder %v18984_v51, 0.0  ;;  %13407 = vpow2.f32 %v3773_v62  ;;  %v3643_v44 = vsel %vm18699_vm6, %v15438_v30, -inf }
 0x53d   :  { %v15442_v58 = vsel %vm18985_vm13, %v12747_v32, -1e+30  ;;  %v3638_v40 = vmax.f32 %v3636_v34, %v3637_v24  ;;  %13409 = vpow2.f32 %v3775_v21  ;;  %v3739_v9 = vsub.f32 %v15398_v52, %v3624_v39  ;;  %v12750_v14 = vpop.f32.mrf.mxu0  ;;  %v18988_v34 = vld [vmem:[#allocation104_spill] sm:$0xff] }
 0x53e   :  { %v3653_v41 = vsel %vm18699_vm6, %v15442_v58, -inf  ;;  %v3740_v15 = vsub.f32 %v15394_v6, %v3624_v39  ;;  %v3631_v12 = vmax.f32 %v3629_v17, %v3630_v1  ;;  %v3645_v35 = vmax.f32 %v3643_v44, %v3644_v2  ;;  %v18990_v44 = vld [vmem:[#allocation105_spill] sm:$0xff] }
 0x53f   :  { %v3639_v45 = vrot.slane %v3638_v40, 2  ;;  %vm18987_vm3 = vcmp.gt.f32.partialorder %v18986_v11, 0.0  ;;  %vm18989_vm14 = vcmp.gt.f32.partialorder %v18988_v34, 0.0  ;;  %v3777_v24 = vmul.f32 1.442695, %v3739_v9  ;;  %v3477_v21 = vpop.f32.mrf.mxu0 }
 0x540   :  { %v15452_v32 = vsel %vm18987_vm3, %v3467_v53, -1e+30  ;;  %v15456_v62 = vsel %vm18989_vm14, %v12750_v14, -1e+30  ;;  %v3779_v51 = vmul.f32 1.442695, %v3740_v15 }
 0x541   :  { %v3632_v31 = vrot.slane %v3631_v12, 1  ;;  %v3652_v52 = vsel %vm18699_vm6, %v15452_v32, -inf  ;;  %v3640_v6 = vmax.f32 %v3638_v40, %v3639_v45  ;;  %v3646_v39 = vrot.slane %v3645_v35, 4  ;;  %v15460_v1 = vpop.eup %13399  ;;  %v12753_v9 = vpop.f32.mrf.mxu0 }
 0x542   :  { %v3654_v17 = vmax.f32 %v3652_v52, %v3653_v41  ;;  %13411 = vpow2.f32 %v3777_v24  ;;  %v3662_v53 = vsel %vm18699_vm6, %v15456_v62, -inf  ;;  %vm18991_vm13 = vcmp.gt.f32.partialorder %v18990_v44, 0.0  ;;  %v15468_v15 = vpop.eup %13401 }
 0x543   :  { %v3633_v2 = vmax.f32 %v3631_v12, %v3632_v31  ;;  %v15466_v14 = vsel %vm18991_vm13, %v3477_v21, -1e+30  ;;  %v3829_v34 = vsel %vm18699_vm6, %v15460_v1, 0.0  ;;  %13413 = vpow2.f32 %v3779_v51  ;;  %v15476_v52 = vpop.f32.mrf.mxu0 }
 0x544   :  { %v3641_v40 = vrot.slane %v3640_v6, 1  ;;  %v3647_v41 = vmax.f32 %v3645_v35, %v3646_v39  ;;  %v3830_v45 = vsel %vm18699_vm6, %v15468_v15, 0.0  ;;  %v3655_v24 = vrot.slane %v3654_v17, 4 }
 0x545   :  { %v3741_v31 = vsub.f32 %v15410_v56, %v3633_v2  ;;  %v3742_v12 = vsub.f32 %v15406_v19, %v3633_v2  ;;  %v3831_v21 = vadd.f32 %v3830_v45, %v3829_v34  ;;  %v3661_v47 = vsel %vm18699_vm6, %v15466_v14, -inf  ;;  %v15480_v18 = vpop.eup %13403  ;;  %v15482_v57 = vpop.f32.mrf.mxu0 }
 0x546   :  { %v3642_v44 = vmax.f32 %v3640_v6, %v3641_v40  ;;  %v3648_v11 = vrot.slane %v3647_v41, 2  ;;  %v3656_v39 = vmax.f32 %v3654_v17, %v3655_v24  ;;  %v3663_v0 = vmax.f32 %v3661_v47, %v3662_v53  ;;  %v15484_v56 = vpop.eup %13405 }
 0x547   :  { %v3781_v51 = vmul.f32 1.442695, %v3741_v31  ;;  %v3783_v35 = vmul.f32 1.442695, %v3742_v12  ;;  %v3832_v19 = vrot.slane %v3831_v21, 4  ;;  %v3838_v2 = vsel %vm18699_vm6, %v15480_v18, 0.0  ;;  %v15492_v17 = vpop.f32.mrf.mxu0 }
 0x548   :  { %v3743_v34 = vsub.f32 %v15424_v28, %v3642_v44  ;;  %v3744_v6 = vsub.f32 %v15418_v49, %v3642_v44  ;;  %v3839_v40 = vsel %vm18699_vm6, %v15484_v56, 0.0  ;;  %v3649_v45 = vmax.f32 %v3647_v41, %v3648_v11 }
 0x549   :  { %13415 = vpow2.f32 %v3781_v51  ;;  %v3657_v31 = vrot.slane %v3656_v39, 2  ;;  %v3840_v47 = vadd.f32 %v3839_v40, %v3838_v2  ;;  %v15494_v12 = vpop.eup %13407  ;;  %v3664_v59 = vrot.slane %v3663_v0, 4  ;;  %v12759_v2 = vpop.f32.mrf.mxu0 }
 0x54a   :  { %13417 = vpow2.f32 %v3783_v35  ;;  %v3785_v53 = vmul.f32 1.442695, %v3743_v34  ;;  %v3787_v24 = vmul.f32 1.442695, %v3744_v6  ;;  %v3650_v54 = vrot.slane %v3649_v45, 1  ;;  %v15496_v28 = vpop.eup %13409 }
 0x54b   :  { %v3658_v3 = vmax.f32 %v3656_v39, %v3657_v31  ;;  %v3833_v49 = vadd.f32 %v3832_v19, %v3831_v21  ;;  %v3841_v44 = vrot.slane %v3840_v47, 4  ;;  %v3847_v51 = vsel %vm18699_vm6, %v15494_v12, 0.0 }
 0x54c   :  { %13419 = vpow2.f32 %v3785_v53  ;;  %v3848_v11 = vsel %vm18699_vm6, %v15496_v28, 0.0  ;;  %v3651_v41 = vmax.f32 %v3649_v45, %v3650_v54  ;;  %v3665_v40 = vmax.f32 %v3663_v0, %v3664_v59  ;;  %v18992_v53 = vld [vmem:[#allocation106_spill] sm:$0xff] }
 0x54d   :  { %13421 = vpow2.f32 %v3787_v24  ;;  %v3659_v35 = vrot.slane %v3658_v3, 1  ;;  %v3842_v34 = vadd.f32 %v3841_v44, %v3840_v47  ;;  %v3849_v6 = vadd.f32 %v3848_v11, %v3847_v51 }
 0x54e   :  { %v3745_v39 = vsub.f32 %v15438_v30, %v3651_v41  ;;  %v3746_v31 = vsub.f32 %v15430_v10, %v3651_v41  ;;  %v3834_v60 = vrot.slane %v3833_v49, 2  ;;  %v3666_v25 = vrot.slane %v3665_v40, 2  ;;  %v3507_v30 = vpop.f32.mrf.mxu0 }
 0x54f   :  { %v3660_v21 = vmax.f32 %v3658_v3, %v3659_v35  ;;  %v15504_v19 = vpop.eup %13411  ;;  %vm18993_vm3 = vcmp.gt.f32.partialorder %v18992_v53, 0.0  ;;  %v3843_v10 = vrot.slane %v3842_v34, 2  ;;  %v3850_v3 = vrot.slane %v3849_v6, 4 }
 0x550   :  { %v15508_v4 = vsel %vm18993_vm3, %v12753_v9, -1e+30  ;;  %v15510_v24 = vpop.eup %13413  ;;  %v3856_v54 = vsel %vm18699_vm6, %v15504_v19, 0.0  ;;  %v3789_v45 = vmul.f32 1.442695, %v3745_v39  ;;  %v3667_v11 = vmax.f32 %v3665_v40, %v3666_v25  ;;  %v18994_v39 = vld [vmem:[#allocation107_spill] sm:$0xff] }
 0x551   :  { %v3791_v59 = vmul.f32 1.442695, %v3746_v31  ;;  %v3747_v0 = vsub.f32 %v15452_v32, %v3660_v21  ;;  %v3857_v47 = vsel %vm18699_vm6, %v15510_v24, 0.0  ;;  %v3748_v44 = vsub.f32 %v15442_v58, %v3660_v21  ;;  %v12762_v21 = vpop.f32.mrf.mxu0 }
 0x552   :  { %v3858_v51 = vadd.f32 %v3857_v47, %v3856_v54  ;;  %13423 = vpow2.f32 %v3789_v45  ;;  %v3671_v35 = vsel %vm18699_vm6, %v15508_v4, -inf  ;;  %vm18995_vm14 = vcmp.gt.f32.partialorder %v18994_v39, 0.0  ;;  %v18996_v47 = vld [vmem:[#allocation108_spill] sm:$0xff] }
 0x553   :  { %v3793_v9 = vmul.f32 1.442695, %v3747_v0  ;;  %13425 = vpow2.f32 %v3791_v59  ;;  %v3795_v41 = vmul.f32 1.442695, %v3748_v44  ;;  %v15523_v32 = vsel %vm18995_vm14, %v15476_v52, -1e+30 }
 0x554   :  { %v3859_v31 = vrot.slane %v3858_v51, 4  ;;  %v3668_v53 = vrot.slane %v3667_v11, 1  ;;  %v3670_v58 = vsel %vm18699_vm6, %v15523_v32, -inf  ;;  %v15529_v25 = vadd.f32 %v3834_v60, %v3833_v49 }
 0x555   :  { %13427 = vpow2.f32 %v3793_v9  ;;  %v3672_v40 = vmax.f32 %v3670_v58, %v3671_v35  ;;  %v15533_v59 = vadd.f32 %v3843_v10, %v3842_v34  ;;  %vm18997_vm13 = vcmp.gt.f32.partialorder %v18996_v47, 0.0 }
 0x556   :  { %v15527_v54 = vpop.eup %13415  ;;  %13429 = vpow2.f32 %v3795_v41  ;;  %v3669_v0 = vmax.f32 %v3667_v11, %v3668_v53  ;;  %v15540_v44 = vsel %vm18997_vm13, %v15482_v57, -1e+30  ;;  %v15542_v9 = vadd.f32 %v3850_v3, %v3849_v6  ;;  %v18998_v41 = vld [vmem:[#allocation109_spill] sm:$0xff]  ;;  %v3517_v6 = vpop.f32.mrf.mxu0 }
 0x557   :  { %v15531_v45 = vpop.eup %13417  ;;  %v3865_v52 = vsel %vm18699_vm6, %v15527_v54, 0.0  ;;  %v3673_v49 = vrot.slane %v3672_v40, 4  ;;  %vm18999_vm3 = vcmp.gt.f32.partialorder %v18998_v41, 0.0  ;;  %v15553_v35 = vadd.f32 %v3859_v31, %v3858_v51 }
 0x558   :  { %v3866_v60 = vsel %vm18699_vm6, %v15531_v45, 0.0  ;;  %v15549_v34 = vsel %vm18999_vm3, %v15492_v17, -1e+30  ;;  %v3749_v11 = vsub.f32 %v15466_v14, %v3669_v0  ;;  %v3750_v57 = vsub.f32 %v15456_v62, %v3669_v0  ;;  %v12765_v13 = vpop.f32.mrf.mxu0 }
 0x559   :  { %v15551_v10 = vpop.eup %13419  ;;  %v3867_v53 = vadd.f32 %v3866_v60, %v3865_v52  ;;  %v3674_v47 = vmax.f32 %v3672_v40, %v3673_v49  ;;  %v3680_v17 = vsel %vm18699_vm6, %v15540_v44, -inf  ;;  %v3679_v41 = vsel %vm18699_vm6, %v15549_v34, -inf  ;;  %v19000_v52 = vld [vmem:[#allocation110_spill] sm:$0xff] }
 0x55a   :  { %v15557_v3 = vpop.eup %13421  ;;  %v3874_v58 = vsel %vm18699_vm6, %v15551_v10, 0.0  ;;  %v3797_v14 = vmul.f32 1.442695, %v3749_v11  ;;  %vm19001_vm14 = vcmp.gt.f32.partialorder %v19000_v52, 0.0  ;;  %v3799_v60 = vmul.f32 1.442695, %v3750_v57 }
 0x55b   :  { %v3868_v51 = vrot.slane %v3867_v53, 4  ;;  %v3875_v31 = vsel %vm18699_vm6, %v15557_v3, 0.0  ;;  %v15569_v62 = vsel %vm19001_vm14, %v12759_v2, -1e+30  ;;  %v3675_v39 = vrot.slane %v3674_v47, 2  ;;  %v19006_v57 = vld [vmem:[#allocation113_spill] sm:$0xff] }
 0x55c   :  { %v3876_v0 = vadd.f32 %v3875_v31, %v3874_v58  ;;  %v3681_v55 = vmax.f32 %v3679_v41, %v3680_v17  ;;  %v3852_v40 = vrot.slane %v15542_v9, 2  ;;  %13431 = vpow2.f32 %v3797_v14 }
 0x55d   :  { %v3869_v49 = vadd.f32 %v3868_v51, %v3867_v53  ;;  %vm19003_vm13 = vcmp.gt.f32.partialorder %v19002_v26, 0.0  ;;  %v3676_v36 = vmax.f32 %v3674_v47, %v3675_v39  ;;  %vm19005_vm3 = vcmp.gt.f32.partialorder %v19004_v37, 0.0 }
 0x55e   :  { %v15574_v46 = vsel %vm19003_vm13, %v3507_v30, -1e+30  ;;  %v3877_v48 = vrot.slane %v3876_v0, 4  ;;  %v3682_v11 = vrot.slane %v3681_v55, 4  ;;  %v15578_v2 = vsel %vm19005_vm3, %v12762_v21, -1e+30 }
 0x55f   :  { %13433 = vpow2.f32 %v3799_v60  ;;  %v3689_v41 = vsel %vm18699_vm6, %v15569_v62, -inf  ;;  %v3688_v53 = vsel %vm18699_vm6, %v15574_v46, -inf  ;;  %vm19007_vm14 = vcmp.gt.f32.partialorder %v19006_v57, 0.0  ;;  %v15588_v30 = vpop.eup %13423  ;;  %v3527_v57 = vpop.f32.mrf.mxu0 }
 0x560   :  { %v15586_v58 = vsel %vm19007_vm14, %v3517_v6, -1e+30  ;;  %v3861_v39 = vrot.slane %v15553_v35, 2  ;;  %v3677_v47 = vrot.slane %v3676_v36, 1  ;;  %v3683_v17 = vmax.f32 %v3681_v55, %v3682_v11  ;;  %v15591_v21 = vpop.eup %13425 }
 0x561   :  { %v3690_v51 = vmax.f32 %v3688_v53, %v3689_v41  ;;  %v3870_v31 = vrot.slane %v3869_v49, 2  ;;  %v3883_v14 = vsel %vm18699_vm6, %v15588_v30, 0.0  ;;  %v3698_v60 = vsel %vm18699_vm6, %v15578_v2, -inf }
 0x562   :  { %v3697_v6 = vsel %vm18699_vm6, %v15586_v58, -inf  ;;  %v15599_v37 = vpop.eup %13427  ;;  %v3878_v26 = vadd.f32 %v3877_v48, %v3876_v0  ;;  %v3884_v55 = vsel %vm18699_vm6, %v15591_v21, 0.0  ;;  %v3678_v11 = vmax.f32 %v3676_v36, %v3677_v47  ;;  %v19008_v0 = vld [vmem:[#allocation114_spill] sm:$0xff] }
 0x563   :  { %v3684_v41 = vrot.slane %v3683_v17, 2  ;;  %v15603_v53 = vpop.eup %13429  ;;  %v3885_v52 = vadd.f32 %v3884_v55, %v3883_v14  ;;  %v3892_v63 = vsel %vm18699_vm6, %v15599_v37, 0.0  ;;  %v3691_v61 = vrot.slane %v3690_v51, 4  ;;  %v12768_v55 = vpop.f32.mrf.mxu0 }
 0x564   :  { %v3699_v38 = vmax.f32 %v3697_v6, %v3698_v60  ;;  %v3893_v8 = vsel %vm18699_vm6, %v15603_v53, 0.0  ;;  %v3751_v33 = vsub.f32 %v15523_v32, %v3678_v11  ;;  %v3752_v48 = vsub.f32 %v15508_v4, %v3678_v11 }
 0x565   :  { %vm19009_vm13 = vcmp.gt.f32.partialorder %v19008_v0, 0.0  ;;  %v3886_v36 = vrot.slane %v3885_v52, 4  ;;  %v3894_v47 = vadd.f32 %v3893_v8, %v3892_v63  ;;  %v3685_v20 = vmax.f32 %v3683_v17, %v3684_v41  ;;  %v3537_v63 = vpop.f32.mrf.mxu0 }
 0x566   :  { %v15613_v5 = vsel %vm19009_vm13, %v12765_v13, -1e+30  ;;  %v3692_v14 = vmax.f32 %v3690_v51, %v3691_v61  ;;  %v15616_v22 = vadd.f32 %v3852_v40, %v15542_v9  ;;  %v3801_v60 = vmul.f32 1.442695, %v3751_v33 }
 0x567   :  { %v3803_v6 = vmul.f32 1.442695, %v3752_v48  ;;  %v3700_v27 = vrot.slane %v3699_v38, 4  ;;  %v3879_v29 = vrot.slane %v3878_v26, 2  ;;  %v3887_v43 = vadd.f32 %v3886_v36, %v3885_v52 }
 0x568   :  { %v3686_v32 = vrot.slane %v3685_v20, 1  ;;  %v3693_v23 = vrot.slane %v3692_v14, 2  ;;  %v3895_v4 = vrot.slane %v3894_v47, 4  ;;  %13435 = vpow2.f32 %v3801_v60  ;;  %v19012_v60 = vld [vmem:[#allocation115_spill] sm:$0xff] }
 0x569   :  { %v3701_v11 = vmax.f32 %v3699_v38, %v3700_v27  ;;  %vm19010_vm3 = vcmp.gt.f32.partialorder %v14807_v16, 0.0  ;;  %v15623_v8 = vadd.f32 %v3861_v39, %v15553_v35  ;;  %v15625_v61 = vadd.f32 %v3870_v31, %v3869_v49  ;;  %v15627_v9 = vpop.eup %13431 }
 0x56a   :  { %v15620_v13 = vsel %vm19010_vm3, %v3527_v57, -1e+30  ;;  %13437 = vpow2.f32 %v3803_v6  ;;  %v3687_v33 = vmax.f32 %v3685_v20, %v3686_v32  ;;  %v3694_v52 = vmax.f32 %v3692_v14, %v3693_v23 }
 0x56b   :  { %v3702_v40 = vrot.slane %v3701_v11, 2  ;;  %v3706_v17 = vsel %vm18699_vm6, %v15620_v13, -inf  ;;  %vm19011_vm14 = vcmp.gt.f32.partialorder %v14816_v42, 0.0  ;;  %v15635_v38 = vadd.f32 %v3879_v29, %v3878_v26 }
 0x56c   :  { %v15633_v27 = vsel %vm19011_vm14, %v12768_v55, -1e+30  ;;  %v3888_v35 = vrot.slane %v3887_v43, 2  ;;  %v3753_v49 = vsub.f32 %v15549_v34, %v3687_v33  ;;  %v3707_v20 = vsel %vm18699_vm6, %v15613_v5, -inf  ;;  %v15640_v57 = vpop.eup %13433  ;;  %v12771_v34 = vpop.f32.mrf.mxu0 }
 0x56d   :  { %v15642_v39 = vadd.f32 %v3895_v4, %v3894_v47  ;;  %v3754_v23 = vsub.f32 %v15540_v44, %v3687_v33  ;;  %v3695_v51 = vrot.slane %v3694_v52, 1  ;;  %v3703_v31 = vmax.f32 %v3701_v11, %v3702_v40 }
 0x56e   :  { %v3901_v41 = vsel %vm18699_vm6, %v15627_v9, 0.0  ;;  %v3805_v48 = vmul.f32 1.442695, %v3753_v49  ;;  %v3708_v29 = vmax.f32 %v3706_v17, %v3707_v20  ;;  %v3716_v26 = vsel %vm18699_vm6, %v15633_v27, -inf  ;;  %v3547_v49 = vpop.f32.mrf.mxu0 }
 0x56f   :  { %v3807_v36 = vmul.f32 1.442695, %v3754_v23  ;;  %v3696_v14 = vmax.f32 %v3694_v52, %v3695_v51  ;;  %v3704_v55 = vrot.slane %v3703_v31, 1  ;;  %vm19013_vm13 = vcmp.gt.f32.partialorder %v19012_v60, 0.0 }
 0x570   :  { %v15651_v47 = vsel %vm19013_vm13, %v3537_v63, -1e+30  ;;  %v3902_v44 = vsel %vm18699_vm6, %v15640_v57, 0.0  ;;  %13439 = vpow2.f32 %v3805_v48  ;;  %v3709_v6 = vrot.slane %v3708_v29, 4 }
 0x571   :  { %v3715_v32 = vsel %vm18699_vm6, %v15651_v47, -inf  ;;  %13441 = vpow2.f32 %v3807_v36  ;;  %v3755_v4 = vsub.f32 %v15574_v46, %v3696_v14  ;;  %v3756_v11 = vsub.f32 %v15569_v62, %v3696_v14 }
 0x572   :  { %v3705_v33 = vmax.f32 %v3703_v31, %v3704_v55  ;;  %v15659_v52 = vadd.f32 %v3888_v35, %v3887_v43  ;;  %v3710_v40 = vmax.f32 %v3708_v29, %v3709_v6  ;;  %v3717_v17 = vmax.f32 %v3715_v32, %v3716_v26 }
 0x573   :  { %vm19014_vm3 = vcmp.gt.f32.partialorder %v14859_v50, 0.0  ;;  %v3809_v20 = vmul.f32 1.442695, %v3755_v4  ;;  %v3811_v23 = vmul.f32 1.442695, %v3756_v11  ;;  %v3897_v46 = vrot.slane %v15642_v39, 2 }
 0x574   :  { %v15663_v63 = vsel %vm19014_vm3, %v12771_v34, -1e+30  ;;  %v3757_v51 = vsub.f32 %v15586_v58, %v3705_v33  ;;  %v3758_v48 = vsub.f32 %v15578_v2, %v3705_v33  ;;  %v3903_v36 = vadd.f32 %v3902_v44, %v3901_v41 }
 0x575   :  { %v3711_v62 = vrot.slane %v3710_v40, 2  ;;  %v3718_v31 = vrot.slane %v3717_v17, 4  ;;  %13443 = vpow2.f32 %v3809_v20  ;;  %vm19015_vm14 = vcmp.gt.f32.partialorder %v14873_v7, 0.0  ;;  %v15672_v26 = vpop.eup %13435 }
 0x576   :  { %v3813_v43 = vmul.f32 1.442695, %v3757_v51  ;;  %v3815_v35 = vmul.f32 1.442695, %v3758_v48  ;;  %v15670_v29 = vsel %vm19015_vm14, %v3547_v49, -1e+30  ;;  %13445 = vpow2.f32 %v3811_v23 }
 0x577   :  { %v3712_v34 = vmax.f32 %v3710_v40, %v3711_v62  ;;  %v3719_v14 = vmax.f32 %v3717_v17, %v3718_v31  ;;  %v3725_v2 = vsel %vm18699_vm6, %v15663_v63, -inf  ;;  %v15676_v58 = vpop.eup %13437  ;;  %v3910_v41 = vsel %vm18699_vm6, %v15672_v26, 0.0 }
 0x578   :  { %13447 = vpow2.f32 %v3813_v43  ;;  %v3724_v55 = vsel %vm18699_vm6, %v15670_v29, -inf  ;;  %v3836_v44 = vrot.slane %v15529_v25, 1  ;;  %v3911_v6 = vsel %vm18699_vm6, %v15676_v58, 0.0 }
 0x579   :  { %13449 = vpow2.f32 %v3815_v35  ;;  %v3713_v32 = vrot.slane %v3712_v34, 1  ;;  %v3720_v4 = vrot.slane %v3719_v14, 2  ;;  %v3904_v11 = vrot.slane %v3903_v36, 4 }
 0x57a   :  { %v3726_v33 = vmax.f32 %v3724_v55, %v3725_v2  ;;  %v3837_v40 = vadd.f32 %v3836_v44, %v15529_v25  ;;  %v3845_v17 = vrot.slane %v15533_v59, 1  ;;  %v3854_v23 = vrot.slane %v15616_v22, 1 }
 0x57b   :  { %v3714_v49 = vmax.f32 %v3712_v34, %v3713_v32  ;;  %v3721_v20 = vmax.f32 %v3719_v14, %v3720_v4  ;;  %v3863_v51 = vrot.slane %v15623_v8, 1  ;;  %v3912_v48 = vadd.f32 %v3911_v6, %v3910_v41 }
 0x57c   :  { %v3727_v62 = vrot.slane %v3726_v33, 4  ;;  %13451 = vrcp.f32 %v3837_v40  ;;  %v3846_v31 = vadd.f32 %v3845_v17, %v15533_v59  ;;  %v3855_v25 = vadd.f32 %v3854_v23, %v15616_v22 }
 0x57d   :  { %v3759_v43 = vsub.f32 %v15620_v13, %v3714_v49  ;;  %v3760_v35 = vsub.f32 %v15613_v5, %v3714_v49  ;;  %v3722_v2 = vrot.slane %v3721_v20, 1  ;;  %v15693_v55 = vpop.eup %13439  ;;  %v3905_v34 = vadd.f32 %v3904_v11, %v3903_v36 }
 0x57e   :  { %v3728_v14 = vmax.f32 %v3726_v33, %v3727_v62  ;;  %13453 = vrcp.f32 %v3846_v31  ;;  %v3864_v44 = vadd.f32 %v3863_v51, %v15623_v8  ;;  %v15696_v32 = vpop.eup %13441  ;;  %v3919_v41 = vsel %vm18699_vm6, %v15693_v55, 0.0 }
 0x57f   :  { %v3817_v59 = vmul.f32 1.442695, %v3759_v43  ;;  %v3819_v6 = vmul.f32 1.442695, %v3760_v35  ;;  %v3723_v13 = vmax.f32 %v3721_v20, %v3722_v2  ;;  %v3913_v4 = vrot.slane %v3912_v48, 4 }
 0x580   :  { %v3920_v5 = vsel %vm18699_vm6, %v15696_v32, 0.0  ;;  %v3729_v22 = vrot.slane %v3728_v14, 2  ;;  %13455 = vrcp.f32 %v3855_v25  ;;  %v3898_v11 = vadd.f32 %v3897_v46, %v15642_v39 }
 0x581   :  { %v3921_v40 = vadd.f32 %v3920_v5, %v3919_v41  ;;  %13457 = vpow2.f32 %v3817_v59  ;;  %v3761_v36 = vsub.f32 %v15651_v47, %v3723_v13  ;;  %v3762_v8 = vsub.f32 %v15633_v27, %v3723_v13 }
 0x582   :  { %13459 = vpow2.f32 %v3819_v6  ;;  %v3730_v33 = vmax.f32 %v3728_v14, %v3729_v22  ;;  %v3872_v17 = vrot.slane %v15625_v61, 1  ;;  %v15706_v49 = vpop.eup %13443  ;;  %v3906_v20 = vrot.slane %v3905_v34, 2 }
 0x583   :  { %v3821_v23 = vmul.f32 1.442695, %v3761_v36  ;;  %v3823_v51 = vmul.f32 1.442695, %v3762_v8  ;;  %13461 = vrcp.f32 %v3864_v44  ;;  %v15708_v62 = vpop.eup %13445  ;;  %v3928_v31 = vsel %vm18699_vm6, %v15706_v49, 0.0 }
 0x584   :  { %v3731_v47 = vrot.slane %v3730_v33, 1  ;;  %v3873_v27 = vadd.f32 %v3872_v17, %v15625_v61  ;;  %v3881_v39 = vrot.slane %v15635_v38, 1  ;;  %v3914_v43 = vadd.f32 %v3913_v4, %v3912_v48 }
 0x585   :  { %v15714_v46 = vpop.eup %13447  ;;  %v3922_v35 = vrot.slane %v3921_v40, 4  ;;  %v3929_v2 = vsel %vm18699_vm6, %v15708_v62, 0.0  ;;  %13463 = vpow2.f32 %v3821_v23  ;;  %v3890_v48 = vrot.slane %v15659_v52, 1 }
 0x586   :  { %v15718_v25 = vpop.eup %13449  ;;  %v3930_v14 = vadd.f32 %v3929_v2, %v3928_v31  ;;  %v3937_v44 = vsel %vm18699_vm6, %v15714_v46, 0.0  ;;  %13465 = vpow2.f32 %v3823_v51  ;;  %v3732_v41 = vmax.f32 %v3730_v33, %v3731_v47 }
 0x587   :  { %v3938_v61 = vsel %vm18699_vm6, %v15718_v25, 0.0  ;;  %13467 = vrcp.f32 %v3873_v27  ;;  %v3882_v59 = vadd.f32 %v3881_v39, %v15635_v38  ;;  %v3907_v5 = vadd.f32 %v3906_v20, %v3905_v34 }
 0x588   :  { %v3763_v6 = vsub.f32 %v15670_v29, %v3732_v41  ;;  %v3764_v13 = vsub.f32 %v15663_v63, %v3732_v41  ;;  %v3915_v22 = vrot.slane %v3914_v43, 2  ;;  %v3931_v36 = vrot.slane %v3930_v14, 4 }
 0x589   :  { %v13452_v4 = vpop.eup %13451  ;;  %v3939_v8 = vadd.f32 %v3938_v61, %v3937_v44  ;;  %v3923_v17 = vadd.f32 %v3922_v35, %v3921_v40  ;;  %v3899_v51 = vrot.slane %v3898_v11, 1  ;;  %13469 = vrcp.f32 %v3882_v59 }
 0x58a   :  { %v3825_v23 = vmul.f32 1.442695, %v3763_v6  ;;  %v3827_v33 = vmul.f32 1.442695, %v3764_v13  ;;  %v3989_v47 = vmul.f32 %v13452_v4, %v15460_v1  ;;  %v3990_v38 = vmul.f32 %v13452_v4, %v15468_v15 }
 0x58b   :  { %v13454_v31 = vpop.eup %13453  ;;  %v3891_v27 = vadd.f32 %v3890_v48, %v15659_v52  ;;  %v3932_v34 = vadd.f32 %v3931_v36, %v3930_v14  ;;  %v3940_v20 = vrot.slane %v3939_v8, 4  ;;  %v3916_v39 = vadd.f32 %v3915_v22, %v3914_v43 }
 0x58c   :  { %13471 = vpow2.f32 %v3825_v23  ;;  %v3991_v63 = vmul.f32 %v13454_v31, %v15480_v18  ;;  %12774 = vmatprep.mubr.msk.f32.mxu1 %vm18699_vm6, %v3989_v47  ;;  %v3924_v35 = vrot.slane %v3923_v17, 2  ;;  %v3992_v1 = vmul.f32 %v13454_v31, %v15484_v56 }
 0x58d   :  { %v13456_v29 = vpop.eup %13455  ;;  %13473 = vpow2.f32 %v3827_v33  ;;  %12775 = vmatmul.mubr.msk.f32.vlgmr.msra.gmra.mxu1 %vm18699_vm6, %v3990_v38  ;;  %v3900_v15 = vadd.f32 %v3899_v51, %v3898_v11  ;;  %v3908_v14 = vrot.slane %v3907_v5, 1  ;;  %v3933_v41 = vrot.slane %v3932_v34, 2 }
 0x58e   :  { %v15733_v40 = vpop.eup %13457  ;;  %12777 = vmatprep.mubr.msk.f32.mxu1 %vm18699_vm6, %v3991_v63  ;;  %v3993_v52 = vmul.f32 %v13456_v29, %v15494_v12  ;;  %13475 = vrcp.f32 %v3891_v27  ;;  %v3941_v61 = vadd.f32 %v3940_v20, %v3939_v8  ;;  %v3925_v11 = vadd.f32 %v3924_v35, %v3923_v17 }
 0x58f   :  { %v15737_v2 = vpop.eup %13459  ;;  %v3946_v18 = vsel %vm18699_vm6, %v15733_v40, 0.0  ;;  %v3994_v48 = vmul.f32 %v13456_v29, %v15496_v28  ;;  %13477 = vrcp.f32 %v3900_v15  ;;  %v3917_v6 = vrot.slane %v3916_v39, 1 }
 0x590   :  { %v13462_v44 = vpop.eup %13461  ;;  %v3947_v43 = vsel %vm18699_vm6, %v15737_v2, 0.0  ;;  %v3909_v36 = vadd.f32 %v3908_v14, %v3907_v5  ;;  %v3934_v23 = vadd.f32 %v3933_v41, %v3932_v34  ;;  %v3942_v33 = vrot.slane %v3941_v61, 2 }
 0x591   :  { %v3948_v59 = vadd.f32 %v3947_v43, %v3946_v18  ;;  %12778 = vmatmul.mubr.msk.f32.gmra.mxu1 %vm18699_vm6, %v3992_v1  ;;  %v3995_v22 = vmul.f32 %v13462_v44, %v15504_v19  ;;  %v3996_v51 = vmul.f32 %v13462_v44, %v15510_v24  ;;  %v3918_v31 = vadd.f32 %v3917_v6, %v3916_v39 }
 0x592   :  { %v15745_v56 = vpop.eup %13463  ;;  %12780 = vmatprep.mubr.msk.f32.mxu1 %vm18699_vm6, %v3993_v52  ;;  %v3926_v47 = vrot.slane %v3925_v11, 1  ;;  %13479 = vrcp.f32 %v3909_v36  ;;  %v3943_v29 = vadd.f32 %v3942_v33, %v3941_v61  ;;  %v3935_v34 = vrot.slane %v3934_v23, 1 }
 0x593   :  { %v15749_v13 = vpop.eup %13465  ;;  %v3949_v12 = vrot.slane %v3948_v59, 4  ;;  %v3955_v4 = vsel %vm18699_vm6, %v15745_v56, 0.0  ;;  %13481 = vrcp.f32 %v3918_v31 }
 0x594   :  { %v13468_v8 = vpop.eup %13467  ;;  %v3956_v17 = vsel %vm18699_vm6, %v15749_v13, 0.0  ;;  %v3927_v39 = vadd.f32 %v3926_v47, %v3925_v11  ;;  %v3936_v41 = vadd.f32 %v3935_v34, %v3934_v23 }
 0x595   :  { %v3957_v28 = vadd.f32 %v3956_v17, %v3955_v4  ;;  %12781 = vmatmul.mubr.msk.f32.gmra.mxu1 %vm18699_vm6, %v3994_v48  ;;  %v3950_v38 = vadd.f32 %v3949_v12, %v3948_v59  ;;  %v3997_v19 = vmul.f32 %v13468_v8, %v15527_v54  ;;  %v3998_v24 = vmul.f32 %v13468_v8, %v15531_v45 }
 0x596   :  { %12783 = vmatprep.mubr.msk.f32.mxu1 %vm18699_vm6, %v3995_v22  ;;  %v13470_v5 = vpop.eup %13469  ;;  %v3944_v45 = vrot.slane %v3943_v29, 1  ;;  %13483 = vrcp.f32 %v3927_v39  ;;  %v19018_v39 = vld [vmem:[#allocation116_spill] sm:$0xff] }
 0x597   :  { %v3958_v27 = vrot.slane %v3957_v28, 4  ;;  %v3951_v1 = vrot.slane %v3950_v38, 2  ;;  %v3999_v18 = vmul.f32 %v13470_v5, %v15551_v10  ;;  %v4000_v43 = vmul.f32 %v13470_v5, %v15557_v3 }
 0x598   :  { %13485 = vrcp.f32 %v3936_v41  ;;  %v3945_v12 = vadd.f32 %v3944_v45, %v3943_v29 }
 0x599   :  { %v15761_v63 = vpop.eup %13471  ;;  %12784 = vmatmul.mubr.msk.f32.gmra.mxu1 %vm18699_vm6, %v3996_v51  ;;  %v3959_v15 = vadd.f32 %v3958_v27, %v3957_v28  ;;  %v3952_v59 = vadd.f32 %v3951_v1, %v3950_v38 }
 0x59a   :  { %v15763_v20 = vpop.eup %13473  ;;  %v3964_v35 = vsel %vm18699_vm6, %v15761_v63, 0.0  ;;  %12786 = vmatprep.mubr.msk.f32.mxu1 %vm18699_vm6, %v3997_v19  ;;  %13487 = vrcp.f32 %v3945_v12 }
 0x59b   :  { %v3965_v54 = vsel %vm18699_vm6, %v15763_v20, 0.0  ;;  %v13476_v52 = vpop.eup %13475  ;;  %v3960_v11 = vrot.slane %v3959_v15, 2  ;;  %v3953_v36 = vrot.slane %v3952_v59, 1 }
 0x59c   :  { %v3966_v14 = vadd.f32 %v3965_v54, %v3964_v35  ;;  %v13478_v61 = vpop.eup %13477  ;;  %v4001_v48 = vmul.f32 %v13476_v52, %v15588_v30  ;;  %v4002_v10 = vmul.f32 %v13476_v52, %v15591_v21  ;;  %v19019_v54 = vld [vmem:[#allocation117_spill] sm:$0xff] }
 0x59d   :  { %12787 = vmatmul.mubr.msk.f32.gmra.mxu1 %vm18699_vm6, %v3998_v24  ;;  %v3961_v4 = vadd.f32 %v3960_v11, %v3959_v15  ;;  %v4003_v3 = vmul.f32 %v13478_v61, %v15599_v37  ;;  %v4004_v30 = vmul.f32 %v13478_v61, %v15603_v53  ;;  %v3954_v28 = vadd.f32 %v3953_v36, %v3952_v59 }
 0x59e   :  { %v3967_v44 = vrot.slane %v3966_v14, 4  ;;  %12789 = vmatprep.mubr.msk.f32.mxu1 %vm18699_vm6, %v3999_v18 }
 0x59f   :  { %v13480_v8 = vpop.eup %13479  ;;  %v3962_v23 = vrot.slane %v3961_v4, 1  ;;  %13489 = vrcp.f32 %v3954_v28 }
 0x5a0   :  { %v3968_v6 = vadd.f32 %v3967_v44, %v3966_v14  ;;  %v13482_v17 = vpop.eup %13481  ;;  %v4005_v21 = vmul.f32 %v13480_v8, %v15627_v9  ;;  %v4006_v51 = vmul.f32 %v13480_v8, %v15640_v57 }
 0x5a1   :  { %12790 = vmatmul.mubr.msk.f32.gmra.mxu1 %vm18699_vm6, %v4000_v43  ;;  %v4007_v31 = vmul.f32 %v13482_v17, %v15672_v26  ;;  %v3963_v53 = vadd.f32 %v3962_v23, %v3961_v4  ;;  %v4008_v38 = vmul.f32 %v13482_v17, %v15676_v58 }
 0x5a2   :  { %v3969_v22 = vrot.slane %v3968_v6, 2  ;;  %12792 = vmatprep.mubr.msk.f32.mxu1 %vm18699_vm6, %v4001_v48 }
 0x5a3   :  { %v13484_v47 = vpop.eup %13483  ;;  %13491 = vrcp.f32 %v3963_v53 }
 0x5a4   :  { %v3970_v33 = vadd.f32 %v3969_v22, %v3968_v6  ;;  %v4009_v9 = vmul.f32 %v13484_v47, %v15693_v55  ;;  %v4010_v57 = vmul.f32 %v13484_v47, %v15696_v32 }
 0x5a5   :  { %12793 = vmatmul.mubr.msk.f32.gmra.mxu1 %vm18699_vm6, %v4002_v10  ;;  %v13486_v27 = vpop.eup %13485 }
 0x5a6   :  { %12795 = vmatprep.mubr.msk.f32.mxu1 %vm18699_vm6, %v4003_v3  ;;  %v3971_v37 = vrot.slane %v3970_v33, 1  ;;  %v4011_v26 = vmul.f32 %v13486_v27, %v15706_v49  ;;  %v4012_v58 = vmul.f32 %v13486_v27, %v15708_v62 }
 0x5a7   :  { %v13488_v5 = vpop.eup %13487 }
 0x5a8   :  { %v3972_v19 = vadd.f32 %v3971_v37, %v3970_v33  ;;  %v4013_v55 = vmul.f32 %v13488_v5, %v15714_v46  ;;  %v4014_v34 = vmul.f32 %v13488_v5, %v15718_v25 }
 0x5a9   :  { %12796 = vmatmul.mubr.msk.f32.gmra.mxu1 %vm18699_vm6, %v4004_v30 }
 0x5aa   :  { %12798 = vmatprep.mubr.msk.f32.mxu1 %vm18699_vm6, %v4005_v21  ;;  %13493 = vrcp.f32 %v3972_v19 }
 0x5ac   :  { %v13490_v29 = vpop.eup %13489 }
 0x5ad   :  { %12799 = vmatmul.mubr.msk.f32.gmra.mxu1 %vm18699_vm6, %v4006_v51  ;;  %v4015_v32 = vmul.f32 %v13490_v29, %v15733_v40  ;;  %v4016_v62 = vmul.f32 %v13490_v29, %v15737_v2  ;;  %v4596_v2 = vld [vmem:[%s19016_s17 + $0x8] sm:$0x7f] }
 0x5ae   :  { %12801 = vmatprep.mubr.msk.f32.mxu1 %vm18699_vm6, %v4007_v31  ;;  %12829 = vmatprep.subr.msk.mxu1 %vm3327_vm10, %v4596_v2 }
 0x5af   :  { %12830 = vmatpush3.msk.msra.mxu1 %vm3327_vm10, %v4596_v2 }
 0x5b0   :  { %v13492_v49 = vpop.eup %13491 }
 0x5b1   :  { %12802 = vmatmul.mubr.msk.f32.gmra.mxu1 %vm18699_vm6, %v4008_v38  ;;  %v4017_v46 = vmul.f32 %v13492_v49, %v15745_v56  ;;  %v4018_v25 = vmul.f32 %v13492_v49, %v15749_v13  ;;  %v4593_v56 = vld [vmem:[%s19017_s25 + $0x8] sm:$0x7f]  ;;  %v4595_v13 = vld [vmem:[%s19016_s17] sm:$0xff]  ;;  %s19567_s17 = sld [smem:[#allocation41_spill]] }
 0x5b2   :  { %12804 = vmatprep.mubr.msk.f32.mxu1 %vm18699_vm6, %v4009_v9  ;;  %12822 = vmatprep.subr.msk.mxu0 %vm3327_vm10, %v4593_v56 }
 0x5b3   :  { %12823 = vmatpush3.msk.msra.mxu0 %vm3327_vm10, %v4593_v56  ;;  %12831 = vmatprep.subr.mxu1 %v4595_v13 }
 0x5b4   :  { %12832 = vmatpush3.msra.mxu1 %v4595_v13 }
 0x5b5   :  { %12805 = vmatmul.mubr.msk.f32.gmra.mxu1 %vm18699_vm6, %v4010_v57 }
 0x5b6   :  { %12807 = vmatprep.mubr.msk.f32.mxu1 %vm18699_vm6, %v4011_v26 }
 0x5b7   :  { %v13494_v35 = vpop.eup %13493 }
 0x5b8   :  { %v4019_v40 = vmul.f32 %v13494_v35, %v15761_v63  ;;  %v4020_v24 = vmul.f32 %v13494_v35, %v15763_v20  ;;  %v4592_v63 = vld [vmem:[%s19017_s25] sm:$0xff]  ;;  %s19572_s25 = sld [smem:[#allocation43_spill]] }
 0x5b9   :  { %12808 = vmatmul.mubr.msk.f32.gmra.mxu1 %vm18699_vm6, %v4012_v58  ;;  %12824 = vmatprep.subr.mxu0 %v4592_v63 }
 0x5ba   :  { %12810 = vmatprep.mubr.msk.f32.mxu1 %vm18699_vm6, %v4013_v55  ;;  %12825 = vmatpush3.msra.mxu0 %v4592_v63 }
 0x5bd   :  { %12811 = vmatmul.mubr.msk.f32.gmra.mxu1 %vm18699_vm6, %v4014_v34 }
 0x5be   :  { %12813 = vmatprep.mubr.msk.f32.mxu1 %vm18699_vm6, %v4015_v32 }
 0x5c1   :  { %12814 = vmatmul.mubr.msk.f32.gmra.mxu1 %vm18699_vm6, %v4016_v62 }
 0x5c2   :  { %12816 = vmatprep.mubr.msk.f32.mxu1 %vm18699_vm6, %v4017_v46 }
 0x5c5   :  { %12817 = vmatmul.mubr.msk.f32.gmra.mxu1 %vm18699_vm6, %v4018_v25 }
 0x5c6   :  { %12819 = vmatprep.mubr.msk.f32.mxu1 %vm18699_vm6, %v4019_v40 }
 0x5c9   :  { %12820 = vmatmul.mubr.msk.f32.gmra.mxu1 %vm18699_vm6, %v4020_v24 }
 0x64d   :  { %v12776_v20 = vpop.f32.mrf.mxu1 }
 0x64e   :  { %v4347_v1 = vmul.f32 %v12776_v20, %v19018_v39 }
 0x64f   :  { %v4187_v15 = vpop.f32.mrf.mxu1 }
 0x650   :  { %v4346_v18 = vmul.f32 %v4187_v15, %v19019_v54  ;;  %v4379_v14 = vsel %vm3230_vm12, %v4347_v1, 0.0  ;;  %v15849_v15 = vld [vmem:[%s19020_s29] ss:$0 sm:$0xff]  ;;  %s19576_s29 = sld [smem:[#allocation35_spill]] }
 0x651   :  { %v12779_v52 = vpop.f32.mrf.mxu1 }
 0x652   :  { %v4378_v44 = vsel %vm3230_vm12, %v4346_v18, 0.0  ;;  %v4349_v43 = vmul.f32 %v12779_v52, %v19018_v39 }
 0x653   :  { %v4380_v41 = vadd.f32 %v4379_v14, %v4378_v44  ;;  %v4197_v45 = vpop.f32.mrf.mxu1 }
 0x654   :  { %v4348_v61 = vmul.f32 %v4197_v45, %v19019_v54  ;;  %v4388_v48 = vsel %vm3230_vm12, %v4349_v43, 0.0 }
 0x655   :  { %v4381_v59 = vrot.slane %v4380_v41, 4  ;;  %v12782_v11 = vpop.f32.mrf.mxu1 }
 0x656   :  { %v4387_v6 = vsel %vm3230_vm12, %v4348_v61, 0.0  ;;  %v4351_v10 = vmul.f32 %v12782_v11, %v19018_v39 }
 0x657   :  { %v4389_v12 = vadd.f32 %v4388_v48, %v4387_v6  ;;  %v4207_v4 = vpop.f32.mrf.mxu1  ;;  %v4382_v3 = vadd.f32 %v4381_v59, %v4380_v41 }
 0x658   :  { %v4350_v22 = vmul.f32 %v4207_v4, %v19019_v54  ;;  %v4397_v30 = vsel %vm3230_vm12, %v4351_v10, 0.0 }
 0x659   :  { %v4390_v36 = vrot.slane %v4389_v12, 4  ;;  %v12785_v8 = vpop.f32.mrf.mxu1  ;;  %v4383_v37 = vrot.slane %v4382_v3, 2 }
 0x65a   :  { %v4396_v17 = vsel %vm3230_vm12, %v4350_v22, 0.0  ;;  %v4353_v23 = vmul.f32 %v12785_v8, %v19018_v39 }
 0x65b   :  { %v4391_v33 = vadd.f32 %v4390_v36, %v4389_v12  ;;  %v4398_v21 = vadd.f32 %v4397_v30, %v4396_v17  ;;  %v4217_v28 = vpop.f32.mrf.mxu1  ;;  %v4384_v55 = vadd.f32 %v4383_v37, %v4382_v3 }
 0x65c   :  { %v4352_v51 = vmul.f32 %v4217_v28, %v19019_v54  ;;  %v4406_v38 = vsel %vm3230_vm12, %v4353_v23, 0.0 }
 0x65d   :  { %v4392_v31 = vrot.slane %v4391_v33, 2  ;;  %v4399_v53 = vrot.slane %v4398_v21, 4  ;;  %v12788_v47 = vpop.f32.mrf.mxu1  ;;  %v4385_v63 = vrot.slane %v4384_v55, 1 }
 0x65e   :  { %v4405_v27 = vsel %vm3230_vm12, %v4352_v51, 0.0  ;;  %v4355_v5 = vmul.f32 %v12788_v47, %v19018_v39 }
 0x65f   :  { %v4393_v9 = vadd.f32 %v4392_v31, %v4391_v33  ;;  %v4400_v19 = vadd.f32 %v4399_v53, %v4398_v21  ;;  %v4407_v57 = vadd.f32 %v4406_v38, %v4405_v27  ;;  %v4227_v26 = vpop.f32.mrf.mxu1  ;;  %v4386_v12 = vadd.f32 %v4385_v63, %v4384_v55 }
 0x660   :  { %v4354_v58 = vmul.f32 %v4227_v26, %v19019_v54  ;;  %v4415_v25 = vsel %vm3230_vm12, %v4355_v5, 0.0 }
 0x661   :  { %v4394_v29 = vrot.slane %v4393_v9, 1  ;;  %v4401_v34 = vrot.slane %v4400_v19, 2  ;;  %v4408_v32 = vrot.slane %v4407_v57, 4  ;;  %v12791_v49 = vpop.f32.mrf.mxu1  ;;  %v4528_v47 = vadd.f32 %v15849_v15, %v4386_v12 }
 0x662   :  { %v4414_v62 = vsel %vm3230_vm12, %v4354_v58, 0.0  ;;  %v4357_v46 = vmul.f32 %v12791_v49, %v19018_v39 }
 0x663   :  { %v4395_v35 = vadd.f32 %v4394_v29, %v4393_v9  ;;  %v4237_v40 = vpop.f32.mrf.mxu1  ;;  %v4402_v24 = vadd.f32 %v4401_v34, %v4400_v19  ;;  %v4409_v2 = vadd.f32 %v4408_v32, %v4407_v57  ;;  %v4416_v56 = vadd.f32 %v4415_v25, %v4414_v62 }
 0x664   :  { %v4356_v13 = vmul.f32 %v4237_v40, %v19019_v54  ;;  %v4424_v20 = vsel %vm3230_vm12, %v4357_v46, 0.0  ;;  %vm4544_vm13 = vcmp.gt.f32.partialorder %v4528_v47, 0.0  ;;  %v4560_v46 = vmul.f32 0.01, %v4528_v47 }
 0x665   :  { %v12794_v1 = vpop.f32.mrf.mxu1  ;;  %v4410_v18 = vrot.slane %v4409_v2, 2  ;;  %v4417_v52 = vrot.slane %v4416_v56, 4  ;;  %v4529_v43 = vadd.f32 %v15849_v15, %v4395_v35  ;;  %v4403_v61 = vrot.slane %v4402_v24, 1 }
 0x666   :  { %v4423_v14 = vsel %vm3230_vm12, %v4356_v13, 0.0  ;;  %v4359_v44 = vmul.f32 %v12794_v1, %v19018_v39 }
 0x667   :  { %v4425_v41 = vadd.f32 %v4424_v20, %v4423_v14  ;;  %v4247_v45 = vpop.f32.mrf.mxu1  ;;  %v4411_v59 = vadd.f32 %v4410_v18, %v4409_v2  ;;  %v4418_v11 = vadd.f32 %v4417_v52, %v4416_v56  ;;  %v4561_v36 = vmul.f32 0.01, %v4529_v43 }
 0x668   :  { %v4358_v48 = vmul.f32 %v4247_v45, %v19019_v54  ;;  %v4433_v22 = vsel %vm3230_vm12, %v4359_v44, 0.0  ;;  %v4404_v23 = vadd.f32 %v4403_v61, %v4402_v24  ;;  %vm4545_vm10 = vcmp.gt.f32.partialorder %v4529_v43, 0.0 }
 0x669   :  { %v4426_v6 = vrot.slane %v4425_v41, 4  ;;  %v12797_v10 = vpop.f32.mrf.mxu1  ;;  %v4419_v4 = vrot.slane %v4418_v11, 2  ;;  %v4412_v33 = vrot.slane %v4411_v59, 1  ;;  %v4577_v5 = vsel %vm4545_vm10, %v4529_v43, %v4561_v36 }
 0x66a   :  { %v4432_v3 = vsel %vm3230_vm12, %v4358_v48, 0.0  ;;  %v4361_v21 = vmul.f32 %v12797_v10, %v19018_v39  ;;  %v4530_v26 = vadd.f32 %v15849_v15, %v4404_v23  ;;  %v4627_v40 = vrot.slane %v4577_v5, 7 }
 0x66b   :  { %v4427_v8 = vadd.f32 %v4426_v6, %v4425_v41  ;;  %v4434_v30 = vadd.f32 %v4433_v22, %v4432_v3  ;;  %v4257_v17 = vpop.f32.mrf.mxu1  ;;  %v4420_v51 = vadd.f32 %v4419_v4, %v4418_v11  ;;  %v4413_v58 = vadd.f32 %v4412_v33, %v4411_v59 }
 0x66c   :  { %v4360_v28 = vmul.f32 %v4257_v17, %v19019_v54  ;;  %v4442_v9 = vsel %vm3230_vm12, %v4361_v21, 0.0  ;;  %vm4546_vm3 = vcmp.gt.f32.partialorder %v4530_v26, 0.0  ;;  %v4562_v63 = vmul.f32 0.01, %v4530_v26 }
 0x66d   :  { %v4428_v37 = vrot.slane %v4427_v8, 2  ;;  %v4435_v31 = vrot.slane %v4434_v30, 4  ;;  %v12800_v53 = vpop.f32.mrf.mxu1  ;;  %v4421_v29 = vrot.slane %v4420_v51, 1  ;;  %v4531_v20 = vadd.f32 %v15849_v15, %v4413_v58 }
 0x66e   :  { %v4441_v19 = vsel %vm3230_vm12, %v4360_v28, 0.0  ;;  %v4363_v32 = vmul.f32 %v12800_v53, %v19018_v39  ;;  %v4576_v41 = vsel %vm4544_vm13, %v4528_v47, %v4560_v46  ;;  %v4578_v4 = vsel %vm4546_vm3, %v4530_v26, %v4562_v63 }
 0x66f   :  { %v4429_v38 = vadd.f32 %v4428_v37, %v4427_v8  ;;  %v4436_v27 = vadd.f32 %v4435_v31, %v4434_v30  ;;  %v4267_v57 = vpop.f32.mrf.mxu1  ;;  %v4443_v55 = vadd.f32 %v4442_v9, %v4441_v19  ;;  %v4422_v18 = vadd.f32 %v4421_v29, %v4420_v51 }
 0x670   :  { %v4362_v49 = vmul.f32 %v4267_v57, %v19019_v54  ;;  %v4451_v14 = vsel %vm3230_vm12, %v4363_v32, 0.0  ;;  %v4628_v36 = vsel %vm2652_vm1, %v4627_v40, %v4576_v41  ;;  %vm4547_vm14 = vcmp.gt.f32.partialorder %v4531_v20, 0.0 }
 0x671   :  { %v4437_v34 = vrot.slane %v4436_v27, 2  ;;  %v12803_v62 = vpop.f32.mrf.mxu1  ;;  %v4430_v35 = vrot.slane %v4429_v38, 1  ;;  %v4444_v25 = vrot.slane %v4443_v55, 4  ;;  %v4563_v8 = vmul.f32 0.01, %v4531_v20 }
 0x672   :  { %v4450_v2 = vsel %vm3230_vm12, %v4362_v49, 0.0  ;;  %v4365_v56 = vmul.f32 %v12803_v62, %v19018_v39  ;;  %v4532_v30 = vadd.f32 %v15849_v15, %v4422_v18 }
 0x673   :  { %v4438_v24 = vadd.f32 %v4437_v34, %v4436_v27  ;;  %v4277_v13 = vpop.f32.mrf.mxu1  ;;  %v4445_v1 = vadd.f32 %v4444_v25, %v4443_v55  ;;  %v4431_v45 = vadd.f32 %v4430_v35, %v4429_v38  ;;  %v4452_v59 = vadd.f32 %v4451_v14, %v4450_v2 }
 0x674   :  { %v4364_v44 = vmul.f32 %v4277_v13, %v19019_v54  ;;  %v4460_v48 = vsel %vm3230_vm12, %v4365_v56, 0.0  ;;  %v4629_v27 = vrot.slane %v4578_v4, 6  ;;  %v4564_v5 = vmul.f32 0.01, %v4532_v30 }
 0x675   :  { %v4439_v52 = vrot.slane %v4438_v24, 1  ;;  %v12806_v43 = vpop.f32.mrf.mxu1  ;;  %v4446_v61 = vrot.slane %v4445_v1, 2  ;;  %v4533_v33 = vadd.f32 %v15849_v15, %v4431_v45  ;;  %v4453_v28 = vrot.slane %v4452_v59, 4 }
 0x676   :  { %v4459_v6 = vsel %vm3230_vm12, %v4364_v44, 0.0  ;;  %v4367_v10 = vmul.f32 %v12806_v43, %v19018_v39  ;;  %vm4548_vm10 = vcmp.gt.f32.partialorder %v4532_v30, 0.0  ;;  %v4579_v55 = vsel %vm4547_vm14, %v4531_v20, %v4563_v8 }
 0x677   :  { %v4440_v11 = vadd.f32 %v4439_v52, %v4438_v24  ;;  %v4287_v12 = vpop.f32.mrf.mxu1  ;;  %v4447_v22 = vadd.f32 %v4446_v61, %v4445_v1  ;;  %v4461_v3 = vadd.f32 %v4460_v48, %v4459_v6  ;;  %v4454_v29 = vadd.f32 %v4453_v28, %v4452_v59 }
 0x678   :  { %v4366_v17 = vmul.f32 %v4287_v12, %v19019_v54  ;;  %v4469_v31 = vsel %vm3230_vm12, %v4367_v10, 0.0  ;;  %vm4549_vm13 = vcmp.gt.f32.partialorder %v4533_v33, 0.0  ;;  %v4565_v32 = vmul.f32 0.01, %v4533_v33 }
 0x679   :  { %v12809_v23 = vpop.f32.mrf.mxu1  ;;  %v4448_v21 = vrot.slane %v4447_v22, 1  ;;  %v4462_v51 = vrot.slane %v4461_v3, 4  ;;  %v4534_v37 = vadd.f32 %v15849_v15, %v4440_v11  ;;  %v4580_v20 = vsel %vm4548_vm10, %v4532_v30, %v4564_v5 }
 0x67a   :  { %v4468_v53 = vsel %vm3230_vm12, %v4366_v17, 0.0  ;;  %v4369_v47 = vmul.f32 %v12809_v23, %v19018_v39  ;;  %v4630_v1 = vsel %vm2655_vm0, %v4629_v27, %v4628_v36  ;;  %v4581_v44 = vsel %vm4549_vm13, %v4533_v33, %v4565_v32 }
 0x67b   :  { %v4297_v38 = vpop.f32.mrf.mxu1  ;;  %v4449_v9 = vadd.f32 %v4448_v21, %v4447_v22  ;;  %v4463_v19 = vadd.f32 %v4462_v51, %v4461_v3  ;;  %v4470_v57 = vadd.f32 %v4469_v31, %v4468_v53  ;;  %v4566_v25 = vmul.f32 0.01, %v4534_v37 }
 0x67c   :  { %v4368_v26 = vmul.f32 %v4297_v38, %v19019_v54  ;;  %v4478_v49 = vsel %vm3230_vm12, %v4369_v47, 0.0  ;;  %vm4550_vm3 = vcmp.gt.f32.partialorder %v4534_v37, 0.0  ;;  %v4631_v61 = vrot.slane %v4579_v55, 5 }
 0x67d   :  { %v12812_v58 = vpop.f32.mrf.mxu1  ;;  %v4471_v34 = vrot.slane %v4470_v57, 4  ;;  %v4535_v35 = vadd.f32 %v15849_v15, %v4449_v9  ;;  %v4464_v40 = vrot.slane %v4463_v19, 2  ;;  %v4455_v59 = vrot.slane %v4454_v29, 2 }
 0x67e   :  { %v4477_v62 = vsel %vm3230_vm12, %v4368_v26, 0.0  ;;  %v4371_v56 = vmul.f32 %v12812_v58, %v19018_v39  ;;  %v4582_v6 = vsel %vm4550_vm3, %v4534_v37, %v4566_v25  ;;  %v4633_v3 = vrot.slane %v4580_v20, 4 }
 0x67f   :  { %v4307_v46 = vpop.f32.mrf.mxu1  ;;  %v4472_v24 = vadd.f32 %v4471_v34, %v4470_v57  ;;  %v4479_v2 = vadd.f32 %v4478_v49, %v4477_v62  ;;  %v4567_v14 = vmul.f32 0.01, %v4535_v35  ;;  %vm4551_vm14 = vcmp.gt.f32.partialorder %v4535_v35, 0.0 }
 0x680   :  { %v4370_v13 = vmul.f32 %v4307_v46, %v19019_v54  ;;  %v4465_v11 = vadd.f32 %v4464_v40, %v4463_v19  ;;  %v4487_v48 = vsel %vm3230_vm12, %v4371_v56, 0.0  ;;  %v4635_v17 = vrot.slane %v4581_v44, 3 }
 0x681   :  { %v12815_v63 = vpop.f32.mrf.mxu1  ;;  %v4473_v18 = vrot.slane %v4472_v24, 2  ;;  %v4480_v52 = vrot.slane %v4479_v2, 4  ;;  %v4583_v30 = vsel %vm4551_vm14, %v4535_v35, %v4567_v14  ;;  %v4637_v28 = vrot.slane %v4582_v6, 2 }
 0x682   :  { %v4486_v43 = vsel %vm3230_vm12, %v4370_v13, 0.0  ;;  %v4373_v41 = vmul.f32 %v12815_v63, %v19018_v39  ;;  %v4456_v31 = vadd.f32 %v4455_v59, %v4454_v29  ;;  %v4466_v53 = vrot.slane %v4465_v11, 1 }
 0x683   :  { %v4317_v45 = vpop.f32.mrf.mxu1  ;;  %v4481_v10 = vadd.f32 %v4480_v52, %v4479_v2  ;;  %v4488_v12 = vadd.f32 %v4487_v48, %v4486_v43  ;;  %v4474_v36 = vadd.f32 %v4473_v18, %v4472_v24  ;;  %v4632_v47 = vsel %vm2658_vm11, %v4631_v61, %v4630_v1 }
 0x684   :  { %v4372_v4 = vmul.f32 %v4317_v45, %v19019_v54  ;;  %v4496_v8 = vsel %vm3230_vm12, %v4373_v41, 0.0  ;;  %v4634_v19 = vsel %vm2661_vm4, %v4633_v3, %v4632_v47  ;;  %v4639_v55 = vrot.slane %v4583_v30, 1 }
 0x685   :  { %v12818_v22 = vpop.f32.mrf.mxu1  ;;  %v4482_v23 = vrot.slane %v4481_v10, 2  ;;  %v4489_v33 = vrot.slane %v4488_v12, 4  ;;  %v4475_v5 = vrot.slane %v4474_v36, 1  ;;  %v4636_v58 = vsel %vm2664_vm5, %v4635_v17, %v4634_v19 }
 0x686   :  { %v4495_v21 = vsel %vm3230_vm12, %v4372_v4, 0.0  ;;  %v4375_v9 = vmul.f32 %v12818_v22, %v19018_v39  ;;  %v4638_v29 = vsel %vm18741_vm7, %v4637_v28, %v4636_v58  ;;  %v4467_v46 = vadd.f32 %v4466_v53, %v4465_v11 }
 0x687   :  { %v4327_v51 = vpop.f32.mrf.mxu1  ;;  %v4497_v37 = vadd.f32 %v4496_v8, %v4495_v21  ;;  %v4483_v38 = vadd.f32 %v4482_v23, %v4481_v10  ;;  %v4490_v27 = vadd.f32 %v4489_v33, %v4488_v12  ;;  %v4640_v25 = vsel %vm18740_vm15, %v4639_v55, %v4638_v29 }
 0x688   :  { %v4374_v49 = vmul.f32 %v4327_v51, %v19019_v54  ;;  %v4505_v24 = vsel %vm3230_vm12, %v4375_v9, 0.0  ;;  %12826 = vmatprep.mubr.msk.f32.mxu0 %vm3230_vm12, %v4640_v25  ;;  %12833 = vmatprep.mubr.msk.f32.mxu1 %vm3230_vm12, %v4640_v25  ;;  %v4476_v13 = vadd.f32 %v4475_v5, %v4474_v36  ;;  %v4457_v18 = vrot.slane %v4456_v31, 1 }
 0x689   :  { %v12821_v57 = vpop.f32.mrf.mxu1  ;;  %v4498_v26 = vrot.slane %v4497_v37, 4  ;;  %v4484_v34 = vrot.slane %v4483_v38, 1  ;;  %v4491_v32 = vrot.slane %v4490_v27, 2  ;;  %v4537_v61 = vadd.f32 %v15849_v15, %v4467_v46 }
 0x68a   :  { %v4504_v2 = vsel %vm3230_vm12, %v4374_v49, 0.0  ;;  %v4377_v56 = vmul.f32 %v12821_v57, %v19018_v39  ;;  %v4538_v39 = vadd.f32 %v15849_v15, %v4476_v13  ;;  %v4458_v10 = vadd.f32 %v4457_v18, %v4456_v31 }
 0x68b   :  { %v4337_v62 = vpop.f32.mrf.mxu1  ;;  %v4499_v35 = vadd.f32 %v4498_v26, %v4497_v37  ;;  %v4492_v40 = vadd.f32 %v4491_v32, %v4490_v27  ;;  %v4506_v20 = vadd.f32 %v4505_v24, %v4504_v2  ;;  %v4485_v52 = vadd.f32 %v4484_v34, %v4483_v38 }
 0x68c   :  { %v4376_v1 = vmul.f32 %v4337_v62, %v19019_v54  ;;  %v4514_v41 = vsel %vm3230_vm12, %v4377_v56, 0.0  ;;  %v4569_v36 = vmul.f32 0.01, %v4537_v61  ;;  %vm4553_vm10 = vcmp.gt.f32.partialorder %v4537_v61, 0.0 }
 0x68d   :  { %v4500_v63 = vrot.slane %v4499_v35, 2  ;;  %v4493_v14 = vrot.slane %v4492_v40, 1  ;;  %v4507_v43 = vrot.slane %v4506_v20, 4  ;;  %v4539_v54 = vadd.f32 %v15849_v15, %v4485_v52 }
 0x68e   :  { %v4513_v45 = vsel %vm3230_vm12, %v4376_v1, 0.0  ;;  %v4570_v30 = vmul.f32 0.01, %v4538_v39  ;;  %v4536_v33 = vadd.f32 %v15849_v15, %v4458_v10  ;;  %vm4554_vm13 = vcmp.gt.f32.partialorder %v4538_v39, 0.0  ;;  %v19025_v10 = vld [vmem:[#allocation65_spill] sm:$0xff] }
 0x68f   :  { %v4501_v44 = vadd.f32 %v4500_v63, %v4499_v35  ;;  %v4494_v59 = vadd.f32 %v4493_v14, %v4492_v40  ;;  %v4515_v11 = vadd.f32 %v4514_v41, %v4513_v45  ;;  %v4508_v6 = vadd.f32 %v4507_v43, %v4506_v20  ;;  %v4601_v43 = vld [vmem:[%s19021_s3 + $0x10] sm:$0xff]  ;;  %v4600_v41 = vld [vmem:[%s19021_s3 + $0x8] sm:$0xff]  ;;  %v4599_v45 = vld [vmem:[%s19021_s3] sm:$0xff] }
 0x690   :  { %v4571_v21 = vmul.f32 0.01, %v4539_v54  ;;  %vm4555_vm3 = vcmp.gt.f32.partialorder %v4539_v54, 0.0  ;;  %v4585_v53 = vsel %vm4553_vm10, %v4537_v61, %v4569_v36  ;;  %v4586_v38 = vsel %vm4554_vm13, %v4538_v39, %v4570_v30  ;;  %v19026_v30 = vld [vmem:[#allocation56_spill] sm:$0xff] }
 0x691   :  { %v4502_v48 = vrot.slane %v4501_v44, 1  ;;  %v4516_v12 = vrot.slane %v4515_v11, 4  ;;  %v4540_v4 = vadd.f32 %v15849_v15, %v4494_v59  ;;  %v4509_v3 = vrot.slane %v4508_v6, 2  ;;  %v11930_v59 = vld [vmem:[%s19022_s8] ss:$0 sm:$0xff]  ;;  %s19580_s8 = sld [smem:[#allocation39_spill]] }
 0x692   :  { %v4568_v9 = vmul.f32 0.01, %v4536_v33  ;;  %v4587_v19 = vsel %vm4555_vm3, %v4539_v54, %v4571_v21  ;;  %vm4552_vm6 = vcmp.gt.f32.partialorder %v4536_v33, 0.0  ;;  %v4641_v5 = vrot.slane %v4585_v53, 7  ;;  %v19028_v21 = vld [vmem:[#allocation58_spill] sm:$0xff]  ;;  %v19030_v53 = vld [vmem:[#allocation60_spill] sm:$0xff] }
 0x693   :  { %v4503_v22 = vadd.f32 %v4502_v48, %v4501_v44  ;;  %v4517_v8 = vadd.f32 %v4516_v12, %v4515_v11  ;;  %v4510_v23 = vadd.f32 %v4509_v3, %v4508_v6  ;;  %v4572_v51 = vmul.f32 0.01, %v4540_v4  ;;  %v4602_v44 = vld [vmem:[%s19021_s3 + $0x18] sm:$0x3f]  ;;  %v15940_v12 = vld [vmem:[%s19023_s14] ss:$0 sm:$0xff] }
 0x694   :  { %vm4556_vm14 = vcmp.gt.f32.partialorder %v4540_v4, 0.0  ;;  %v4643_v55 = vrot.slane %v4586_v38, 6  ;;  %v4645_v29 = vrot.slane %v4587_v19, 5  ;;  %v4584_v62 = vsel %vm4552_vm6, %v4536_v33, %v4568_v9  ;;  %v11926_v3 = vld [vmem:[%s19024_s19] ss:$0 sm:$0xff]  ;;  %s19579_s3 = sld [smem:[#allocation38_spill]] }
 0x695   :  { %v4541_v17 = vadd.f32 %v15849_v15, %v4503_v22  ;;  %v4518_v28 = vrot.slane %v4517_v8, 2  ;;  %v4511_v31 = vrot.slane %v4510_v23, 1  ;;  %v4588_v26 = vsel %vm4556_vm14, %v4540_v4, %v4572_v51  ;;  %v19029_v51 = vld [vmem:[#allocation57_spill] sm:$0xff]  ;;  %s19584_s14 = sld [smem:[#allocation37_spill]] }
 0x696   :  { %v4647_v46 = vrot.slane %v4588_v26, 4  ;;  %v4642_v40 = vsel %vm2652_vm1, %v4641_v5, %v4584_v62  ;;  %v19034_v5 = vld [vmem:[#allocation47_spill] sm:$0xff]  ;;  %s19585_s19 = sld [smem:[#allocation46_spill]] }
 0x697   :  { %v4573_v37 = vmul.f32 0.01, %v4541_v17  ;;  %v4519_v47 = vadd.f32 %v4518_v28, %v4517_v8  ;;  %vm4557_vm2 = vcmp.gt.f32.partialorder %v4541_v17, 0.0  ;;  %v4512_v27 = vadd.f32 %v4511_v31, %v4510_v23  ;;  %v19027_v23 = vld [vmem:[#allocation55_spill] sm:$0xff] }
 0x698   :  { %v4644_v56 = vsel %vm2655_vm0, %v4643_v55, %v4642_v40  ;;  %v5039_v33 = vmul.f32 %v15940_v12, %v19027_v23  ;;  %v5042_v28 = vmul.f32 %v15940_v12, %v19028_v21  ;;  %v5040_v31 = vmul.f32 %v15940_v12, %v19029_v51 }
 0x699   :  { %v4520_v57 = vrot.slane %v4519_v47, 1  ;;  %v4542_v58 = vadd.f32 %v15849_v15, %v4512_v27  ;;  %v4589_v34 = vsel %vm4557_vm2, %v4541_v17, %v4573_v37  ;;  %v4646_v63 = vsel %vm2658_vm11, %v4645_v29, %v4644_v56  ;;  %v19031_v27 = vld [vmem:[#allocation59_spill] sm:$0xff] }
 0x69a   :  { %v4649_v24 = vrot.slane %v4589_v34, 3  ;;  %v4648_v1 = vsel %vm2661_vm4, %v4647_v46, %v4646_v63  ;;  %vm18708_vm2 = vcmask 1045504   ;;  %v5041_v17 = vmul.f32 %v15940_v12, %v19026_v30 }
 0x69b   :  { %v4521_v32 = vadd.f32 %v4520_v57, %v4519_v47  ;;  %vm4558_vm9 = vcmp.gt.f32.partialorder %v4542_v58, 0.0  ;;  %v4574_v49 = vmul.f32 0.01, %v4542_v58  ;;  %12836 = vmatprep.subr.msk.mxu0 %vm18708_vm2, %v4602_v44  ;;  %v5044_v37 = vmul.f32 %v15940_v12, %v19030_v53 }
 0x69c   :  { %v5043_v9 = vmul.f32 %v15940_v12, %v19031_v27 }
 0x69d   :  { %v4543_v35 = vadd.f32 %v15849_v15, %v4521_v32  ;;  %v4590_v25 = vsel %vm4558_vm9, %v4542_v58, %v4574_v49  ;;  %v4650_v15 = vsel %vm2664_vm5, %v4649_v24, %v4648_v1  ;;  %v19035_v58 = vld [vmem:[#allocation62_spill] sm:$0xff]  ;;  %v19036_v49 = vld [vmem:[#allocation61_spill] sm:$0xff]  ;;  %vm18707_vm9 = vcmask 244736  }
 0x69e   :  { %v4651_v13 = vrot.slane %v4590_v25, 2  ;;  %v5046_v55 = vmul.f32 %v15940_v12, %v19035_v58  ;;  %v5045_v62 = vmul.f32 %v15940_v12, %v19036_v49  ;;  %v19039_v58 = vld [vmem:[#allocation66_spill] sm:$0xff] }
 0x69f   :  { %v4575_v2 = vmul.f32 0.01, %v4543_v35  ;;  %vm4559_vm10 = vcmp.gt.f32.partialorder %v4543_v35, 0.0 }
 0x6a0   :  { %v4652_v52 = vsel %vm18741_vm7, %v4651_v13, %v4650_v15 }
 0x6a1   :  { %v4591_v20 = vsel %vm4559_vm10, %v4543_v35, %v4575_v2 }
 0x6a2   :  { %v4653_v18 = vrot.slane %v4591_v20, 1 }
 0x6a4   :  { %v4654_v14 = vsel %vm18740_vm15, %v4653_v18, %v4652_v52 }
 0x6a5   :  { %12827 = vmatmul.mubr.msk.f32.vlgmr.msra.gmra.mxu0 %vm3230_vm12, %v4654_v14  ;;  %12834 = vmatmul.mubr.msk.f32.vlgmr.msra.gmra.mxu1 %vm3230_vm12, %v4654_v14 }
 0x6a6   :  { %12837 = vmatpush3.msk.msra.mxu0 %vm18708_vm2, %v4602_v44 }
 0x6a7   :  { %12838 = vmatprep.subr.mxu0 %v4601_v43 }
 0x6a8   :  { %12839 = vmatpush3.msra.mxu0 %v4601_v43 }
 0x6a9   :  { %12840 = vmatprep.subr.mxu0 %v4600_v41 }
 0x6aa   :  { %12841 = vmatpush3.msra.mxu0 %v4600_v41 }
 0x6ab   :  { %12842 = vmatprep.subr.mxu0 %v4599_v45 }
 0x6ac   :  { %12843 = vmatpush3.msra.mxu0 %v4599_v45 }
 0x765   :  { %v12835_v61 = vpop.f32.mrf.mxu1  ;;  %v12828_v48 = vpop.f32.mrf.mxu0 }
 0x766   :  { %v15958_v19 = vadd.f32 %v12828_v48, %v11926_v3  ;;  %v15971_v40 = vadd.f32 %v12835_v61, %v11930_v59 }
 0x767   :  { %v4812_v11 = vpop.f32.mrf.mxu1  ;;  %v4728_v36 = vpop.f32.mrf.mxu0 }
 0x768   :  { %v4813_v39 = vadd.f32 %v11930_v59, %v4812_v11  ;;  %19032 = vst [vmem:[#allocation114_spill] sm:$0xff] %v15958_v19  ;;  %v15960_v57 = vadd.f32 %v11926_v3, %v4728_v36  ;;  %v4879_v23 = vrot.slane %v15971_v40, %v19025_v10 }
 0x76a   :  { %v4823_v6 = vcombine.high %v4813_v39, %v4813_v39  ;;  %v4830_v54 = vrot.slane %v4813_v39, %v19025_v10  ;;  %19033 = vst [vmem:[#allocation115_spill] sm:$0xff] %v15960_v57 }
 0x76c   :  { %v4838_v4 = vcombine.high %v4830_v54, %v4830_v54  ;;  %v4846_v22 = vrot.slane %v4830_v54, %v19025_v10  ;;  %v4837_v8 = vrot.slane %v4823_v6, %v19025_v10 }
 0x76e   :  { %v4860_v47 = vrot.slane %v4838_v4, %v19025_v10  ;;  %v4868_v38 = vcombine.high %v4846_v22, %v4846_v22  ;;  %v4924_v26 = vrot.slane %v4846_v22, %v19034_v5  ;;  %v4839_v34 = vcombine.high %v4837_v8, %v4837_v8 }
 0x76f   :  { %v4853_v24 = vrot.slane %v4837_v8, %v19025_v10  ;;  %v19037_v8 = vld [vmem:[#allocation63_spill] sm:$0xff] }
 0x770   :  { %v4870_v32 = vcombine.high %v4860_v47, %v4860_v47  ;;  %v4928_v29 = vrot.slane %v4860_v47, %v19034_v5  ;;  %v4932_v46 = vrot.slane %v4868_v38, %v19034_v5  ;;  %v5001_v35 = vadd.f32 %v4924_v26, %v15960_v57 }
 0x771   :  { %v5002_v25 = vadd.f32 %v4924_v26, %v15958_v19  ;;  %v4867_v1 = vrot.slane %v4839_v34, %v19025_v10  ;;  %v4869_v43 = vcombine.high %v4853_v24, %v4853_v24  ;;  %v4940_v6 = vrot.slane %v4853_v24, %v19034_v5 }
 0x772   :  { %v4936_v2 = vrot.slane %v4870_v32, %v19034_v5  ;;  %v5071_v56 = vadd.f32 %v5039_v33, %v5001_v35  ;;  %v5003_v63 = vadd.f32 %v4928_v29, %v15960_v57  ;;  %v5004_v20 = vadd.f32 %v4928_v29, %v15958_v19 }
 0x773   :  { %v5072_v13 = vadd.f32 %v5040_v31, %v5002_v25  ;;  %v5005_v15 = vadd.f32 %v4932_v46, %v15960_v57  ;;  %v5006_v18 = vadd.f32 %v4932_v46, %v15958_v19  ;;  %v4944_v22 = vrot.slane %v4867_v1, %v19034_v5 }
 0x774   :  { %v5007_v52 = vadd.f32 %v4936_v2, %v15960_v57  ;;  %vm5103_vm12 = vcmp.gt.f32.partialorder %v5071_v56, 0.0  ;;  %v5135_v14 = vmul.f32 0.2, %v5071_v56  ;;  %v5073_v41 = vadd.f32 %v5041_v17, %v5003_v63  ;;  %v19040_v63 = vld [vmem:[#allocation67_spill] sm:$0xff] }
 0x775   :  { %vm5104_vm6 = vcmp.gt.f32.partialorder %v5072_v13, 0.0  ;;  %v5136_v44 = vmul.f32 0.2, %v5072_v13  ;;  %v5074_v45 = vadd.f32 %v5042_v28, %v5004_v20  ;;  %v5075_v61 = vadd.f32 %v5043_v9, %v5005_v15  ;;  %v19038_v9 = vld [vmem:[#allocation64_spill] sm:$0xff] }
 0x776   :  { %v5167_v59 = vsel %vm5103_vm12, %v5071_v56, %v5135_v14  ;;  %v5076_v39 = vadd.f32 %v5044_v37, %v5006_v18  ;;  %v5008_v48 = vadd.f32 %v4936_v2, %v15958_v19  ;;  %vm5105_vm13 = vcmp.gt.f32.partialorder %v5073_v41, 0.0 }
 0x777   :  { %v5168_v11 = vsel %vm5104_vm6, %v5072_v13, %v5136_v44  ;;  %12844 = vmatprep.mubr.msk.f32.mxu0 %vm18707_vm9, %v5167_v59  ;;  %v5137_v54 = vmul.f32 0.2, %v5073_v41  ;;  %v5138_v4 = vmul.f32 0.2, %v5074_v45  ;;  %vm5106_vm3 = vcmp.gt.f32.partialorder %v5074_v45, 0.0 }
 0x778   :  { %12845 = vmatmul.mubr.msk.f32.vlgmr.msra.gmra.mxu0 %vm18707_vm9, %v5168_v11  ;;  %v5139_v3 = vmul.f32 0.2, %v5075_v61  ;;  %v5077_v36 = vadd.f32 %v5045_v62, %v5007_v52  ;;  %v5047_v30 = vmul.f32 %v15940_v12, %v19037_v8  ;;  %vm5107_vm14 = vcmp.gt.f32.partialorder %v5075_v61, 0.0 }
 0x779   :  { %v5169_v17 = vsel %vm5105_vm13, %v5073_v41, %v5137_v54  ;;  %v4948_v33 = vrot.slane %v4869_v43, %v19034_v5  ;;  %v5140_v21 = vmul.f32 0.2, %v5076_v39  ;;  %v5078_v28 = vadd.f32 %v5046_v55, %v5008_v48 }
 0x77a   :  { %12847 = vmatprep.mubr.msk.f32.mxu0 %vm18707_vm9, %v5169_v17  ;;  %v5170_v51 = vsel %vm5106_vm3, %v5074_v45, %v5138_v4  ;;  %vm5108_vm10 = vcmp.gt.f32.partialorder %v5076_v39, 0.0  ;;  %v5009_v31 = vadd.f32 %v4940_v6, %v15960_v57  ;;  %v5010_v53 = vadd.f32 %v4940_v6, %v15958_v19  ;;  %v19043_v6 = vld [vmem:[#allocation70_spill] sm:$0xff] }
 0x77b   :  { %v4871_v37 = vcombine.high %v4867_v1, %v4867_v1  ;;  %v5171_v47 = vsel %vm5107_vm14, %v5075_v61, %v5139_v3  ;;  %v5141_v38 = vmul.f32 0.2, %v5077_v36  ;;  %v5011_v27 = vadd.f32 %v4944_v22, %v15960_v57  ;;  %v19041_v1 = vld [vmem:[#allocation68_spill] sm:$0xff] }
 0x77c   :  { %12848 = vmatmul.mubr.msk.f32.gmra.mxu0 %vm18707_vm9, %v5170_v51  ;;  %v5048_v26 = vmul.f32 %v15940_v12, %v19038_v9  ;;  %v5049_v34 = vmul.f32 %v15940_v12, %v19039_v58  ;;  %vm5109_vm12 = vcmp.gt.f32.partialorder %v5077_v36, 0.0  ;;  %v5079_v55 = vadd.f32 %v5047_v30, %v5009_v31  ;;  %v19044_v51 = vld [vmem:[#allocation71_spill] sm:$0xff] }
 0x77d   :  { %12850 = vmatprep.mubr.msk.f32.mxu0 %vm18707_vm9, %v5171_v47  ;;  %v4887_v32 = vcombine.high %v4879_v23, %v4879_v23  ;;  %v4895_v29 = vrot.slane %v4879_v23, %v19025_v10  ;;  %v5172_v49 = vsel %vm5108_vm10, %v5076_v39, %v5140_v21  ;;  %v5142_v62 = vmul.f32 0.2, %v5078_v28  ;;  %v19042_v39 = vld [vmem:[#allocation69_spill] sm:$0xff] }
 0x77e   :  { %vm5110_vm6 = vcmp.gt.f32.partialorder %v5078_v28, 0.0  ;;  %v5080_v46 = vadd.f32 %v5048_v26, %v5010_v53  ;;  %v5012_v35 = vadd.f32 %v4944_v22, %v15958_v19  ;;  %v5013_v25 = vadd.f32 %v4948_v33, %v15960_v57 }
 0x77f   :  { %v5173_v24 = vsel %vm5109_vm12, %v5077_v36, %v5141_v38  ;;  %v5143_v2 = vmul.f32 0.2, %v5079_v55  ;;  %v5081_v56 = vadd.f32 %v5049_v34, %v5011_v27  ;;  %v4952_v13 = vrot.slane %v4871_v37, %v19034_v5  ;;  %v19046_v37 = vld [vmem:[#allocation72_spill] sm:$0xff] }
 0x780   :  { %12851 = vmatmul.mubr.msk.f32.gmra.mxu0 %vm18707_vm9, %v5172_v49  ;;  %v5050_v20 = vmul.f32 %v15940_v12, %v19040_v63  ;;  %v5051_v15 = vmul.f32 %v15940_v12, %v19041_v1  ;;  %vm5111_vm13 = vcmp.gt.f32.partialorder %v5079_v55, 0.0  ;;  %v4909_v18 = vrot.slane %v4887_v32, %v19025_v10 }
 0x781   :  { %12853 = vmatprep.mubr.msk.f32.mxu0 %vm18707_vm9, %v5173_v24  ;;  %v4956_v52 = vrot.slane %v4895_v29, %v19034_v5  ;;  %v5174_v14 = vsel %vm5110_vm6, %v5078_v28, %v5142_v62  ;;  %v5144_v44 = vmul.f32 0.2, %v5080_v46  ;;  %v5014_v45 = vadd.f32 %v4948_v33, %v15958_v19 }
 0x782   :  { %v5082_v43 = vadd.f32 %v5050_v20, %v5012_v35  ;;  %v5083_v41 = vadd.f32 %v5051_v15, %v5013_v25  ;;  %v5175_v61 = vsel %vm5111_vm13, %v5079_v55, %v5143_v2  ;;  %vm5112_vm3 = vcmp.gt.f32.partialorder %v5080_v46, 0.0  ;;  %v19048_v25 = vld [vmem:[#allocation74_spill] sm:$0xff] }
 0x783   :  { %v5145_v59 = vmul.f32 0.2, %v5081_v56  ;;  %v5015_v11 = vadd.f32 %v4952_v13, %v15960_v57  ;;  %v5052_v48 = vmul.f32 %v15940_v12, %v19042_v39  ;;  %v5053_v54 = vmul.f32 %v15940_v12, %v19043_v6 }
 0x784   :  { %12854 = vmatmul.mubr.msk.f32.gmra.mxu0 %vm18707_vm9, %v5174_v14  ;;  %vm5113_vm14 = vcmp.gt.f32.partialorder %v5081_v56, 0.0  ;;  %v4872_v4 = vcombine.high %v15971_v40, %v15971_v40  ;;  %v4917_v22 = vcombine.high %v4895_v29, %v4895_v29  ;;  %v4960_v3 = vrot.slane %v4909_v18, %v19034_v5  ;;  %v19045_v40 = vld [vmem:[#allocation73_spill] sm:$0xff] }
 0x785   :  { %12856 = vmatprep.mubr.msk.f32.mxu0 %vm18707_vm9, %v5175_v61  ;;  %v5017_v36 = vadd.f32 %v4956_v52, %v15960_v57  ;;  %v5176_v8 = vsel %vm5112_vm3, %v5080_v46, %v5144_v44  ;;  %v5146_v30 = vmul.f32 0.2, %v5082_v43  ;;  %v5084_v17 = vadd.f32 %v5052_v48, %v5014_v45  ;;  %v19047_v46 = vld [vmem:[#allocation75_spill] sm:$0xff] }
 0x786   :  { %v5016_v23 = vadd.f32 %v4952_v13, %v15958_v19  ;;  %v5177_v33 = vsel %vm5113_vm14, %v5081_v56, %v5145_v59  ;;  %vm5114_vm10 = vcmp.gt.f32.partialorder %v5082_v43, 0.0  ;;  %v5147_v21 = vmul.f32 0.2, %v5083_v41 }
 0x787   :  { %v5085_v28 = vadd.f32 %v5053_v54, %v5015_v11  ;;  %v5054_v31 = vmul.f32 %v15940_v12, %v19044_v51  ;;  %v5056_v53 = vmul.f32 %v15940_v12, %v19045_v40  ;;  %v5055_v47 = vmul.f32 %v15940_v12, %v19046_v37 }
 0x788   :  { %12857 = vmatmul.mubr.msk.f32.gmra.mxu0 %vm18707_vm9, %v5176_v8  ;;  %vm5115_vm12 = vcmp.gt.f32.partialorder %v5083_v41, 0.0  ;;  %v4886_v38 = vrot.slane %v4872_v4, %v19025_v10  ;;  %v4919_v27 = vcombine.high %v4909_v18, %v4909_v18  ;;  %v4964_v9 = vrot.slane %v4917_v22, %v19034_v5  ;;  %v19051_v8 = vld [vmem:[#allocation79_spill] sm:$0xff] }
 0x789   :  { %12859 = vmatprep.mubr.msk.f32.mxu0 %vm18707_vm9, %v5177_v33  ;;  %v5018_v26 = vadd.f32 %v4956_v52, %v15958_v19  ;;  %v5178_v58 = vsel %vm5114_vm10, %v5082_v43, %v5146_v30  ;;  %v5148_v34 = vmul.f32 0.2, %v5084_v17  ;;  %v5086_v55 = vadd.f32 %v5054_v31, %v5016_v23  ;;  %v19049_v43 = vld [vmem:[#allocation76_spill] sm:$0xff] }
 0x78a   :  { %v5087_v32 = vadd.f32 %v5055_v47, %v5017_v36  ;;  %v5179_v29 = vsel %vm5115_vm12, %v5083_v41, %v5147_v21  ;;  %vm5116_vm6 = vcmp.gt.f32.partialorder %v5084_v17, 0.0  ;;  %v5149_v49 = vmul.f32 0.2, %v5085_v28 }
 0x78b   :  { %v5019_v62 = vadd.f32 %v4960_v3, %v15960_v57  ;;  %v5058_v35 = vmul.f32 %v15940_v12, %v19047_v46  ;;  %v5057_v24 = vmul.f32 %v15940_v12, %v19048_v25  ;;  %vm5117_vm13 = vcmp.gt.f32.partialorder %v5085_v28, 0.0  ;;  %v19054_v25 = vld [vmem:[#allocation81_spill] sm:$0xff] }
 0x78c   :  { %12860 = vmatmul.mubr.msk.f32.gmra.mxu0 %vm18707_vm9, %v5178_v58  ;;  %v4888_v2 = vcombine.high %v4886_v38, %v4886_v38  ;;  %v4902_v56 = vrot.slane %v4886_v38, %v19025_v10  ;;  %v5088_v13 = vadd.f32 %v5056_v53, %v5018_v26  ;;  %v5020_v63 = vadd.f32 %v4960_v3, %v15958_v19  ;;  %v19050_v3 = vld [vmem:[#allocation77_spill] sm:$0xff] }
 0x78d   :  { %12862 = vmatprep.mubr.msk.f32.mxu0 %vm18707_vm9, %v5179_v29  ;;  %v4968_v20 = vrot.slane %v4919_v27, %v19034_v5  ;;  %v5180_v1 = vsel %vm5116_vm6, %v5084_v17, %v5148_v34  ;;  %v5150_v15 = vmul.f32 0.2, %v5086_v55  ;;  %v5021_v18 = vadd.f32 %v4964_v9, %v15960_v57  ;;  %v19052_v17 = vld [vmem:[#allocation78_spill] sm:$0xff]  ;;  %v19053_v27 = vld [vmem:[#allocation80_spill] sm:$0xff] }
 0x78e   :  { %v5181_v52 = vsel %vm5117_vm13, %v5085_v28, %v5149_v49  ;;  %vm5118_vm3 = vcmp.gt.f32.partialorder %v5086_v55, 0.0  ;;  %v5151_v14 = vmul.f32 0.2, %v5087_v32  ;;  %v5089_v44 = vadd.f32 %v5057_v24, %v5019_v62 }
 0x78f   :  { %v5059_v41 = vmul.f32 %v15940_v12, %v19049_v43  ;;  %vm5119_vm14 = vcmp.gt.f32.partialorder %v5087_v32, 0.0  ;;  %vm5120_vm10 = vcmp.gt.f32.partialorder %v5088_v13, 0.0  ;;  %v5152_v45 = vmul.f32 0.2, %v5088_v13  ;;  %v19056_v43 = vld [vmem:[#allocation83_spill] sm:$0xff] }
 0x790   :  { %12863 = vmatmul.mubr.msk.f32.gmra.mxu0 %vm18707_vm9, %v5180_v1  ;;  %v5090_v61 = vadd.f32 %v5058_v35, %v5020_v63  ;;  %v5182_v59 = vsel %vm5118_vm3, %v5086_v55, %v5150_v15  ;;  %v5022_v39 = vadd.f32 %v4964_v9, %v15958_v19  ;;  %v5023_v48 = vadd.f32 %v4968_v20, %v15960_v57 }
 0x791   :  { %12865 = vmatprep.mubr.msk.f32.mxu0 %vm18707_vm9, %v5181_v52  ;;  %v5091_v11 = vadd.f32 %v5059_v41, %v5021_v18  ;;  %v4916_v6 = vrot.slane %v4888_v2, %v19025_v10  ;;  %v4972_v54 = vrot.slane %v4902_v56, %v19034_v5  ;;  %v5183_v4 = vsel %vm5119_vm14, %v5087_v32, %v5151_v14  ;;  %v19055_v2 = vld [vmem:[#allocation82_spill] sm:$0xff] }
 0x792   :  { %v5153_v22 = vmul.f32 0.2, %v5089_v44  ;;  %v5060_v36 = vmul.f32 %v15940_v12, %v19050_v3  ;;  %v5062_v30 = vmul.f32 %v15940_v12, %v19051_v8  ;;  %v5061_v23 = vmul.f32 %v15940_v12, %v19052_v17  ;;  %v19058_v3 = vld [vmem:[#allocation85_spill] sm:$0xff]  ;;  %v19059_v8 = vld [vmem:[#allocation86_spill] sm:$0xff] }
 0x793   :  { %vm5121_vm12 = vcmp.gt.f32.partialorder %v5089_v44, 0.0  ;;  %v4918_v33 = vcombine.high %v4902_v56, %v4902_v56  ;;  %v5184_v21 = vsel %vm5120_vm10, %v5088_v13, %v5152_v45  ;;  %v5154_v28 = vmul.f32 0.2, %v5090_v61  ;;  %v19057_v45 = vld [vmem:[#allocation84_spill] sm:$0xff] }
 0x794   :  { %12866 = vmatmul.mubr.msk.f32.gmra.mxu0 %vm18707_vm9, %v5182_v59  ;;  %v5024_v51 = vadd.f32 %v4968_v20, %v15958_v19  ;;  %vm5122_vm6 = vcmp.gt.f32.partialorder %v5090_v61, 0.0  ;;  %v5155_v31 = vmul.f32 0.2, %v5091_v11  ;;  %v5092_v40 = vadd.f32 %v5060_v36, %v5022_v39 }
 0x795   :  { %12868 = vmatprep.mubr.msk.f32.mxu0 %vm18707_vm9, %v5183_v4  ;;  %v5093_v53 = vadd.f32 %v5061_v23, %v5023_v48  ;;  %v4976_v37 = vrot.slane %v4916_v6, %v19034_v5  ;;  %v5185_v47 = vsel %vm5121_vm12, %v5089_v44, %v5153_v22  ;;  %vm5123_vm13 = vcmp.gt.f32.partialorder %v5091_v11, 0.0 }
 0x796   :  { %v5025_v38 = vadd.f32 %v4972_v54, %v15960_v57  ;;  %v5063_v9 = vmul.f32 %v15940_v12, %v19053_v27  ;;  %v4920_v26 = vcombine.high %v4916_v6, %v4916_v6  ;;  %v4980_v58 = vrot.slane %v4918_v33, %v19034_v5 }
 0x797   :  { %v5186_v34 = vsel %vm5122_vm6, %v5090_v61, %v5154_v28  ;;  %v5094_v55 = vadd.f32 %v5062_v30, %v5024_v51  ;;  %v5187_v32 = vsel %vm5123_vm13, %v5091_v11, %v5155_v31  ;;  %v5156_v29 = vmul.f32 0.2, %v5092_v40 }
 0x798   :  { %12869 = vmatmul.mubr.msk.f32.gmra.mxu0 %vm18707_vm9, %v5184_v21  ;;  %v5157_v49 = vmul.f32 0.2, %v5093_v53  ;;  %v5026_v62 = vadd.f32 %v4972_v54, %v15958_v19  ;;  %vm5124_vm3 = vcmp.gt.f32.partialorder %v5092_v40, 0.0  ;;  %vm5125_vm14 = vcmp.gt.f32.partialorder %v5093_v53, 0.0 }
 0x799   :  { %12871 = vmatprep.mubr.msk.f32.mxu0 %vm18707_vm9, %v5185_v47  ;;  %v5095_v46 = vadd.f32 %v5063_v9, %v5025_v38  ;;  %v5027_v35 = vadd.f32 %v4976_v37, %v15960_v57  ;;  %v5064_v24 = vmul.f32 %v15940_v12, %v19054_v25  ;;  %v5065_v56 = vmul.f32 %v15940_v12, %v19055_v2 }
 0x79a   :  { %vm5126_vm10 = vcmp.gt.f32.partialorder %v5094_v55, 0.0  ;;  %v5158_v13 = vmul.f32 0.2, %v5094_v55  ;;  %v5188_v63 = vsel %vm5124_vm3, %v5092_v40, %v5156_v29  ;;  %v5189_v20 = vsel %vm5125_vm14, %v5093_v53, %v5157_v49  ;;  %v19060_v40 = vld [vmem:[#allocation87_spill] sm:$0xff]  ;;  %v19062_v29 = vld [vmem:[#allocation88_spill] sm:$0xff] }
 0x79b   :  { %v5096_v1 = vadd.f32 %v5064_v24, %v5026_v62  ;;  %v5028_v15 = vadd.f32 %v4976_v37, %v15958_v19  ;;  %v5159_v18 = vmul.f32 0.2, %v5095_v46  ;;  %v5097_v52 = vadd.f32 %v5065_v56, %v5027_v35 }
 0x79c   :  { %12872 = vmatmul.mubr.msk.f32.gmra.mxu0 %vm18707_vm9, %v5186_v34  ;;  %v5029_v14 = vadd.f32 %v4980_v58, %v15960_v57  ;;  %v4984_v44 = vrot.slane %v4920_v26, %v19034_v5  ;;  %v5066_v41 = vmul.f32 %v15940_v12, %v19056_v43  ;;  %vm5127_vm12 = vcmp.gt.f32.partialorder %v5095_v46, 0.0 }
 0x79d   :  { %12874 = vmatprep.mubr.msk.f32.mxu0 %vm18707_vm9, %v5187_v32  ;;  %v5067_v61 = vmul.f32 %v15940_v12, %v19057_v45  ;;  %v5190_v59 = vsel %vm5126_vm10, %v5094_v55, %v5158_v13  ;;  %vm5128_vm6 = vcmp.gt.f32.partialorder %v5096_v1, 0.0  ;;  %v5160_v11 = vmul.f32 0.2, %v5096_v1  ;;  %v4604_v55 = vld [vmem:[%s19061_s24] sm:$0x7]  ;;  %v19074_v45 = vld [vmem:[#allocation92_spill] sm:$0xff] }
 0x79e   :  { %v5098_v39 = vadd.f32 %v5066_v41, %v5028_v15  ;;  %v5030_v48 = vadd.f32 %v4980_v58, %v15958_v19  ;;  %v5191_v6 = vsel %vm5127_vm12, %v5095_v46, %v5159_v18  ;;  %v5161_v54 = vmul.f32 0.2, %v5097_v52  ;;  %12892 = vmatprep.subr.msk.mxu1 %vm4117_vm8, %v4604_v55  ;;  %v19064_v46 = vld [vmem:[#allocation89_spill] sm:$0xff]  ;;  %v19068_v13 = vld [vmem:[#allocation90_spill] sm:$0xff]  ;;  %v19070_v15 = vld [vmem:[#allocation91_spill] sm:$0xff]  ;;  %s19589_s24 = sld [smem:[#allocation44_spill]] }
 0x79f   :  { %v5099_v4 = vadd.f32 %v5067_v61, %v5029_v14  ;;  %v5031_v22 = vadd.f32 %v4984_v44, %v15960_v57  ;;  %v5068_v36 = vmul.f32 %v15940_v12, %v19058_v3  ;;  %vm5129_vm13 = vcmp.gt.f32.partialorder %v5097_v52, 0.0  ;;  %12893 = vmatpush3.msk.msra.mxu1 %vm4117_vm8, %v4604_v55 }
 0x7a0   :  { %12875 = vmatmul.mubr.msk.f32.gmra.mxu0 %vm18707_vm9, %v5188_v63  ;;  %v5069_v30 = vmul.f32 %v15940_v12, %v19059_v8  ;;  %v5192_v17 = vsel %vm5128_vm6, %v5096_v1, %v5160_v11  ;;  %v5162_v23 = vmul.f32 0.2, %v5098_v39  ;;  %v5032_v21 = vadd.f32 %v4984_v44, %v15958_v19 }
 0x7a1   :  { %12877 = vmatprep.mubr.msk.f32.mxu0 %vm18707_vm9, %v5189_v20  ;;  %v5100_v33 = vadd.f32 %v5068_v36, %v5030_v48  ;;  %v5193_v28 = vsel %vm5129_vm13, %v5097_v52, %v5161_v54  ;;  %vm5130_vm3 = vcmp.gt.f32.partialorder %v5098_v39, 0.0  ;;  %v5163_v51 = vmul.f32 0.2, %v5099_v4  ;;  %v19076_v48 = vld [vmem:[#allocation93_spill] sm:$0xff] }
 0x7a2   :  { %v5101_v31 = vadd.f32 %v5069_v30, %v5031_v22  ;;  %v5070_v53 = vmul.f32 %v15940_v12, %v19060_v40  ;;  %vm5131_vm14 = vcmp.gt.f32.partialorder %v5099_v4, 0.0  ;;  %v5194_v37 = vsel %vm5130_vm3, %v5098_v39, %v5162_v23  ;;  %v19080_v30 = vld [vmem:[#allocation94_spill] sm:$0xff] }
 0x7a3   :  { %v5164_v47 = vmul.f32 0.2, %v5100_v33  ;;  %v5195_v27 = vsel %vm5131_vm14, %v5099_v4, %v5163_v51  ;;  %vm5132_vm10 = vcmp.gt.f32.partialorder %v5100_v33, 0.0  ;;  %vm19063_vm13 = vcmp.gt.f32.partialorder %v19062_v29, 0.0  ;;  %v19082_v51 = vld [vmem:[#allocation95_spill] sm:$0xff] }
 0x7a4   :  { %12878 = vmatmul.mubr.msk.f32.gmra.mxu0 %vm18707_vm9, %v5190_v59  ;;  %v5102_v38 = vadd.f32 %v5070_v53, %v5032_v21  ;;  %v5165_v9 = vmul.f32 0.2, %v5101_v31  ;;  %vm5133_vm12 = vcmp.gt.f32.partialorder %v5101_v31, 0.0  ;;  %vm19065_vm3 = vcmp.gt.f32.partialorder %v19064_v46, 0.0  ;;  %v19088_v46 = vld [vmem:[#allocation97_spill] sm:$0xff] }
 0x7a5   :  { %12880 = vmatprep.mubr.msk.f32.mxu0 %vm18707_vm9, %v5191_v6  ;;  %v5196_v26 = vsel %vm5132_vm10, %v5100_v33, %v5164_v47  ;;  %vm19066_vm14 = vcmask 23552   ;;  %vm19071_vm8 = vcmp.gt.f32.partialorder %v19070_v15, 0.0 }
 0x7a6   :  { %v5166_v58 = vmul.f32 0.2, %v5102_v38  ;;  %v5197_v12 = vsel %vm5133_vm12, %v5101_v31, %v5165_v9  ;;  %vm5134_vm6 = vcmp.gt.f32.partialorder %v5102_v38, 0.0  ;;  %vm19067_vm10 = vmmov %vm19066_vm14  ;;  %vm19069_vm12 = vcmp.gt.f32.partialorder %v19068_v13, 0.0 }
 0x7a8   :  { %12881 = vmatmul.mubr.msk.f32.gmra.mxu0 %vm18707_vm9, %v5192_v17  ;;  %v5198_v34 = vsel %vm5134_vm6, %v5102_v38, %v5166_v58  ;;  %vm19072_vm6 = vmmov %vm19067_vm10 }
 0x7a9   :  { %12883 = vmatprep.mubr.msk.f32.mxu0 %vm18707_vm9, %v5193_v28 }
 0x7ac   :  { %12884 = vmatmul.mubr.msk.f32.gmra.mxu0 %vm18707_vm9, %v5194_v37 }
 0x7ad   :  { %12886 = vmatprep.mubr.msk.f32.mxu0 %vm18707_vm9, %v5195_v27 }
 0x7b0   :  { %12887 = vmatmul.mubr.msk.f32.gmra.mxu0 %vm18707_vm9, %v5196_v26  ;;  %v19086_v26 = vld [vmem:[#allocation96_spill] sm:$0xff] }
 0x7b1   :  { %12889 = vmatprep.mubr.msk.f32.mxu0 %vm18707_vm9, %v5197_v12 }
 0x7b4   :  { %12890 = vmatmul.mubr.msk.f32.gmra.mxu0 %vm18707_vm9, %v5198_v34 }
 0x838   :  { %v12846_v32 = vpop.f32.mrf.mxu0 }
 0x839   :  { %v5526_v49 = vsel %vm19063_vm13, %v12846_v32, -1e+30  ;;  %vm19073_vm13 = vmmov %vm19072_vm6 }
 0x83a   :  { %v5366_v62 = vpop.f32.mrf.mxu0  ;;  %v5558_v25 = vsel %vm19066_vm14, %v5526_v49, -inf  ;;  %vm19077_vm14 = vcmp.gt.f32.partialorder %v19076_v48, 0.0 }
 0x83b   :  { %v5525_v35 = vsel %vm19065_vm3, %v5366_v62, -1e+30  ;;  %vm19075_vm3 = vcmp.gt.f32.partialorder %v19074_v45, 0.0 }
 0x83c   :  { %v5557_v24 = vsel %vm19067_vm10, %v5525_v35, -inf  ;;  %v12849_v2 = vpop.f32.mrf.mxu0  ;;  %vm19078_vm10 = vmmov %vm19072_vm6 }
 0x83d   :  { %v5559_v56 = vmax.f32 %v5557_v24, %v5558_v25  ;;  %v5528_v63 = vsel %vm19069_vm12, %v12849_v2, -1e+30  ;;  %vm19079_vm12 = vmmov %vm19072_vm6 }
 0x83e   :  { %v5376_v20 = vpop.f32.mrf.mxu0  ;;  %v5567_v52 = vsel %vm19072_vm6, %v5528_v63, -inf  ;;  %vm19083_vm6 = vcmp.gt.f32.partialorder %v19082_v51, 0.0 }
 0x83f   :  { %v5560_v1 = vrot.slane %v5559_v56, 4  ;;  %v5527_v18 = vsel %vm19071_vm8, %v5376_v20, -1e+30  ;;  %vm19081_vm8 = vcmp.gt.f32.partialorder %v19080_v30, 0.0 }
 0x840   :  { %v5566_v14 = vsel %vm19073_vm13, %v5527_v18, -inf  ;;  %v12852_v44 = vpop.f32.mrf.mxu0  ;;  %vm19084_vm13 = vmmov %vm19078_vm10 }
 0x841   :  { %v5561_v43 = vmax.f32 %v5559_v56, %v5560_v1  ;;  %v5568_v41 = vmax.f32 %v5566_v14, %v5567_v52  ;;  %v16125_v61 = vsel %vm19075_vm3, %v12852_v44, -1e+30  ;;  %vm19085_vm3 = vmmov %vm19078_vm10 }
 0x842   :  { %v5386_v59 = vpop.f32.mrf.mxu0  ;;  %v5576_v54 = vsel %vm19078_vm10, %v16125_v61, -inf  ;;  %vm19089_vm10 = vcmp.gt.f32.partialorder %v19088_v46, 0.0 }
 0x843   :  { %v5562_v11 = vrot.slane %v5561_v43, 2  ;;  %v5569_v39 = vrot.slane %v5568_v41, 4  ;;  %v16129_v6 = vsel %vm19077_vm14, %v5386_v59, -1e+30  ;;  %vm19087_vm14 = vcmp.gt.f32.partialorder %v19086_v26, 0.0 }
 0x844   :  { %v5575_v4 = vsel %vm19079_vm12, %v16129_v6, -inf  ;;  %v12855_v22 = vpop.f32.mrf.mxu0  ;;  %vm19090_vm12 = vmmov %vm19085_vm3 }
 0x845   :  { %v5563_v3 = vmax.f32 %v5561_v43, %v5562_v11  ;;  %v5570_v36 = vmax.f32 %v5568_v41, %v5569_v39  ;;  %v5577_v8 = vmax.f32 %v5575_v4, %v5576_v54  ;;  %v16137_v17 = vsel %vm19081_vm8, %v12855_v22, -1e+30  ;;  %vm19091_vm8 = vmmov %vm19085_vm3  ;;  %v19095_v22 = vld [vmem:[#allocation99_spill] sm:$0xff] }
 0x846   :  { %v5396_v23 = vpop.f32.mrf.mxu0  ;;  %v5585_v40 = vsel %vm19084_vm13, %v16137_v17, -inf  ;;  %vm19094_vm13 = vmmov %vm19085_vm3 }
 0x847   :  { %v5564_v33 = vrot.slane %v5563_v3, 1  ;;  %v5571_v21 = vrot.slane %v5570_v36, 2  ;;  %v5578_v28 = vrot.slane %v5577_v8, 4  ;;  %v16141_v31 = vsel %vm19083_vm6, %v5396_v23, -1e+30 }
 0x848   :  { %v5584_v53 = vsel %vm19085_vm3, %v16141_v31, -inf  ;;  %v12858_v37 = vpop.f32.mrf.mxu0  ;;  %vm19096_vm3 = vcmp.gt.f32.partialorder %v19095_v22, 0.0 }
 0x849   :  { %v5565_v47 = vmax.f32 %v5563_v3, %v5564_v33  ;;  %v5572_v38 = vmax.f32 %v5570_v36, %v5571_v21  ;;  %v5579_v27 = vmax.f32 %v5577_v8, %v5578_v28  ;;  %v5586_v9 = vmax.f32 %v5584_v53, %v5585_v40 }
 0x84a   :  { %v16149_v58 = vsel %vm19087_vm14, %v12858_v37, -1e+30  ;;  %v5406_v12 = vpop.f32.mrf.mxu0  ;;  %vm19097_vm14 = vmmov %vm19091_vm8 }
 0x84b   :  { %v5701_v34 = vsub.f32 %v5525_v35, %v5565_v47  ;;  %v5702_v55 = vsub.f32 %v5526_v49, %v5565_v47  ;;  %v5573_v32 = vrot.slane %v5572_v38, 1  ;;  %v5580_v29 = vrot.slane %v5579_v27, 2  ;;  %v19092_v49 = vld [vmem:[#allocation98_spill] sm:$0xff] }
 0x84c   :  { %v5587_v62 = vrot.slane %v5586_v9, 4  ;;  %v16153_v25 = vsel %vm19089_vm10, %v5406_v12, -1e+30  ;;  %v12861_v24 = vpop.f32.mrf.mxu0  ;;  %v5594_v15 = vsel %vm19090_vm12, %v16149_v58, -inf  ;;  %vm19093_vm6 = vcmp.gt.f32.partialorder %v19092_v49, 0.0  ;;  %vm19100_vm12 = vmmov %vm19091_vm8  ;;  %v19101_v12 = vld [vmem:[#allocation101_spill] sm:$0xff] }
 0x84d   :  { %v5733_v2 = vmul.f32 1.442695, %v5701_v34  ;;  %v5735_v56 = vmul.f32 1.442695, %v5702_v55  ;;  %v5574_v13 = vmax.f32 %v5572_v38, %v5573_v32  ;;  %v5581_v20 = vmax.f32 %v5579_v27, %v5580_v29 }
 0x84e   :  { %v5588_v1 = vmax.f32 %v5586_v9, %v5587_v62  ;;  %v5593_v35 = vsel %vm19091_vm8, %v16153_v25, -inf  ;;  %v16161_v52 = vsel %vm19093_vm6, %v12861_v24, -1e+30  ;;  %v5416_v14 = vpop.f32.mrf.mxu0  ;;  %vm19102_vm8 = vcmp.gt.f32.partialorder %v19101_v12, 0.0 }
 0x84f   :  { %13495 = vpow2.f32 %v5733_v2  ;;  %v5703_v44 = vsub.f32 %v5527_v18, %v5574_v13  ;;  %v5704_v43 = vsub.f32 %v5528_v63, %v5574_v13  ;;  %v5582_v41 = vrot.slane %v5581_v20, 1  ;;  %v19098_v18 = vld [vmem:[#allocation100_spill] sm:$0xff] }
 0x850   :  { %13497 = vpow2.f32 %v5735_v56  ;;  %v5589_v45 = vrot.slane %v5588_v1, 2  ;;  %v5595_v59 = vmax.f32 %v5593_v35, %v5594_v15  ;;  %v5603_v11 = vsel %vm19094_vm13, %v16161_v52, -inf  ;;  %v12864_v39 = vpop.f32.mrf.mxu0  ;;  %vm19105_vm13 = vmmov %vm19100_vm12  ;;  %v19109_v35 = vld [vmem:[#allocation104_spill] sm:$0xff] }
 0x851   :  { %v5737_v48 = vmul.f32 1.442695, %v5703_v44  ;;  %v5739_v54 = vmul.f32 1.442695, %v5704_v43  ;;  %v5583_v4 = vmax.f32 %v5581_v20, %v5582_v41  ;;  %v16167_v3 = vsel %vm19096_vm3, %v5416_v14, -1e+30  ;;  %vm19106_vm3 = vmmov %vm19100_vm12 }
 0x852   :  { %v5590_v36 = vmax.f32 %v5588_v1, %v5589_v45  ;;  %v5596_v8 = vrot.slane %v5595_v59, 4  ;;  %v5602_v63 = vsel %vm19097_vm14, %v16167_v3, -inf  ;;  %vm19099_vm10 = vcmp.gt.f32.partialorder %v19098_v18, 0.0  ;;  %v5426_v23 = vpop.f32.mrf.mxu0  ;;  %v19107_v1 = vld [vmem:[#allocation103_spill] sm:$0xff] }
 0x853   :  { %v16173_v30 = vsel %vm19099_vm10, %v12864_v39, -1e+30  ;;  %13499 = vpow2.f32 %v5737_v48  ;;  %v5705_v33 = vsub.f32 %v16129_v6, %v5583_v4  ;;  %v5706_v21 = vsub.f32 %v16125_v61, %v5583_v4  ;;  %v19103_v6 = vld [vmem:[#allocation102_spill] sm:$0xff] }
 0x854   :  { %v5604_v28 = vmax.f32 %v5602_v63, %v5603_v11  ;;  %13501 = vpow2.f32 %v5739_v54  ;;  %v5591_v51 = vrot.slane %v5590_v36, 1  ;;  %v5597_v40 = vmax.f32 %v5595_v59, %v5596_v8  ;;  %v12867_v53 = vpop.f32.mrf.mxu0  ;;  %v19113_v54 = vld [vmem:[#allocation105_spill] sm:$0xff] }
 0x855   :  { %v5741_v37 = vmul.f32 1.442695, %v5705_v33  ;;  %v5743_v47 = vmul.f32 1.442695, %v5706_v21  ;;  %v5612_v27 = vsel %vm19100_vm12, %v16173_v30, -inf  ;;  %vm19104_vm6 = vcmp.gt.f32.partialorder %v19103_v6, 0.0  ;;  %vm19111_vm12 = vmmov %vm19106_vm3 }
 0x856   :  { %v5605_v38 = vrot.slane %v5604_v28, 4  ;;  %v5592_v9 = vmax.f32 %v5590_v36, %v5591_v51  ;;  %v5598_v26 = vrot.slane %v5597_v40, 2  ;;  %v16181_v34 = vsel %vm19102_vm8, %v5426_v23, -1e+30  ;;  %v5436_v55 = vpop.f32.mrf.mxu0  ;;  %vm19112_vm8 = vmmov %vm19106_vm3 }
 0x857   :  { %v16185_v61 = vsel %vm19104_vm6, %v12867_v53, -1e+30  ;;  %13503 = vpow2.f32 %v5741_v37  ;;  %v5611_v29 = vsel %vm19105_vm13, %v16181_v34, -inf  ;;  %vm19108_vm14 = vcmp.gt.f32.partialorder %v19107_v1, 0.0  ;;  %vm19115_vm13 = vmmov %vm19106_vm3 }
 0x858   :  { %v5606_v32 = vmax.f32 %v5604_v28, %v5605_v38  ;;  %v5621_v62 = vsel %vm19106_vm3, %v16185_v61, -inf  ;;  %13505 = vpow2.f32 %v5743_v47  ;;  %v5707_v46 = vsub.f32 %v16141_v31, %v5592_v9  ;;  %v12870_v56 = vpop.f32.mrf.mxu0 }
 0x859   :  { %v5708_v24 = vsub.f32 %v16137_v17, %v5592_v9  ;;  %v5599_v2 = vmax.f32 %v5597_v40, %v5598_v26  ;;  %v5613_v20 = vmax.f32 %v5611_v29, %v5612_v27  ;;  %v16195_v15 = vsel %vm19108_vm14, %v5436_v55, -1e+30  ;;  %vm19116_vm14 = vmmov %vm19106_vm3 }
 0x85a   :  { %v5607_v13 = vrot.slane %v5606_v32, 2  ;;  %vm19110_vm10 = vcmp.gt.f32.partialorder %v19109_v35, 0.0  ;;  %v5745_v14 = vmul.f32 1.442695, %v5707_v46  ;;  %v5620_v31 = vsel %vm19111_vm12, %v16195_v15, -inf  ;;  %v5446_v41 = vpop.f32.mrf.mxu0  ;;  %vm19118_vm12 = vmmov %vm19106_vm3 }
 0x85b   :  { %v16199_v49 = vsel %vm19110_vm10, %v12870_v56, -1e+30  ;;  %v5747_v44 = vmul.f32 1.442695, %v5708_v24  ;;  %v5600_v43 = vrot.slane %v5599_v2, 1  ;;  %v5614_v45 = vrot.slane %v5613_v20, 4  ;;  %vm19117_vm10 = vmmov %vm19106_vm3 }
 0x85c   :  { %v5608_v17 = vmax.f32 %v5606_v32, %v5607_v13  ;;  %v5622_v59 = vmax.f32 %v5620_v31, %v5621_v62  ;;  %v16203_v11 = vpop.eup %13495  ;;  %13507 = vpow2.f32 %v5745_v14  ;;  %v5630_v48 = vsel %vm19112_vm8, %v16199_v49, -inf  ;;  %v16211_v22 = vpop.f32.mrf.mxu0  ;;  %vm19119_vm8 = vmmov %vm19106_vm3 }
 0x85d   :  { %v5601_v39 = vmax.f32 %v5599_v2, %v5600_v43  ;;  %vm19114_vm6 = vcmp.gt.f32.partialorder %v19113_v54, 0.0  ;;  %v16213_v36 = vpop.eup %13497  ;;  %v5797_v8 = vsel %vm19115_vm13, %v16203_v11, 0.0  ;;  %13509 = vpow2.f32 %v5747_v44  ;;  %vm19121_vm13 = vmmov %vm19106_vm3 }
 0x85e   :  { %v16209_v4 = vsel %vm19114_vm6, %v5446_v41, -1e+30  ;;  %v5609_v63 = vrot.slane %v5608_v17, 1  ;;  %v5615_v18 = vmax.f32 %v5613_v20, %v5614_v45  ;;  %v5798_v23 = vsel %vm19106_vm3, %v16213_v36, 0.0  ;;  %v16221_v51 = vpop.f32.mrf.mxu0  ;;  %vm19120_vm6 = vmmov %vm19106_vm3 }
 0x85f   :  { %v5709_v33 = vsub.f32 %v16153_v25, %v5601_v39  ;;  %v5710_v21 = vsub.f32 %v16149_v58, %v5601_v39  ;;  %v5623_v28 = vrot.slane %v5622_v59, 4  ;;  %v5799_v40 = vadd.f32 %v5798_v23, %v5797_v8 }
 0x860   :  { %v5610_v53 = vmax.f32 %v5608_v17, %v5609_v63  ;;  %v5616_v37 = vrot.slane %v5615_v18, 2  ;;  %v5629_v47 = vsel %vm19116_vm14, %v16209_v4, -inf  ;;  %v16225_v38 = vpop.eup %13499  ;;  %v16227_v6 = vpop.f32.mrf.mxu0 }
 0x861   :  { %v5749_v27 = vmul.f32 1.442695, %v5709_v33  ;;  %v5751_v9 = vmul.f32 1.442695, %v5710_v21  ;;  %v5624_v26 = vmax.f32 %v5622_v59, %v5623_v28  ;;  %v5631_v12 = vmax.f32 %v5629_v47, %v5630_v48  ;;  %v16229_v25 = vpop.eup %13501 }
 0x862   :  { %v5800_v58 = vrot.slane %v5799_v40, 4  ;;  %v5806_v55 = vsel %vm19117_vm10, %v16225_v38, 0.0  ;;  %v5711_v32 = vsub.f32 %v16167_v3, %v5610_v53  ;;  %v5712_v29 = vsub.f32 %v16161_v52, %v5610_v53  ;;  %v16239_v43 = vpop.f32.mrf.mxu0  ;;  %vm19124_vm10 = vmmov %vm19106_vm3 }
 0x863   :  { %v5807_v62 = vsel %vm19118_vm12, %v16229_v25, 0.0  ;;  %13511 = vpow2.f32 %v5749_v27  ;;  %v5617_v46 = vmax.f32 %v5615_v18, %v5616_v37  ;;  %v5625_v24 = vrot.slane %v5624_v26, 2 }
 0x864   :  { %v5801_v2 = vadd.f32 %v5800_v58, %v5799_v40  ;;  %v5808_v56 = vadd.f32 %v5807_v62, %v5806_v55  ;;  %13513 = vpow2.f32 %v5751_v9  ;;  %v5753_v13 = vmul.f32 1.442695, %v5711_v32  ;;  %v16237_v20 = vpop.eup %13503  ;;  %v12879_v18 = vpop.f32.mrf.mxu0 }
 0x865   :  { %v5755_v1 = vmul.f32 1.442695, %v5712_v29  ;;  %v5618_v35 = vrot.slane %v5617_v46, 1  ;;  %v5626_v14 = vmax.f32 %v5624_v26, %v5625_v24  ;;  %v5632_v44 = vrot.slane %v5631_v12, 4  ;;  %v16241_v3 = vpop.eup %13505  ;;  %v19122_v26 = vld [vmem:[#allocation106_spill] sm:$0xff] }
 0x866   :  { %v5809_v52 = vrot.slane %v5808_v56, 4  ;;  %v5815_v31 = vsel %vm19119_vm8, %v16237_v20, 0.0  ;;  %13515 = vpow2.f32 %v5753_v13  ;;  %v5816_v41 = vsel %vm19120_vm6, %v16241_v3, 0.0  ;;  %v5476_v29 = vpop.f32.mrf.mxu0  ;;  %v19125_v13 = vld [vmem:[#allocation107_spill] sm:$0xff]  ;;  %vm19127_vm8 = vmmov %vm19106_vm3 }
 0x867   :  { %13517 = vpow2.f32 %v5755_v1  ;;  %v5619_v17 = vmax.f32 %v5617_v46, %v5618_v35  ;;  %v5627_v45 = vrot.slane %v5626_v14, 1  ;;  %v5802_v59 = vrot.slane %v5801_v2, 2  ;;  %vm19128_vm6 = vmmov %vm19106_vm3 }
 0x868   :  { %v5817_v39 = vadd.f32 %v5816_v41, %v5815_v31  ;;  %v5633_v48 = vmax.f32 %v5631_v12, %v5632_v44  ;;  %v5810_v33 = vadd.f32 %v5809_v52, %v5808_v56  ;;  %vm19123_vm14 = vcmp.gt.f32.partialorder %v19122_v26, 0.0  ;;  %v19129_v31 = vld [vmem:[#allocation108_spill] sm:$0xff] }
 0x869   :  { %v5713_v54 = vsub.f32 %v16181_v34, %v5619_v17  ;;  %v5714_v8 = vsub.f32 %v16173_v30, %v5619_v17  ;;  %v5628_v63 = vmax.f32 %v5626_v14, %v5627_v45  ;;  %v16249_v23 = vpop.eup %13507  ;;  %v16256_v9 = vadd.f32 %v5802_v59, %v5801_v2  ;;  %v12882_v17 = vpop.f32.mrf.mxu0 }
 0x86a   :  { %v5818_v21 = vrot.slane %v5817_v39, 4  ;;  %v5634_v28 = vrot.slane %v5633_v48, 2  ;;  %v16251_v40 = vpop.eup %13509  ;;  %v5824_v53 = vsel %vm19121_vm13, %v16249_v23, 0.0  ;;  %v16264_v12 = vsel %vm19123_vm14, %v16211_v22, -1e+30  ;;  %vm19131_vm14 = vmmov %vm19106_vm3 }
 0x86b   :  { %v5757_v37 = vmul.f32 1.442695, %v5713_v54  ;;  %v5759_v47 = vmul.f32 1.442695, %v5714_v8  ;;  %v5715_v27 = vsub.f32 %v16195_v15, %v5628_v63  ;;  %v5825_v30 = vsel %vm19106_vm3, %v16251_v40, 0.0  ;;  %v5486_v26 = vpop.f32.mrf.mxu0 }
 0x86c   :  { %v5716_v34 = vsub.f32 %v16185_v61, %v5628_v63  ;;  %v5826_v58 = vadd.f32 %v5825_v30, %v5824_v53  ;;  %v5635_v32 = vmax.f32 %v5633_v48, %v5634_v28  ;;  %v5811_v62 = vrot.slane %v5810_v33, 2 }
 0x86d   :  { %13519 = vpow2.f32 %v5757_v37  ;;  %v5761_v55 = vmul.f32 1.442695, %v5715_v27  ;;  %v5819_v46 = vadd.f32 %v5818_v21, %v5817_v39  ;;  %v5639_v22 = vsel %vm19124_vm10, %v16264_v12, -inf  ;;  %vm19132_vm10 = vmmov %vm19106_vm3  ;;  %v19133_v37 = vld [vmem:[#allocation109_spill] sm:$0xff] }
 0x86e   :  { %13521 = vpow2.f32 %v5759_v47  ;;  %v5763_v15 = vmul.f32 1.442695, %v5716_v34  ;;  %v5827_v24 = vrot.slane %v5826_v58, 4  ;;  %v5636_v2 = vrot.slane %v5635_v32, 1 }
 0x86f   :  { %13523 = vpow2.f32 %v5761_v55  ;;  %vm19126_vm12 = vcmp.gt.f32.partialorder %v19125_v13, 0.0  ;;  %vm19130_vm13 = vcmp.gt.f32.partialorder %v19129_v31, 0.0  ;;  %v16287_v45 = vadd.f32 %v5811_v62, %v5810_v33 }
 0x870   :  { %v16266_v56 = vpop.eup %13511  ;;  %13525 = vpow2.f32 %v5763_v15  ;;  %v16274_v1 = vsel %vm19126_vm12, %v16221_v51, -1e+30  ;;  %v5637_v44 = vmax.f32 %v5635_v32, %v5636_v2  ;;  %v16285_v41 = vsel %vm19130_vm13, %v16227_v6, -1e+30  ;;  %vm19138_vm13 = vmmov %vm19106_vm3 }
 0x871   :  { %v16276_v35 = vpop.eup %13513  ;;  %v5833_v14 = vsel %vm19127_vm8, %v16266_v56, 0.0  ;;  %v5638_v52 = vsel %vm19128_vm6, %v16274_v1, -inf  ;;  %v5820_v59 = vrot.slane %v5819_v46, 2  ;;  %v5828_v54 = vadd.f32 %v5827_v24, %v5826_v58  ;;  %vm19135_vm8 = vmmov %vm19106_vm3 }
 0x872   :  { %v5834_v51 = vsel %vm19106_vm3, %v16276_v35, 0.0  ;;  %v5640_v39 = vmax.f32 %v5638_v52, %v5639_v22  ;;  %v5717_v63 = vsub.f32 %v16209_v4, %v5637_v44  ;;  %v5718_v21 = vsub.f32 %v16199_v49, %v5637_v44  ;;  %v19136_v49 = vld [vmem:[#allocation110_spill] sm:$0xff]  ;;  %v19139_v52 = vld [vmem:[#allocation111_spill] sm:$0xff] }
 0x873   :  { %v16291_v48 = vpop.eup %13515  ;;  %v5835_v8 = vadd.f32 %v5834_v51, %v5833_v14  ;;  %v5648_v53 = vsel %vm19132_vm10, %v16285_v41, -inf  ;;  %vm19134_vm12 = vcmp.gt.f32.partialorder %v19133_v37, 0.0  ;;  %vm19137_vm6 = vcmp.gt.f32.partialorder %v19136_v49, 0.0  ;;  %v12885_v51 = vpop.f32.mrf.mxu0  ;;  %vm19141_vm10 = vmmov %vm19106_vm3 }
 0x874   :  { %v16295_v28 = vpop.eup %13517  ;;  %v5842_v6 = vsel %vm19131_vm14, %v16291_v48, 0.0  ;;  %v5641_v33 = vrot.slane %v5640_v39, 4  ;;  %v16304_v47 = vsel %vm19134_vm12, %v16239_v43, -1e+30  ;;  %v5765_v30 = vmul.f32 1.442695, %v5717_v63 }
 0x875   :  { %v5836_v27 = vrot.slane %v5835_v8, 4  ;;  %v5843_v4 = vsel %vm19135_vm8, %v16295_v28, 0.0  ;;  %v16310_v34 = vsel %vm19137_vm6, %v12879_v18, -1e+30  ;;  %v5767_v55 = vmul.f32 1.442695, %v5718_v21  ;;  %vm19144_vm8 = vmmov %vm19106_vm3 }
 0x876   :  { %v5844_v58 = vadd.f32 %v5843_v4, %v5842_v6  ;;  %v5642_v32 = vmax.f32 %v5640_v39, %v5641_v33  ;;  %v5647_v62 = vsel %vm19138_vm13, %v16304_v47, -inf  ;;  %13527 = vpow2.f32 %v5765_v30  ;;  %v19142_v6 = vld [vmem:[#allocation112_spill] sm:$0xff]  ;;  %vm19145_vm6 = vmmov %vm19106_vm3 }
 0x877   :  { %v5837_v43 = vadd.f32 %v5836_v27, %v5835_v8  ;;  %v5649_v24 = vmax.f32 %v5647_v62, %v5648_v53  ;;  %v5829_v2 = vrot.slane %v5828_v54, 2  ;;  %13529 = vpow2.f32 %v5767_v55  ;;  %v19146_v55 = vld [vmem:[#allocation113_spill] sm:$0xff] }
 0x878   :  { %v5845_v22 = vrot.slane %v5844_v58, 4  ;;  %v5643_v13 = vrot.slane %v5642_v32, 2  ;;  %v16315_v14 = vadd.f32 %v5820_v59, %v5819_v46  ;;  %v5657_v44 = vsel %vm19106_vm3, %v16310_v34, -inf }
 0x879   :  { %v5650_v18 = vrot.slane %v5649_v24, 4  ;;  %vm19140_vm14 = vcmp.gt.f32.partialorder %v19139_v52, 0.0  ;;  %v5838_v8 = vrot.slane %v5837_v43, 2  ;;  %vm19143_vm12 = vcmp.gt.f32.partialorder %v19142_v6, 0.0 }
 0x87a   :  { %v16321_v31 = vsel %vm19140_vm14, %v5476_v29, -1e+30  ;;  %v16323_v39 = vpop.eup %13519  ;;  %v5644_v63 = vmax.f32 %v5642_v32, %v5643_v13  ;;  %v16329_v46 = vsel %vm19143_vm12, %v12882_v17, -1e+30  ;;  %v5846_v33 = vadd.f32 %v5845_v22, %v5844_v58  ;;  %vm19148_vm14 = vmmov %vm19106_vm3 }
 0x87b   :  { %v5656_v21 = vsel %vm19141_vm10, %v16321_v31, -inf  ;;  %v16331_v59 = vpop.eup %13521  ;;  %v5851_v53 = vsel %vm19144_vm8, %v16323_v39, 0.0  ;;  %v5651_v29 = vmax.f32 %v5649_v24, %v5650_v18  ;;  %v16337_v4 = vadd.f32 %v5829_v2, %v5828_v54  ;;  %v5496_v54 = vpop.f32.mrf.mxu0  ;;  %vm19149_vm10 = vmmov %vm19106_vm3 }
 0x87c   :  { %v5658_v37 = vmax.f32 %v5656_v21, %v5657_v44  ;;  %v16335_v27 = vpop.eup %13523  ;;  %v5852_v30 = vsel %vm19145_vm6, %v16331_v59, 0.0  ;;  %v5645_v49 = vrot.slane %v5644_v63, 1  ;;  %vm19147_vm13 = vcmp.gt.f32.partialorder %v19146_v55, 0.0  ;;  %vm19150_vm12 = vmmov %vm19106_vm3 }
 0x87d   :  { %v16343_v17 = vsel %vm19147_vm13, %v5486_v26, -1e+30  ;;  %v16345_v32 = vpop.eup %13525  ;;  %v5853_v58 = vadd.f32 %v5852_v30, %v5851_v53  ;;  %v5860_v62 = vsel %vm19106_vm3, %v16335_v27, 0.0  ;;  %v5652_v24 = vrot.slane %v5651_v29, 2  ;;  %v12888_v57 = vpop.f32.mrf.mxu0  ;;  %vm19151_vm8 = vmmov %vm19106_vm3 }
 0x87e   :  { %v5666_v22 = vsel %vm19148_vm14, %v16329_v46, -inf  ;;  %v16351_v2 = vadd.f32 %v5838_v8, %v5837_v43  ;;  %v5861_v13 = vsel %vm19149_vm10, %v16345_v32, 0.0  ;;  %v5646_v18 = vmax.f32 %v5644_v63, %v5645_v49  ;;  %vm19155_vm14 = vmmov %vm19106_vm3 }
 0x87f   :  { %v5659_v44 = vrot.slane %v5658_v37, 4  ;;  %v5847_v26 = vrot.slane %v5846_v33, 2  ;;  %v5854_v52 = vrot.slane %v5853_v58, 4  ;;  %v5653_v21 = vmax.f32 %v5651_v29, %v5652_v24  ;;  %vm19156_vm10 = vmmov %vm19106_vm3 }
 0x880   :  { %v5665_v6 = vsel %vm19150_vm12, %v16343_v17, -inf  ;;  %v5862_v53 = vadd.f32 %v5861_v13, %v5860_v62  ;;  %v5719_v30 = vsub.f32 %v16274_v1, %v5646_v18  ;;  %v5720_v55 = vsub.f32 %v16264_v12, %v5646_v18 }
 0x881   :  { %v5660_v15 = vmax.f32 %v5658_v37, %v5659_v44  ;;  %v5822_v43 = vrot.slane %v16315_v14, 1  ;;  %v5855_v8 = vadd.f32 %v5854_v52, %v5853_v58  ;;  %v5654_v61 = vrot.slane %v5653_v21, 1 }
 0x882   :  { %v5667_v10 = vmax.f32 %v5665_v6, %v5666_v22  ;;  %v5831_v63 = vrot.slane %v16337_v4, 1  ;;  %v5769_v49 = vmul.f32 1.442695, %v5719_v30  ;;  %v5771_v19 = vmul.f32 1.442695, %v5720_v55 }
 0x883   :  { %v5661_v29 = vrot.slane %v5660_v15, 2  ;;  %v16362_v5 = vadd.f32 %v5847_v26, %v5846_v33  ;;  %v5655_v62 = vmax.f32 %v5653_v21, %v5654_v61  ;;  %v16364_v13 = vpop.eup %13527  ;;  %v5856_v12 = vrot.slane %v5855_v8, 2  ;;  %v5506_v33 = vpop.f32.mrf.mxu0 }
 0x884   :  { %v5668_v1 = vrot.slane %v5667_v10, 4  ;;  %v5863_v37 = vrot.slane %v5862_v53, 4  ;;  %13531 = vpow2.f32 %v5769_v49  ;;  %v16366_v18 = vpop.eup %13529  ;;  %v5869_v22 = vsel %vm19151_vm8, %v16364_v13, 0.0  ;;  %vm19158_vm8 = vmmov %vm19106_vm3 }
 0x885   :  { %v5662_v58 = vmax.f32 %v5660_v15, %v5661_v29  ;;  %13533 = vpow2.f32 %v5771_v19  ;;  %vm19152_vm6 = vcmp.gt.f32.partialorder %v19008_v0, 0.0  ;;  %vm19153_vm13 = vcmp.gt.f32.partialorder %v14807_v16, 0.0 }
 0x886   :  { %v16372_v44 = vsel %vm19152_vm6, %v12885_v51, -1e+30  ;;  %v16376_v61 = vsel %vm19153_vm13, %v5496_v54, -1e+30  ;;  %v5870_v26 = vsel %vm19106_vm3, %v16366_v18, 0.0  ;;  %v5721_v15 = vsub.f32 %v16304_v47, %v5655_v62  ;;  %vm19160_vm13 = vmmov %vm19106_vm3 }
 0x887   :  { %v5722_v52 = vsub.f32 %v16285_v41, %v5655_v62  ;;  %v5663_v21 = vrot.slane %v5662_v58, 1  ;;  %v5849_v6 = vrot.slane %v16362_v5, 1  ;;  %v5871_v19 = vadd.f32 %v5870_v26, %v5869_v22  ;;  %v12891_v62 = vpop.f32.mrf.mxu0 }
 0x888   :  { %v5669_v30 = vmax.f32 %v5667_v10, %v5668_v1  ;;  %v19154_v0 = vrot.slane %v16256_v9, 1  ;;  %v5864_v16 = vadd.f32 %v5863_v37, %v5862_v53  ;;  %v5773_v54 = vmul.f32 1.442695, %v5721_v15 }
 0x889   :  { %v5775_v55 = vmul.f32 1.442695, %v5722_v52  ;;  %v5664_v49 = vmax.f32 %v5662_v58, %v5663_v21  ;;  %v16386_v29 = vadd.f32 %v5856_v12, %v5855_v8  ;;  %v5675_v47 = vsel %vm19155_vm14, %v16372_v44, -inf  ;;  %v5516_v21 = vpop.f32.mrf.mxu0 }
 0x88a   :  { %v5805_v51 = vadd.f32 %v19154_v0, %v16256_v9  ;;  %v5670_v24 = vrot.slane %v5669_v30, 2  ;;  %v5674_v41 = vsel %vm19156_vm10, %v16376_v61, -inf  ;;  %13535 = vpow2.f32 %v5773_v54  ;;  %vm19164_vm10 = vmmov %vm19158_vm8 }
 0x88b   :  { %v5723_v10 = vsub.f32 %v16321_v31, %v5664_v49  ;;  %v5724_v1 = vsub.f32 %v16310_v34, %v5664_v49  ;;  %v5676_v9 = vmax.f32 %v5674_v41, %v5675_v47  ;;  %v5872_v53 = vrot.slane %v5871_v19, 4 }
 0x88c   :  { %13537 = vpow2.f32 %v5775_v55  ;;  %v5671_v37 = vmax.f32 %v5669_v30, %v5670_v24  ;;  %vm19157_vm12 = vcmp.gt.f32.partialorder %v14816_v42, 0.0  ;;  %v5865_v12 = vrot.slane %v5864_v16, 2 }
 0x88d   :  { %v16396_v8 = vsel %vm19157_vm12, %v12888_v57, -1e+30  ;;  %v5777_v58 = vmul.f32 1.442695, %v5723_v10  ;;  %v5779_v22 = vmul.f32 1.442695, %v5724_v1  ;;  %v5873_v30 = vadd.f32 %v5872_v53, %v5871_v19  ;;  %vm19165_vm12 = vmmov %vm19158_vm8 }
 0x88e   :  { %v5677_v26 = vrot.slane %v5676_v9, 4  ;;  %v5858_v15 = vrot.slane %v16386_v29, 1  ;;  %v5672_v52 = vrot.slane %v5671_v37, 1  ;;  %v5684_v31 = vsel %vm19158_vm8, %v16396_v8, -inf }
 0x88f   :  { %vm19159_vm6 = vcmp.gt.f32.partialorder %v19012_v60, 0.0  ;;  %13539 = vpow2.f32 %v5777_v58  ;;  %vm19161_vm3 = vcmp.gt.f32.partialorder %v14859_v50, 0.0  ;;  %vm19162_vm14 = vcmp.gt.f32.partialorder %v14873_v7, 0.0 }
 0x890   :  { %v16403_v34 = vsel %vm19159_vm6, %v5506_v33, -1e+30  ;;  %v5678_v24 = vmax.f32 %v5676_v9, %v5677_v26  ;;  %v16409_v57 = vsel %vm19161_vm3, %v12891_v62, -1e+30  ;;  %13541 = vpow2.f32 %v5779_v22  ;;  %vm19166_vm6 = vmmov %vm19158_vm8 }
 0x891   :  { %v5683_v42 = vsel %vm19160_vm13, %v16403_v34, -inf  ;;  %v5673_v0 = vmax.f32 %v5671_v37, %v5672_v52  ;;  %v16413_v60 = vsel %vm19162_vm14, %v5516_v21, -1e+30  ;;  %13543 = vrcp.f32 %v5805_v51  ;;  %v16418_v47 = vpop.eup %13531  ;;  %vm19168_vm13 = vmmov %vm19166_vm6 }
 0x892   :  { %v5685_v54 = vmax.f32 %v5683_v42, %v5684_v31  ;;  %v5679_v55 = vrot.slane %v5678_v24, 2  ;;  %v19163_v33 = vrot.slane %v16287_v45, 1  ;;  %v5693_v62 = vsel %vm19164_vm10, %v16409_v57, -inf  ;;  %v16424_v10 = vpop.eup %13533  ;;  %vm19169_vm3 = vmmov %vm19166_vm6 }
 0x893   :  { %v5725_v50 = vsub.f32 %v16343_v17, %v5673_v0  ;;  %v5726_v41 = vsub.f32 %v16329_v46, %v5673_v0  ;;  %v5878_v7 = vsel %vm19165_vm12, %v16418_v47, 0.0  ;;  %v5692_v1 = vsel %vm19158_vm8, %v16413_v60, -inf  ;;  %vm19170_vm14 = vmmov %vm19169_vm3 }
 0x894   :  { %v5814_v49 = vadd.f32 %v19163_v33, %v16287_v45  ;;  %v5686_v19 = vrot.slane %v5685_v54, 4  ;;  %v5680_v51 = vmax.f32 %v5678_v24, %v5679_v55  ;;  %v5879_v45 = vsel %vm19166_vm6, %v16424_v10, 0.0  ;;  %vm19171_vm10 = vmmov %vm19169_vm3 }
 0x895   :  { %v5781_v17 = vmul.f32 1.442695, %v5725_v50  ;;  %v5783_v9 = vmul.f32 1.442695, %v5726_v41  ;;  %v5880_v53 = vadd.f32 %v5879_v45, %v5878_v7  ;;  %v5694_v58 = vmax.f32 %v5692_v1, %v5693_v62  ;;  %vm19172_vm12 = vmmov %vm19169_vm3 }
 0x896   :  { %13545 = vrcp.f32 %v5814_v49  ;;  %v5687_v46 = vmax.f32 %v5685_v54, %v5686_v19  ;;  %v5681_v37 = vrot.slane %v5680_v51, 1  ;;  %v5823_v22 = vadd.f32 %v5822_v43, %v16315_v14  ;;  %vm19173_vm8 = vmmov %vm19169_vm3 }
 0x897   :  { %v16435_v26 = vadd.f32 %v5865_v12, %v5864_v16  ;;  %13547 = vpow2.f32 %v5781_v17  ;;  %v5832_v31 = vadd.f32 %v5831_v63, %v16337_v4  ;;  %v5881_v21 = vrot.slane %v5880_v53, 4  ;;  %v16440_v0 = vpop.eup %13535  ;;  %vm19174_vm6 = vmmov %vm19169_vm3 }
 0x898   :  { %v5688_v52 = vrot.slane %v5687_v46, 2  ;;  %13549 = vpow2.f32 %v5783_v9  ;;  %v5682_v24 = vmax.f32 %v5680_v51, %v5681_v37  ;;  %v5695_v42 = vrot.slane %v5694_v58, 4 }
 0x899   :  { %v5874_v54 = vrot.slane %v5873_v30, 2  ;;  %13551 = vrcp.f32 %v5823_v22  ;;  %v19167_v14 = vrot.slane %v16351_v2, 1  ;;  %v16445_v16 = vpop.eup %13537  ;;  %v5882_v12 = vadd.f32 %v5881_v21, %v5880_v53 }
 0x89a   :  { %v5689_v55 = vmax.f32 %v5687_v46, %v5688_v52  ;;  %v5887_v33 = vsel %vm19168_vm13, %v16440_v0, 0.0  ;;  %v5727_v4 = vsub.f32 %v16376_v61, %v5682_v24  ;;  %v5728_v63 = vsub.f32 %v16372_v44, %v5682_v24  ;;  %vm19175_vm13 = vmmov %vm19169_vm3 }
 0x89b   :  { %v5841_v43 = vadd.f32 %v19167_v14, %v16351_v2  ;;  %v5888_v49 = vsel %vm19169_vm3, %v16445_v16, 0.0  ;;  %v5696_v41 = vmax.f32 %v5694_v58, %v5695_v42  ;;  %13553 = vrcp.f32 %v5832_v31 }
 0x89c   :  { %v5690_v50 = vrot.slane %v5689_v55, 1  ;;  %v5867_v19 = vrot.slane %v16435_v26, 1  ;;  %v5889_v62 = vadd.f32 %v5888_v49, %v5887_v33  ;;  %v5785_v2 = vmul.f32 1.442695, %v5727_v4  ;;  %v16454_v51 = vpop.eup %13539 }
 0x89d   :  { %v5787_v7 = vmul.f32 1.442695, %v5728_v63  ;;  %v5875_v1 = vadd.f32 %v5874_v54, %v5873_v30  ;;  %v5697_v17 = vrot.slane %v5696_v41, 2  ;;  %13555 = vrcp.f32 %v5841_v43  ;;  %v16456_v61 = vpop.eup %13541 }
 0x89e   :  { %v5691_v45 = vmax.f32 %v5689_v55, %v5690_v50  ;;  %v5883_v44 = vrot.slane %v5882_v12, 2  ;;  %v5890_v9 = vrot.slane %v5889_v62, 4  ;;  %v5896_v46 = vsel %vm19170_vm14, %v16454_v51, 0.0  ;;  %v13544_v53 = vpop.eup %13543  ;;  %vm19176_vm14 = vmmov %vm19169_vm3 }
 0x89f   :  { %13557 = vpow2.f32 %v5785_v2  ;;  %v5897_v37 = vsel %vm19171_vm10, %v16456_v61, 0.0  ;;  %v5698_v31 = vmax.f32 %v5696_v41, %v5697_v17  ;;  %v5850_v21 = vadd.f32 %v5849_v6, %v16362_v5  ;;  %vm19177_vm10 = vmmov %vm19169_vm3 }
 0x8a0   :  { %13559 = vpow2.f32 %v5787_v7  ;;  %v5729_v58 = vsub.f32 %v16403_v34, %v5691_v45  ;;  %v5730_v30 = vsub.f32 %v16396_v8, %v5691_v45  ;;  %v5891_v22 = vadd.f32 %v5890_v9, %v5889_v62 }
 0x8a1   :  { %v5898_v52 = vadd.f32 %v5897_v37, %v5896_v46  ;;  %v5957_v55 = vmul.f32 %v13544_v53, %v16203_v11  ;;  %v5958_v14 = vmul.f32 %v13544_v53, %v16213_v36  ;;  %v5884_v43 = vadd.f32 %v5883_v44, %v5882_v12 }
 0x8a2   :  { %v5789_v42 = vmul.f32 1.442695, %v5729_v58  ;;  %v5791_v54 = vmul.f32 1.442695, %v5730_v30  ;;  %v5699_v4 = vrot.slane %v5698_v31, 1  ;;  %v5892_v8 = vrot.slane %v5891_v22, 2 }
 0x8a3   :  { %v13546_v24 = vpop.eup %13545  ;;  %v5899_v33 = vrot.slane %v5898_v52, 4  ;;  %12894 = vmatprep.mubr.msk.f32.mxu1 %vm19172_vm12, %v5957_v55  ;;  %v5859_v5 = vadd.f32 %v5858_v15, %v16386_v29  ;;  %v5885_v29 = vrot.slane %v5884_v43, 1  ;;  %v5868_v62 = vadd.f32 %v5867_v19, %v16435_v26  ;;  %vm19178_vm12 = vmmov %vm19169_vm3 }
 0x8a4   :  { %v5959_v34 = vmul.f32 %v13546_v24, %v16225_v38  ;;  %13561 = vpow2.f32 %v5789_v42  ;;  %v16474_v6 = vpop.eup %13547  ;;  %v5700_v11 = vmax.f32 %v5698_v31, %v5699_v4  ;;  %12895 = vmatmul.mubr.msk.f32.vlgmr.msra.gmra.mxu1 %vm19173_vm8, %v5958_v14  ;;  %v5960_v36 = vmul.f32 %v13546_v24, %v16229_v25  ;;  %vm19179_vm8 = vmmov %vm19169_vm3 }
 0x8a5   :  { %v5900_v63 = vadd.f32 %v5899_v33, %v5898_v52  ;;  %13563 = vpow2.f32 %v5791_v54  ;;  %v16478_v12 = vpop.eup %13549  ;;  %v5876_v38 = vrot.slane %v5875_v1, 1  ;;  %v5905_v49 = vsel %vm19174_vm6, %v16474_v6, 0.0  ;;  %vm19180_vm6 = vmmov %vm19169_vm3 }
 0x8a6   :  { %12897 = vmatprep.mubr.msk.f32.mxu1 %vm19175_vm13, %v5959_v34  ;;  %13565 = vrcp.f32 %v5850_v21  ;;  %v13552_v50 = vpop.eup %13551  ;;  %v5906_v15 = vsel %vm19169_vm3, %v16478_v12, 0.0  ;;  %v5731_v41 = vsub.f32 %v16413_v60, %v5700_v11  ;;  %v5893_v2 = vadd.f32 %v5892_v8, %v5891_v22  ;;  %vm19181_vm13 = vmmov %vm19169_vm3 }
 0x8a7   :  { %v5907_v25 = vadd.f32 %v5906_v15, %v5905_v49  ;;  %v5732_v7 = vsub.f32 %v16409_v57, %v5700_v11  ;;  %v5961_v45 = vmul.f32 %v13552_v50, %v16237_v20  ;;  %v5901_v44 = vrot.slane %v5900_v63, 2 }
 0x8a8   :  { %v13554_v17 = vpop.eup %13553  ;;  %v5793_v9 = vmul.f32 1.442695, %v5731_v41  ;;  %12898 = vmatmul.mubr.msk.f32.gmra.mxu1 %vm19176_vm14, %v5960_v36  ;;  %v5962_v46 = vmul.f32 %v13552_v50, %v16241_v3  ;;  %13567 = vrcp.f32 %v5859_v5  ;;  %v5877_v26 = vadd.f32 %v5876_v38, %v5875_v1  ;;  %vm19182_vm14 = vmmov %vm19169_vm3 }
 0x8a9   :  { %v5908_v53 = vrot.slane %v5907_v25, 4  ;;  %v5795_v37 = vmul.f32 1.442695, %v5732_v7  ;;  %12900 = vmatprep.mubr.msk.f32.mxu1 %vm19177_vm10, %v5961_v45  ;;  %v5963_v60 = vmul.f32 %v13554_v17, %v16249_v23  ;;  %v5894_v20 = vrot.slane %v5893_v2, 1  ;;  %vm19183_vm10 = vmmov %vm19169_vm3 }
 0x8aa   :  { %v13556_v19 = vpop.eup %13555  ;;  %13569 = vpow2.f32 %v5793_v9  ;;  %v5886_v30 = vadd.f32 %v5885_v29, %v5884_v43  ;;  %v5902_v52 = vadd.f32 %v5901_v44, %v5900_v63  ;;  %v5964_v31 = vmul.f32 %v13554_v17, %v16251_v40 }
 0x8ab   :  { %v5909_v58 = vadd.f32 %v5908_v53, %v5907_v25  ;;  %13571 = vpow2.f32 %v5795_v37  ;;  %v5965_v21 = vmul.f32 %v13556_v19, %v16266_v56  ;;  %v5966_v14 = vmul.f32 %v13556_v19, %v16276_v35 }
 0x8ac   :  { %v16493_v57 = vpop.eup %13557  ;;  %12901 = vmatmul.mubr.msk.f32.gmra.mxu1 %vm19179_vm8, %v5962_v46  ;;  %13573 = vrcp.f32 %v5868_v62  ;;  %v5903_v54 = vrot.slane %v5902_v52, 1  ;;  %v5895_v56 = vadd.f32 %v5894_v20, %v5893_v2  ;;  %vm19185_vm8 = vmmov %vm19169_vm3 }
 0x8ad   :  { %v16495_v22 = vpop.eup %13559  ;;  %v5914_v3 = vsel %vm19178_vm12, %v16493_v57, 0.0  ;;  %v5910_v23 = vrot.slane %v5909_v58, 2  ;;  %12903 = vmatprep.mubr.msk.f32.mxu1 %vm19181_vm13, %v5963_v60  ;;  %13575 = vrcp.f32 %v5877_v26  ;;  %vm19184_vm12 = vmmov %vm19169_vm3 }
 0x8ae   :  { %v5915_v1 = vsel %vm19180_vm6, %v16495_v22, 0.0  ;;  %13577 = vrcp.f32 %v5886_v30  ;;  %v5904_v36 = vadd.f32 %v5903_v54, %v5902_v52  ;;  %vm19186_vm6 = vmmov %vm19169_vm3 }
 0x8af   :  { %v5916_v24 = vadd.f32 %v5915_v1, %v5914_v3  ;;  %v5911_v43 = vadd.f32 %v5910_v23, %v5909_v58  ;;  %13579 = vrcp.f32 %v5895_v56  ;;  %vm19187_vm13 = vmmov %vm19169_vm3  ;;  %v6561_v56 = vld [vmem:[%s19202_s6 + $0x10] sm:$0xff] }
 0x8b0   :  { %12904 = vmatmul.mubr.msk.f32.gmra.mxu1 %vm19169_vm3, %v5964_v31  ;;  %13581 = vrcp.f32 %v5904_v36  ;;  %v19210_v36 = vld [vmem:[#allocation48_spill] sm:$0xff] }
 0x8b1   :  { %v16505_v42 = vpop.eup %13561  ;;  %v5917_v55 = vrot.slane %v5916_v24, 4  ;;  %12906 = vmatprep.mubr.msk.f32.mxu1 %vm19183_vm10, %v5965_v21  ;;  %v5912_v49 = vrot.slane %v5911_v43, 1  ;;  %vm19189_vm10 = vmmov %vm19169_vm3 }
 0x8b2   :  { %v16509_v40 = vpop.eup %13563  ;;  %v5923_v33 = vsel %vm19182_vm14, %v16505_v42, 0.0  ;;  %vm19188_vm14 = vmmov %vm19169_vm3 }
 0x8b3   :  { %v13566_v4 = vpop.eup %13565  ;;  %v5918_v34 = vadd.f32 %v5917_v55, %v5916_v24  ;;  %v5924_v8 = vsel %vm19184_vm12, %v16509_v40, 0.0  ;;  %vm19190_vm12 = vmmov %vm19169_vm3 }
 0x8b4   :  { %v5925_v5 = vadd.f32 %v5924_v8, %v5923_v33  ;;  %v5967_v63 = vmul.f32 %v13566_v4, %v16291_v48  ;;  %12907 = vmatmul.mubr.msk.f32.gmra.mxu1 %vm19185_vm8, %v5966_v14  ;;  %v5968_v35 = vmul.f32 %v13566_v4, %v16295_v28  ;;  %vm19191_vm8 = vmmov %vm19169_vm3  ;;  %v6566_v33 = vld [vmem:[%s19200_s30 + $0x10] sm:$0xff]  ;;  %v6565_v4 = vld [vmem:[%s19200_s30 + $0x8] sm:$0xff] }
 0x8b5   :  { %v5919_v11 = vrot.slane %v5918_v34, 2  ;;  %v13568_v38 = vpop.eup %13567  ;;  %v6564_v8 = vld [vmem:[%s19200_s30] sm:$0xff] }
 0x8b6   :  { %v5926_v50 = vrot.slane %v5925_v5, 4  ;;  %12909 = vmatprep.mubr.msk.f32.mxu1 %vm19186_vm6, %v5967_v63  ;;  %v5969_v15 = vmul.f32 %v13568_v38, %v16323_v39  ;;  %v5970_v28 = vmul.f32 %v13568_v38, %v16331_v59  ;;  %v5913_v39 = vadd.f32 %v5912_v49, %v5911_v43  ;;  %vm19192_vm6 = vmmov %vm19169_vm3  ;;  %v249_v63 = vld [vmem:[%s19208_s20] sm:$0xff]  ;;  %v19211_v49 = vld [vmem:[#allocation49_spill] sm:$0xff] }
 0x8b7   :  { %v5920_v29 = vadd.f32 %v5919_v11, %v5918_v34  ;;  %v16521_v41 = vpop.eup %13569  ;;  %v6560_v34 = vld [vmem:[%s19202_s6 + $0x8] sm:$0xff]  ;;  %v7015_v38 = vrot.slane %v249_v63, %v19210_v36 }
 0x8b8   :  { %v5927_v62 = vadd.f32 %v5926_v50, %v5925_v5  ;;  %v16523_v2 = vpop.eup %13571  ;;  %v5932_v48 = vsel %vm19187_vm13, %v16521_v41, 0.0  ;;  %12910 = vmatmul.mubr.msk.f32.gmra.mxu1 %vm19169_vm3, %v5968_v35  ;;  %13583 = vrcp.f32 %v5913_v39  ;;  %vm19193_vm13 = vmmov %vm19169_vm3  ;;  %v6559_v5 = vld [vmem:[%s19202_s6] sm:$0xff]  ;;  %v7026_v50 = vrot.slane %v249_v63, %v19211_v49 }
 0x8b9   :  { %v13574_v25 = vpop.eup %13573  ;;  %v5921_v7 = vrot.slane %v5920_v29, 1  ;;  %v5933_v17 = vsel %vm19188_vm14, %v16523_v2, 0.0  ;;  %12912 = vmatprep.mubr.msk.f32.mxu1 %vm19189_vm10, %v5969_v15  ;;  %vm19194_vm14 = vmmov %vm19169_vm3  ;;  %v19209_v11 = vld [vmem:[#allocation47_spill] sm:$0xff] }
 0x8ba   :  { %v5928_v45 = vrot.slane %v5927_v62, 2  ;;  %v13576_v44 = vpop.eup %13575  ;;  %v5934_v9 = vadd.f32 %v5933_v17, %v5932_v48  ;;  %v5971_v46 = vmul.f32 %v13574_v25, %v16335_v27  ;;  %v5972_v59 = vmul.f32 %v13574_v25, %v16345_v32  ;;  %vm19195_vm10 = vmmov %vm19169_vm3  ;;  %v16591_v17 = vld [vmem:[%s19208_s20 + $0x8] sm:$0xff] }
 0x8bb   :  { %v5973_v26 = vmul.f32 %v13576_v44, %v16364_v13  ;;  %v5922_v19 = vadd.f32 %v5921_v7, %v5920_v29  ;;  %v13578_v20 = vpop.eup %13577  ;;  %v5974_v27 = vmul.f32 %v13576_v44, %v16366_v18  ;;  %v7004_v35 = vrot.slane %v249_v63, %v19209_v11  ;;  %v19212_v29 = vld [vmem:[#allocation50_spill] sm:$0xff] }
 0x8bc   :  { %v5929_v53 = vadd.f32 %v5928_v45, %v5927_v62  ;;  %v5935_v37 = vrot.slane %v5934_v9, 4  ;;  %12913 = vmatmul.mubr.msk.f32.gmra.mxu1 %vm19190_vm12, %v5970_v28  ;;  %v5975_v52 = vmul.f32 %v13578_v20, %v16418_v47  ;;  %v13580_v3 = vpop.eup %13579  ;;  %v5976_v13 = vmul.f32 %v13578_v20, %v16424_v10  ;;  %vm19196_vm12 = vmmov %vm19169_vm3  ;;  %v19215_v28 = vld [vmem:[#allocation53_spill] sm:$0xff]  ;;  %v19216_v7 = vld [vmem:[#allocation54_spill] sm:$0xff] }
 0x8bd   :  { %12915 = vmatprep.mubr.msk.f32.mxu1 %vm19191_vm8, %v5971_v46  ;;  %13585 = vrcp.f32 %v5922_v19  ;;  %v13582_v1 = vpop.eup %13581  ;;  %v5977_v21 = vmul.f32 %v13580_v3, %v16440_v0  ;;  %v5978_v47 = vmul.f32 %v13580_v3, %v16445_v16  ;;  %vm19197_vm8 = vmmov %vm19169_vm3  ;;  %7010 = vbcast.lane.b32.xlu1 %v7004_v35, 264  ;;  %v7037_v15 = vrot.slane %v249_v63, %v19212_v29  ;;  %v19217_v46 = vld [vmem:[#allocation114_spill] sm:$0xff] }
 0x8be   :  { %v5930_v60 = vrot.slane %v5929_v53, 1  ;;  %v5936_v58 = vadd.f32 %v5935_v37, %v5934_v9  ;;  %v5979_v24 = vmul.f32 %v13582_v1, %v16454_v51  ;;  %v5980_v10 = vmul.f32 %v13582_v1, %v16456_v61  ;;  %7006 = vbcast.lane.b32.xlu0 %v7004_v35, 256 }
 0x8bf   :  { %v7070_v25 = vrot.slane %v249_v63, %v19215_v28  ;;  %v7081_v45 = vrot.slane %v249_v63, %v19216_v7  ;;  %v7092_v39 = vrot.slane %v16591_v17, %v19209_v11  ;;  %v7103_v44 = vrot.slane %v16591_v17, %v19210_v36 }
 0x8c0   :  { %v5937_v30 = vrot.slane %v5936_v58, 2  ;;  %12916 = vmatmul.mubr.msk.f32.gmra.mxu1 %vm19192_vm6, %v5972_v59  ;;  %v5931_v32 = vadd.f32 %v5930_v60, %v5929_v53  ;;  %vm19198_vm6 = vmmov %vm19169_vm3  ;;  %v19218_v59 = vld [vmem:[#allocation115_spill] sm:$0xff]  ;;  %v7125_v3 = vrot.slane %v16591_v17, %v19212_v29 }
 0x8c1   :  { %12918 = vmatprep.mubr.msk.f32.mxu1 %vm19193_vm13, %v5973_v26  ;;  %vm19199_vm13 = vmmov %vm19169_vm3  ;;  %7021 = vbcast.lane.b32.xlu1 %v7015_v38, 264  ;;  %v7114_v26 = vrot.slane %v16591_v17, %v19211_v49 }
 0x8c2   :  { %v5938_v31 = vadd.f32 %v5937_v30, %v5936_v58  ;;  %13587 = vrcp.f32 %v5931_v32  ;;  %7017 = vbcast.lane.b32.xlu0 %v7015_v38, 256 }
 0x8c4   :  { %v5939_v23 = vrot.slane %v5938_v31, 1  ;;  %12919 = vmatmul.mubr.msk.f32.gmra.mxu1 %vm19169_vm3, %v5974_v27 }
 0x8c5   :  { %12921 = vmatprep.mubr.msk.f32.mxu1 %vm19194_vm14, %v5975_v52  ;;  %v13584_v54 = vpop.eup %13583  ;;  %vm19201_vm14 = vmmov %vm19169_vm3  ;;  %7032 = vbcast.lane.b32.xlu1 %v7026_v50, 264 }
 0x8c6   :  { %v5940_v18 = vadd.f32 %v5939_v23, %v5938_v31  ;;  %v5981_v0 = vmul.f32 %v13584_v54, %v16474_v6  ;;  %v5982_v14 = vmul.f32 %v13584_v54, %v16478_v12  ;;  %7028 = vbcast.lane.b32.xlu0 %v7026_v50, 256 }
 0x8c8   :  { %12922 = vmatmul.mubr.msk.f32.gmra.mxu1 %vm19195_vm10, %v5976_v13  ;;  %13589 = vrcp.f32 %v5940_v18  ;;  %vm19203_vm10 = vmmov %vm19169_vm3 }
 0x8c9   :  { %12924 = vmatprep.mubr.msk.f32.mxu1 %vm19196_vm12, %v5977_v21  ;;  %vm19204_vm12 = vmmov %vm19169_vm3  ;;  %7043 = vbcast.lane.b32.xlu1 %v7037_v15, 264 }
 0x8ca   :  { %v13586_v55 = vpop.eup %13585  ;;  %7039 = vbcast.lane.b32.xlu0 %v7037_v15, 256  ;;  %v7158_v15 = vrot.slane %v16591_v17, %v19215_v28 }
 0x8cb   :  { %v5983_v16 = vmul.f32 %v13586_v55, %v16493_v57  ;;  %v5984_v61 = vmul.f32 %v13586_v55, %v16495_v22 }
 0x8cc   :  { %12925 = vmatmul.mubr.msk.f32.gmra.mxu1 %vm19197_vm8, %v5978_v47  ;;  %vm19205_vm8 = vmmov %vm19169_vm3 }
 0x8cd   :  { %12927 = vmatprep.mubr.msk.f32.mxu1 %vm19198_vm6, %v5979_v24  ;;  %vm19206_vm6 = vmmov %vm19169_vm3 }
 0x8cf   :  { %v13588_v51 = vpop.eup %13587 }
 0x8d0   :  { %12928 = vmatmul.mubr.msk.f32.gmra.mxu1 %vm19199_vm13, %v5980_v10  ;;  %v5985_v6 = vmul.f32 %v13588_v51, %v16505_v42  ;;  %v5986_v12 = vmul.f32 %v13588_v51, %v16509_v40  ;;  %vm19207_vm13 = vmmov %vm19169_vm3  ;;  %v6567_v42 = vld [vmem:[%s19200_s30 + $0x18] sm:$0x3f]  ;;  %s19590_s30 = sld [smem:[#allocation45_spill]] }
 0x8d1   :  { %12930 = vmatprep.mubr.msk.f32.mxu1 %vm19169_vm3, %v5981_v0  ;;  %12953 = vmatprep.subr.msk.mxu0 %vm18708_vm2, %v6567_v42  ;;  %v6562_v40 = vld [vmem:[%s19202_s6 + $0x18] sm:$0x3f] }
 0x8d2   :  { %12954 = vmatpush3.msk.msra.mxu0 %vm18708_vm2, %v6567_v42  ;;  %12942 = vmatprep.subr.msk.mxu1 %vm18708_vm2, %v6562_v40 }
 0x8d3   :  { %12943 = vmatpush3.msk.msra.mxu1 %vm18708_vm2, %v6562_v40  ;;  %12955 = vmatprep.subr.mxu0 %v6566_v33 }
 0x8d4   :  { %12931 = vmatmul.mubr.msk.f32.gmra.mxu1 %vm19201_vm14, %v5982_v14  ;;  %12956 = vmatpush3.msra.mxu0 %v6566_v33 }
 0x8d5   :  { %12933 = vmatprep.mubr.msk.f32.mxu1 %vm19203_vm10, %v5983_v16  ;;  %v13590_v43 = vpop.eup %13589  ;;  %12944 = vmatprep.subr.mxu1 %v6561_v56 }
 0x8d6   :  { %v5987_v57 = vmul.f32 %v13590_v43, %v16521_v41  ;;  %v5988_v22 = vmul.f32 %v13590_v43, %v16523_v2  ;;  %12945 = vmatpush3.msra.mxu1 %v6561_v56  ;;  %12957 = vmatprep.subr.mxu0 %v6565_v4  ;;  %v19213_v41 = vld [vmem:[#allocation51_spill] sm:$0xff]  ;;  %v19214_v2 = vld [vmem:[#allocation52_spill] sm:$0xff] }
 0x8d7   :  { %12958 = vmatpush3.msra.mxu0 %v6565_v4  ;;  %12946 = vmatprep.subr.mxu1 %v6560_v34  ;;  %v7048_v62 = vrot.slane %v249_v63, %v19213_v41  ;;  %v7059_v48 = vrot.slane %v249_v63, %v19214_v2  ;;  %v7136_v10 = vrot.slane %v16591_v17, %v19213_v41 }
 0x8d8   :  { %12934 = vmatmul.mubr.msk.f32.gmra.mxu1 %vm19204_vm12, %v5984_v61  ;;  %12959 = vmatprep.subr.mxu0 %v6564_v8 }
 0x8d9   :  { %12936 = vmatprep.mubr.msk.f32.mxu1 %vm19205_vm8, %v5985_v6  ;;  %12947 = vmatpush3.msra.mxu1 %v6560_v34 }
 0x8da   :  { %12960 = vmatpush3.msra.mxu0 %v6564_v8  ;;  %12948 = vmatprep.subr.mxu1 %v6559_v5 }
 0x8db   :  { %12949 = vmatpush3.msra.mxu1 %v6559_v5  ;;  %7054 = vbcast.lane.b32.xlu1 %v7048_v62, 264 }
 0x8dc   :  { %12937 = vmatmul.mubr.msk.f32.gmra.mxu1 %vm19206_vm6, %v5986_v12  ;;  %7050 = vbcast.lane.b32.xlu0 %v7048_v62, 256 }
 0x8dd   :  { %12939 = vmatprep.mubr.msk.f32.mxu1 %vm19207_vm13, %v5987_v57 }
 0x8df   :  { %7065 = vbcast.lane.b32.xlu1 %v7059_v48, 264 }
 0x8e0   :  { %12940 = vmatmul.mubr.msk.f32.gmra.mxu1 %vm19169_vm3, %v5988_v22  ;;  %7061 = vbcast.lane.b32.xlu0 %v7059_v48, 256  ;;  %v7147_v22 = vrot.slane %v16591_v17, %v19214_v2 }
 0x8e3   :  { %7076 = vbcast.lane.b32.xlu1 %v7070_v25, 264 }
 0x8e4   :  { %7072 = vbcast.lane.b32.xlu0 %v7070_v25, 256 }
 0x8e7   :  { %7087 = vbcast.lane.b32.xlu1 %v7081_v45, 264 }
 0x8e8   :  { %7083 = vbcast.lane.b32.xlu0 %v7081_v45, 256 }
 0x8eb   :  { %7098 = vbcast.lane.b32.xlu1 %v7092_v39, 264 }
 0x8ec   :  { %7094 = vbcast.lane.b32.xlu0 %v7092_v39, 256 }
 0x8ef   :  { %7109 = vbcast.lane.b32.xlu1 %v7103_v44, 264 }
 0x8f0   :  { %7105 = vbcast.lane.b32.xlu0 %v7103_v44, 256 }
 0x8f3   :  { %7120 = vbcast.lane.b32.xlu1 %v7114_v26, 264 }
 0x8f4   :  { %7116 = vbcast.lane.b32.xlu0 %v7114_v26, 256  ;;  %v7169_v26 = vrot.slane %v16591_v17, %v19216_v7 }
 0x8f7   :  { %7131 = vbcast.lane.b32.xlu1 %v7125_v3, 264 }
 0x8f8   :  { %7127 = vbcast.lane.b32.xlu0 %v7125_v3, 256 }
 0x8fb   :  { %7142 = vbcast.lane.b32.xlu1 %v7136_v10, 264 }
 0x8fc   :  { %7138 = vbcast.lane.b32.xlu0 %v7136_v10, 256 }
 0x8ff   :  { %7153 = vbcast.lane.b32.xlu1 %v7147_v22, 264 }
 0x900   :  { %7149 = vbcast.lane.b32.xlu0 %v7147_v22, 256 }
 0x903   :  { %7164 = vbcast.lane.b32.xlu1 %v7158_v15, 264 }
 0x904   :  { %7160 = vbcast.lane.b32.xlu0 %v7158_v15, 256 }
 0x907   :  { %7175 = vbcast.lane.b32.xlu1 %v7169_v26, 264 }
 0x908   :  { %7171 = vbcast.lane.b32.xlu0 %v7169_v26, 256 }
 0x964   :  { %v12896_v9 = vpop.f32.mrf.mxu1 }
 0x965   :  { %v6314_v53 = vmul.f32 %v12896_v9, %v19217_v46 }
 0x966   :  { %v6154_v37 = vpop.f32.mrf.mxu1 }
 0x967   :  { %v6313_v60 = vmul.f32 %v6154_v37, %v19218_v59  ;;  %v6346_v20 = vsel %vm18707_vm9, %v6314_v53, 0.0 }
 0x968   :  { %v12899_v19 = vpop.f32.mrf.mxu1 }
 0x969   :  { %v6345_v58 = vsel %vm18707_vm9, %v6313_v60, 0.0  ;;  %v6316_v30 = vmul.f32 %v12899_v19, %v19217_v46 }
 0x96a   :  { %v6347_v27 = vadd.f32 %v6346_v20, %v6345_v58  ;;  %v6164_v52 = vpop.f32.mrf.mxu1 }
 0x96b   :  { %v6315_v32 = vmul.f32 %v6164_v52, %v19218_v59  ;;  %v6355_v13 = vsel %vm18707_vm9, %v6316_v30, 0.0 }
 0x96c   :  { %v6348_v31 = vrot.slane %v6347_v27, 4  ;;  %v12902_v23 = vpop.f32.mrf.mxu1 }
 0x96d   :  { %v6354_v1 = vsel %vm18707_vm9, %v6315_v32, 0.0  ;;  %v6318_v21 = vmul.f32 %v12902_v23, %v19217_v46 }
 0x96e   :  { %v6349_v18 = vadd.f32 %v6348_v31, %v6347_v27  ;;  %v6356_v47 = vadd.f32 %v6355_v13, %v6354_v1  ;;  %v6174_v24 = vpop.f32.mrf.mxu1 }
 0x96f   :  { %v6317_v54 = vmul.f32 %v6174_v24, %v19218_v59  ;;  %v6364_v16 = vsel %vm18707_vm9, %v6318_v21, 0.0 }
 0x970   :  { %v6357_v0 = vrot.slane %v6356_v47, 4  ;;  %v12905_v55 = vpop.f32.mrf.mxu1  ;;  %v6350_v14 = vrot.slane %v6349_v18, 2 }
 0x971   :  { %v6363_v51 = vsel %vm18707_vm9, %v6317_v54, 0.0  ;;  %v6320_v61 = vmul.f32 %v12905_v55, %v19217_v46 }
 0x972   :  { %v6358_v6 = vadd.f32 %v6357_v0, %v6356_v47  ;;  %v6365_v43 = vadd.f32 %v6364_v16, %v6363_v51  ;;  %v6184_v12 = vpop.f32.mrf.mxu1  ;;  %v6351_v56 = vadd.f32 %v6350_v14, %v6349_v18  ;;  %v16635_v18 = vld [vmem:[%s19219_s4] ss:$0 sm:$0xff] }
 0x973   :  { %v6319_v57 = vmul.f32 %v6184_v12, %v19218_v59  ;;  %v6373_v4 = vsel %vm18707_vm9, %v6320_v61, 0.0 }
 0x974   :  { %v6359_v42 = vrot.slane %v6358_v6, 2  ;;  %v6366_v40 = vrot.slane %v6365_v43, 4  ;;  %v12908_v33 = vpop.f32.mrf.mxu1  ;;  %v6352_v9 = vrot.slane %v6351_v56, 1 }
 0x975   :  { %v6372_v34 = vsel %vm18707_vm9, %v6319_v57, 0.0  ;;  %v6322_v35 = vmul.f32 %v12908_v33, %v19217_v46 }
 0x976   :  { %v6360_v8 = vadd.f32 %v6359_v42, %v6358_v6  ;;  %v6367_v5 = vadd.f32 %v6366_v40, %v6365_v43  ;;  %v6374_v63 = vadd.f32 %v6373_v4, %v6372_v34  ;;  %v6194_v38 = vpop.f32.mrf.mxu1  ;;  %v6353_v1 = vadd.f32 %v6352_v9, %v6351_v56 }
 0x977   :  { %v6321_v50 = vmul.f32 %v6194_v38, %v19218_v59  ;;  %v6382_v37 = vsel %vm18707_vm9, %v6322_v35, 0.0 }
 0x978   :  { %v6361_v62 = vrot.slane %v6360_v8, 1  ;;  %v6368_v48 = vrot.slane %v6367_v5, 2  ;;  %v6375_v25 = vrot.slane %v6374_v63, 4  ;;  %v12911_v45 = vpop.f32.mrf.mxu1  ;;  %v6495_v57 = vadd.f32 %v16635_v18, %v6353_v1 }
 0x979   :  { %v6381_v39 = vsel %vm18707_vm9, %v6321_v50, 0.0  ;;  %v6324_v44 = vmul.f32 %v12911_v45, %v19217_v46 }
 0x97a   :  { %v6369_v53 = vadd.f32 %v6368_v48, %v6367_v5  ;;  %v6204_v60 = vpop.f32.mrf.mxu1  ;;  %v6376_v19 = vadd.f32 %v6375_v25, %v6374_v63  ;;  %v6383_v20 = vadd.f32 %v6382_v37, %v6381_v39  ;;  %v6362_v30 = vadd.f32 %v6361_v62, %v6360_v8 }
 0x97b   :  { %v6323_v58 = vmul.f32 %v6204_v60, %v19218_v59  ;;  %v6391_v52 = vsel %vm18707_vm9, %v6324_v44, 0.0  ;;  %vm6511_vm10 = vcmp.gt.f32.partialorder %v6495_v57, 0.0  ;;  %v6527_v9 = vmul.f32 0.01, %v6495_v57 }
 0x97c   :  { %v6370_v27 = vrot.slane %v6369_v53, 1  ;;  %v12914_v32 = vpop.f32.mrf.mxu1  ;;  %v6377_v3 = vrot.slane %v6376_v19, 2  ;;  %v6384_v31 = vrot.slane %v6383_v20, 4  ;;  %v6496_v10 = vadd.f32 %v16635_v18, %v6362_v30 }
 0x97d   :  { %v6390_v23 = vsel %vm18707_vm9, %v6323_v58, 0.0  ;;  %v6326_v13 = vmul.f32 %v12914_v32, %v19217_v46  ;;  %v6543_v1 = vsel %vm6511_vm10, %v6495_v57, %v6527_v9 }
 0x97e   :  { %v6392_v17 = vadd.f32 %v6391_v52, %v6390_v23  ;;  %v6214_v21 = vpop.f32.mrf.mxu1  ;;  %v6378_v47 = vadd.f32 %v6377_v3, %v6376_v19  ;;  %v6385_v24 = vadd.f32 %v6384_v31, %v6383_v20  ;;  %v6371_v14 = vadd.f32 %v6370_v27, %v6369_v53 }
 0x97f   :  { %v6325_v54 = vmul.f32 %v6214_v21, %v19218_v59  ;;  %v6400_v51 = vsel %vm18707_vm9, %v6326_v13, 0.0  ;;  %v6528_v33 = vmul.f32 0.01, %v6496_v10  ;;  %vm6512_vm14 = vcmp.gt.f32.partialorder %v6496_v10, 0.0 }
 0x980   :  { %v6393_v0 = vrot.slane %v6392_v17, 4  ;;  %v12917_v55 = vpop.f32.mrf.mxu1  ;;  %v6386_v16 = vrot.slane %v6385_v24, 2  ;;  %v6379_v22 = vrot.slane %v6378_v47, 1  ;;  %v6497_v5 = vadd.f32 %v16635_v18, %v6371_v14 }
 0x981   :  { %v6399_v61 = vsel %vm18707_vm9, %v6325_v54, 0.0  ;;  %v6328_v42 = vmul.f32 %v12917_v55, %v19217_v46  ;;  %v6544_v25 = vsel %vm6512_vm14, %v6496_v10, %v6528_v33 }
 0x982   :  { %v6394_v6 = vadd.f32 %v6393_v0, %v6392_v17  ;;  %v6401_v43 = vadd.f32 %v6400_v51, %v6399_v61  ;;  %v6224_v12 = vpop.f32.mrf.mxu1  ;;  %v6387_v56 = vadd.f32 %v6386_v16, %v6385_v24  ;;  %v6380_v62 = vadd.f32 %v6379_v22, %v6378_v47 }
 0x983   :  { %v6327_v40 = vmul.f32 %v6224_v12, %v19218_v59  ;;  %v6409_v38 = vsel %vm18707_vm9, %v6328_v42, 0.0  ;;  %v6529_v53 = vmul.f32 0.01, %v6497_v5  ;;  %vm6513_vm12 = vcmp.gt.f32.partialorder %v6497_v5, 0.0 }
 0x984   :  { %v6395_v4 = vrot.slane %v6394_v6, 2  ;;  %v6402_v34 = vrot.slane %v6401_v43, 4  ;;  %v12920_v8 = vpop.f32.mrf.mxu1  ;;  %v6388_v45 = vrot.slane %v6387_v56, 1  ;;  %v6595_v30 = vrot.slane %v6544_v25, 7 }
 0x985   :  { %v6408_v50 = vsel %vm18707_vm9, %v6327_v40, 0.0  ;;  %v6498_v27 = vadd.f32 %v16635_v18, %v6380_v62  ;;  %v6330_v31 = vmul.f32 %v12920_v8, %v19217_v46  ;;  %v16653_v17 = vsel %vm6513_vm12, %v6497_v5, %v6529_v53 }
 0x986   :  { %v6396_v63 = vadd.f32 %v6395_v4, %v6394_v6  ;;  %v6403_v35 = vadd.f32 %v6402_v34, %v6401_v43  ;;  %v6234_v15 = vpop.f32.mrf.mxu1  ;;  %v6410_v48 = vadd.f32 %v6409_v38, %v6408_v50  ;;  %v6389_v32 = vadd.f32 %v6388_v45, %v6387_v56 }
 0x987   :  { %v6329_v19 = vmul.f32 %v6234_v15, %v19218_v59  ;;  %v6596_v61 = vsel %vm2652_vm1, %v6595_v30, %v6543_v1  ;;  %v6530_v6 = vmul.f32 0.01, %v6498_v27  ;;  %v6418_v12 = vsel %vm18707_vm9, %v6330_v31, 0.0 }
 0x988   :  { %v6404_v39 = vrot.slane %v6403_v35, 2  ;;  %v12923_v44 = vpop.f32.mrf.mxu1  ;;  %v6397_v37 = vrot.slane %v6396_v63, 1  ;;  %v6411_v60 = vrot.slane %v6410_v48, 4  ;;  %v6499_v43 = vadd.f32 %v16635_v18, %v6389_v32 }
 0x989   :  { %v6332_v20 = vmul.f32 %v12923_v44, %v19217_v46  ;;  %v6417_v24 = vsel %vm18707_vm9, %v6329_v19, 0.0  ;;  %vm6514_vm8 = vcmp.gt.f32.partialorder %v6498_v27, 0.0 }
 0x98a   :  { %v6405_v26 = vadd.f32 %v6404_v39, %v6403_v35  ;;  %v6244_v58 = vpop.f32.mrf.mxu1  ;;  %v6412_v52 = vadd.f32 %v6411_v60, %v6410_v48  ;;  %v6398_v21 = vadd.f32 %v6397_v37, %v6396_v63  ;;  %v6419_v40 = vadd.f32 %v6418_v12, %v6417_v24 }
 0x98b   :  { %v6331_v23 = vmul.f32 %v6244_v58, %v19218_v59  ;;  %v6427_v54 = vsel %vm18707_vm9, %v6332_v20, 0.0  ;;  %v6597_v63 = vrot.slane %v16653_v17, 6  ;;  %v6546_v15 = vsel %vm6514_vm8, %v6498_v27, %v6530_v6 }
 0x98c   :  { %v6406_v3 = vrot.slane %v6405_v26, 1  ;;  %v12926_v13 = vpop.f32.mrf.mxu1  ;;  %v6413_v47 = vrot.slane %v6412_v52, 2  ;;  %v6500_v56 = vadd.f32 %v16635_v18, %v6398_v21  ;;  %vm6515_vm6 = vcmp.gt.f32.partialorder %v6499_v43, 0.0 }
 0x98d   :  { %v6426_v10 = vsel %vm18707_vm9, %v6331_v23, 0.0  ;;  %v6334_v0 = vmul.f32 %v12926_v13, %v19217_v46  ;;  %v6531_v62 = vmul.f32 0.01, %v6499_v43  ;;  %v6420_v39 = vrot.slane %v6419_v40, 4 }
 0x98e   :  { %v6254_v55 = vpop.f32.mrf.mxu1  ;;  %v6407_v14 = vadd.f32 %v6406_v3, %v6405_v26  ;;  %v6414_v16 = vadd.f32 %v6413_v47, %v6412_v52  ;;  %v6428_v51 = vadd.f32 %v6427_v54, %v6426_v10  ;;  %v6532_v53 = vmul.f32 0.01, %v6500_v56 }
 0x98f   :  { %v6333_v57 = vmul.f32 %v6254_v55, %v19218_v59  ;;  %v6436_v4 = vsel %vm18707_vm9, %v6334_v0, 0.0  ;;  %vm6516_vm13 = vcmp.gt.f32.partialorder %v6500_v56, 0.0  ;;  %v6599_v27 = vrot.slane %v6546_v15, 5 }
 0x990   :  { %v12929_v22 = vpop.f32.mrf.mxu1  ;;  %v6415_v42 = vrot.slane %v6414_v16, 1  ;;  %v6429_v33 = vrot.slane %v6428_v51, 4  ;;  %v6501_v35 = vadd.f32 %v16635_v18, %v6407_v14  ;;  %v6547_v3 = vsel %vm6515_vm6, %v6499_v43, %v6531_v62 }
 0x991   :  { %v6435_v34 = vsel %vm18707_vm9, %v6333_v57, 0.0  ;;  %v6336_v8 = vmul.f32 %v12929_v22, %v19217_v46  ;;  %v6421_v31 = vadd.f32 %v6420_v39, %v6419_v40  ;;  %v6548_v24 = vsel %vm6516_vm13, %v6500_v56, %v6532_v53 }
 0x992   :  { %v6264_v5 = vpop.f32.mrf.mxu1  ;;  %v6416_v38 = vadd.f32 %v6415_v42, %v6414_v16  ;;  %v6437_v50 = vadd.f32 %v6436_v4, %v6435_v34  ;;  %v6430_v44 = vadd.f32 %v6429_v33, %v6428_v51  ;;  %v6533_v30 = vmul.f32 0.01, %v6501_v35 }
 0x993   :  { %v6335_v48 = vmul.f32 %v6264_v5, %v19218_v59  ;;  %v6445_v37 = vsel %vm18707_vm9, %v6336_v8, 0.0  ;;  %vm6517_vm3 = vcmp.gt.f32.partialorder %v6501_v35, 0.0  ;;  %v6598_v55 = vsel %vm2655_vm0, %v6597_v63, %v6596_v61 }
 0x994   :  { %v12932_v25 = vpop.f32.mrf.mxu1  ;;  %v6502_v45 = vadd.f32 %v16635_v18, %v6416_v38  ;;  %v6438_v9 = vrot.slane %v6437_v50, 4  ;;  %v6431_v23 = vrot.slane %v6430_v44, 2  ;;  %v6549_v0 = vsel %vm6517_vm3, %v6501_v35, %v6533_v30 }
 0x995   :  { %v6444_v60 = vsel %vm18707_vm9, %v6335_v48, 0.0  ;;  %v6338_v58 = vmul.f32 %v12932_v25, %v19217_v46  ;;  %v6601_v43 = vrot.slane %v6547_v3, 4  ;;  %v6603_v42 = vrot.slane %v6548_v24, 3 }
 0x996   :  { %v6274_v26 = vpop.f32.mrf.mxu1  ;;  %v6439_v19 = vadd.f32 %v6438_v9, %v6437_v50  ;;  %v6446_v20 = vadd.f32 %v6445_v37, %v6444_v60  ;;  %v6534_v1 = vmul.f32 0.01, %v6502_v45  ;;  %vm6518_vm14 = vcmp.gt.f32.partialorder %v6502_v45, 0.0 }
 0x997   :  { %v6337_v52 = vmul.f32 %v6274_v26, %v19218_v59  ;;  %v6454_v10 = vsel %vm18707_vm9, %v6338_v58, 0.0  ;;  %v6432_v12 = vadd.f32 %v6431_v23, %v6430_v44  ;;  %v6605_v4 = vrot.slane %v6549_v0, 2 }
 0x998   :  { %v12935_v32 = vpop.f32.mrf.mxu1  ;;  %v6447_v13 = vrot.slane %v6446_v20, 4  ;;  %v6440_v54 = vrot.slane %v6439_v19, 2  ;;  %v6550_v22 = vsel %vm6518_vm14, %v6502_v45, %v6534_v1  ;;  %v6422_v8 = vrot.slane %v6421_v31, 2 }
 0x999   :  { %v6453_v17 = vsel %vm18707_vm9, %v6337_v52, 0.0  ;;  %v6340_v21 = vmul.f32 %v12935_v32, %v19217_v46  ;;  %v6600_v63 = vsel %vm2658_vm11, %v6599_v27, %v6598_v55  ;;  %v6607_v45 = vrot.slane %v6550_v22, 1 }
 0x99a   :  { %v6284_v47 = vpop.f32.mrf.mxu1  ;;  %v6448_v14 = vadd.f32 %v6447_v13, %v6446_v20  ;;  %v6455_v16 = vadd.f32 %v6454_v10, %v6453_v17  ;;  %v6441_v5 = vadd.f32 %v6440_v54, %v6439_v19  ;;  %v6602_v15 = vsel %vm2661_vm4, %v6601_v43, %v6600_v63 }
 0x99b   :  { %v6339_v51 = vmul.f32 %v6284_v47, %v19218_v59  ;;  %v6463_v57 = vsel %vm18707_vm9, %v6340_v21, 0.0  ;;  %v6604_v25 = vsel %vm2664_vm5, %v6603_v42, %v6602_v15  ;;  %v6433_v39 = vrot.slane %v6432_v12, 1 }
 0x99c   :  { %v12938_v6 = vpop.f32.mrf.mxu1  ;;  %v6449_v40 = vrot.slane %v6448_v14, 2  ;;  %v6456_v33 = vrot.slane %v6455_v16, 4  ;;  %v6606_v9 = vsel %vm18741_vm7, %v6605_v4, %v6604_v25  ;;  %v6423_v37 = vadd.f32 %v6422_v8, %v6421_v31 }
 0x99d   :  { %v6462_v56 = vsel %vm18707_vm9, %v6339_v51, 0.0  ;;  %v6342_v50 = vmul.f32 %v12938_v6, %v19217_v46  ;;  %v6442_v60 = vrot.slane %v6441_v5, 1  ;;  %v16691_v19 = vsel %vm18740_vm15, %v6607_v45, %v6606_v9 }
 0x99e   :  { %v6294_v34 = vpop.f32.mrf.mxu1  ;;  %v6464_v61 = vadd.f32 %v6463_v57, %v6462_v56  ;;  %v6450_v35 = vadd.f32 %v6449_v40, %v6448_v14  ;;  %v6457_v38 = vadd.f32 %v6456_v33, %v6455_v16  ;;  %19220 = vst [vmem:[#allocation116_spill] sm:$0xff] %v16691_v19  ;;  %12950 = vmatprep.mubr.msk.f32.mxu1 %vm18707_vm9, %v16691_v19  ;;  %v6424_v24 = vrot.slane %v6423_v37, 1 }
 0x99f   :  { %v6341_v53 = vmul.f32 %v6294_v34, %v19218_v59  ;;  %v6472_v27 = vsel %vm18707_vm9, %v6342_v50, 0.0  ;;  %12961 = vmatprep.mubr.msk.f32.mxu0 %vm18707_vm9, %v16691_v19  ;;  %v6434_v23 = vadd.f32 %v6433_v39, %v6432_v12  ;;  %v6443_v17 = vadd.f32 %v6442_v60, %v6441_v5 }
 0x9a0   :  { %v12941_v62 = vpop.f32.mrf.mxu1  ;;  %v6465_v48 = vrot.slane %v6464_v61, 4  ;;  %v6458_v44 = vrot.slane %v6457_v38, 2  ;;  %v6451_v58 = vrot.slane %v6450_v35, 1  ;;  %v6425_v57 = vadd.f32 %v6424_v24, %v6423_v37 }
 0x9a1   :  { %v6471_v52 = vsel %vm18707_vm9, %v6341_v53, 0.0  ;;  %v6344_v31 = vmul.f32 %v12941_v62, %v19217_v46  ;;  %v6504_v6 = vadd.f32 %v16635_v18, %v6434_v23  ;;  %v6505_v46 = vadd.f32 %v16635_v18, %v6443_v17 }
 0x9a2   :  { %v6466_v26 = vadd.f32 %v6465_v48, %v6464_v61  ;;  %v6304_v20 = vpop.f32.mrf.mxu1  ;;  %v6459_v30 = vadd.f32 %v6458_v44, %v6457_v38  ;;  %v6473_v3 = vadd.f32 %v6472_v27, %v6471_v52  ;;  %v6452_v54 = vadd.f32 %v6451_v58, %v6450_v35 }
 0x9a3   :  { %v6343_v1 = vmul.f32 %v6304_v20, %v19218_v59  ;;  %v6481_v10 = vsel %vm18707_vm9, %v6344_v31, 0.0  ;;  %v6536_v56 = vmul.f32 0.01, %v6504_v6  ;;  %vm6520_vm10 = vcmp.gt.f32.partialorder %v6504_v6, 0.0 }
 0x9a4   :  { %v6467_v32 = vrot.slane %v6466_v26, 2  ;;  %v6460_v13 = vrot.slane %v6459_v30, 1  ;;  %v6474_v47 = vrot.slane %v6473_v3, 4  ;;  %v6506_v22 = vadd.f32 %v16635_v18, %v6452_v54 }
 0x9a5   :  { %v6480_v0 = vsel %vm18707_vm9, %v6343_v1, 0.0  ;;  %v6537_v34 = vmul.f32 0.01, %v6505_v46  ;;  %v6503_v5 = vadd.f32 %v16635_v18, %v6425_v57  ;;  %vm6521_vm12 = vcmp.gt.f32.partialorder %v6505_v46, 0.0 }
 0x9a6   :  { %v6468_v21 = vadd.f32 %v6467_v32, %v6466_v26  ;;  %v6461_v55 = vadd.f32 %v6460_v13, %v6459_v30  ;;  %v6475_v16 = vadd.f32 %v6474_v47, %v6473_v3  ;;  %v6482_v51 = vadd.f32 %v6481_v10, %v6480_v0  ;;  %v6570_v0 = vld [vmem:[%s19221_s15] sm:$0xf] }
 0x9a7   :  { %v6538_v61 = vmul.f32 0.01, %v6506_v22  ;;  %vm6522_vm8 = vcmp.gt.f32.partialorder %v6506_v22, 0.0  ;;  %v6552_v50 = vsel %vm6520_vm10, %v6504_v6, %v6536_v56  ;;  %v6553_v48 = vsel %vm6521_vm12, %v6505_v46, %v6537_v34 }
 0x9a8   :  { %v6469_v14 = vrot.slane %v6468_v21, 1  ;;  %v6476_v12 = vrot.slane %v6475_v16, 2  ;;  %v6483_v59 = vrot.slane %v6482_v51, 4  ;;  %v6507_v42 = vadd.f32 %v16635_v18, %v6461_v55  ;;  %v247_v55 = vld [vmem:[%s19222_s16] sm:$0xff] }
 0x9a9   :  { %vm6519_vm3 = vcmp.gt.f32.partialorder %v6503_v5, 0.0  ;;  %v6535_v45 = vmul.f32 0.01, %v6503_v5  ;;  %v6554_v39 = vsel %vm6522_vm8, %v6506_v22, %v6538_v61  ;;  %v6609_v9 = vrot.slane %v6552_v50, 7 }
 0x9aa   :  { %v6470_v43 = vadd.f32 %v6469_v14, %v6468_v21  ;;  %v6477_v40 = vadd.f32 %v6476_v12, %v6475_v16  ;;  %v6484_v33 = vadd.f32 %v6483_v59, %v6482_v51  ;;  %v6539_v35 = vmul.f32 0.01, %v6507_v42  ;;  %v16736_v59 = vpop.permute.xlu1 %7010 }
 0x9ab   :  { %vm6523_vm6 = vcmp.gt.f32.partialorder %v6507_v42, 0.0  ;;  %v6611_v60 = vrot.slane %v6553_v48, 6  ;;  %v6613_v58 = vrot.slane %v6554_v39, 5  ;;  %v6551_v27 = vsel %vm6519_vm3, %v6503_v5, %v6535_v45 }
 0x9ac   :  { %v6508_v4 = vadd.f32 %v16635_v18, %v6470_v43  ;;  %v6478_v8 = vrot.slane %v6477_v40, 1  ;;  %v6485_v63 = vrot.slane %v6484_v33, 2  ;;  %v6555_v53 = vsel %vm6523_vm6, %v6507_v42, %v6539_v35  ;;  %v16733_v43 = vpop.permute.xlu0 %7006 }
 0x9ad   :  { %v6615_v52 = vrot.slane %v6555_v53, 4  ;;  %v6610_v3 = vsel %vm2652_vm1, %v6609_v9, %v6551_v27  ;;  %vm7440_vm12 = vcmask 1043456   ;;  %v7672_v14 = vrot.slane %v247_v55, %v19209_v11  ;;  %19224 = vst [vmem:[#allocation56_spill] sm:$0xff] %v16733_v43 }
 0x9ae   :  { %v6479_v38 = vadd.f32 %v6478_v8, %v6477_v40  ;;  %v6540_v15 = vmul.f32 0.01, %v6508_v4  ;;  %v6486_v62 = vadd.f32 %v6485_v63, %v6484_v33  ;;  %vm6524_vm13 = vcmp.gt.f32.partialorder %v6508_v4, 0.0  ;;  %12964 = vmatprep.subr.msk.mxu1 %vm7440_vm12, %v6570_v0  ;;  %v16741_v42 = vpop.permute.xlu1 %7021  ;;  %v248_v33 = vld [vmem:[%s19222_s16 + $0x8] sm:$0xff] }
 0x9af   :  { %v6612_v13 = vsel %vm2655_vm0, %v6611_v60, %v6610_v3  ;;  %7678 = vbcast.lane.b32.xlu1 %v7672_v14, 264  ;;  %7674 = vbcast.lane.b32.xlu0 %v7672_v14, 256  ;;  %v7683_v16 = vrot.slane %v247_v55, %v19210_v36  ;;  %v7694_v51 = vrot.slane %v247_v55, %v19211_v49  ;;  %vm7343_vm8 = vcmask 31744  }
 0x9b0   :  { %v6509_v25 = vadd.f32 %v16635_v18, %v6479_v38  ;;  %v6487_v44 = vrot.slane %v6486_v62, 1  ;;  %v6556_v26 = vsel %vm6524_vm13, %v6508_v4, %v6540_v15  ;;  %v6614_v17 = vsel %vm2658_vm11, %v6613_v58, %v6612_v13  ;;  %v16738_v57 = vpop.permute.xlu0 %7017  ;;  %19226 = vst [vmem:[#allocation58_spill] sm:$0xff] %v16741_v42  ;;  %v12006_v15 = vld [vmem:[%s19228_s18] ss:$0 sm:$0xff] }
 0x9b1   :  { %v6617_v31 = vrot.slane %v6556_v26, 3  ;;  %v6616_v47 = vsel %vm2661_vm4, %v6615_v52, %v6614_v17  ;;  %v7705_v6 = vrot.slane %v247_v55, %v19212_v29  ;;  %v7716_v46 = vrot.slane %v247_v55, %v19213_v41  ;;  %19225 = vst [vmem:[#allocation55_spill] sm:$0xff] %v16738_v57 }
 0x9b2   :  { %vm6525_vm14 = vcmp.gt.f32.partialorder %v6509_v25, 0.0  ;;  %v6541_v37 = vmul.f32 0.01, %v6509_v25  ;;  %v6488_v20 = vadd.f32 %v6487_v44, %v6486_v62  ;;  %v7727_v12 = vrot.slane %v247_v55, %v19214_v2  ;;  %v16748_v34 = vpop.permute.xlu1 %7032 }
 0x9b3   :  { %v6618_v24 = vsel %vm2664_vm5, %v6617_v31, %v6616_v47  ;;  %7689 = vbcast.lane.b32.xlu1 %v7683_v16, 264  ;;  %7685 = vbcast.lane.b32.xlu0 %v7683_v16, 256  ;;  %v7738_v22 = vrot.slane %v247_v55, %v19215_v28  ;;  %v7749_v40 = vrot.slane %v247_v55, %v19216_v7 }
 0x9b4   :  { %v6557_v30 = vsel %vm6525_vm14, %v6509_v25, %v6541_v37  ;;  %v6510_v32 = vadd.f32 %v16635_v18, %v6488_v20  ;;  %v16745_v56 = vpop.permute.xlu0 %7028  ;;  %v7760_v4 = vrot.slane %v248_v33, %v19209_v11  ;;  %19229 = vst [vmem:[#allocation60_spill] sm:$0xff] %v16748_v34  ;;  %v7771_v5 = vrot.slane %v248_v33, %v19210_v36  ;;  %v12002_v20 = vld [vmem:[%s19234_s22] ss:$0 sm:$0xff] }
 0x9b5   :  { %v6619_v1 = vrot.slane %v6557_v30, 2  ;;  %19227 = vst [vmem:[#allocation57_spill] sm:$0xff] %v16745_v56  ;;  %v7782_v63 = vrot.slane %v248_v33, %v19211_v49  ;;  %v7793_v50 = vrot.slane %v248_v33, %v19212_v29  ;;  %v7804_v45 = vrot.slane %v248_v33, %v19213_v41  ;;  %v19237_v49 = vld [vmem:[#allocation65_spill] sm:$0xff]  ;;  %v16774_v30 = vld [vmem:[%s19236_s23] ss:$0 sm:$0xff] }
 0x9b6   :  { %v6542_v23 = vmul.f32 0.01, %v6510_v32  ;;  %vm6526_vm10 = vcmp.gt.f32.partialorder %v6510_v32, 0.0  ;;  %v16753_v61 = vpop.permute.xlu1 %7043  ;;  %v7815_v37 = vrot.slane %v248_v33, %v19214_v2  ;;  %v7184_v27 = vmul.f32 %v16774_v30, %v16736_v59 }
 0x9b7   :  { %v6620_v18 = vsel %vm18741_vm7, %v6619_v1, %v6618_v24  ;;  %7700 = vbcast.lane.b32.xlu1 %v7694_v51, 264  ;;  %7696 = vbcast.lane.b32.xlu0 %v7694_v51, 256  ;;  %19231 = vst [vmem:[#allocation62_spill] sm:$0xff] %v16753_v61  ;;  %v7183_v2 = vmul.f32 %v16774_v30, %v16733_v43 }
 0x9b8   :  { %v6558_v21 = vsel %vm6526_vm10, %v6510_v32, %v6542_v23  ;;  %v16750_v8 = vpop.permute.xlu0 %7039  ;;  %v7826_v32 = vrot.slane %v248_v33, %v19215_v28  ;;  %v7186_v13 = vmul.f32 %v16774_v30, %v16741_v42  ;;  %v7185_v28 = vmul.f32 %v16774_v30, %v16738_v57 }
 0x9b9   :  { %v6621_v54 = vrot.slane %v6558_v21, 1  ;;  %19230 = vst [vmem:[#allocation59_spill] sm:$0xff] %v16750_v8  ;;  %v7837_v14 = vrot.slane %v248_v33, %v19216_v7 }
 0x9ba   :  { %v16760_v48 = vpop.permute.xlu1 %7054 }
 0x9bb   :  { %v16718_v10 = vsel %vm18740_vm15, %v6621_v54, %v6620_v18  ;;  %7711 = vbcast.lane.b32.xlu1 %v7705_v6, 264  ;;  %7707 = vbcast.lane.b32.xlu0 %v7705_v6, 256  ;;  %19233 = vst [vmem:[#allocation63_spill] sm:$0xff] %v16760_v48  ;;  %v7188_v54 = vmul.f32 %v16774_v30, %v16748_v34 }
 0x9bc   :  { %19223 = vst [vmem:[#allocation117_spill] sm:$0xff] %v16718_v10  ;;  %12951 = vmatmul.mubr.msk.f32.vlgmr.msra.gmra.mxu1 %vm18707_vm9, %v16718_v10  ;;  %12962 = vmatmul.mubr.msk.f32.vlgmr.msra.gmra.mxu0 %vm18707_vm9, %v16718_v10  ;;  %v16756_v35 = vpop.permute.xlu0 %7050  ;;  %v7187_v18 = vmul.f32 %v16774_v30, %v16745_v56  ;;  %v7192_v7 = vmul.f32 %v16774_v30, %v16760_v48 }
 0x9bd   :  { %12965 = vmatpush3.msk.msra.mxu1 %vm7440_vm12, %v6570_v0  ;;  %19232 = vst [vmem:[#allocation61_spill] sm:$0xff] %v16756_v35  ;;  %v7190_v0 = vmul.f32 %v16774_v30, %v16753_v61  ;;  %v7191_v33 = vmul.f32 %v16774_v30, %v16756_v35 }
 0x9be   :  { %v16766_v53 = vpop.permute.xlu1 %7065 }
 0x9bf   :  { %7722 = vbcast.lane.b32.xlu1 %v7716_v46, 264  ;;  %7718 = vbcast.lane.b32.xlu0 %v7716_v46, 256  ;;  %19238 = vst [vmem:[#allocation66_spill] sm:$0xff] %v16766_v53 }
 0x9c0   :  { %v16762_v36 = vpop.permute.xlu0 %7061 }
 0x9c1   :  { %19235 = vst [vmem:[#allocation64_spill] sm:$0xff] %v16762_v36 }
 0x9c2   :  { %v16790_v1 = vpop.permute.xlu1 %7076 }
 0x9c3   :  { %7733 = vbcast.lane.b32.xlu1 %v7727_v12, 264  ;;  %7729 = vbcast.lane.b32.xlu0 %v7727_v12, 256  ;;  %19240 = vst [vmem:[#allocation68_spill] sm:$0xff] %v16790_v1  ;;  %v7189_v12 = vmul.f32 %v16774_v30, %v16750_v8 }
 0x9c4   :  { %v16770_v26 = vpop.permute.xlu0 %7072 }
 0x9c5   :  { %19239 = vst [vmem:[#allocation67_spill] sm:$0xff] %v16770_v26 }
 0x9c7   :  { %7744 = vbcast.lane.b32.xlu1 %v7738_v22, 264  ;;  %7740 = vbcast.lane.b32.xlu0 %v7738_v22, 256 }
 0x9c8   :  { %v16803_v55 = vpop.permute.xlu0 %7083 }
 0x9c9   :  { %19241 = vst [vmem:[#allocation69_spill] sm:$0xff] %v16803_v55 }
 0x9cb   :  { %7755 = vbcast.lane.b32.xlu1 %v7749_v40, 264  ;;  %7751 = vbcast.lane.b32.xlu0 %v7749_v40, 256 }
 0x9cf   :  { %7766 = vbcast.lane.b32.xlu1 %v7760_v4, 264  ;;  %7762 = vbcast.lane.b32.xlu0 %v7760_v4, 256 }
 0x9d3   :  { %7777 = vbcast.lane.b32.xlu1 %v7771_v5, 264  ;;  %7773 = vbcast.lane.b32.xlu0 %v7771_v5, 256 }
 0x9d7   :  { %7788 = vbcast.lane.b32.xlu1 %v7782_v63, 264  ;;  %7784 = vbcast.lane.b32.xlu0 %v7782_v63, 256 }
 0x9db   :  { %7799 = vbcast.lane.b32.xlu1 %v7793_v50, 264  ;;  %7795 = vbcast.lane.b32.xlu0 %v7793_v50, 256  ;;  %v16819_v50 = vmul.f32 %v16774_v30, %v16766_v53 }
 0x9df   :  { %7810 = vbcast.lane.b32.xlu1 %v7804_v45, 264  ;;  %7806 = vbcast.lane.b32.xlu0 %v7804_v45, 256 }
 0x9e3   :  { %7821 = vbcast.lane.b32.xlu1 %v7815_v37, 264  ;;  %7817 = vbcast.lane.b32.xlu0 %v7815_v37, 256 }
 0x9e7   :  { %7832 = vbcast.lane.b32.xlu1 %v7826_v32, 264  ;;  %7828 = vbcast.lane.b32.xlu0 %v7826_v32, 256 }
 0x9eb   :  { %7843 = vbcast.lane.b32.xlu1 %v7837_v14, 264  ;;  %7839 = vbcast.lane.b32.xlu0 %v7837_v14, 256 }
 0xa7c   :  { %v12963_v38 = vpop.f32.mrf.mxu0  ;;  %v12952_v44 = vpop.f32.mrf.mxu1 }
 0xa7d   :  { %v16783_v3 = vadd.f32 %v12952_v44, %v12002_v20  ;;  %v16808_v22 = vadd.f32 %v12963_v38, %v12006_v15  ;;  %v16821_v38 = vpop.permute.xlu1 %7087  ;;  %v16829_v44 = vpop.permute.xlu0 %7094 }
 0xa7e   :  { %v6780_v62 = vpop.f32.mrf.mxu0  ;;  %v6696_v58 = vpop.f32.mrf.mxu1  ;;  %19242 = vst [vmem:[#allocation70_spill] sm:$0xff] %v16821_v38  ;;  %19243 = vst [vmem:[#allocation71_spill] sm:$0xff] %v16829_v44 }
 0xa7f   :  { %v6781_v25 = vadd.f32 %v12006_v15, %v6780_v62  ;;  %v16785_v31 = vadd.f32 %v12002_v20, %v6696_v58 }
 0xa81   :  { %v6798_v39 = vrot.slane %v6781_v25, %v19237_v49  ;;  %v6791_v60 = vcombine.high %v6781_v25, %v6781_v25 }
 0xa83   :  { %v6806_v9 = vcombine.high %v6798_v39, %v6798_v39  ;;  %v6814_v29 = vrot.slane %v6798_v39, %v19237_v49  ;;  %v6805_v23 = vrot.slane %v6791_v60, %v19237_v49  ;;  %v7193_v39 = vmul.f32 %v16774_v30, %v16762_v36 }
 0xa85   :  { %v6828_v41 = vrot.slane %v6806_v9, %v19237_v49  ;;  %v6892_v52 = vrot.slane %v6814_v29, %v19209_v11  ;;  %v6836_v21 = vcombine.high %v6814_v29, %v6814_v29  ;;  %v6807_v16 = vcombine.high %v6805_v23, %v6805_v23 }
 0xa86   :  { %v6821_v4 = vrot.slane %v6805_v23, %v19237_v49  ;;  %v16833_v9 = vrot.slane %v16808_v22, %v19237_v49 }
 0xa87   :  { %v6896_v17 = vrot.slane %v6828_v41, %v19209_v11  ;;  %v6969_v47 = vadd.f32 %v6892_v52, %v16785_v31  ;;  %v6970_v24 = vadd.f32 %v6892_v52, %v16783_v3  ;;  %v6838_v51 = vcombine.high %v6828_v41, %v6828_v41 }
 0xa88   :  { %v6900_v5 = vrot.slane %v6836_v21, %v19209_v11  ;;  %v16824_v15 = vrot.slane %v6807_v16, %v19237_v49  ;;  %v6837_v60 = vcombine.high %v6821_v4, %v6821_v4  ;;  %v6908_v20 = vrot.slane %v6821_v4, %v19209_v11  ;;  %v16845_v21 = vpop.permute.xlu1 %7098 }
 0xa89   :  { %v7215_v6 = vadd.f32 %v7183_v2, %v6969_v47  ;;  %v7216_v46 = vadd.f32 %v7184_v27, %v6970_v24  ;;  %v6971_v40 = vadd.f32 %v6896_v17, %v16785_v31  ;;  %v6904_v62 = vrot.slane %v6838_v51, %v19209_v11  ;;  %19244 = vst [vmem:[#allocation73_spill] sm:$0xff] %v16845_v21 }
 0xa8a   :  { %v6972_v37 = vadd.f32 %v6896_v17, %v16783_v3  ;;  %v6973_v41 = vadd.f32 %v6900_v5, %v16785_v31  ;;  %v6974_v32 = vadd.f32 %v6900_v5, %v16783_v3  ;;  %v6912_v2 = vrot.slane %v16824_v15, %v19209_v11 }
 0xa8b   :  { %vm7247_vm6 = vcmp.gt.f32.partialorder %v7215_v6, 0.0  ;;  %v7279_v63 = vmul.f32 0.2, %v7215_v6  ;;  %vm7248_vm13 = vcmp.gt.f32.partialorder %v7216_v46, 0.0  ;;  %v7280_v45 = vmul.f32 0.2, %v7216_v46 }
 0xa8c   :  { %v7217_v29 = vadd.f32 %v7185_v28, %v6971_v40  ;;  %v7218_v52 = vadd.f32 %v7186_v13, %v6972_v37  ;;  %v7219_v23 = vadd.f32 %v7187_v18, %v6973_v41  ;;  %v6975_v28 = vadd.f32 %v6904_v62, %v16785_v31 }
 0xa8d   :  { %v7311_v25 = vsel %vm7247_vm6, %v7215_v6, %v7279_v63  ;;  %v7312_v58 = vsel %vm7248_vm13, %v7216_v46, %v7280_v45  ;;  %v6976_v17 = vadd.f32 %v6904_v62, %v16783_v3  ;;  %v7220_v14 = vadd.f32 %v7188_v54, %v6974_v32  ;;  %v16848_v6 = vpop.permute.xlu0 %7105 }
 0xa8e   :  { %12966 = vmatprep.mubr.msk.f32.mxu1 %vm7343_vm8, %v7311_v25  ;;  %vm7249_vm3 = vcmp.gt.f32.partialorder %v7217_v29, 0.0  ;;  %v7281_v27 = vmul.f32 0.2, %v7217_v29  ;;  %vm7250_vm14 = vcmp.gt.f32.partialorder %v7218_v52, 0.0  ;;  %v7282_v24 = vmul.f32 0.2, %v7218_v52 }
 0xa8f   :  { %12967 = vmatmul.mubr.msk.f32.vlgmr.msra.gmra.mxu1 %vm7343_vm8, %v7312_v58  ;;  %vm7251_vm10 = vcmp.gt.f32.partialorder %v7219_v23, 0.0  ;;  %v7283_v13 = vmul.f32 0.2, %v7219_v23  ;;  %v7221_v16 = vadd.f32 %v7189_v12, %v6975_v28  ;;  %v7222_v51 = vadd.f32 %v7190_v0, %v6976_v17  ;;  %19245 = vst [vmem:[#allocation72_spill] sm:$0xff] %v16848_v6 }
 0xa90   :  { %v7313_v47 = vsel %vm7249_vm3, %v7217_v29, %v7281_v27  ;;  %v6978_v18 = vadd.f32 %v6908_v20, %v16783_v3  ;;  %v7314_v46 = vsel %vm7250_vm14, %v7218_v52, %v7282_v24  ;;  %v7284_v40 = vmul.f32 0.2, %v7220_v14 }
 0xa91   :  { %12969 = vmatprep.mubr.msk.f32.mxu1 %vm7343_vm8, %v7313_v47  ;;  %v6977_v4 = vadd.f32 %v6908_v20, %v16785_v31  ;;  %v6916_v5 = vrot.slane %v6837_v60, %v19209_v11  ;;  %v7315_v63 = vsel %vm7251_vm10, %v7219_v23, %v7283_v13  ;;  %vm7252_vm6 = vcmp.gt.f32.partialorder %v7220_v14, 0.0  ;;  %v16864_v60 = vpop.permute.xlu1 %7109  ;;  %v16871_v32 = vpop.permute.xlu0 %7116 }
 0xa92   :  { %v7285_v54 = vmul.f32 0.2, %v7221_v16  ;;  %v7195_v62 = vmul.f32 %v16774_v30, %v16770_v26  ;;  %v6839_v0 = vcombine.high %v16824_v15, %v16824_v15  ;;  %vm7253_vm13 = vcmp.gt.f32.partialorder %v7221_v16, 0.0  ;;  %19246 = vst [vmem:[#allocation75_spill] sm:$0xff] %v16864_v60  ;;  %19247 = vst [vmem:[#allocation74_spill] sm:$0xff] %v16871_v32 }
 0xa93   :  { %12970 = vmatmul.mubr.msk.f32.gmra.mxu1 %vm7343_vm8, %v7314_v46  ;;  %v7223_v12 = vadd.f32 %v7191_v33, %v6977_v4  ;;  %v6855_v25 = vcombine.high %v16833_v9, %v16833_v9  ;;  %v6863_v45 = vrot.slane %v16833_v9, %v19237_v49  ;;  %v7286_v29 = vmul.f32 0.2, %v7222_v51 }
 0xa94   :  { %12972 = vmatprep.mubr.msk.f32.mxu1 %vm7343_vm8, %v7315_v63  ;;  %v6979_v37 = vadd.f32 %v6912_v2, %v16785_v31  ;;  %v7316_v20 = vsel %vm7252_vm6, %v7220_v14, %v7284_v40  ;;  %vm7254_vm3 = vcmp.gt.f32.partialorder %v7222_v51, 0.0  ;;  %v7224_v58 = vadd.f32 %v7192_v7, %v6978_v18 }
 0xa95   :  { %v6980_v15 = vadd.f32 %v6912_v2, %v16783_v3  ;;  %v7317_v41 = vsel %vm7253_vm13, %v7221_v16, %v7285_v54  ;;  %v7287_v33 = vmul.f32 0.2, %v7223_v12  ;;  %v6981_v52 = vadd.f32 %v6916_v5, %v16785_v31  ;;  %v16886_v40 = vpop.permute.xlu1 %7120  ;;  %v16895_v54 = vpop.permute.xlu0 %7127 }
 0xa96   :  { %v7225_v27 = vadd.f32 %v7193_v39, %v6979_v37  ;;  %v7196_v9 = vmul.f32 %v16774_v30, %v16790_v1  ;;  %vm7255_vm14 = vcmp.gt.f32.partialorder %v7223_v12, 0.0  ;;  %v6920_v23 = vrot.slane %v6839_v0, %v19209_v11  ;;  %19248 = vst [vmem:[#allocation76_spill] sm:$0xff] %v16886_v40  ;;  %19249 = vst [vmem:[#allocation77_spill] sm:$0xff] %v16895_v54 }
 0xa97   :  { %12973 = vmatmul.mubr.msk.f32.gmra.mxu1 %vm7343_vm8, %v7316_v20  ;;  %v7197_v7 = vmul.f32 %v16774_v30, %v16803_v55  ;;  %v6877_v2 = vrot.slane %v6855_v25, %v19237_v49  ;;  %v6924_v28 = vrot.slane %v6863_v45, %v19209_v11  ;;  %v7318_v39 = vsel %vm7254_vm3, %v7222_v51, %v7286_v29 }
 0xa98   :  { %12975 = vmatprep.mubr.msk.f32.mxu1 %vm7343_vm8, %v7317_v41  ;;  %vm7256_vm10 = vcmp.gt.f32.partialorder %v7224_v58, 0.0  ;;  %v7288_v17 = vmul.f32 0.2, %v7224_v58  ;;  %v7226_v47 = vadd.f32 %v16819_v50, %v6980_v15  ;;  %v6982_v24 = vadd.f32 %v6916_v5, %v16783_v3 }
 0xa99   :  { %v7319_v14 = vsel %vm7255_vm14, %v7223_v12, %v7287_v33  ;;  %v7289_v13 = vmul.f32 0.2, %v7225_v27  ;;  %v7227_v16 = vadd.f32 %v7195_v62, %v6981_v52  ;;  %v6983_v18 = vadd.f32 %v6920_v23, %v16785_v31  ;;  %v16907_v52 = vpop.permute.xlu1 %7131 }
 0xa9a   :  { %v7198_v46 = vmul.f32 %v16774_v30, %v16821_v38  ;;  %v6840_v51 = vcombine.high %v16808_v22, %v16808_v22  ;;  %vm7257_vm6 = vcmp.gt.f32.partialorder %v7225_v27, 0.0  ;;  %v7199_v50 = vmul.f32 %v16774_v30, %v16829_v44  ;;  %19250 = vst [vmem:[#allocation79_spill] sm:$0xff] %v16907_v52 }
 0xa9b   :  { %12976 = vmatmul.mubr.msk.f32.gmra.mxu1 %vm7343_vm8, %v7318_v39  ;;  %v6885_v4 = vcombine.high %v6863_v45, %v6863_v45  ;;  %v6928_v5 = vrot.slane %v6877_v2, %v19209_v11  ;;  %v6985_v63 = vadd.f32 %v6924_v28, %v16785_v31  ;;  %v7320_v62 = vsel %vm7256_vm10, %v7224_v58, %v7288_v17 }
 0xa9c   :  { %12978 = vmatprep.mubr.msk.f32.mxu1 %vm7343_vm8, %v7319_v14  ;;  %v7290_v0 = vmul.f32 0.2, %v7226_v47  ;;  %v7228_v12 = vadd.f32 %v7196_v9, %v6982_v24  ;;  %v6984_v25 = vadd.f32 %v6920_v23, %v16783_v3  ;;  %v7321_v22 = vsel %vm7257_vm6, %v7225_v27, %v7289_v13 }
 0xa9d   :  { %vm7258_vm13 = vcmp.gt.f32.partialorder %v7226_v47, 0.0  ;;  %v7291_v29 = vmul.f32 0.2, %v7227_v16  ;;  %v7229_v37 = vadd.f32 %v7197_v7, %v6983_v18  ;;  %v7200_v45 = vmul.f32 %v16774_v30, %v16845_v21  ;;  %v16916_v18 = vpop.permute.xlu0 %7138 }
 0xa9e   :  { %v6854_v20 = vrot.slane %v6840_v51, %v19237_v49  ;;  %vm7259_vm3 = vcmp.gt.f32.partialorder %v7227_v16, 0.0  ;;  %v7201_v58 = vmul.f32 %v16774_v30, %v16848_v6  ;;  %v6887_v15 = vcombine.high %v6877_v2, %v6877_v2  ;;  %19251 = vst [vmem:[#allocation78_spill] sm:$0xff] %v16916_v18 }
 0xa9f   :  { %12979 = vmatmul.mubr.msk.f32.gmra.mxu1 %vm7343_vm8, %v7320_v62  ;;  %v6932_v41 = vrot.slane %v6885_v4, %v19209_v11  ;;  %v7231_v33 = vadd.f32 %v7199_v50, %v6985_v63  ;;  %v6986_v27 = vadd.f32 %v6924_v28, %v16783_v3  ;;  %v7322_v9 = vsel %vm7258_vm13, %v7226_v47, %v7290_v0 }
 0xaa0   :  { %12981 = vmatprep.mubr.msk.f32.mxu1 %vm7343_vm8, %v7321_v22  ;;  %v7292_v23 = vmul.f32 0.2, %v7228_v12  ;;  %v7230_v7 = vadd.f32 %v7198_v46, %v6984_v25  ;;  %v7323_v39 = vsel %vm7259_vm3, %v7227_v16, %v7291_v29  ;;  %vm7260_vm14 = vcmp.gt.f32.partialorder %v7228_v12, 0.0  ;;  %v16926_v22 = vpop.permute.xlu1 %7142 }
 0xaa1   :  { %v7293_v17 = vmul.f32 0.2, %v7229_v37  ;;  %v6987_v24 = vadd.f32 %v6928_v5, %v16785_v31  ;;  %v7202_v2 = vmul.f32 %v16774_v30, %v16864_v60  ;;  %v7203_v14 = vmul.f32 %v16774_v30, %v16871_v32  ;;  %19252 = vst [vmem:[#allocation80_spill] sm:$0xff] %v16926_v22 }
 0xaa2   :  { %v6856_v13 = vcombine.high %v6854_v20, %v6854_v20  ;;  %vm7261_vm10 = vcmp.gt.f32.partialorder %v7229_v37, 0.0  ;;  %v6870_v28 = vrot.slane %v6854_v20, %v19237_v49  ;;  %v6936_v47 = vrot.slane %v6887_v15, %v19209_v11 }
 0xaa3   :  { %12982 = vmatmul.mubr.msk.f32.gmra.mxu1 %vm7343_vm8, %v7322_v9  ;;  %v6988_v16 = vadd.f32 %v6928_v5, %v16783_v3  ;;  %vm7263_vm6 = vcmp.gt.f32.partialorder %v7231_v33, 0.0  ;;  %v7324_v46 = vsel %vm7260_vm14, %v7228_v12, %v7292_v23  ;;  %v7294_v51 = vmul.f32 0.2, %v7230_v7 }
 0xaa4   :  { %12984 = vmatprep.mubr.msk.f32.mxu1 %vm7343_vm8, %v7323_v39  ;;  %v7295_v50 = vmul.f32 0.2, %v7231_v33  ;;  %v7232_v4 = vadd.f32 %v7200_v45, %v6986_v27  ;;  %v7325_v63 = vsel %vm7261_vm10, %v7229_v37, %v7293_v17  ;;  %vm7262_vm13 = vcmp.gt.f32.partialorder %v7230_v7, 0.0  ;;  %v16934_v45 = vpop.permute.xlu0 %7149 }
 0xaa5   :  { %v7233_v62 = vadd.f32 %v7201_v58, %v6987_v24  ;;  %v6989_v0 = vadd.f32 %v6932_v41, %v16785_v31  ;;  %v7204_v25 = vmul.f32 %v16774_v30, %v16886_v40  ;;  %v7205_v5 = vmul.f32 %v16774_v30, %v16895_v54  ;;  %19253 = vst [vmem:[#allocation81_spill] sm:$0xff] %v16934_v45 }
 0xaa6   :  { %v6884_v12 = vrot.slane %v6856_v13, %v19237_v49  ;;  %v6990_v29 = vadd.f32 %v6932_v41, %v16783_v3  ;;  %v6940_v37 = vrot.slane %v6870_v28, %v19209_v11  ;;  %v7326_v20 = vsel %vm7262_vm13, %v7230_v7, %v7294_v51 }
 0xaa7   :  { %12985 = vmatmul.mubr.msk.f32.gmra.mxu1 %vm7343_vm8, %v7324_v46  ;;  %v7327_v58 = vsel %vm7263_vm6, %v7231_v33, %v7295_v50  ;;  %v7296_v15 = vmul.f32 0.2, %v7232_v4  ;;  %v7234_v27 = vadd.f32 %v7202_v2, %v6988_v16  ;;  %vm7264_vm3 = vcmp.gt.f32.partialorder %v7232_v4, 0.0  ;;  %v16946_v2 = vpop.permute.xlu1 %7153 }
 0xaa8   :  { %12987 = vmatprep.mubr.msk.f32.mxu1 %vm7343_vm8, %v7325_v63  ;;  %v7297_v9 = vmul.f32 0.2, %v7233_v62  ;;  %v7235_v23 = vadd.f32 %v7203_v14, %v6989_v0  ;;  %v6991_v39 = vadd.f32 %v6936_v47, %v16785_v31  ;;  %v7206_v17 = vmul.f32 %v16774_v30, %v16907_v52  ;;  %19254 = vst [vmem:[#allocation82_spill] sm:$0xff] %v16946_v2  ;;  %v16952_v0 = vpop.permute.xlu0 %7160 }
 0xaa9   :  { %vm7265_vm14 = vcmp.gt.f32.partialorder %v7233_v62, 0.0  ;;  %v6886_v41 = vcombine.high %v6870_v28, %v6870_v28  ;;  %v7207_v7 = vmul.f32 %v16774_v30, %v16916_v18  ;;  %v6993_v33 = vadd.f32 %v6940_v37, %v16785_v31  ;;  %19255 = vst [vmem:[#allocation83_spill] sm:$0xff] %v16952_v0 }
 0xaaa   :  { %v6944_v24 = vrot.slane %v6884_v12, %v19209_v11  ;;  %v7328_v13 = vsel %vm7264_vm3, %v7232_v4, %v7296_v15  ;;  %v7298_v14 = vmul.f32 0.2, %v7234_v27  ;;  %v7236_v16 = vadd.f32 %v7204_v25, %v6990_v29 }
 0xaab   :  { %12988 = vmatmul.mubr.msk.f32.gmra.mxu1 %vm7343_vm8, %v7326_v20  ;;  %v6992_v46 = vadd.f32 %v6936_v47, %v16783_v3  ;;  %v7329_v51 = vsel %vm7265_vm14, %v7233_v62, %v7297_v9  ;;  %vm7266_vm10 = vcmp.gt.f32.partialorder %v7234_v27, 0.0  ;;  %v7299_v50 = vmul.f32 0.2, %v7235_v23 }
 0xaac   :  { %12990 = vmatprep.mubr.msk.f32.mxu1 %vm7343_vm8, %v7327_v58  ;;  %v7237_v28 = vadd.f32 %v7205_v5, %v6991_v39  ;;  %v7208_v63 = vmul.f32 %v16774_v30, %v16926_v22  ;;  %vm7267_vm6 = vcmp.gt.f32.partialorder %v7235_v23, 0.0  ;;  %v6994_v4 = vadd.f32 %v6940_v37, %v16783_v3 }
 0xaad   :  { %v7239_v20 = vadd.f32 %v7207_v7, %v6993_v33  ;;  %v7209_v47 = vmul.f32 %v16774_v30, %v16934_v45  ;;  %v6948_v25 = vrot.slane %v6886_v41, %v19209_v11  ;;  %v6888_v62 = vcombine.high %v6884_v12, %v6884_v12  ;;  %v16971_v41 = vpop.permute.xlu0 %7171 }
 0xaae   :  { %v7330_v29 = vsel %vm7266_vm10, %v7234_v27, %v7298_v14  ;;  %v7300_v58 = vmul.f32 0.2, %v7236_v16  ;;  %v7238_v5 = vadd.f32 %v7206_v17, %v6992_v46  ;;  %v6995_v15 = vadd.f32 %v6944_v24, %v16785_v31  ;;  %19257 = vst [vmem:[#allocation85_spill] sm:$0xff] %v16971_v41 }
 0xaaf   :  { %12991 = vmatmul.mubr.msk.f32.gmra.mxu1 %vm7343_vm8, %v7328_v13  ;;  %v7331_v9 = vsel %vm7267_vm6, %v7235_v23, %v7299_v50  ;;  %vm7268_vm13 = vcmp.gt.f32.partialorder %v7236_v16, 0.0  ;;  %v7301_v39 = vmul.f32 0.2, %v7237_v28  ;;  %v16961_v13 = vpop.permute.xlu1 %7164  ;;  %vm7269_vm3 = vcmp.gt.f32.partialorder %v7237_v28, 0.0 }
 0xab0   :  { %12993 = vmatprep.mubr.msk.f32.mxu1 %vm7343_vm8, %v7329_v51  ;;  %19256 = vst [vmem:[#allocation84_spill] sm:$0xff] %v16961_v13  ;;  %v7240_v37 = vadd.f32 %v7208_v63, %v6994_v4  ;;  %v6996_v7 = vadd.f32 %v6944_v24, %v16783_v3  ;;  %v7210_v12 = vmul.f32 %v16774_v30, %v16946_v2  ;;  %v7302_v14 = vmul.f32 0.2, %v7238_v5 }
 0xab1   :  { %v7211_v27 = vmul.f32 %v16774_v30, %v16952_v0  ;;  %v6997_v17 = vadd.f32 %v6948_v25, %v16785_v31  ;;  %v6952_v23 = vrot.slane %v6888_v62, %v19209_v11  ;;  %v7332_v33 = vsel %vm7268_vm13, %v7236_v16, %v7300_v58 }
 0xab2   :  { %v7241_v46 = vadd.f32 %v7209_v47, %v6995_v15  ;;  %v7333_v51 = vsel %vm7269_vm3, %v7237_v28, %v7301_v39  ;;  %vm7270_vm14 = vcmp.gt.f32.partialorder %v7238_v5, 0.0  ;;  %v7303_v24 = vmul.f32 0.2, %v7239_v20 }
 0xab3   :  { %12994 = vmatmul.mubr.msk.f32.gmra.mxu1 %vm7343_vm8, %v7330_v29  ;;  %vm7271_vm10 = vcmp.gt.f32.partialorder %v7239_v20, 0.0  ;;  %v7304_v50 = vmul.f32 0.2, %v7240_v37  ;;  %v7212_v63 = vmul.f32 %v16774_v30, %v16961_v13  ;;  %v7213_v4 = vmul.f32 %v16774_v30, %v16971_v41  ;;  %v16980_v47 = vpop.permute.xlu1 %7175 }
 0xab4   :  { %12996 = vmatprep.mubr.msk.f32.mxu1 %vm7343_vm8, %v7331_v9  ;;  %v7242_v62 = vadd.f32 %v7210_v12, %v6996_v7  ;;  %v6998_v16 = vadd.f32 %v6948_v25, %v16783_v3  ;;  %v7243_v29 = vadd.f32 %v7211_v27, %v6997_v17  ;;  %19258 = vst [vmem:[#allocation86_spill] sm:$0xff] %v16980_v47  ;;  %vm7272_vm6 = vcmp.gt.f32.partialorder %v7240_v37, 0.0 }
 0xab5   :  { %v7334_v58 = vsel %vm7270_vm14, %v7238_v5, %v7302_v14  ;;  %v6999_v28 = vadd.f32 %v6952_v23, %v16785_v31  ;;  %v7335_v15 = vsel %vm7271_vm10, %v7239_v20, %v7303_v24  ;;  %v7305_v9 = vmul.f32 0.2, %v7241_v46 }
 0xab6   :  { %vm7273_vm13 = vcmp.gt.f32.partialorder %v7241_v46, 0.0  ;;  %v7214_v39 = vmul.f32 %v16774_v30, %v16980_v47  ;;  %v7306_v7 = vmul.f32 0.2, %v7242_v62  ;;  %v7244_v12 = vadd.f32 %v7212_v63, %v6998_v16  ;;  %v6572_v63 = vld [vmem:[%s19259_s26] sm:$0x3] }
 0xab7   :  { %12997 = vmatmul.mubr.msk.f32.gmra.mxu1 %vm7343_vm8, %v7332_v33  ;;  %v7000_v25 = vadd.f32 %v6952_v23, %v16783_v3  ;;  %v7336_v27 = vsel %vm7272_vm6, %v7240_v37, %v7304_v50  ;;  %v7245_v17 = vadd.f32 %v7213_v4, %v6999_v28  ;;  %v7337_v5 = vsel %vm7273_vm13, %v7241_v46, %v7305_v9  ;;  %v16998_v4 = vpop.permute.xlu1 %7678 }
 0xab8   :  { %12999 = vmatprep.mubr.msk.f32.mxu1 %vm7343_vm8, %v7333_v51  ;;  %vm7274_vm3 = vcmp.gt.f32.partialorder %v7242_v62, 0.0  ;;  %v7307_v33 = vmul.f32 0.2, %v7243_v29  ;;  %vm7275_vm14 = vcmp.gt.f32.partialorder %v7243_v29, 0.0  ;;  %v7308_v20 = vmul.f32 0.2, %v7244_v12 }
 0xab9   :  { %v7246_v14 = vadd.f32 %v7214_v39, %v7000_v25  ;;  %v7338_v51 = vsel %vm7274_vm3, %v7242_v62, %v7306_v7  ;;  %vm7276_vm10 = vcmp.gt.f32.partialorder %v7244_v12, 0.0  ;;  %v7309_v24 = vmul.f32 0.2, %v7245_v17  ;;  %19262 = vst [vmem:[#allocation87_spill] sm:$0xff] %v16998_v4  ;;  %v17000_v62 = vpop.permute.xlu0 %7674 }
 0xaba   :  { %v7339_v30 = vsel %vm7275_vm14, %v7243_v29, %v7307_v33  ;;  %vm7277_vm6 = vcmp.gt.f32.partialorder %v7245_v17, 0.0  ;;  %v7340_v23 = vsel %vm7276_vm10, %v7244_v12, %v7308_v20  ;;  %vm19260_vm3 = vcmask 1041408   ;;  %19263 = vst [vmem:[#allocation88_spill] sm:$0xff] %v17000_v62 }
 0xabb   :  { %13000 = vmatmul.mubr.msk.f32.gmra.mxu1 %vm7343_vm8, %v7334_v58  ;;  %v7310_v37 = vmul.f32 0.2, %v7246_v14  ;;  %v7341_v46 = vsel %vm7277_vm6, %v7245_v17, %v7309_v24  ;;  %vm7278_vm13 = vcmp.gt.f32.partialorder %v7246_v14, 0.0  ;;  %13014 = vmatprep.subr.msk.mxu0 %vm19260_vm3, %v6572_v63  ;;  %vm19261_vm14 = vmmov %vm19260_vm3  ;;  %v17002_v16 = vpop.permute.xlu1 %7689  ;;  %vm18726_vm10 = vcmp.gt.f32.partialorder %v16998_v4, 0.0 }
 0xabc   :  { %13002 = vmatprep.mubr.msk.f32.mxu1 %vm7343_vm8, %v7335_v15  ;;  %13015 = vmatpush3.msk.msra.mxu0 %vm19261_vm14, %v6572_v63  ;;  %19264 = vst [vmem:[#allocation89_spill] sm:$0xff] %v17002_v16  ;;  %vm18709_vm6 = vcmp.gt.f32.partialorder %v17000_v62, 0.0  ;;  %vm19272_vm3 = vcmask 15360  }
 0xabd   :  { %v7342_v50 = vsel %vm7278_vm13, %v7246_v14, %v7310_v37  ;;  %v17004_v29 = vpop.permute.xlu0 %7685  ;;  %vm18723_vm13 = vcmp.gt.f32.partialorder %v17002_v16, 0.0  ;;  %vm19273_vm14 = vmmov %vm19272_vm3 }
 0xabe   :  { %19265 = vst [vmem:[#allocation90_spill] sm:$0xff] %v17004_v29  ;;  %vm18712_vm9 = vcmp.gt.f32.partialorder %v17004_v29, 0.0 }
 0xabf   :  { %13003 = vmatmul.mubr.msk.f32.gmra.mxu1 %vm7343_vm8, %v7336_v27  ;;  %v17006_v58 = vpop.permute.xlu1 %7700 }
 0xac0   :  { %13005 = vmatprep.mubr.msk.f32.mxu1 %vm7343_vm8, %v7337_v5  ;;  %19266 = vst [vmem:[#allocation91_spill] sm:$0xff] %v17006_v58  ;;  %vm18716_vm2 = vcmp.gt.f32.partialorder %v17006_v58, 0.0 }
 0xac1   :  { %v17008_v28 = vpop.permute.xlu0 %7696 }
 0xac2   :  { %19267 = vst [vmem:[#allocation92_spill] sm:$0xff] %v17008_v28 }
 0xac3   :  { %13006 = vmatmul.mubr.msk.f32.gmra.mxu1 %vm7343_vm8, %v7338_v51  ;;  %v17010_v15 = vpop.permute.xlu1 %7711 }
 0xac4   :  { %13008 = vmatprep.mubr.msk.f32.mxu1 %vm7343_vm8, %v7339_v30  ;;  %19268 = vst [vmem:[#allocation93_spill] sm:$0xff] %v17010_v15 }
 0xac5   :  { %v17012_v9 = vpop.permute.xlu0 %7707 }
 0xac6   :  { %19269 = vst [vmem:[#allocation94_spill] sm:$0xff] %v17012_v9 }
 0xac7   :  { %13009 = vmatmul.mubr.msk.f32.gmra.mxu1 %vm7343_vm8, %v7340_v23  ;;  %v17015_v39 = vpop.permute.xlu1 %7722 }
 0xac8   :  { %13011 = vmatprep.mubr.msk.f32.mxu1 %vm7343_vm8, %v7341_v46  ;;  %19270 = vst [vmem:[#allocation95_spill] sm:$0xff] %v17015_v39 }
 0xac9   :  { %v17017_v7 = vpop.permute.xlu0 %7718 }
 0xaca   :  { %19271 = vst [vmem:[#allocation96_spill] sm:$0xff] %v17017_v7 }
 0xacb   :  { %13012 = vmatmul.mubr.msk.f32.gmra.mxu1 %vm7343_vm8, %v7342_v50  ;;  %v17033_v20 = vpop.permute.xlu1 %7733 }
 0xacc   :  { %19274 = vst [vmem:[#allocation97_spill] sm:$0xff] %v17033_v20 }
 0xacd   :  { %v17035_v14 = vpop.permute.xlu0 %7729 }
 0xace   :  { %19275 = vst [vmem:[#allocation98_spill] sm:$0xff] %v17035_v14 }
 0xad1   :  { %v17058_v10 = vpop.permute.xlu0 %7740 }
 0xad2   :  { %19278 = vst [vmem:[#allocation100_spill] sm:$0xff] %v17058_v10 }
 0xb4f   :  { %v12968_v12 = vpop.f32.mrf.mxu1 }
 0xb50   :  { %v17022_v25 = vsel %vm18726_vm10, %v12968_v12, -1e+30  ;;  %vm7855_vm10 = vcmp.gt.f32.partialorder %v17035_v14, 0.0 }
 0xb51   :  { %v7510_v27 = vpop.f32.mrf.mxu1  ;;  %v7974_v5 = vsel %vm19272_vm3, %v17022_v25, -inf }
 0xb52   :  { %v17026_v17 = vsel %vm18709_vm6, %v7510_v27, -1e+30  ;;  %vm18722_vm6 = vcmp.gt.f32.partialorder %v17008_v28, 0.0 }
 0xb53   :  { %v7973_v33 = vsel %vm19273_vm14, %v17026_v17, -inf  ;;  %v12971_v30 = vpop.f32.mrf.mxu1  ;;  %vm19276_vm14 = vmmov %vm19272_vm3 }
 0xb54   :  { %v7975_v51 = vmax.f32 %v7973_v33, %v7974_v5  ;;  %v17040_v24 = vsel %vm18723_vm13, %v12971_v30, -1e+30  ;;  %v17056_v30 = vpop.permute.xlu1 %7744  ;;  %vm18738_vm13 = vcmp.gt.f32.partialorder %v17017_v7, 0.0 }
 0xb55   :  { %v7520_v23 = vpop.f32.mrf.mxu1  ;;  %v7983_v63 = vsel %vm19272_vm3, %v17040_v24, -inf  ;;  %19277 = vst [vmem:[#allocation99_spill] sm:$0xff] %v17056_v30 }
 0xb56   :  { %v7976_v37 = vrot.slane %v7975_v51, 4  ;;  %v17045_v46 = vsel %vm18712_vm9, %v7520_v23, -1e+30  ;;  %vm18724_vm9 = vcmp.gt.f32.partialorder %v17010_v15, 0.0 }
 0xb57   :  { %v7982_v12 = vsel %vm19276_vm14, %v17045_v46, -inf  ;;  %v12974_v27 = vpop.f32.mrf.mxu1  ;;  %vm19279_vm14 = vmmov %vm19272_vm3 }
 0xb58   :  { %v7977_v50 = vmax.f32 %v7975_v51, %v7976_v37  ;;  %v7984_v5 = vmax.f32 %v7982_v12, %v7983_v63  ;;  %v17054_v33 = vsel %vm18716_vm2, %v12974_v27, -1e+30  ;;  %vm18731_vm2 = vcmp.gt.f32.partialorder %v17012_v9, 0.0 }
 0xb59   :  { %v7530_v51 = vpop.f32.mrf.mxu1  ;;  %v7992_v63 = vsel %vm19272_vm3, %v17054_v33, -inf  ;;  %vm18739_vm3 = vcmp.gt.f32.partialorder %v17033_v20, 0.0 }
 0xb5a   :  { %v7978_v23 = vrot.slane %v7977_v50, 2  ;;  %v7985_v37 = vrot.slane %v7984_v5, 4  ;;  %v17063_v19 = vsel %vm18722_vm6, %v7530_v51, -1e+30  ;;  %vm18735_vm6 = vcmp.gt.f32.partialorder %v17015_v39, 0.0 }
 0xb5b   :  { %v7991_v12 = vsel %vm19279_vm14, %v17063_v19, -inf  ;;  %v12977_v27 = vpop.f32.mrf.mxu1 }
 0xb5c   :  { %v7979_v29 = vmax.f32 %v7977_v50, %v7978_v23  ;;  %v7986_v58 = vmax.f32 %v7984_v5, %v7985_v37  ;;  %v7993_v16 = vmax.f32 %v7991_v12, %v7992_v63  ;;  %v17072_v62 = vsel %vm18724_vm9, %v12977_v27, -1e+30  ;;  %v17081_v5 = vpop.permute.xlu1 %7755  ;;  %v17083_v37 = vpop.permute.xlu0 %7751  ;;  %vm19282_vm9 = vmmov %vm19279_vm14 }
 0xb5d   :  { %v7540_v28 = vpop.f32.mrf.mxu1  ;;  %19280 = vst [vmem:[#allocation101_spill] sm:$0xff] %v17081_v5  ;;  %19281 = vst [vmem:[#allocation102_spill] sm:$0xff] %v17083_v37  ;;  %v8001_v12 = vsel %vm19279_vm14, %v17072_v62, -inf  ;;  %vm18768_vm14 = vcmp.gt.f32.partialorder %v17056_v30, 0.0 }
 0xb5e   :  { %v7980_v4 = vrot.slane %v7979_v29, 1  ;;  %v7987_v50 = vrot.slane %v7986_v58, 2  ;;  %v7994_v23 = vrot.slane %v7993_v16, 4  ;;  %v17078_v51 = vsel %vm18731_vm2, %v7540_v28, -1e+30 }
 0xb5f   :  { %v8000_v27 = vsel %vm19282_vm9, %v17078_v51, -inf  ;;  %v12980_v15 = vpop.f32.mrf.mxu1  ;;  %vm18766_vm2 = vcmp.gt.f32.partialorder %v17058_v10, 0.0 }
 0xb60   :  { %v7981_v63 = vmax.f32 %v7979_v29, %v7980_v4  ;;  %v7988_v47 = vmax.f32 %v7986_v58, %v7987_v50  ;;  %v7995_v9 = vmax.f32 %v7993_v16, %v7994_v23  ;;  %v8002_v28 = vmax.f32 %v8000_v27, %v8001_v12  ;;  %v17106_v39 = vpop.permute.xlu1 %7766  ;;  %v17108_v22 = vpop.permute.xlu0 %7762 }
 0xb61   :  { %v17092_v41 = vsel %vm18735_vm6, %v12980_v15, -1e+30  ;;  %v7550_v29 = vpop.f32.mrf.mxu1  ;;  %vm19283_vm6 = vmmov %vm19282_vm9  ;;  %19284 = vst [vmem:[#allocation103_spill] sm:$0xff] %v17106_v39  ;;  %vm18748_vm15 = vcmp.gt.f32.partialorder %v17108_v22, 0.0 }
 0xb62   :  { %v8117_v13 = vsub.f32 %v17026_v17, %v7981_v63  ;;  %v8118_v4 = vsub.f32 %v17022_v25, %v7981_v63  ;;  %v7989_v0 = vrot.slane %v7988_v47, 1  ;;  %v7996_v2 = vrot.slane %v7995_v9, 2  ;;  %19285 = vst [vmem:[#allocation104_spill] sm:$0xff] %v17108_v22  ;;  %vm19286_vm7 = vmmov %vm19283_vm6 }
 0xb63   :  { %v8003_v45 = vrot.slane %v8002_v28, 4  ;;  %v17100_v16 = vsel %vm18738_vm13, %v7550_v29, -1e+30  ;;  %v8010_v15 = vsel %vm19282_vm9, %v17092_v41, -inf  ;;  %v12983_v17 = vpop.f32.mrf.mxu1  ;;  %vm18764_vm9 = vcmp.gt.f32.partialorder %v17081_v5, 0.0 }
 0xb64   :  { %v8149_v58 = vmul.f32 1.442695, %v8117_v13  ;;  %v8151_v50 = vmul.f32 1.442695, %v8118_v4  ;;  %v8009_v25 = vsel %vm19283_vm6, %v17100_v16, -inf  ;;  %v7990_v23 = vmax.f32 %v7988_v47, %v7989_v0 }
 0xb65   :  { %v7997_v63 = vmax.f32 %v7995_v9, %v7996_v2  ;;  %v8004_v12 = vmax.f32 %v8002_v28, %v8003_v45  ;;  %v8011_v27 = vmax.f32 %v8009_v25, %v8010_v15  ;;  %v17112_v13 = vsel %vm18739_vm3, %v12983_v17, -1e+30  ;;  %v7560_v4 = vpop.f32.mrf.mxu1 }
 0xb66   :  { %13591 = vpow2.f32 %v8149_v58  ;;  %vm18759_vm13 = vcmp.gt.f32.partialorder %v17083_v37, 0.0  ;;  %v8119_v0 = vsub.f32 %v17045_v46, %v7990_v23  ;;  %v8120_v45 = vsub.f32 %v17040_v24, %v7990_v23 }
 0xb67   :  { %13593 = vpow2.f32 %v8151_v50  ;;  %v7998_v2 = vrot.slane %v7997_v63, 1  ;;  %v8005_v47 = vrot.slane %v8004_v12, 2  ;;  %v8012_v9 = vrot.slane %v8011_v27, 4  ;;  %v12986_v58 = vpop.f32.mrf.mxu1 }
 0xb68   :  { %v8019_v28 = vsel %vm19283_vm6, %v17112_v13, -inf  ;;  %v17122_v29 = vsel %vm7855_vm10, %v7560_v4, -1e+30  ;;  %vm18750_vm3 = vcmp.gt.f32.partialorder %v17106_v39, 0.0  ;;  %v8153_v50 = vmul.f32 1.442695, %v8119_v0 }
 0xb69   :  { %v8155_v15 = vmul.f32 1.442695, %v8120_v45  ;;  %v7999_v46 = vmax.f32 %v7997_v63, %v7998_v2  ;;  %v8018_v24 = vsel %vm19286_vm7, %v17122_v29, -inf  ;;  %v8006_v25 = vmax.f32 %v8004_v12, %v8005_v47  ;;  %v7570_v4 = vpop.f32.mrf.mxu1  ;;  %vm19287_vm7 = vmmov %vm19283_vm6 }
 0xb6a   :  { %v8013_v17 = vmax.f32 %v8011_v27, %v8012_v9  ;;  %v8020_v23 = vmax.f32 %v8018_v24, %v8019_v28  ;;  %v17130_v20 = vsel %vm18768_vm14, %v12986_v58, -1e+30  ;;  %13595 = vpow2.f32 %v8153_v50 }
 0xb6b   :  { %v8121_v14 = vsub.f32 %v17063_v19, %v7999_v46  ;;  %v8122_v7 = vsub.f32 %v17054_v33, %v7999_v46  ;;  %v8028_v0 = vsel %vm19283_vm6, %v17130_v20, -inf  ;;  %13597 = vpow2.f32 %v8155_v15  ;;  %v12989_v12 = vpop.f32.mrf.mxu1 }
 0xb6c   :  { %v8007_v63 = vrot.slane %v8006_v25, 1  ;;  %v8014_v45 = vrot.slane %v8013_v17, 2  ;;  %v8021_v2 = vrot.slane %v8020_v23, 4  ;;  %v17138_v9 = vsel %vm18766_vm2, %v7570_v4, -1e+30 }
 0xb6d   :  { %v8157_v27 = vmul.f32 1.442695, %v8121_v14  ;;  %v8159_v47 = vmul.f32 1.442695, %v8122_v7  ;;  %v8027_v19 = vsel %vm19287_vm7, %v17138_v9, -inf  ;;  %v7580_v33 = vpop.f32.mrf.mxu1  ;;  %vm19288_vm7 = vmmov %vm19283_vm6 }
 0xb6e   :  { %v8008_v28 = vmax.f32 %v8006_v25, %v8007_v63  ;;  %v8015_v58 = vmax.f32 %v8013_v17, %v8014_v45  ;;  %v8022_v50 = vmax.f32 %v8020_v23, %v8021_v2  ;;  %v8029_v46 = vmax.f32 %v8027_v19, %v8028_v0  ;;  %v17156_v45 = vpop.permute.xlu1 %7777 }
 0xb6f   :  { %13599 = vpow2.f32 %v8157_v27  ;;  %v17144_v15 = vsel %vm18764_vm9, %v12989_v12, -1e+30  ;;  %v17148_v7 = vsel %vm18759_vm13, %v7580_v33, -1e+30  ;;  %v12992_v17 = vpop.f32.mrf.mxu1  ;;  %19289 = vst [vmem:[#allocation105_spill] sm:$0xff] %v17156_v45 }
 0xb70   :  { %13601 = vpow2.f32 %v8159_v47  ;;  %v8123_v14 = vsub.f32 %v17078_v51, %v8008_v28  ;;  %v8124_v24 = vsub.f32 %v17072_v62, %v8008_v28  ;;  %v8016_v25 = vrot.slane %v8015_v58, 1  ;;  %v17158_v51 = vpop.permute.xlu0 %7773 }
 0xb71   :  { %v8023_v23 = vrot.slane %v8022_v50, 2  ;;  %v8030_v4 = vrot.slane %v8029_v46, 4  ;;  %v8037_v0 = vsel %vm19283_vm6, %v17144_v15, -inf  ;;  %v8036_v63 = vsel %vm19288_vm7, %v17148_v7, -inf  ;;  %v7590_v19 = vpop.f32.mrf.mxu1  ;;  %19290 = vst [vmem:[#allocation106_spill] sm:$0xff] %v17158_v51  ;;  %vm19291_vm7 = vmmov %vm19283_vm6 }
 0xb72   :  { %v8161_v2 = vmul.f32 1.442695, %v8123_v14  ;;  %v8163_v12 = vmul.f32 1.442695, %v8124_v24  ;;  %v8017_v27 = vmax.f32 %v8015_v58, %v8016_v25  ;;  %v8038_v47 = vmax.f32 %v8036_v63, %v8037_v0 }
 0xb73   :  { %v17160_v62 = vpop.eup %13591  ;;  %v8024_v28 = vmax.f32 %v8022_v50, %v8023_v23  ;;  %v8031_v33 = vmax.f32 %v8029_v46, %v8030_v4  ;;  %v17164_v37 = vsel %vm18750_vm3, %v12992_v17, -1e+30  ;;  %v17168_v5 = vsel %vm18748_vm15, %v7590_v19, -1e+30  ;;  %v12995_v50 = vpop.f32.mrf.mxu1  ;;  %vm19292_vm3 = vmmov %vm19283_vm6 }
 0xb74   :  { %v17170_v10 = vpop.eup %13593  ;;  %v8213_v58 = vsel %vm19283_vm6, %v17160_v62, 0.0  ;;  %13603 = vpow2.f32 %v8161_v2  ;;  %v8125_v14 = vsub.f32 %v17100_v16, %v8017_v27  ;;  %v8126_v24 = vsub.f32 %v17092_v41, %v8017_v27  ;;  %v17183_v27 = vpop.permute.xlu1 %7788  ;;  %vm19299_vm9 = vmmov %vm19292_vm3 }
 0xb75   :  { %v8214_v46 = vsel %vm19291_vm7, %v17170_v10, 0.0  ;;  %13605 = vpow2.f32 %v8163_v12  ;;  %v8025_v25 = vrot.slane %v8024_v28, 1  ;;  %v8032_v17 = vrot.slane %v8031_v33, 2  ;;  %v7600_v19 = vpop.f32.mrf.mxu1  ;;  %19293 = vst [vmem:[#allocation107_spill] sm:$0xff] %v17183_v27  ;;  %vm19295_vm7 = vmmov %vm19292_vm3 }
 0xb76   :  { %vm18763_vm15 = vcmp.gt.f32.partialorder %v17156_v45, 0.0  ;;  %v8215_v23 = vadd.f32 %v8214_v46, %v8213_v58  ;;  %v8165_v4 = vmul.f32 1.442695, %v8125_v14  ;;  %v8167_v0 = vmul.f32 1.442695, %v8126_v24  ;;  %v17189_v24 = vpop.permute.xlu0 %7784 }
 0xb77   :  { %v8039_v63 = vrot.slane %v8038_v47, 4  ;;  %v8026_v22 = vmax.f32 %v8024_v28, %v8025_v25  ;;  %v8033_v2 = vmax.f32 %v8031_v33, %v8032_v17  ;;  %v8046_v16 = vsel %vm19283_vm6, %v17164_v37, -inf  ;;  %v17185_v12 = vpop.eup %13595  ;;  %v17187_v14 = vpop.f32.mrf.mxu1  ;;  %19294 = vst [vmem:[#allocation108_spill] sm:$0xff] %v17189_v24 }
 0xb78   :  { %v8045_v41 = vsel %vm19292_vm3, %v17168_v5, -inf  ;;  %v8216_v39 = vrot.slane %v8215_v23, 4  ;;  %13607 = vpow2.f32 %v8165_v4  ;;  %v17191_v28 = vpop.eup %13597  ;;  %v8222_v33 = vsel %vm19295_vm7, %v17185_v12, 0.0  ;;  %vm19296_vm7 = vmmov %vm19292_vm3 }
 0xb79   :  { %v8040_v30 = vmax.f32 %v8038_v47, %v8039_v63  ;;  %v8047_v58 = vmax.f32 %v8045_v41, %v8046_v16  ;;  %13609 = vpow2.f32 %v8167_v0  ;;  %v8127_v46 = vsub.f32 %v17122_v29, %v8026_v22  ;;  %v17199_v16 = vpop.f32.mrf.mxu1 }
 0xb7a   :  { %v8128_v25 = vsub.f32 %v17112_v13, %v8026_v22  ;;  %v8217_v17 = vadd.f32 %v8216_v39, %v8215_v23  ;;  %v8223_v4 = vsel %vm19292_vm3, %v17191_v28, 0.0  ;;  %v8034_v47 = vrot.slane %v8033_v2, 1 }
 0xb7b   :  { %v8041_v63 = vrot.slane %v8040_v30, 2  ;;  %v8224_v41 = vadd.f32 %v8223_v4, %v8222_v33  ;;  %v8169_v18 = vmul.f32 1.442695, %v8127_v46  ;;  %v8048_v54 = vrot.slane %v8047_v58, 4  ;;  %v17208_v23 = vpop.f32.mrf.mxu1 }
 0xb7c   :  { %v8171_v52 = vmul.f32 1.442695, %v8128_v25  ;;  %v17201_v32 = vpop.eup %13599  ;;  %v8218_v40 = vrot.slane %v8217_v17, 2  ;;  %v8035_v0 = vmax.f32 %v8033_v2, %v8034_v47  ;;  %vm18765_vm6 = vcmp.gt.f32.partialorder %v17158_v51, 0.0  ;;  %v17216_v2 = vpop.permute.xlu0 %7795 }
 0xb7d   :  { %v8042_v60 = vmax.f32 %v8040_v30, %v8041_v63  ;;  %v17204_v22 = vpop.eup %13601  ;;  %v8225_v39 = vrot.slane %v8224_v41, 4  ;;  %v8231_v13 = vsel %vm19296_vm7, %v17201_v32, 0.0  ;;  %13611 = vpow2.f32 %v8169_v18  ;;  %v17214_v30 = vpop.permute.xlu1 %7799  ;;  %19298 = vst [vmem:[#allocation110_spill] sm:$0xff] %v17216_v2 }
 0xb7e   :  { %v8049_v29 = vmax.f32 %v8047_v58, %v8048_v54  ;;  %v8232_v33 = vsel %vm19292_vm3, %v17204_v22, 0.0  ;;  %13613 = vpow2.f32 %v8171_v52  ;;  %v8129_v46 = vsub.f32 %v17138_v9, %v8035_v0  ;;  %19297 = vst [vmem:[#allocation109_spill] sm:$0xff] %v17214_v30 }
 0xb7f   :  { %vm18775_vm13 = vcmp.gt.f32.partialorder %v17183_v27, 0.0  ;;  %v8226_v25 = vadd.f32 %v8225_v39, %v8224_v41  ;;  %v8233_v4 = vadd.f32 %v8232_v33, %v8231_v13  ;;  %v8130_v47 = vsub.f32 %v17130_v20, %v8035_v0  ;;  %v17228_v41 = vpop.f32.mrf.mxu1 }
 0xb80   :  { %v8043_v18 = vrot.slane %v8042_v60, 1  ;;  %v8173_v54 = vmul.f32 1.442695, %v8129_v46  ;;  %v8050_v58 = vrot.slane %v8049_v29, 2  ;;  %v17221_v63 = vsel %vm18763_vm15, %v12995_v50, -1e+30 }
 0xb81   :  { %vm18776_vm7 = vcmp.gt.f32.partialorder %v17189_v24, 0.0  ;;  %v17224_v52 = vpop.eup %13603  ;;  %v17226_v9 = vadd.f32 %v8218_v40, %v8217_v17  ;;  %v8234_v6 = vrot.slane %v8233_v4, 4  ;;  %v8175_v21 = vmul.f32 1.442695, %v8130_v47 }
 0xb82   :  { %v8044_v44 = vmax.f32 %v8042_v60, %v8043_v18  ;;  %v17230_v39 = vpop.eup %13605  ;;  %v8240_v20 = vsel %vm19292_vm3, %v17224_v52, 0.0  ;;  %13615 = vpow2.f32 %v8173_v54  ;;  %v8051_v0 = vmax.f32 %v8049_v29, %v8050_v58  ;;  %v17244_v29 = vpop.permute.xlu1 %7810 }
 0xb83   :  { %v17236_v50 = vsel %vm18765_vm6, %v7600_v19, -1e+30  ;;  %vm18779_vm15 = vcmp.gt.f32.partialorder %v17214_v30, 0.0  ;;  %v8227_v40 = vrot.slane %v8226_v25, 2  ;;  %v8235_v17 = vadd.f32 %v8234_v6, %v8233_v4  ;;  %19300 = vst [vmem:[#allocation111_spill] sm:$0xff] %v17244_v29  ;;  %v17246_v19 = vpop.permute.xlu0 %7806  ;;  %vm19302_vm6 = vmmov %vm19299_vm9  ;;  %v17255_v54 = vpop.f32.mrf.mxu1 }
 0xb84   :  { %v8241_v60 = vsel %vm19299_vm9, %v17230_v39, 0.0  ;;  %13617 = vpow2.f32 %v8175_v21  ;;  %v8131_v33 = vsub.f32 %v17148_v7, %v8044_v44  ;;  %v8132_v46 = vsub.f32 %v17144_v15, %v8044_v44  ;;  %19301 = vst [vmem:[#allocation112_spill] sm:$0xff] %v17246_v19  ;;  %vm19303_vm2 = vmmov %vm19302_vm6 }
 0xb85   :  { %v8242_v13 = vadd.f32 %v8241_v60, %v8240_v20  ;;  %v8052_v47 = vrot.slane %v8051_v0, 1  ;;  %vm7867_vm3 = vcmp.gt.f32.partialorder %v17216_v2, 0.0  ;;  %v17248_v18 = vpop.eup %13607  ;;  %v8236_v4 = vrot.slane %v8235_v17, 2  ;;  %vm19304_vm14 = vmmov %vm19303_vm2 }
 0xb86   :  { %v8055_v21 = vsel %vm19299_vm9, %v17221_v63, -inf  ;;  %v8054_v7 = vsel %vm19302_vm6, %v17236_v50, -inf  ;;  %v17257_v44 = vpop.eup %13609  ;;  %v8249_v58 = vsel %vm19303_vm2, %v17248_v18, 0.0  ;;  %v8177_v20 = vmul.f32 1.442695, %v8131_v33  ;;  %vm19307_vm9 = vmmov %vm19302_vm6 }
 0xb87   :  { %v8243_v15 = vrot.slane %v8242_v13, 4  ;;  %v8179_v60 = vmul.f32 1.442695, %v8132_v46  ;;  %v17261_v51 = vadd.f32 %v8227_v40, %v8226_v25  ;;  %v8250_v6 = vsel %vm19304_vm14, %v17257_v44, 0.0 }
 0xb88   :  { %v8053_v45 = vmax.f32 %v8051_v0, %v8052_v47  ;;  %v8056_v38 = vmax.f32 %v8054_v7, %v8055_v21  ;;  %v8251_v1 = vadd.f32 %v8250_v6, %v8249_v58  ;;  %13619 = vpow2.f32 %v8177_v20  ;;  %v7630_v0 = vpop.f32.mrf.mxu1 }
 0xb89   :  { %v8244_v55 = vadd.f32 %v8243_v15, %v8242_v13  ;;  %v17268_v26 = vsel %vm18775_vm13, %v17187_v14, -1e+30  ;;  %v17270_v53 = vadd.f32 %v8236_v4, %v8235_v17  ;;  %13621 = vpow2.f32 %v8179_v60  ;;  %v17283_v17 = vpop.permute.xlu1 %7821  ;;  %vm19308_vm13 = vmmov %vm19302_vm6 }
 0xb8a   :  { %v8133_v33 = vsub.f32 %v17168_v5, %v8053_v45  ;;  %v8134_v25 = vsub.f32 %v17164_v37, %v8053_v45  ;;  %vm18794_vm2 = vcmp.gt.f32.partialorder %v17244_v29, 0.0  ;;  %vm18789_vm14 = vcmp.gt.f32.partialorder %v17246_v19, 0.0  ;;  %v17276_v40 = vpop.eup %13611  ;;  %19305 = vst [vmem:[#allocation113_spill] sm:$0xff] %v17283_v17  ;;  %v17285_v5 = vpop.permute.xlu0 %7817 }
 0xb8b   :  { %v8245_v13 = vrot.slane %v8244_v55, 2  ;;  %v8252_v46 = vrot.slane %v8251_v1, 4  ;;  %v8057_v47 = vrot.slane %v8056_v38, 4  ;;  %v17281_v14 = vsel %vm18776_vm7, %v17199_v16, -1e+30  ;;  %19306 = vst [vmem:[#allocation48_spill] sm:$0xff] %v17285_v5  ;;  %v17287_v37 = vpop.eup %13613  ;;  %vm19309_vm7 = vmmov %vm19302_vm6 }
 0xb8c   :  { %v8258_v45 = vsel %vm19302_vm6, %v17276_v40, 0.0  ;;  %v8181_v6 = vmul.f32 1.442695, %v8133_v33  ;;  %v8183_v4 = vmul.f32 1.442695, %v8134_v25  ;;  %v8063_v21 = vsel %vm19307_vm9, %v17281_v14, -inf  ;;  %v13007_v33 = vpop.f32.mrf.mxu1 }
 0xb8d   :  { %v8253_v7 = vadd.f32 %v8252_v46, %v8251_v1  ;;  %v8259_v15 = vsel %vm19308_vm13, %v17287_v37, 0.0  ;;  %v8058_v16 = vmax.f32 %v8056_v38, %v8057_v47  ;;  %v8064_v58 = vsel %vm19309_vm7, %v17268_v26, -inf  ;;  %vm19310_vm7 = vmmov %vm19302_vm6 }
 0xb8e   :  { %v8260_v20 = vadd.f32 %v8259_v15, %v8258_v45  ;;  %13623 = vpow2.f32 %v8181_v6  ;;  %v8065_v60 = vmax.f32 %v8063_v21, %v8064_v58  ;;  %v17300_v24 = vsel %vm18779_vm15, %v17208_v23, -1e+30  ;;  %vm19311_vm9 = vmmov %vm19310_vm7  ;;  %v17323_v15 = vpop.permute.xlu1 %7832  ;;  %v17325_v58 = vpop.permute.xlu0 %7828 }
 0xb8f   :  { %v17302_v25 = vadd.f32 %v8245_v13, %v8244_v55  ;;  %v8254_v27 = vrot.slane %v8253_v7, 2  ;;  %13625 = vpow2.f32 %v8183_v4  ;;  %v8059_v1 = vrot.slane %v8058_v16, 2  ;;  %v17305_v38 = vpop.eup %13615  ;;  %vm19312_vm15 = vmmov %vm19310_vm7  ;;  %v7640_v35 = vpop.f32.mrf.mxu1 }
 0xb90   :  { %vm18797_vm13 = vcmp.gt.f32.partialorder %v17283_v17, 0.0  ;;  %v8261_v46 = vrot.slane %v8260_v20, 4  ;;  %v8066_v47 = vrot.slane %v8065_v60, 4  ;;  %v8073_v45 = vsel %vm19310_vm7, %v17300_v24, -inf }
 0xb91   :  { %v17312_v23 = vsel %vm7867_vm3, %v17228_v41, -1e+30  ;;  %vm18800_vm6 = vcmp.gt.f32.partialorder %v17285_v5, 0.0  ;;  %v17315_v55 = vpop.eup %13617  ;;  %v17317_v13 = vadd.f32 %v8254_v27, %v8253_v7  ;;  %v8267_v6 = vsel %vm19311_vm9, %v17305_v38, 0.0  ;;  %v13010_v8 = vpop.f32.mrf.mxu1  ;;  %vm19314_vm9 = vmmov %vm19310_vm7 }
 0xb92   :  { %v8060_v4 = vmax.f32 %v8058_v16, %v8059_v1  ;;  %v8072_v21 = vsel %vm19312_vm15, %v17312_v23, -inf  ;;  %v8262_v2 = vadd.f32 %v8261_v46, %v8260_v20  ;;  %v8268_v41 = vsel %vm19310_vm7, %v17315_v55, 0.0  ;;  %vm19313_vm15 = vmmov %vm19310_vm7  ;;  %v17353_v7 = vpop.permute.xlu1 %7843 }
 0xb93   :  { %v8067_v30 = vmax.f32 %v8065_v60, %v8066_v47  ;;  %v8074_v36 = vmax.f32 %v8072_v21, %v8073_v45  ;;  %v8269_v48 = vadd.f32 %v8268_v41, %v8267_v6  ;;  %v17336_v60 = vsel %vm18794_vm2, %v17255_v54, -1e+30  ;;  %19315 = vst [vmem:[#allocation49_spill] sm:$0xff] %v17353_v7  ;;  %v7650_v57 = vpop.f32.mrf.mxu1 }
 0xb94   :  { %v8061_v16 = vrot.slane %v8060_v4, 1  ;;  %v17340_v46 = vsel %vm18789_vm14, %v7630_v0, -1e+30  ;;  %v8263_v45 = vrot.slane %v8262_v2, 2  ;;  %vm18806_vm7 = vcmp.gt.f32.partialorder %v17323_v15, 0.0  ;;  %vm19317_vm14 = vmmov %vm19314_vm9 }
 0xb95   :  { %v8068_v61 = vrot.slane %v8067_v30, 2  ;;  %v8075_v56 = vrot.slane %v8074_v36, 4  ;;  %v8270_v11 = vrot.slane %v8269_v48, 4  ;;  %v17342_v47 = vpop.eup %13619  ;;  %v8081_v41 = vsel %vm19313_vm15, %v17340_v46, -inf  ;;  %vm19318_vm15 = vmmov %vm19314_vm9 }
 0xb96   :  { %v8062_v20 = vmax.f32 %v8060_v4, %v8061_v16  ;;  %v17346_v1 = vpop.eup %13621  ;;  %v8276_v54 = vsel %vm19314_vm9, %v17342_v47, 0.0  ;;  %vm18805_vm9 = vcmp.gt.f32.partialorder %v17325_v58, 0.0  ;;  %v17364_v34 = vsel %vm18797_vm13, %v13007_v33, -1e+30  ;;  %vm19319_vm13 = vmmov %vm19318_vm15 }
 0xb97   :  { %v8069_v6 = vmax.f32 %v8067_v30, %v8068_v61  ;;  %v8076_v21 = vmax.f32 %v8074_v36, %v8075_v56  ;;  %v8271_v4 = vadd.f32 %v8270_v11, %v8269_v48  ;;  %v17355_v61 = vpop.permute.xlu0 %7839  ;;  %v8277_v56 = vsel %vm19317_vm14, %v17346_v1, 0.0 }
 0xb98   :  { %v8135_v16 = vsub.f32 %v17236_v50, %v8062_v20  ;;  %v8136_v0 = vsub.f32 %v17221_v63, %v8062_v20  ;;  %19316 = vst [vmem:[#allocation50_spill] sm:$0xff] %v17355_v61  ;;  %v8082_v11 = vsel %vm19318_vm15, %v17336_v60, -inf  ;;  %v8278_v27 = vadd.f32 %v8277_v56, %v8276_v54 }
 0xb99   :  { %v8070_v36 = vrot.slane %v8069_v6, 1  ;;  %v8077_v30 = vrot.slane %v8076_v21, 2  ;;  %v8272_v48 = vrot.slane %v8271_v4, 2  ;;  %v8083_v29 = vmax.f32 %v8081_v41, %v8082_v11  ;;  %v13013_v11 = vpop.f32.mrf.mxu1 }
 0xb9a   :  { %v8185_v19 = vmul.f32 1.442695, %v8135_v16  ;;  %v8187_v50 = vmul.f32 1.442695, %v8136_v0  ;;  %vm18804_vm14 = vcmp.gt.f32.partialorder %v17353_v7, 0.0  ;;  %vm18801_vm2 = vcmp.gt.f32.partialorder %v17355_v61, 0.0 }
 0xb9b   :  { %v8071_v63 = vmax.f32 %v8069_v6, %v8070_v36  ;;  %v8078_v20 = vmax.f32 %v8076_v21, %v8077_v30  ;;  %v17368_v42 = vpop.eup %13623  ;;  %v17370_v43 = vadd.f32 %v8263_v45, %v8262_v2  ;;  %v8279_v54 = vrot.slane %v8278_v27, 4 }
 0xb9c   :  { %13627 = vpow2.f32 %v8185_v19  ;;  %v17374_v6 = vsel %vm18800_vm6, %v7640_v35, -1e+30  ;;  %v17376_v21 = vpop.eup %13625  ;;  %v8285_v33 = vsel %vm19318_vm15, %v17368_v42, 0.0  ;;  %v17382_v0 = vadd.f32 %v8272_v48, %v8271_v4  ;;  %vm19320_vm15 = vmmov %vm19319_vm13 }
 0xb9d   :  { %13629 = vpow2.f32 %v8187_v50  ;;  %v8137_v41 = vsub.f32 %v17281_v14, %v8071_v63  ;;  %v8138_v16 = vsub.f32 %v17268_v26, %v8071_v63  ;;  %v8280_v2 = vadd.f32 %v8279_v54, %v8278_v27  ;;  %vm19321_vm6 = vmmov %vm19319_vm13 }
 0xb9e   :  { %v8286_v19 = vsel %vm19319_vm13, %v17376_v21, 0.0  ;;  %v8079_v45 = vrot.slane %v8078_v20, 1  ;;  %v8084_v30 = vrot.slane %v8083_v29, 4  ;;  %v8091_v50 = vsel %vm19320_vm15, %v17364_v34, -inf  ;;  %vm19323_vm13 = vmmov %vm19321_vm6 }
 0xb9f   :  { %v8287_v56 = vadd.f32 %v8286_v19, %v8285_v33  ;;  %v8189_v35 = vmul.f32 1.442695, %v8137_v41  ;;  %v8191_v36 = vmul.f32 1.442695, %v8138_v16  ;;  %v8281_v5 = vrot.slane %v8280_v2, 2  ;;  %v7660_v19 = vpop.f32.mrf.mxu1  ;;  %vm19324_vm15 = vmmov %vm19321_vm6 }
 0xba0   :  { %v8080_v17 = vmax.f32 %v8078_v20, %v8079_v45  ;;  %v8090_v26 = vsel %vm19321_vm6, %v17374_v6, -inf  ;;  %v8085_v27 = vmax.f32 %v8083_v29, %v8084_v30  ;;  %v17396_v16 = vsel %vm18806_vm7, %v13010_v8, -1e+30 }
 0xba1   :  { %v8288_v14 = vrot.slane %v8287_v56, 4  ;;  %13631 = vpow2.f32 %v8189_v35  ;;  %v8092_v4 = vmax.f32 %v8090_v26, %v8091_v50  ;;  %v17398_v45 = vadd.f32 %v8281_v5, %v8280_v2 }
 0xba2   :  { %13633 = vpow2.f32 %v8191_v36  ;;  %v8139_v63 = vsub.f32 %v17312_v23, %v8080_v17  ;;  %v8140_v54 = vsub.f32 %v17300_v24, %v8080_v17  ;;  %v8086_v20 = vrot.slane %v8085_v27, 2 }
 0xba3   :  { %v8093_v41 = vrot.slane %v8092_v4, 4  ;;  %v19322_v36 = vrot.slane %v17226_v9, 1  ;;  %v17403_v23 = vadd.f32 %v8288_v14, %v8287_v56  ;;  %v17407_v50 = vsel %vm18805_vm9, %v7650_v57, -1e+30 }
 0xba4   :  { %v8193_v29 = vmul.f32 1.442695, %v8139_v63  ;;  %v8195_v35 = vmul.f32 1.442695, %v8140_v54  ;;  %v8087_v24 = vmax.f32 %v8085_v27, %v8086_v20  ;;  %v8099_v8 = vsel %vm19323_vm13, %v17407_v50, -inf  ;;  %vm19325_vm13 = vmmov %vm19321_vm6 }
 0xba5   :  { %v8221_v30 = vadd.f32 %v19322_v36, %v17226_v9  ;;  %v8094_v17 = vmax.f32 %v8092_v4, %v8093_v41  ;;  %v17413_v5 = vsel %vm18804_vm14, %v13013_v11, -1e+30  ;;  %v17417_v2 = vsel %vm18801_vm2, %v7660_v19, -1e+30  ;;  %vm19326_vm2 = vmmov %vm19321_vm6 }
 0xba6   :  { %13635 = vpow2.f32 %v8193_v29  ;;  %v8088_v9 = vrot.slane %v8087_v24, 1  ;;  %v8100_v26 = vsel %vm19321_vm6, %v17396_v16, -inf  ;;  %v8109_v14 = vsel %vm19324_vm15, %v17413_v5, -inf  ;;  %vm19329_vm6 = vmmov %vm19326_vm2 }
 0xba7   :  { %13637 = vpow2.f32 %v8195_v35  ;;  %v8095_v56 = vrot.slane %v8094_v17, 2  ;;  %v8101_v57 = vmax.f32 %v8099_v8, %v8100_v26  ;;  %v8108_v27 = vsel %vm19325_vm13, %v17417_v2, -inf  ;;  %vm19331_vm15 = vmmov %vm19326_vm2 }
 0xba8   :  { %13639 = vrcp.f32 %v8221_v30  ;;  %v8089_v63 = vmax.f32 %v8087_v24, %v8088_v9  ;;  %v8110_v20 = vmax.f32 %v8108_v27, %v8109_v14  ;;  %v19327_v35 = vrot.slane %v17261_v51, 1  ;;  %vm19333_vm13 = vmmov %vm19326_vm2 }
 0xba9   :  { %v17425_v11 = vpop.eup %13627  ;;  %v8096_v54 = vmax.f32 %v8094_v17, %v8095_v56  ;;  %v8102_v29 = vrot.slane %v8101_v57, 4  ;;  %v19328_v30 = vrot.slane %v17270_v53, 1  ;;  %v19330_v61 = vrot.slane %v17302_v25, 1  ;;  %vm19353_vm14 = vmmov %vm19326_vm2 }
 0xbaa   :  { %v17428_v41 = vpop.eup %13629  ;;  %v8294_v19 = vsel %vm19326_vm2, %v17425_v11, 0.0  ;;  %v8230_v36 = vadd.f32 %v19327_v35, %v17261_v51  ;;  %v8141_v24 = vsub.f32 %v17340_v46, %v8089_v63  ;;  %v8142_v17 = vsub.f32 %v17336_v60, %v8089_v63  ;;  %vm19370_vm9 = vmmov %vm19326_vm2 }
 0xbab   :  { %v8239_v8 = vadd.f32 %v19328_v30, %v17270_v53  ;;  %v8295_v26 = vsel %vm19329_vm6, %v17428_v41, 0.0  ;;  %v8097_v9 = vrot.slane %v8096_v54, 1  ;;  %v8103_v14 = vmax.f32 %v8101_v57, %v8102_v29  ;;  %vm19335_vm6 = vmmov %vm19326_vm2 }
 0xbac   :  { %v8296_v56 = vadd.f32 %v8295_v26, %v8294_v19  ;;  %v8111_v27 = vrot.slane %v8110_v20, 4  ;;  %13641 = vrcp.f32 %v8230_v36  ;;  %v8197_v4 = vmul.f32 1.442695, %v8141_v24 }
 0xbad   :  { %v8199_v33 = vmul.f32 1.442695, %v8142_v17  ;;  %v8098_v48 = vmax.f32 %v8096_v54, %v8097_v9  ;;  %13643 = vrcp.f32 %v8239_v8  ;;  %v8104_v53 = vrot.slane %v8103_v14, 2 }
 0xbae   :  { %v17442_v51 = vpop.eup %13631  ;;  %v8297_v35 = vrot.slane %v8296_v56, 4  ;;  %v8112_v30 = vmax.f32 %v8110_v20, %v8111_v27  ;;  %v8248_v46 = vadd.f32 %v19330_v61, %v17302_v25  ;;  %13645 = vpow2.f32 %v8197_v4 }
 0xbaf   :  { %v17447_v7 = vpop.eup %13633  ;;  %v8303_v60 = vsel %vm19326_vm2, %v17442_v51, 0.0  ;;  %v8143_v57 = vsub.f32 %v17374_v6, %v8098_v48  ;;  %v8144_v63 = vsub.f32 %v17364_v34, %v8098_v48  ;;  %13647 = vpow2.f32 %v8199_v33 }
 0xbb0   :  { %v8298_v54 = vadd.f32 %v8297_v35, %v8296_v56  ;;  %v8304_v19 = vsel %vm19331_vm15, %v17447_v7, 0.0  ;;  %v8105_v20 = vmax.f32 %v8103_v14, %v8104_v53  ;;  %v8113_v25 = vrot.slane %v8112_v30, 2  ;;  %vm19337_vm15 = vmmov %vm19326_vm2 }
 0xbb1   :  { %v8305_v29 = vadd.f32 %v8304_v19, %v8303_v60  ;;  %v8201_v36 = vmul.f32 1.442695, %v8143_v57  ;;  %v8203_v8 = vmul.f32 1.442695, %v8144_v63  ;;  %v8290_v61 = vrot.slane %v17403_v23, 2 }
 0xbb2   :  { %v8106_v26 = vrot.slane %v8105_v20, 1  ;;  %13649 = vrcp.f32 %v8248_v46  ;;  %v19332_v4 = vrot.slane %v17317_v13, 1  ;;  %v8299_v34 = vrot.slane %v8298_v54, 2 }
 0xbb3   :  { %v17459_v24 = vpop.eup %13635  ;;  %v8306_v48 = vrot.slane %v8305_v29, 4  ;;  %13651 = vpow2.f32 %v8201_v36  ;;  %v8114_v17 = vmax.f32 %v8112_v30, %v8113_v25  ;;  %v19334_v14 = vrot.slane %v17370_v43, 1 }
 0xbb4   :  { %v8257_v6 = vadd.f32 %v19332_v4, %v17317_v13  ;;  %v17461_v33 = vpop.eup %13637  ;;  %v8312_v9 = vsel %vm19333_vm13, %v17459_v24, 0.0  ;;  %13653 = vpow2.f32 %v8203_v8  ;;  %v8107_v56 = vmax.f32 %v8105_v20, %v8106_v26  ;;  %vm19338_vm13 = vmmov %vm19326_vm2 }
 0xbb5   :  { %v8266_v27 = vadd.f32 %v19334_v14, %v17370_v43  ;;  %v13640_v35 = vpop.eup %13639  ;;  %v8307_v53 = vadd.f32 %v8306_v48, %v8305_v29  ;;  %v8313_v13 = vsel %vm19335_vm6, %v17461_v33, 0.0  ;;  %v8115_v46 = vrot.slane %v8114_v17, 1  ;;  %vm19339_vm6 = vmmov %vm19326_vm2 }
 0xbb6   :  { %13655 = vrcp.f32 %v8257_v6  ;;  %v8291_v30 = vadd.f32 %v8290_v61, %v17403_v23  ;;  %v8314_v60 = vadd.f32 %v8313_v13, %v8312_v9  ;;  %v8145_v57 = vsub.f32 %v17407_v50, %v8107_v56 }
 0xbb7   :  { %v8146_v63 = vsub.f32 %v17396_v16, %v8107_v56  ;;  %v8300_v19 = vadd.f32 %v8299_v34, %v8298_v54  ;;  %v8116_v20 = vmax.f32 %v8114_v17, %v8115_v46  ;;  %v8373_v36 = vmul.f32 %v13640_v35, %v17160_v62 }
 0xbb8   :  { %v8374_v43 = vmul.f32 %v13640_v35, %v17170_v10  ;;  %v8315_v8 = vrot.slane %v8314_v60, 4  ;;  %v8205_v29 = vmul.f32 1.442695, %v8145_v57  ;;  %13657 = vrcp.f32 %v8266_v27 }
 0xbb9   :  { %v8207_v25 = vmul.f32 1.442695, %v8146_v63  ;;  %v13642_v26 = vpop.eup %13641  ;;  %v8308_v4 = vrot.slane %v8307_v53, 2  ;;  %v8147_v6 = vsub.f32 %v17417_v2, %v8116_v20  ;;  %v8148_v23 = vsub.f32 %v17413_v5, %v8116_v20  ;;  %13016 = vmatprep.mubr.msk.f32.mxu0 %vm19326_vm2, %v8373_v36 }
 0xbba   :  { %v19336_v16 = vrot.slane %v17382_v0, 1  ;;  %v13644_v54 = vpop.eup %13643  ;;  %v8316_v62 = vadd.f32 %v8315_v8, %v8314_v60  ;;  %13659 = vpow2.f32 %v8205_v29  ;;  %13017 = vmatmul.mubr.msk.f32.vlgmr.msra.gmra.mxu0 %vm19337_vm15, %v8374_v43  ;;  %v8375_v10 = vmul.f32 %v13642_v26, %v17185_v12  ;;  %vm19341_vm15 = vmmov %vm19326_vm2 }
 0xbbb   :  { %v8376_v61 = vmul.f32 %v13642_v26, %v17191_v28  ;;  %v8292_v34 = vrot.slane %v8291_v30, 1  ;;  %13661 = vpow2.f32 %v8207_v25  ;;  %v8209_v2 = vmul.f32 1.442695, %v8147_v6  ;;  %v17484_v5 = vpop.eup %13645 }
 0xbbc   :  { %v8275_v50 = vadd.f32 %v19336_v16, %v17382_v0  ;;  %v8211_v48 = vmul.f32 1.442695, %v8148_v23  ;;  %v8301_v17 = vrot.slane %v8300_v19, 1  ;;  %13019 = vmatprep.mubr.msk.f32.mxu0 %vm19338_vm13, %v8375_v10  ;;  %v8377_v0 = vmul.f32 %v13644_v54, %v17201_v32  ;;  %v17488_v9 = vpop.eup %13647  ;;  %vm19342_vm13 = vmmov %vm19326_vm2 }
 0xbbd   :  { %v8309_v56 = vadd.f32 %v8308_v4, %v8307_v53  ;;  %v8321_v12 = vsel %vm19339_vm6, %v17484_v5, 0.0  ;;  %v19340_v28 = vrot.slane %v17398_v45, 1  ;;  %v8317_v27 = vrot.slane %v8316_v62, 2  ;;  %vm19343_vm6 = vmmov %vm19326_vm2 }
 0xbbe   :  { %13663 = vrcp.f32 %v8275_v50  ;;  %v8322_v35 = vsel %vm19326_vm2, %v17488_v9, 0.0  ;;  %13020 = vmatmul.mubr.msk.f32.gmra.mxu0 %vm19341_vm15, %v8376_v61  ;;  %v8378_v32 = vmul.f32 %v13644_v54, %v17204_v22  ;;  %v8293_v53 = vadd.f32 %v8292_v34, %v8291_v30  ;;  %vm19344_vm15 = vmmov %vm19326_vm2 }
 0xbbf   :  { %13665 = vpow2.f32 %v8209_v2  ;;  %v8284_v14 = vadd.f32 %v19340_v28, %v17398_v45  ;;  %v13650_v13 = vpop.eup %13649  ;;  %v8323_v46 = vadd.f32 %v8322_v35, %v8321_v12  ;;  %13022 = vmatprep.mubr.msk.f32.mxu0 %vm19342_vm13, %v8377_v0  ;;  %v8310_v63 = vrot.slane %v8309_v56, 1  ;;  %vm19345_vm13 = vmmov %vm19326_vm2 }
 0xbc0   :  { %13667 = vpow2.f32 %v8211_v48  ;;  %v17500_v60 = vpop.eup %13651  ;;  %v8379_v57 = vmul.f32 %v13650_v13, %v17224_v52  ;;  %v8318_v8 = vadd.f32 %v8317_v27, %v8316_v62  ;;  %v8380_v30 = vmul.f32 %v13650_v13, %v17230_v39 }
 0xbc1   :  { %13669 = vrcp.f32 %v8284_v14  ;;  %v17503_v45 = vpop.eup %13653  ;;  %v8324_v20 = vrot.slane %v8323_v46, 4  ;;  %v8330_v36 = vsel %vm19343_vm6, %v17500_v60, 0.0  ;;  %v8302_v29 = vadd.f32 %v8301_v17, %v8300_v19  ;;  %vm19346_vm6 = vmmov %vm19326_vm2 }
 0xbc2   :  { %v8331_v22 = vsel %vm19326_vm2, %v17503_v45, 0.0  ;;  %13023 = vmatmul.mubr.msk.f32.gmra.mxu0 %vm19344_vm15, %v8378_v32  ;;  %13671 = vrcp.f32 %v8293_v53  ;;  %v8319_v16 = vrot.slane %v8318_v8, 1  ;;  %v8311_v54 = vadd.f32 %v8310_v63, %v8309_v56  ;;  %vm19347_vm15 = vmmov %vm19326_vm2 }
 0xbc3   :  { %v13656_v43 = vpop.eup %13655  ;;  %v8325_v25 = vadd.f32 %v8324_v20, %v8323_v46  ;;  %v8332_v26 = vadd.f32 %v8331_v22, %v8330_v36  ;;  %13025 = vmatprep.mubr.msk.f32.mxu0 %vm19345_vm13, %v8379_v57  ;;  %13673 = vrcp.f32 %v8302_v29  ;;  %vm19348_vm13 = vmmov %vm19326_vm2 }
 0xbc4   :  { %v8381_v52 = vmul.f32 %v13656_v43, %v17248_v18  ;;  %v8382_v50 = vmul.f32 %v13656_v43, %v17257_v44  ;;  %13675 = vrcp.f32 %v8311_v54 }
 0xbc5   :  { %v13658_v4 = vpop.eup %13657  ;;  %v8326_v6 = vrot.slane %v8325_v25, 2  ;;  %v8333_v23 = vrot.slane %v8332_v26, 4 }
 0xbc6   :  { %13026 = vmatmul.mubr.msk.f32.gmra.mxu0 %vm19346_vm6, %v8380_v30  ;;  %v8383_v10 = vmul.f32 %v13658_v4, %v17276_v40  ;;  %vm19349_vm6 = vmmov %vm19326_vm2  ;;  %v8384_v0 = vmul.f32 %v13658_v4, %v17287_v37  ;;  %v8320_v40 = vadd.f32 %v8319_v16, %v8318_v8 }
 0xbc7   :  { %v17515_v62 = vpop.eup %13659  ;;  %v8327_v39 = vadd.f32 %v8326_v6, %v8325_v25  ;;  %v8334_v19 = vadd.f32 %v8333_v23, %v8332_v26  ;;  %13028 = vmatprep.mubr.msk.f32.mxu0 %vm19326_vm2, %v8381_v52 }
 0xbc8   :  { %v17519_v18 = vpop.eup %13661  ;;  %v8339_v61 = vsel %vm19347_vm15, %v17515_v62, 0.0  ;;  %vm19350_vm15 = vmmov %vm19326_vm2  ;;  %13677 = vrcp.f32 %v8320_v40 }
 0xbc9   :  { %v8335_v2 = vrot.slane %v8334_v19, 2  ;;  %v8340_v44 = vsel %vm19348_vm13, %v17519_v18, 0.0  ;;  %v8328_v12 = vrot.slane %v8327_v39, 1  ;;  %vm19351_vm13 = vmmov %vm19326_vm2 }
 0xbca   :  { %v8341_v17 = vadd.f32 %v8340_v44, %v8339_v61  ;;  %13029 = vmatmul.mubr.msk.f32.gmra.mxu0 %vm19349_vm6, %v8382_v50  ;;  %vm19352_vm6 = vmmov %vm19326_vm2 }
 0xbcb   :  { %v13664_v34 = vpop.eup %13663  ;;  %v8336_v28 = vadd.f32 %v8335_v2, %v8334_v19  ;;  %13031 = vmatprep.mubr.msk.f32.mxu0 %vm19350_vm15, %v8383_v10  ;;  %v8329_v36 = vadd.f32 %v8328_v12, %v8327_v39  ;;  %vm19354_vm15 = vmmov %vm19326_vm2 }
 0xbcc   :  { %v17525_v48 = vpop.eup %13665  ;;  %v8385_v27 = vmul.f32 %v13664_v34, %v17305_v38  ;;  %v8342_v32 = vrot.slane %v8341_v17, 4  ;;  %v8386_v53 = vmul.f32 %v13664_v34, %v17315_v55 }
 0xbcd   :  { %v17529_v56 = vpop.eup %13667  ;;  %v8348_v14 = vsel %vm19326_vm2, %v17525_v48, 0.0  ;;  %v8337_v57 = vrot.slane %v8336_v28, 1  ;;  %13679 = vrcp.f32 %v8329_v36 }
 0xbce   :  { %v13670_v35 = vpop.eup %13669  ;;  %v8349_v13 = vsel %vm19351_vm13, %v17529_v56, 0.0  ;;  %v8343_v37 = vadd.f32 %v8342_v32, %v8341_v17  ;;  %13032 = vmatmul.mubr.msk.f32.gmra.mxu0 %vm19352_vm6, %v8384_v0  ;;  %vm19356_vm13 = vmmov %vm19326_vm2 }
 0xbcf   :  { %v8350_v46 = vadd.f32 %v8349_v13, %v8348_v14  ;;  %13034 = vmatprep.mubr.msk.f32.mxu0 %vm19353_vm14, %v8385_v27  ;;  %v8387_v20 = vmul.f32 %v13670_v35, %v17342_v47  ;;  %v13672_v38 = vpop.eup %13671  ;;  %v8388_v30 = vmul.f32 %v13670_v35, %v17346_v1  ;;  %v8338_v25 = vadd.f32 %v8337_v57, %v8336_v28  ;;  %vm19355_vm14 = vmmov %vm19326_vm2 }
 0xbd0   :  { %v8344_v43 = vrot.slane %v8343_v37, 2  ;;  %v8389_v55 = vmul.f32 %v13672_v38, %v17368_v42  ;;  %v13674_v26 = vpop.eup %13673  ;;  %v8390_v47 = vmul.f32 %v13672_v38, %v17376_v21  ;;  %vm19357_vm6 = vmmov %vm19326_vm2 }
 0xbd1   :  { %v8351_v63 = vrot.slane %v8350_v46, 4  ;;  %v13676_v6 = vpop.eup %13675  ;;  %v8391_v1 = vmul.f32 %v13674_v26, %v17425_v11  ;;  %13681 = vrcp.f32 %v8338_v25  ;;  %v8392_v42 = vmul.f32 %v13674_v26, %v17428_v41 }
 0xbd2   :  { %v8345_v22 = vadd.f32 %v8344_v43, %v8343_v37  ;;  %13035 = vmatmul.mubr.msk.f32.gmra.mxu0 %vm19326_vm2, %v8386_v53  ;;  %v8393_v54 = vmul.f32 %v13676_v6, %v17442_v51  ;;  %v8394_v21 = vmul.f32 %v13676_v6, %v17447_v7 }
 0xbd3   :  { %v8352_v8 = vadd.f32 %v8351_v63, %v8350_v46  ;;  %13037 = vmatprep.mubr.msk.f32.mxu0 %vm19354_vm15, %v8387_v20  ;;  %vm19358_vm15 = vmmov %vm19326_vm2 }
 0xbd4   :  { %v8346_v52 = vrot.slane %v8345_v22, 1 }
 0xbd5   :  { %v8353_v29 = vrot.slane %v8352_v8, 2  ;;  %v13678_v50 = vpop.eup %13677 }
 0xbd6   :  { %13038 = vmatmul.mubr.msk.f32.gmra.mxu0 %vm19355_vm14, %v8388_v30  ;;  %v8347_v16 = vadd.f32 %v8346_v52, %v8345_v22  ;;  %vm19359_vm14 = vmmov %vm19326_vm2  ;;  %v8395_v11 = vmul.f32 %v13678_v50, %v17459_v24  ;;  %v8396_v41 = vmul.f32 %v13678_v50, %v17461_v33 }
 0xbd7   :  { %v8354_v4 = vadd.f32 %v8353_v29, %v8352_v8  ;;  %13040 = vmatprep.mubr.msk.f32.mxu0 %vm19356_vm13, %v8389_v55  ;;  %vm19360_vm13 = vmmov %vm19326_vm2 }
 0xbd8   :  { %13683 = vrcp.f32 %v8347_v16 }
 0xbd9   :  { %v8355_v23 = vrot.slane %v8354_v4, 1 }
 0xbda   :  { %13041 = vmatmul.mubr.msk.f32.gmra.mxu0 %vm19357_vm6, %v8390_v47  ;;  %v13680_v19 = vpop.eup %13679  ;;  %vm19361_vm6 = vmmov %vm19326_vm2 }
 0xbdb   :  { %13043 = vmatprep.mubr.msk.f32.mxu0 %vm19326_vm2, %v8391_v1  ;;  %v8356_v39 = vadd.f32 %v8355_v23, %v8354_v4  ;;  %v8397_v51 = vmul.f32 %v13680_v19, %v17484_v5  ;;  %v8398_v61 = vmul.f32 %v13680_v19, %v17488_v9 }
 0xbdd   :  { %13685 = vrcp.f32 %v8356_v39 }
 0xbde   :  { %13044 = vmatmul.mubr.msk.f32.gmra.mxu0 %vm19358_vm15, %v8392_v42  ;;  %v13682_v10 = vpop.eup %13681  ;;  %vm19362_vm15 = vmmov %vm19326_vm2 }
 0xbdf   :  { %13046 = vmatprep.mubr.msk.f32.mxu0 %vm19359_vm14, %v8393_v54  ;;  %v8399_v7 = vmul.f32 %v13682_v10, %v17500_v60  ;;  %vm19364_vm14 = vmmov %vm19326_vm2  ;;  %v8400_v33 = vmul.f32 %v13682_v10, %v17503_v45  ;;  %v8977_v45 = vld [vmem:[%s19363_s28] sm:$0xf] }
 0xbe0   :  { %13069 = vmatprep.subr.msk.mxu0 %vm7440_vm12, %v8977_v45 }
 0xbe1   :  { %13070 = vmatpush3.msk.msra.mxu0 %vm7440_vm12, %v8977_v45 }
 0xbe2   :  { %13047 = vmatmul.mubr.msk.f32.gmra.mxu0 %vm19360_vm13, %v8394_v21  ;;  %vm19366_vm13 = vmmov %vm19326_vm2 }
 0xbe3   :  { %13049 = vmatprep.mubr.msk.f32.mxu0 %vm19361_vm6, %v8395_v11  ;;  %vm19367_vm6 = vmmov %vm19326_vm2 }
 0xbe5   :  { %v13684_v24 = vpop.eup %13683 }
 0xbe6   :  { %13050 = vmatmul.mubr.msk.f32.gmra.mxu0 %vm19326_vm2, %v8396_v41  ;;  %v8401_v5 = vmul.f32 %v13684_v24, %v17515_v62  ;;  %v8402_v9 = vmul.f32 %v13684_v24, %v17519_v18  ;;  %v8975_v62 = vld [vmem:[%s19365_s1] sm:$0xf] }
 0xbe7   :  { %13052 = vmatprep.mubr.msk.f32.mxu0 %vm19362_vm15, %v8397_v51  ;;  %vm19368_vm15 = vmmov %vm19326_vm2  ;;  %13064 = vmatprep.subr.msk.mxu1 %vm7440_vm12, %v8975_v62 }
 0xbe8   :  { %13065 = vmatpush3.msk.msra.mxu1 %vm7440_vm12, %v8975_v62 }
 0xbea   :  { %13053 = vmatmul.mubr.msk.f32.gmra.mxu0 %vm19364_vm14, %v8398_v61  ;;  %v13686_v34 = vpop.eup %13685  ;;  %vm19369_vm14 = vmmov %vm19326_vm2 }
 0xbeb   :  { %13055 = vmatprep.mubr.msk.f32.mxu0 %vm19366_vm13, %v8399_v7  ;;  %v8403_v2 = vmul.f32 %v13686_v34, %v17525_v48  ;;  %v8404_v60 = vmul.f32 %v13686_v34, %v17529_v56 }
 0xbee   :  { %13056 = vmatmul.mubr.msk.f32.gmra.mxu0 %vm19367_vm6, %v8400_v33 }
 0xbef   :  { %13058 = vmatprep.mubr.msk.f32.mxu0 %vm19326_vm2, %v8401_v5 }
 0xbf2   :  { %13059 = vmatmul.mubr.msk.f32.gmra.mxu0 %vm19368_vm15, %v8402_v9 }
 0xbf3   :  { %13061 = vmatprep.mubr.msk.f32.mxu0 %vm19369_vm14, %v8403_v2 }
 0xbf6   :  { %13062 = vmatmul.mubr.msk.f32.gmra.mxu0 %vm19370_vm9, %v8404_v60 }
 0xc7a   :  { %v13018_v18 = vpop.f32.mrf.mxu0 }
 0xc7b   :  { %v8730_v44 = vmul.f32 %v13018_v18, %v16783_v3 }
 0xc7c   :  { %v8570_v48 = vpop.f32.mrf.mxu0 }
 0xc7d   :  { %v8729_v17 = vmul.f32 %v8570_v48, %v16785_v31  ;;  %v8762_v40 = vsel %vm7343_vm8, %v8730_v44, 0.0 }
 0xc7e   :  { %v13021_v0 = vpop.f32.mrf.mxu0 }
 0xc7f   :  { %v8761_v56 = vsel %vm7343_vm8, %v8729_v17, 0.0  ;;  %v8732_v12 = vmul.f32 %v13021_v0, %v16783_v3 }
 0xc80   :  { %v8763_v28 = vadd.f32 %v8762_v40, %v8761_v56  ;;  %v8580_v14 = vpop.f32.mrf.mxu0 }
 0xc81   :  { %v8731_v27 = vmul.f32 %v8580_v14, %v16785_v31  ;;  %v8771_v13 = vsel %vm7343_vm8, %v8732_v12, 0.0  ;;  %v17609_v12 = vld [vmem:[%s19371_s2] ss:$0 sm:$0xff] }
 0xc82   :  { %v8764_v35 = vrot.slane %v8763_v28, 4  ;;  %v13024_v32 = vpop.f32.mrf.mxu0 }
 0xc83   :  { %v8770_v46 = vsel %vm7343_vm8, %v8731_v27, 0.0  ;;  %v8734_v37 = vmul.f32 %v13024_v32, %v16783_v3 }
 0xc84   :  { %v8772_v53 = vadd.f32 %v8771_v13, %v8770_v46  ;;  %v8590_v57 = vpop.f32.mrf.mxu0  ;;  %v8765_v63 = vadd.f32 %v8764_v35, %v8763_v28 }
 0xc85   :  { %v8733_v20 = vmul.f32 %v8590_v57, %v16785_v31  ;;  %v8780_v43 = vsel %vm7343_vm8, %v8734_v37, 0.0 }
 0xc86   :  { %v8773_v36 = vrot.slane %v8772_v53, 4  ;;  %v13027_v38 = vpop.f32.mrf.mxu0  ;;  %v8766_v25 = vrot.slane %v8765_v63, 2 }
 0xc87   :  { %v8779_v8 = vsel %vm7343_vm8, %v8733_v20, 0.0  ;;  %v8736_v22 = vmul.f32 %v13027_v38, %v16783_v3 }
 0xc88   :  { %v8774_v30 = vadd.f32 %v8773_v36, %v8772_v53  ;;  %v8781_v29 = vadd.f32 %v8780_v43, %v8779_v8  ;;  %v8600_v55 = vpop.f32.mrf.mxu0  ;;  %v8767_v39 = vadd.f32 %v8766_v25, %v8765_v63 }
 0xc89   :  { %v8735_v26 = vmul.f32 %v8600_v55, %v16785_v31  ;;  %v8789_v6 = vsel %vm7343_vm8, %v8736_v22, 0.0 }
 0xc8a   :  { %v8775_v52 = vrot.slane %v8774_v30, 2  ;;  %v8782_v4 = vrot.slane %v8781_v29, 4  ;;  %v13030_v47 = vpop.f32.mrf.mxu0  ;;  %v8768_v5 = vrot.slane %v8767_v39, 1 }
 0xc8b   :  { %v8788_v23 = vsel %vm7343_vm8, %v8735_v26, 0.0  ;;  %v8738_v50 = vmul.f32 %v13030_v47, %v16783_v3 }
 0xc8c   :  { %v8776_v1 = vadd.f32 %v8775_v52, %v8774_v30  ;;  %v8783_v16 = vadd.f32 %v8782_v4, %v8781_v29  ;;  %v8790_v42 = vadd.f32 %v8789_v6, %v8788_v23  ;;  %v8610_v54 = vpop.f32.mrf.mxu0  ;;  %v8769_v28 = vadd.f32 %v8768_v5, %v8767_v39 }
 0xc8d   :  { %v8737_v21 = vmul.f32 %v8610_v54, %v16785_v31  ;;  %v8798_v24 = vsel %vm7343_vm8, %v8738_v50, 0.0 }
 0xc8e   :  { %v8777_v11 = vrot.slane %v8776_v1, 1  ;;  %v8784_v19 = vrot.slane %v8783_v16, 2  ;;  %v8791_v41 = vrot.slane %v8790_v42, 4  ;;  %v13033_v51 = vpop.f32.mrf.mxu0  ;;  %v8911_v43 = vadd.f32 %v17609_v12, %v8769_v28 }
 0xc8f   :  { %v8797_v10 = vsel %vm7343_vm8, %v8737_v21, 0.0  ;;  %v8740_v61 = vmul.f32 %v13033_v51, %v16783_v3 }
 0xc90   :  { %v8785_v7 = vadd.f32 %v8784_v19, %v8783_v16  ;;  %v8620_v33 = vpop.f32.mrf.mxu0  ;;  %v8792_v34 = vadd.f32 %v8791_v41, %v8790_v42  ;;  %v8799_v9 = vadd.f32 %v8798_v24, %v8797_v10  ;;  %v8778_v60 = vadd.f32 %v8777_v11, %v8776_v1 }
 0xc91   :  { %v8739_v2 = vmul.f32 %v8620_v33, %v16785_v31  ;;  %v8807_v62 = vsel %vm7343_vm8, %v8740_v61, 0.0  ;;  %vm8927_vm13 = vcmp.gt.f32.partialorder %v8911_v43, 0.0  ;;  %v8943_v19 = vmul.f32 0.01, %v8911_v43 }
 0xc92   :  { %v8786_v45 = vrot.slane %v8785_v7, 1  ;;  %v13036_v18 = vpop.f32.mrf.mxu0  ;;  %v8793_v44 = vrot.slane %v8792_v34, 2  ;;  %v8800_v48 = vrot.slane %v8799_v9, 4  ;;  %v8912_v32 = vadd.f32 %v17609_v12, %v8778_v60 }
 0xc93   :  { %v8806_v17 = vsel %vm7343_vm8, %v8739_v2, 0.0  ;;  %v8742_v0 = vmul.f32 %v13036_v18, %v16783_v3 }
 0xc94   :  { %v8808_v40 = vadd.f32 %v8807_v62, %v8806_v17  ;;  %v8630_v56 = vpop.f32.mrf.mxu0  ;;  %v8794_v14 = vadd.f32 %v8793_v44, %v8792_v34  ;;  %v8801_v27 = vadd.f32 %v8800_v48, %v8799_v9  ;;  %v8787_v37 = vadd.f32 %v8786_v45, %v8785_v7 }
 0xc95   :  { %v8741_v35 = vmul.f32 %v8630_v56, %v16785_v31  ;;  %v8816_v57 = vsel %vm7343_vm8, %v8742_v0, 0.0  ;;  %v8944_v29 = vmul.f32 0.01, %v8912_v32  ;;  %vm8928_vm9 = vcmp.gt.f32.partialorder %v8912_v32, 0.0 }
 0xc96   :  { %v8809_v13 = vrot.slane %v8808_v40, 4  ;;  %v13039_v46 = vpop.f32.mrf.mxu0  ;;  %v8802_v53 = vrot.slane %v8801_v27, 2  ;;  %v8795_v8 = vrot.slane %v8794_v14, 1  ;;  %v8913_v4 = vadd.f32 %v17609_v12, %v8787_v37 }
 0xc97   :  { %v8815_v63 = vsel %vm7343_vm8, %v8741_v35, 0.0  ;;  %v8744_v22 = vmul.f32 %v13039_v46, %v16783_v3  ;;  %v8960_v54 = vsel %vm8928_vm9, %v8912_v32, %v8944_v29  ;;  %v8959_v44 = vsel %vm8927_vm13, %v8911_v43, %v8943_v19 }
 0xc98   :  { %v8810_v20 = vadd.f32 %v8809_v13, %v8808_v40  ;;  %v8817_v36 = vadd.f32 %v8816_v57, %v8815_v63  ;;  %v8640_v38 = vpop.f32.mrf.mxu0  ;;  %v8803_v55 = vadd.f32 %v8802_v53, %v8801_v27  ;;  %v8796_v42 = vadd.f32 %v8795_v8, %v8794_v14 }
 0xc99   :  { %v8743_v30 = vmul.f32 %v8640_v38, %v16785_v31  ;;  %v8825_v23 = vsel %vm7343_vm8, %v8744_v22, 0.0  ;;  %v8945_v41 = vmul.f32 0.01, %v8913_v4  ;;  %vm8929_vm6 = vcmp.gt.f32.partialorder %v8913_v4, 0.0 }
 0xc9a   :  { %v8811_v25 = vrot.slane %v8810_v20, 2  ;;  %v8818_v26 = vrot.slane %v8817_v36, 4  ;;  %v13042_v52 = vpop.f32.mrf.mxu0  ;;  %v8804_v39 = vrot.slane %v8803_v55, 1  ;;  %v9005_v5 = vrot.slane %v8960_v54, 7 }
 0xc9b   :  { %v8824_v1 = vsel %vm7343_vm8, %v8743_v30, 0.0  ;;  %v8914_v34 = vadd.f32 %v17609_v12, %v8796_v42  ;;  %v8746_v45 = vmul.f32 %v13042_v52, %v16783_v3  ;;  %v17627_v48 = vsel %vm8929_vm6, %v8913_v4, %v8945_v41 }
 0xc9c   :  { %v8812_v47 = vadd.f32 %v8811_v25, %v8810_v20  ;;  %v8819_v6 = vadd.f32 %v8818_v26, %v8817_v36  ;;  %v8650_v16 = vpop.f32.mrf.mxu0  ;;  %v8826_v50 = vadd.f32 %v8825_v23, %v8824_v1  ;;  %v8805_v2 = vadd.f32 %v8804_v39, %v8803_v55 }
 0xc9d   :  { %v8745_v7 = vmul.f32 %v8650_v16, %v16785_v31  ;;  %v9006_v46 = vsel %vm2652_vm1, %v9005_v5, %v8959_v44  ;;  %v8946_v37 = vmul.f32 0.01, %v8914_v34  ;;  %v8834_v57 = vsel %vm7343_vm8, %v8746_v45, 0.0 }
 0xc9e   :  { %v8820_v21 = vrot.slane %v8819_v6, 2  ;;  %v13045_v11 = vpop.f32.mrf.mxu0  ;;  %v8813_v51 = vrot.slane %v8812_v47, 1  ;;  %v8827_v10 = vrot.slane %v8826_v50, 4  ;;  %v8915_v53 = vadd.f32 %v17609_v12, %v8805_v2 }
 0xc9f   :  { %v8748_v24 = vmul.f32 %v13045_v11, %v16783_v3  ;;  %v8833_v40 = vsel %vm7343_vm8, %v8745_v7, 0.0  ;;  %vm8930_vm2 = vcmp.gt.f32.partialorder %v8914_v34, 0.0  ;;  %v9007_v25 = vrot.slane %v17627_v48, 6 }
 0xca0   :  { %v8821_v61 = vadd.f32 %v8820_v21, %v8819_v6  ;;  %v8660_v33 = vpop.f32.mrf.mxu0  ;;  %v8828_v9 = vadd.f32 %v8827_v10, %v8826_v50  ;;  %v8814_v17 = vadd.f32 %v8813_v51, %v8812_v47  ;;  %v8835_v38 = vadd.f32 %v8834_v57, %v8833_v40 }
 0xca1   :  { %v8747_v62 = vmul.f32 %v8660_v33, %v16785_v31  ;;  %v8843_v56 = vsel %vm7343_vm8, %v8748_v24, 0.0  ;;  %v8962_v47 = vsel %vm8930_vm2, %v8914_v34, %v8946_v37  ;;  %vm8931_vm15 = vcmp.gt.f32.partialorder %v8915_v53, 0.0 }
 0xca2   :  { %v8822_v60 = vrot.slane %v8821_v61, 1  ;;  %v13048_v18 = vpop.f32.mrf.mxu0  ;;  %v8829_v0 = vrot.slane %v8828_v9, 2  ;;  %v8916_v8 = vadd.f32 %v17609_v12, %v8814_v17  ;;  %v8947_v6 = vmul.f32 0.01, %v8915_v53 }
 0xca3   :  { %v8842_v28 = vsel %vm7343_vm8, %v8747_v62, 0.0  ;;  %v8750_v14 = vmul.f32 %v13048_v18, %v16783_v3  ;;  %v8836_v42 = vrot.slane %v8835_v38, 4  ;;  %v9009_v7 = vrot.slane %v8962_v47, 5 }
 0xca4   :  { %v8670_v27 = vpop.f32.mrf.mxu0  ;;  %v8823_v35 = vadd.f32 %v8822_v60, %v8821_v61  ;;  %v8830_v32 = vadd.f32 %v8829_v0, %v8828_v9  ;;  %v8844_v13 = vadd.f32 %v8843_v56, %v8842_v28  ;;  %v8948_v39 = vmul.f32 0.01, %v8916_v8 }
 0xca5   :  { %v8749_v63 = vmul.f32 %v8670_v27, %v16785_v31  ;;  %v8852_v22 = vsel %vm7343_vm8, %v8750_v14, 0.0  ;;  %vm8932_vm14 = vcmp.gt.f32.partialorder %v8916_v8, 0.0  ;;  %v8963_v5 = vsel %vm8931_vm15, %v8915_v53, %v8947_v6 }
 0xca6   :  { %v13051_v20 = vpop.f32.mrf.mxu0  ;;  %v8831_v36 = vrot.slane %v8830_v32, 1  ;;  %v8845_v43 = vrot.slane %v8844_v13, 4  ;;  %v8917_v26 = vadd.f32 %v17609_v12, %v8823_v35  ;;  %v8837_v34 = vadd.f32 %v8836_v42, %v8835_v38 }
 0xca7   :  { %v8851_v30 = vsel %vm7343_vm8, %v8749_v63, 0.0  ;;  %v8752_v29 = vmul.f32 %v13051_v20, %v16783_v3  ;;  %v8964_v44 = vsel %vm8932_vm14, %v8916_v8, %v8948_v39  ;;  %v9008_v40 = vsel %vm2655_vm0, %v9007_v25, %v9006_v46 }
 0xca8   :  { %v8680_v55 = vpop.f32.mrf.mxu0  ;;  %v8832_v52 = vadd.f32 %v8831_v36, %v8830_v32  ;;  %v8853_v4 = vadd.f32 %v8852_v22, %v8851_v30  ;;  %v8846_v50 = vadd.f32 %v8845_v43, %v8844_v13  ;;  %v8949_v61 = vmul.f32 0.01, %v8917_v26 }
 0xca9   :  { %v8751_v23 = vmul.f32 %v8680_v55, %v16785_v31  ;;  %v8861_v21 = vsel %vm7343_vm8, %v8752_v29, 0.0  ;;  %vm8933_vm9 = vcmp.gt.f32.partialorder %v8917_v26, 0.0  ;;  %v9011_v35 = vrot.slane %v8963_v5, 4 }
 0xcaa   :  { %v13054_v1 = vpop.f32.mrf.mxu0  ;;  %v8918_v16 = vadd.f32 %v17609_v12, %v8832_v52  ;;  %v8854_v54 = vrot.slane %v8853_v4, 4  ;;  %v8847_v9 = vrot.slane %v8846_v50, 2  ;;  %v8965_v0 = vsel %vm8933_vm9, %v8917_v26, %v8949_v61 }
 0xcab   :  { %v8860_v11 = vsel %vm7343_vm8, %v8751_v23, 0.0  ;;  %v8754_v10 = vmul.f32 %v13054_v1, %v16783_v3  ;;  %v9013_v53 = vrot.slane %v8964_v44, 3  ;;  %v9015_v36 = vrot.slane %v8965_v0, 2 }
 0xcac   :  { %v8690_v19 = vpop.f32.mrf.mxu0  ;;  %v8855_v41 = vadd.f32 %v8854_v54, %v8853_v4  ;;  %v8862_v51 = vadd.f32 %v8861_v21, %v8860_v11  ;;  %v8950_v60 = vmul.f32 0.01, %v8918_v16  ;;  %vm8934_vm13 = vcmp.gt.f32.partialorder %v8918_v16, 0.0 }
 0xcad   :  { %v8753_v24 = vmul.f32 %v8690_v19, %v16785_v31  ;;  %v8870_v17 = vsel %vm7343_vm8, %v8754_v10, 0.0  ;;  %v8848_v32 = vadd.f32 %v8847_v9, %v8846_v50  ;;  %v8838_v43 = vrot.slane %v8837_v34, 2 }
 0xcae   :  { %v13057_v33 = vpop.f32.mrf.mxu0  ;;  %v8863_v2 = vrot.slane %v8862_v51, 4  ;;  %v8856_v48 = vrot.slane %v8855_v41, 2  ;;  %v8966_v37 = vsel %vm8934_vm13, %v8918_v16, %v8950_v60  ;;  %v9010_v22 = vsel %vm2658_vm11, %v9009_v7, %v9008_v40 }
 0xcaf   :  { %v8869_v45 = vsel %vm7343_vm8, %v8753_v24, 0.0  ;;  %v8756_v62 = vmul.f32 %v13057_v33, %v16783_v3  ;;  %v9012_v25 = vsel %vm2661_vm4, %v9011_v35, %v9010_v22  ;;  %v9017_v47 = vrot.slane %v8966_v37, 1 }
 0xcb0   :  { %v8700_v18 = vpop.f32.mrf.mxu0  ;;  %v8864_v56 = vadd.f32 %v8863_v2, %v8862_v51  ;;  %v8871_v28 = vadd.f32 %v8870_v17, %v8869_v45  ;;  %v8857_v8 = vadd.f32 %v8856_v48, %v8855_v41  ;;  %v9014_v4 = vsel %vm2664_vm5, %v9013_v53, %v9012_v25 }
 0xcb1   :  { %v8755_v14 = vmul.f32 %v8700_v18, %v16785_v31  ;;  %v8879_v13 = vsel %vm7343_vm8, %v8756_v62, 0.0  ;;  %v8849_v6 = vrot.slane %v8848_v32, 1  ;;  %vm19372_vm6 = vcmask 1046534  }
 0xcb2   :  { %v13060_v27 = vpop.f32.mrf.mxu0  ;;  %v8865_v57 = vrot.slane %v8864_v56, 2  ;;  %v8872_v63 = vrot.slane %v8871_v28, 4  ;;  %v9016_v1 = vsel %vm19372_vm6, %v9015_v36, %v9014_v4  ;;  %v8839_v42 = vadd.f32 %v8838_v43, %v8837_v34 }
 0xcb3   :  { %v8878_v20 = vsel %vm7343_vm8, %v8755_v14, 0.0  ;;  %v8758_v55 = vmul.f32 %v13060_v27, %v16783_v3  ;;  %v8858_v50 = vrot.slane %v8857_v8, 1  ;;  %vm19373_vm2 = vcmask 1047559  }
 0xcb4   :  { %v8710_v38 = vpop.f32.mrf.mxu0  ;;  %v8880_v46 = vadd.f32 %v8879_v13, %v8878_v20  ;;  %v8866_v30 = vadd.f32 %v8865_v57, %v8864_v56  ;;  %v8873_v29 = vadd.f32 %v8872_v63, %v8871_v28  ;;  %v9018_v39 = vsel %vm19373_vm2, %v9017_v47, %v9016_v1 }
 0xcb5   :  { %v8757_v16 = vmul.f32 %v8710_v38, %v16785_v31  ;;  %v8888_v41 = vsel %vm7343_vm8, %v8758_v55, 0.0  ;;  %13066 = vmatprep.mubr.msk.f32.mxu1 %vm7343_vm8, %v9018_v39  ;;  %13071 = vmatprep.mubr.msk.f32.mxu0 %vm7343_vm8, %v9018_v39  ;;  %v8850_v24 = vadd.f32 %v8849_v6, %v8848_v32  ;;  %v8859_v34 = vadd.f32 %v8858_v50, %v8857_v8 }
 0xcb6   :  { %v13063_v26 = vpop.f32.mrf.mxu0  ;;  %v8881_v52 = vrot.slane %v8880_v46, 4  ;;  %v8874_v23 = vrot.slane %v8873_v29, 2  ;;  %v8867_v11 = vrot.slane %v8866_v30, 1  ;;  %v8840_v60 = vrot.slane %v8839_v42, 1 }
 0xcb7   :  { %v8887_v51 = vsel %vm7343_vm8, %v8757_v16, 0.0  ;;  %v8760_v7 = vmul.f32 %v13063_v26, %v16783_v3  ;;  %v8920_v0 = vadd.f32 %v17609_v12, %v8850_v24  ;;  %v8921_v3 = vadd.f32 %v17609_v12, %v8859_v34 }
 0xcb8   :  { %v8882_v54 = vadd.f32 %v8881_v52, %v8880_v46  ;;  %v8720_v21 = vpop.f32.mrf.mxu0  ;;  %v8875_v19 = vadd.f32 %v8874_v23, %v8873_v29  ;;  %v8889_v61 = vadd.f32 %v8888_v41, %v8887_v51  ;;  %v8868_v45 = vadd.f32 %v8867_v11, %v8866_v30 }
 0xcb9   :  { %v8759_v5 = vmul.f32 %v8720_v21, %v16785_v31  ;;  %v8897_v62 = vsel %vm7343_vm8, %v8760_v7, 0.0  ;;  %v8841_v31 = vadd.f32 %v8840_v60, %v8839_v42  ;;  %v8952_v13 = vmul.f32 0.01, %v8920_v0  ;;  %v12082_v60 = vld [vmem:[%s19375_s7] ss:$0 sm:$0xff] }
 0xcba   :  { %v8883_v10 = vrot.slane %v8882_v54, 2  ;;  %v8876_v33 = vrot.slane %v8875_v19, 1  ;;  %v8890_v2 = vrot.slane %v8889_v61, 4  ;;  %v8922_v14 = vadd.f32 %v17609_v12, %v8868_v45 }
 0xcbb   :  { %v8896_v17 = vsel %vm7343_vm8, %v8759_v5, 0.0  ;;  %vm8936_vm15 = vcmp.gt.f32.partialorder %v8920_v0, 0.0  ;;  %v8953_v57 = vmul.f32 0.01, %v8921_v3  ;;  %v8919_v20 = vadd.f32 %v17609_v12, %v8841_v31 }
 0xcbc   :  { %v8884_v9 = vadd.f32 %v8883_v10, %v8882_v54  ;;  %v8877_v18 = vadd.f32 %v8876_v33, %v8875_v19  ;;  %v8891_v48 = vadd.f32 %v8890_v2, %v8889_v61  ;;  %v8898_v40 = vadd.f32 %v8897_v62, %v8896_v17  ;;  %v17696_v17 = vld [vmem:[%s19376_s11] ss:$0 sm:$0xff] }
 0xcbd   :  { %vm8937_vm14 = vcmp.gt.f32.partialorder %v8921_v3, 0.0  ;;  %v8954_v36 = vmul.f32 0.01, %v8922_v14  ;;  %vm8938_vm9 = vcmp.gt.f32.partialorder %v8922_v14, 0.0  ;;  %v8968_v46 = vsel %vm8936_vm15, %v8920_v0, %v8952_v13  ;;  %v19382_v13 = vld [vmem:[#allocation55_spill] sm:$0xff] }
 0xcbe   :  { %v8885_v44 = vrot.slane %v8884_v9, 1  ;;  %v8892_v28 = vrot.slane %v8891_v48, 2  ;;  %v8899_v27 = vrot.slane %v8898_v40, 4  ;;  %v8923_v35 = vadd.f32 %v17609_v12, %v8877_v18 }
 0xcbf   :  { %v8969_v29 = vsel %vm8937_vm14, %v8921_v3, %v8953_v57  ;;  %vm8935_vm2 = vcmp.gt.f32.partialorder %v8919_v20, 0.0  ;;  %v8951_v25 = vmul.f32 0.01, %v8919_v20  ;;  %v8970_v26 = vsel %vm8938_vm9, %v8922_v14, %v8954_v36  ;;  %v19380_v14 = vld [vmem:[#allocation56_spill] sm:$0xff]  ;;  %v19384_v36 = vld [vmem:[#allocation47_spill] sm:$0xff] }
 0xcc0   :  { %v8886_v56 = vadd.f32 %v8885_v44, %v8884_v9  ;;  %v8893_v32 = vadd.f32 %v8892_v28, %v8891_v48  ;;  %v8900_v53 = vadd.f32 %v8899_v27, %v8898_v40  ;;  %v8955_v43 = vmul.f32 0.01, %v8923_v35  ;;  %v8980_v9 = vld [vmem:[%s19374_s10] sm:$0xf] }
 0xcc1   :  { %vm8939_vm13 = vcmp.gt.f32.partialorder %v8923_v35, 0.0  ;;  %v9019_v4 = vrot.slane %v8968_v46, 7  ;;  %v9021_v23 = vrot.slane %v8969_v29, 6  ;;  %v9023_v42 = vrot.slane %v8970_v26, 5  ;;  %13074 = vmatprep.subr.msk.mxu1 %vm7440_vm12, %v8980_v9  ;;  %v19386_v26 = vld [vmem:[#allocation62_spill] sm:$0xff] }
 0xcc2   :  { %v8924_v37 = vadd.f32 %v17609_v12, %v8886_v56  ;;  %v8894_v63 = vrot.slane %v8893_v32, 1  ;;  %v8901_v38 = vrot.slane %v8900_v53, 2  ;;  %v8971_v47 = vsel %vm8939_vm13, %v8923_v35, %v8955_v43  ;;  %v12078_v56 = vld [vmem:[%s19379_s0] ss:$0 sm:$0xff]  ;;  %v19385_v43 = vld [vmem:[#allocation57_spill] sm:$0xff] }
 0xcc3   :  { %v8967_v54 = vsel %vm8935_vm2, %v8919_v20, %v8951_v25  ;;  %v9025_v39 = vrot.slane %v8971_v47, 4  ;;  %vm19378_vm14 = vcmask 1047559   ;;  %v9418_v31 = vmul.f32 %v17696_v17, %v16736_v59  ;;  %v19381_v35 = vld [vmem:[#allocation58_spill] sm:$0xff] }
 0xcc4   :  { %v8895_v8 = vadd.f32 %v8894_v63, %v8893_v32  ;;  %v8956_v22 = vmul.f32 0.01, %v8924_v37  ;;  %v8902_v30 = vadd.f32 %v8901_v38, %v8900_v53  ;;  %vm8940_vm6 = vcmp.gt.f32.partialorder %v8924_v37, 0.0  ;;  %v19383_v53 = vld [vmem:[#allocation60_spill] sm:$0xff] }
 0xcc5   :  { %v9020_v11 = vsel %vm2652_vm1, %v9019_v4, %v8967_v54  ;;  %v9417_v27 = vmul.f32 %v17696_v17, %v19380_v14  ;;  %v9420_v32 = vmul.f32 %v17696_v17, %v19381_v35  ;;  %v9422_v57 = vmul.f32 %v17696_v17, %v19383_v53  ;;  %v19387_v4 = vld [vmem:[#allocation59_spill] sm:$0xff] }
 0xcc6   :  { %v8925_v55 = vadd.f32 %v17609_v12, %v8895_v8  ;;  %v8903_v52 = vrot.slane %v8902_v30, 1  ;;  %v8972_v1 = vsel %vm8940_vm6, %v8924_v37, %v8956_v22  ;;  %v9022_v41 = vsel %vm2655_vm0, %v9021_v23, %v9020_v11 }
 0xcc7   :  { %v9027_v19 = vrot.slane %v8972_v1, 3  ;;  %v9024_v61 = vsel %vm2658_vm11, %v9023_v42, %v9022_v41  ;;  %v9419_v37 = vmul.f32 %v17696_v17, %v19382_v13  ;;  %v9421_v59 = vmul.f32 %v17696_v17, %v19385_v43 }
 0xcc8   :  { %vm8941_vm7 = vcmp.gt.f32.partialorder %v8925_v55, 0.0  ;;  %v8957_v6 = vmul.f32 0.01, %v8925_v55  ;;  %v8904_v16 = vadd.f32 %v8903_v52, %v8902_v30  ;;  %v9026_v24 = vsel %vm2661_vm4, %v9025_v39, %v9024_v61 }
 0xcc9   :  { %v9028_v33 = vsel %vm2664_vm5, %v9027_v19, %v9026_v24  ;;  %v9424_v52 = vmul.f32 %v17696_v17, %v19386_v26  ;;  %v9423_v47 = vmul.f32 %v17696_v17, %v19387_v4 }
 0xcca   :  { %v8973_v50 = vsel %vm8941_vm7, %v8925_v55, %v8957_v6  ;;  %v8926_v21 = vadd.f32 %v17609_v12, %v8904_v16  ;;  %vm19377_vm7 = vcmask 1046534   ;;  %v19388_v6 = vld [vmem:[#allocation63_spill] sm:$0xff] }
 0xccb   :  { %v9029_v51 = vrot.slane %v8973_v50, 2  ;;  %v9426_v23 = vmul.f32 %v17696_v17, %v19388_v6 }
 0xccc   :  { %vm8942_vm15 = vcmp.gt.f32.partialorder %v8926_v21, 0.0  ;;  %v8958_v10 = vmul.f32 0.01, %v8926_v21 }
 0xccd   :  { %v9030_v12 = vsel %vm19377_vm7, %v9029_v51, %v9028_v33 }
 0xcce   :  { %v8974_v7 = vsel %vm8942_vm15, %v8926_v21, %v8958_v10 }
 0xccf   :  { %v9031_v5 = vrot.slane %v8974_v7, 1 }
 0xcd1   :  { %v9032_v34 = vsel %vm19378_vm14, %v9031_v5, %v9030_v12 }
 0xcd2   :  { %13067 = vmatmul.mubr.msk.f32.vlgmr.msra.gmra.mxu1 %vm7343_vm8, %v9032_v34  ;;  %13072 = vmatmul.mubr.msk.f32.vlgmr.msra.gmra.mxu0 %vm7343_vm8, %v9032_v34 }
 0xcd3   :  { %13075 = vmatpush3.msk.msra.mxu1 %vm7440_vm12, %v8980_v9 }
 0xd92   :  { %v13073_v2 = vpop.f32.mrf.mxu0  ;;  %v13068_v48 = vpop.f32.mrf.mxu1 }
 0xd93   :  { %v17715_v8 = vadd.f32 %v13068_v48, %v12078_v56  ;;  %v17729_v16 = vadd.f32 %v13073_v2, %v12082_v60 }
 0xd94   :  { %v9190_v45 = vpop.f32.mrf.mxu0  ;;  %v9106_v28 = vpop.f32.mrf.mxu1 }
 0xd95   :  { %v9191_v62 = vadd.f32 %v12082_v60, %v9190_v45  ;;  %v17717_v46 = vadd.f32 %v12078_v56, %v9106_v28  ;;  %v19389_v45 = vld [vmem:[#allocation61_spill] sm:$0xff]  ;;  %v9257_v56 = vrot.slane %v17729_v16, %v19237_v49 }
 0xd97   :  { %v9201_v18 = vcombine.high %v9191_v62, %v9191_v62  ;;  %v9208_v44 = vrot.slane %v9191_v62, %v19237_v49  ;;  %v9425_v62 = vmul.f32 %v17696_v17, %v19389_v45 }
 0xd99   :  { %v9216_v0 = vcombine.high %v9208_v44, %v9208_v44  ;;  %v9224_v40 = vrot.slane %v9208_v44, %v19237_v49  ;;  %v9215_v3 = vrot.slane %v9201_v18, %v19237_v49 }
 0xd9b   :  { %v9238_v63 = vrot.slane %v9216_v0, %v19237_v49  ;;  %v9246_v20 = vcombine.high %v9224_v40, %v9224_v40  ;;  %v9302_v38 = vrot.slane %v9224_v40, %v19384_v36  ;;  %v9217_v22 = vcombine.high %v9215_v3, %v9215_v3 }
 0xd9c   :  { %v9231_v30 = vrot.slane %v9215_v3, %v19237_v49 }
 0xd9d   :  { %v9248_v29 = vcombine.high %v9238_v63, %v9238_v63  ;;  %v9306_v55 = vrot.slane %v9238_v63, %v19384_v36  ;;  %v9310_v25 = vrot.slane %v9246_v20, %v19384_v36  ;;  %v9379_v1 = vadd.f32 %v9302_v38, %v17717_v46 }
 0xd9e   :  { %v9380_v50 = vadd.f32 %v9302_v38, %v17715_v8  ;;  %v17735_v39 = vrot.slane %v9217_v22, %v19237_v49  ;;  %v9318_v41 = vrot.slane %v9231_v30, %v19384_v36  ;;  %v9247_v48 = vcombine.high %v9231_v30, %v9231_v30  ;;  %v19390_v38 = vld [vmem:[#allocation64_spill] sm:$0xff] }
 0xd9f   :  { %v9314_v42 = vrot.slane %v9248_v29, %v19384_v36  ;;  %v9382_v54 = vadd.f32 %v9306_v55, %v17715_v8  ;;  %v9384_v21 = vadd.f32 %v9310_v25, %v17715_v8  ;;  %v9449_v11 = vadd.f32 %v9417_v27, %v9379_v1  ;;  %v19391_v1 = vld [vmem:[#allocation66_spill] sm:$0xff] }
 0xda0   :  { %v9381_v19 = vadd.f32 %v9306_v55, %v17717_v46  ;;  %v9450_v51 = vadd.f32 %v9418_v31, %v9380_v50  ;;  %v9383_v61 = vadd.f32 %v9310_v25, %v17717_v46  ;;  %v9322_v18 = vrot.slane %v17735_v39, %v19384_v36 }
 0xda1   :  { %v9452_v10 = vadd.f32 %v9420_v32, %v9382_v54  ;;  %vm9481_vm9 = vcmp.gt.f32.partialorder %v9449_v11, 0.0  ;;  %v9513_v7 = vmul.f32 0.2, %v9449_v11  ;;  %v9385_v33 = vadd.f32 %v9314_v42, %v17717_v46 }
 0xda2   :  { %v9451_v24 = vadd.f32 %v9419_v37, %v9381_v19  ;;  %vm9482_vm13 = vcmp.gt.f32.partialorder %v9450_v51, 0.0  ;;  %v9514_v5 = vmul.f32 0.2, %v9450_v51  ;;  %v9454_v34 = vadd.f32 %v9422_v57, %v9384_v21 }
 0xda3   :  { %v9516_v12 = vmul.f32 0.2, %v9452_v10  ;;  %v9545_v9 = vsel %vm9481_vm9, %v9449_v11, %v9513_v7  ;;  %v9453_v60 = vadd.f32 %v9421_v59, %v9383_v61  ;;  %vm9484_vm2 = vcmp.gt.f32.partialorder %v9452_v10, 0.0 }
 0xda4   :  { %vm9483_vm6 = vcmp.gt.f32.partialorder %v9451_v24, 0.0  ;;  %v9515_v2 = vmul.f32 0.2, %v9451_v24  ;;  %13076 = vmatprep.mubr.msk.f32.mxu1 %vm7343_vm8, %v9545_v9  ;;  %v9546_v44 = vsel %vm9482_vm13, %v9450_v51, %v9514_v5  ;;  %v9455_v3 = vadd.f32 %v9423_v47, %v9385_v33  ;;  %v19394_v5 = vld [vmem:[#allocation69_spill] sm:$0xff] }
 0xda5   :  { %13077 = vmatmul.mubr.msk.f32.vlgmr.msra.gmra.mxu1 %vm7343_vm8, %v9546_v44  ;;  %v9517_v40 = vmul.f32 0.2, %v9453_v60  ;;  %vm9485_vm15 = vcmp.gt.f32.partialorder %v9453_v60, 0.0  ;;  %v9386_v28 = vadd.f32 %v9314_v42, %v17715_v8  ;;  %v9387_v31 = vadd.f32 %v9318_v41, %v17717_v46 }
 0xda6   :  { %v9547_v0 = vsel %vm9483_vm6, %v9451_v24, %v9515_v2  ;;  %v9249_v14 = vcombine.high %v17735_v39, %v17735_v39  ;;  %v9388_v27 = vadd.f32 %v9318_v41, %v17715_v8  ;;  %v9548_v35 = vsel %vm9484_vm2, %v9452_v10, %v9516_v12  ;;  %v19393_v24 = vld [vmem:[#allocation68_spill] sm:$0xff] }
 0xda7   :  { %13079 = vmatprep.mubr.msk.f32.mxu1 %vm7343_vm8, %v9547_v0  ;;  %v9518_v32 = vmul.f32 0.2, %v9454_v34  ;;  %vm9486_vm7 = vcmp.gt.f32.partialorder %v9454_v34, 0.0  ;;  %v9519_v13 = vmul.f32 0.2, %v9455_v3  ;;  %v9456_v37 = vadd.f32 %v9424_v52, %v9386_v28 }
 0xda8   :  { %v9389_v53 = vadd.f32 %v9322_v18, %v17717_v46  ;;  %v9326_v57 = vrot.slane %v9247_v48, %v19384_v36  ;;  %v9549_v63 = vsel %vm9485_vm15, %v9453_v60, %v9517_v40  ;;  %vm9487_vm14 = vcmp.gt.f32.partialorder %v9455_v3, 0.0 }
 0xda9   :  { %13080 = vmatmul.mubr.msk.f32.gmra.mxu1 %vm7343_vm8, %v9548_v35  ;;  %v9457_v20 = vadd.f32 %v9425_v62, %v9387_v31  ;;  %v9427_v43 = vmul.f32 %v17696_v17, %v19390_v38  ;;  %v9265_v59 = vcombine.high %v9257_v56, %v9257_v56  ;;  %v9273_v22 = vrot.slane %v9257_v56, %v19237_v49  ;;  %v19396_v56 = vld [vmem:[#allocation71_spill] sm:$0xff]  ;;  %v19397_v38 = vld [vmem:[#allocation73_spill] sm:$0xff] }
 0xdaa   :  { %13082 = vmatprep.mubr.msk.f32.mxu1 %vm7343_vm8, %v9549_v63  ;;  %v9550_v30 = vsel %vm9486_vm7, %v9454_v34, %v9518_v32  ;;  %v9458_v29 = vadd.f32 %v9426_v23, %v9388_v27  ;;  %v9551_v55 = vsel %vm9487_vm14, %v9455_v3, %v9519_v13  ;;  %v9520_v25 = vmul.f32 0.2, %v9456_v37  ;;  %v19392_v23 = vld [vmem:[#allocation67_spill] sm:$0xff]  ;;  %v19395_v3 = vld [vmem:[#allocation70_spill] sm:$0xff] }
 0xdab   :  { %v9459_v26 = vadd.f32 %v9427_v43, %v9389_v53  ;;  %v9390_v52 = vadd.f32 %v9322_v18, %v17715_v8  ;;  %vm9488_vm9 = vcmp.gt.f32.partialorder %v9456_v37, 0.0  ;;  %v9521_v4 = vmul.f32 0.2, %v9457_v20 }
 0xdac   :  { %v9391_v47 = vadd.f32 %v9326_v57, %v17717_v46  ;;  %v9330_v6 = vrot.slane %v9249_v14, %v19384_v36  ;;  %v9428_v42 = vmul.f32 %v17696_v17, %v19391_v1  ;;  %vm9489_vm13 = vcmp.gt.f32.partialorder %v9457_v20, 0.0 }
 0xdad   :  { %13083 = vmatmul.mubr.msk.f32.gmra.mxu1 %vm7343_vm8, %v9550_v30  ;;  %v9429_v50 = vmul.f32 %v17696_v17, %v19392_v23  ;;  %v9287_v54 = vrot.slane %v9265_v59, %v19237_v49  ;;  %v9334_v39 = vrot.slane %v9273_v22, %v19384_v36  ;;  %vm9490_vm6 = vcmp.gt.f32.partialorder %v9458_v29, 0.0  ;;  %v19398_v59 = vld [vmem:[#allocation72_spill] sm:$0xff]  ;;  %v19399_v23 = vld [vmem:[#allocation75_spill] sm:$0xff] }
 0xdae   :  { %13085 = vmatprep.mubr.msk.f32.mxu1 %vm7343_vm8, %v9551_v55  ;;  %v9552_v21 = vsel %vm9488_vm9, %v9456_v37, %v9520_v25  ;;  %v9522_v11 = vmul.f32 0.2, %v9458_v29  ;;  %v9460_v19 = vadd.f32 %v9428_v42, %v9390_v52  ;;  %v9392_v41 = vadd.f32 %v9326_v57, %v17715_v8 }
 0xdaf   :  { %v9553_v51 = vsel %vm9489_vm13, %v9457_v20, %v9521_v4  ;;  %v9523_v10 = vmul.f32 0.2, %v9459_v26  ;;  %v9461_v61 = vadd.f32 %v9429_v50, %v9391_v47  ;;  %v9393_v7 = vadd.f32 %v9330_v6, %v17717_v46 }
 0xdb0   :  { %v9430_v33 = vmul.f32 %v17696_v17, %v19393_v24  ;;  %v9431_v12 = vmul.f32 %v17696_v17, %v19394_v5  ;;  %vm9491_vm2 = vcmp.gt.f32.partialorder %v9459_v26, 0.0  ;;  %v9250_v34 = vcombine.high %v17729_v16, %v17729_v16 }
 0xdb1   :  { %13086 = vmatmul.mubr.msk.f32.gmra.mxu1 %vm7343_vm8, %v9552_v21  ;;  %v9295_v9 = vcombine.high %v9273_v22, %v9273_v22  ;;  %v9338_v2 = vrot.slane %v9287_v54, %v19384_v36  ;;  %v9395_v60 = vadd.f32 %v9334_v39, %v17717_v46  ;;  %v9554_v45 = vsel %vm9490_vm6, %v9458_v29, %v9522_v11  ;;  %v19401_v21 = vld [vmem:[#allocation74_spill] sm:$0xff] }
 0xdb2   :  { %13088 = vmatprep.mubr.msk.f32.mxu1 %vm7343_vm8, %v9553_v51  ;;  %v9524_v62 = vmul.f32 0.2, %v9460_v19  ;;  %v9462_v18 = vadd.f32 %v9430_v33, %v9392_v41  ;;  %v9394_v44 = vadd.f32 %v9330_v6, %v17715_v8  ;;  %v9555_v48 = vsel %vm9491_vm2, %v9459_v26, %v9523_v10 }
 0xdb3   :  { %vm9492_vm15 = vcmp.gt.f32.partialorder %v9460_v19, 0.0  ;;  %v9525_v0 = vmul.f32 0.2, %v9461_v61  ;;  %v9463_v40 = vadd.f32 %v9431_v12, %v9393_v7  ;;  %v9432_v16 = vmul.f32 %v17696_v17, %v19395_v3  ;;  %v19403_v3 = vld [vmem:[#allocation79_spill] sm:$0xff] }
 0xdb4   :  { %v9433_v28 = vmul.f32 %v17696_v17, %v19396_v56  ;;  %vm9493_vm7 = vcmp.gt.f32.partialorder %v9461_v61, 0.0  ;;  %v9264_v31 = vrot.slane %v9250_v34, %v19237_v49  ;;  %v9297_v14 = vcombine.high %v9287_v54, %v9287_v54  ;;  %v19400_v54 = vld [vmem:[#allocation76_spill] sm:$0xff]  ;;  %v19402_v34 = vld [vmem:[#allocation77_spill] sm:$0xff]  ;;  %v19404_v56 = vld [vmem:[#allocation78_spill] sm:$0xff] }
 0xdb5   :  { %13089 = vmatmul.mubr.msk.f32.gmra.mxu1 %vm7343_vm8, %v9554_v45  ;;  %v9342_v27 = vrot.slane %v9295_v9, %v19384_v36  ;;  %v9396_v35 = vadd.f32 %v9334_v39, %v17715_v8  ;;  %v9556_v32 = vsel %vm9492_vm15, %v9460_v19, %v9524_v62  ;;  %v9526_v13 = vmul.f32 0.2, %v9462_v18 }
 0xdb6   :  { %13091 = vmatprep.mubr.msk.f32.mxu1 %vm7343_vm8, %v9555_v48  ;;  %v9464_v37 = vadd.f32 %v9432_v16, %v9394_v44  ;;  %v9465_v53 = vadd.f32 %v9433_v28, %v9395_v60  ;;  %v9557_v57 = vsel %vm9493_vm7, %v9461_v61, %v9525_v0  ;;  %vm9494_vm14 = vcmp.gt.f32.partialorder %v9462_v18, 0.0 }
 0xdb7   :  { %v9527_v63 = vmul.f32 0.2, %v9463_v40  ;;  %v9397_v20 = vadd.f32 %v9338_v2, %v17717_v46  ;;  %v9434_v43 = vmul.f32 %v17696_v17, %v19397_v38  ;;  %v9435_v22 = vmul.f32 %v17696_v17, %v19398_v59 }
 0xdb8   :  { %vm9495_vm9 = vcmp.gt.f32.partialorder %v9463_v40, 0.0  ;;  %v9266_v30 = vcombine.high %v9264_v31, %v9264_v31  ;;  %v9280_v29 = vrot.slane %v9264_v31, %v19237_v49  ;;  %v9346_v55 = vrot.slane %v9297_v14, %v19384_v36  ;;  %v19405_v31 = vld [vmem:[#allocation80_spill] sm:$0xff] }
 0xdb9   :  { %13092 = vmatmul.mubr.msk.f32.gmra.mxu1 %vm7343_vm8, %v9556_v32  ;;  %v9398_v25 = vadd.f32 %v9338_v2, %v17715_v8  ;;  %v9558_v26 = vsel %vm9494_vm14, %v9462_v18, %v9526_v13  ;;  %v9528_v52 = vmul.f32 0.2, %v9464_v37  ;;  %v9529_v4 = vmul.f32 0.2, %v9465_v53 }
 0xdba   :  { %13094 = vmatprep.mubr.msk.f32.mxu1 %vm7343_vm8, %v9557_v57  ;;  %v9466_v47 = vadd.f32 %v9434_v43, %v9396_v35  ;;  %v9559_v6 = vsel %vm9495_vm9, %v9463_v40, %v9527_v63  ;;  %vm9496_vm13 = vcmp.gt.f32.partialorder %v9464_v37, 0.0  ;;  %v9467_v1 = vadd.f32 %v9435_v22, %v9397_v20  ;;  %v19406_v43 = vld [vmem:[#allocation81_spill] sm:$0xff] }
 0xdbb   :  { %v9399_v42 = vadd.f32 %v9342_v27, %v17717_v46  ;;  %v9436_v50 = vmul.f32 %v17696_v17, %v19399_v23  ;;  %v9438_v39 = vmul.f32 %v17696_v17, %v19400_v54  ;;  %vm9497_vm6 = vcmp.gt.f32.partialorder %v9465_v53, 0.0 }
 0xdbc   :  { %v9437_v11 = vmul.f32 %v17696_v17, %v19401_v21  ;;  %v9294_v19 = vrot.slane %v9266_v30, %v19237_v49  ;;  %v9350_v41 = vrot.slane %v9280_v29, %v19384_v36  ;;  %v9400_v51 = vadd.f32 %v9342_v27, %v17715_v8 }
 0xdbd   :  { %13095 = vmatmul.mubr.msk.f32.gmra.mxu1 %vm7343_vm8, %v9558_v26  ;;  %v9560_v10 = vsel %vm9496_vm13, %v9464_v37, %v9528_v52  ;;  %vm9498_vm2 = vcmp.gt.f32.partialorder %v9466_v47, 0.0  ;;  %v9530_v61 = vmul.f32 0.2, %v9466_v47  ;;  %v9468_v7 = vadd.f32 %v9436_v50, %v9398_v25 }
 0xdbe   :  { %13097 = vmatprep.mubr.msk.f32.mxu1 %vm7343_vm8, %v9559_v6  ;;  %v9561_v24 = vsel %vm9497_vm6, %v9465_v53, %v9529_v4  ;;  %v9531_v33 = vmul.f32 0.2, %v9467_v1  ;;  %v9469_v5 = vadd.f32 %v9437_v11, %v9399_v42  ;;  %v9401_v12 = vadd.f32 %v9346_v55, %v17717_v46  ;;  %v19407_v6 = vld [vmem:[#allocation82_spill] sm:$0xff]  ;;  %v19408_v42 = vld [vmem:[#allocation83_spill] sm:$0xff] }
 0xdbf   :  { %vm9499_vm15 = vcmp.gt.f32.partialorder %v9467_v1, 0.0  ;;  %v9439_v49 = vmul.f32 %v17696_v17, %v19402_v34  ;;  %v9296_v9 = vcombine.high %v9280_v29, %v9280_v29  ;;  %v9354_v2 = vrot.slane %v9294_v19, %v19384_v36 }
 0xdc0   :  { %v9470_v60 = vadd.f32 %v9438_v39, %v9400_v51  ;;  %v9562_v45 = vsel %vm9498_vm2, %v9466_v47, %v9530_v61  ;;  %v9532_v62 = vmul.f32 0.2, %v9468_v7  ;;  %v9402_v18 = vadd.f32 %v9346_v55, %v17715_v8  ;;  %v19409_v51 = vld [vmem:[#allocation84_spill] sm:$0xff]  ;;  %v19410_v61 = vld [vmem:[#allocation85_spill] sm:$0xff] }
 0xdc1   :  { %13098 = vmatmul.mubr.msk.f32.gmra.mxu1 %vm7343_vm8, %v9560_v10  ;;  %v9403_v44 = vadd.f32 %v9350_v41, %v17717_v46  ;;  %v9563_v48 = vsel %vm9499_vm15, %v9467_v1, %v9531_v33  ;;  %vm9500_vm7 = vcmp.gt.f32.partialorder %v9468_v7, 0.0  ;;  %v9533_v0 = vmul.f32 0.2, %v9469_v5 }
 0xdc2   :  { %13100 = vmatprep.mubr.msk.f32.mxu1 %vm7343_vm8, %v9561_v24  ;;  %v9471_v40 = vadd.f32 %v9439_v49, %v9401_v12  ;;  %v9440_v16 = vmul.f32 %v17696_v17, %v19403_v3  ;;  %v9441_v28 = vmul.f32 %v17696_v17, %v19404_v56  ;;  %vm9501_vm14 = vcmp.gt.f32.partialorder %v9469_v5, 0.0 }
 0xdc3   :  { %v9442_v14 = vmul.f32 %v17696_v17, %v19405_v31  ;;  %v9298_v27 = vcombine.high %v9294_v19, %v9294_v19  ;;  %v9404_v35 = vadd.f32 %v9350_v41, %v17715_v8  ;;  %v9534_v32 = vmul.f32 0.2, %v9470_v60 }
 0xdc4   :  { %v9564_v13 = vsel %vm9500_vm7, %v9468_v7, %v9532_v62  ;;  %vm9502_vm9 = vcmp.gt.f32.partialorder %v9470_v60, 0.0  ;;  %v9472_v37 = vadd.f32 %v9440_v16, %v9402_v18  ;;  %v9473_v53 = vadd.f32 %v9441_v28, %v9403_v44  ;;  %v8982_v16 = vld [vmem:[%s19412_s5] sm:$0x3]  ;;  %v19415_v28 = vld [vmem:[#allocation87_spill] sm:$0xff] }
 0xdc5   :  { %13101 = vmatmul.mubr.msk.f32.gmra.mxu1 %vm7343_vm8, %v9562_v45  ;;  %v9358_v57 = vrot.slane %v9296_v9, %v19384_v36  ;;  %v9565_v63 = vsel %vm9501_vm14, %v9469_v5, %v9533_v0  ;;  %v9535_v20 = vmul.f32 0.2, %v9471_v40  ;;  %v9405_v38 = vadd.f32 %v9354_v2, %v17717_v46 }
 0xdc6   :  { %13103 = vmatprep.mubr.msk.f32.mxu1 %vm7343_vm8, %v9563_v48  ;;  %vm9503_vm13 = vcmp.gt.f32.partialorder %v9471_v40, 0.0  ;;  %v9443_v59 = vmul.f32 %v17696_v17, %v19406_v43  ;;  %v9566_v22 = vsel %vm9502_vm9, %v9470_v60, %v9534_v32  ;;  %v9474_v30 = vadd.f32 %v9442_v14, %v9404_v35  ;;  %v19423_v43 = vld [vmem:[#allocation90_spill] sm:$0xff] }
 0xdc7   :  { %vm9504_vm6 = vcmp.gt.f32.partialorder %v9472_v37, 0.0  ;;  %v9536_v29 = vmul.f32 0.2, %v9472_v37  ;;  %v9537_v55 = vmul.f32 0.2, %v9473_v53  ;;  %v9406_v25 = vadd.f32 %v9354_v2, %v17715_v8  ;;  %v19411_v2 = vld [vmem:[#allocation86_spill] sm:$0xff] }
 0xdc8   :  { %v9567_v26 = vsel %vm9503_vm13, %v9471_v40, %v9535_v20  ;;  %v9475_v52 = vadd.f32 %v9443_v59, %v9405_v38  ;;  %v9407_v4 = vadd.f32 %v9358_v57, %v17717_v46  ;;  %v9362_v47 = vrot.slane %v9298_v27, %v19384_v36  ;;  %v19417_v27 = vld [vmem:[#allocation88_spill] sm:$0xff] }
 0xdc9   :  { %13104 = vmatmul.mubr.msk.f32.gmra.mxu1 %vm7343_vm8, %v9564_v13  ;;  %v9444_v1 = vmul.f32 %v17696_v17, %v19407_v6  ;;  %vm9505_vm2 = vcmp.gt.f32.partialorder %v9473_v53, 0.0  ;;  %v9445_v23 = vmul.f32 %v17696_v17, %v19408_v42  ;;  %vm9506_vm15 = vcmp.gt.f32.partialorder %v9474_v30, 0.0 }
 0xdca   :  { %13106 = vmatprep.mubr.msk.f32.mxu1 %vm7343_vm8, %v9565_v63  ;;  %v9568_v50 = vsel %vm9504_vm6, %v9472_v37, %v9536_v29  ;;  %v9538_v54 = vmul.f32 0.2, %v9474_v30  ;;  %v9408_v21 = vadd.f32 %v9358_v57, %v17715_v8  ;;  %v9569_v11 = vsel %vm9505_vm2, %v9473_v53, %v9537_v55  ;;  %v19421_v57 = vld [vmem:[#allocation89_spill] sm:$0xff] }
 0xdcb   :  { %v9476_v39 = vadd.f32 %v9444_v1, %v9406_v25  ;;  %v9539_v19 = vmul.f32 0.2, %v9475_v52  ;;  %v9477_v36 = vadd.f32 %v9445_v23, %v9407_v4  ;;  %v9409_v41 = vadd.f32 %v9362_v47, %v17717_v46  ;;  %v19429_v1 = vld [vmem:[#allocation92_spill] sm:$0xff] }
 0xdcc   :  { %v9446_v10 = vmul.f32 %v17696_v17, %v19409_v51  ;;  %vm9507_vm7 = vcmp.gt.f32.partialorder %v9475_v52, 0.0  ;;  %v9447_v7 = vmul.f32 %v17696_v17, %v19410_v61  ;;  %v9570_v24 = vsel %vm9506_vm15, %v9474_v30, %v9538_v54 }
 0xdcd   :  { %13107 = vmatmul.mubr.msk.f32.gmra.mxu1 %vm7343_vm8, %v9566_v22  ;;  %v9540_v33 = vmul.f32 0.2, %v9476_v39  ;;  %v9410_v12 = vadd.f32 %v9362_v47, %v17715_v8  ;;  %v9571_v34 = vsel %vm9507_vm7, %v9475_v52, %v9539_v19  ;;  %vm9508_vm14 = vcmp.gt.f32.partialorder %v9476_v39, 0.0  ;;  %v19432_v19 = vld [vmem:[#allocation93_spill] sm:$0xff] }
 0xdce   :  { %13109 = vmatprep.mubr.msk.f32.mxu1 %vm7343_vm8, %v9567_v26  ;;  %v9478_v5 = vadd.f32 %v9446_v10, %v9408_v21  ;;  %v9541_v49 = vmul.f32 0.2, %v9477_v36  ;;  %v9479_v9 = vadd.f32 %v9447_v7, %v9409_v41  ;;  %v9448_v60 = vmul.f32 %v17696_v17, %v19411_v2  ;;  %v19427_v26 = vld [vmem:[#allocation91_spill] sm:$0xff]  ;;  %v19434_v7 = vld [vmem:[#allocation94_spill] sm:$0xff] }
 0xdcf   :  { %vm9509_vm9 = vcmp.gt.f32.partialorder %v9477_v36, 0.0  ;;  %v9572_v45 = vsel %vm9508_vm14, %v9476_v39, %v9540_v33  ;;  %vm19413_vm15 = vcmask 1041408   ;;  %vm19416_vm14 = vcmp.gt.f32.partialorder %v19415_v28, 0.0 }
 0xdd0   :  { %v9542_v62 = vmul.f32 0.2, %v9478_v5  ;;  %v9480_v18 = vadd.f32 %v9448_v60, %v9410_v12  ;;  %v9573_v44 = vsel %vm9509_vm9, %v9477_v36, %v9541_v49  ;;  %vm9510_vm13 = vcmp.gt.f32.partialorder %v9478_v5, 0.0  ;;  %13124 = vmatprep.subr.msk.mxu0 %vm19413_vm15, %v8982_v16  ;;  %vm19414_vm7 = vmmov %vm19413_vm15  ;;  %v19438_v60 = vld [vmem:[#allocation95_spill] sm:$0xff] }
 0xdd1   :  { %13110 = vmatmul.mubr.msk.f32.gmra.mxu1 %vm7343_vm8, %v9568_v50  ;;  %v9543_v48 = vmul.f32 0.2, %v9479_v9  ;;  %vm9511_vm6 = vcmp.gt.f32.partialorder %v9479_v9, 0.0  ;;  %13125 = vmatpush3.msk.msra.mxu0 %vm19414_vm7, %v8982_v16  ;;  %vm19418_vm9 = vcmp.gt.f32.partialorder %v19417_v27, 0.0  ;;  %vm19424_vm15 = vcmp.gt.f32.partialorder %v19423_v43, 0.0 }
 0xdd2   :  { %13112 = vmatprep.mubr.msk.f32.mxu1 %vm7343_vm8, %v9569_v11  ;;  %v9574_v0 = vsel %vm9510_vm13, %v9478_v5, %v9542_v62  ;;  %v9544_v40 = vmul.f32 0.2, %v9480_v18  ;;  %vm9512_vm2 = vcmp.gt.f32.partialorder %v9480_v18, 0.0  ;;  %vm19419_vm13 = vcmask 15360  }
 0xdd3   :  { %v9575_v17 = vsel %vm9511_vm6, %v9479_v9, %v9543_v48  ;;  %vm19420_vm6 = vmmov %vm19419_vm13 }
 0xdd4   :  { %v9576_v3 = vsel %vm9512_vm2, %v9480_v18, %v9544_v40  ;;  %vm19422_vm2 = vcmp.gt.f32.partialorder %v19421_v57, 0.0  ;;  %vm19425_vm7 = vmmov %vm19420_vm6 }
 0xdd5   :  { %13113 = vmatmul.mubr.msk.f32.gmra.mxu1 %vm7343_vm8, %v9570_v24 }
 0xdd6   :  { %13115 = vmatprep.mubr.msk.f32.mxu1 %vm7343_vm8, %v9571_v34 }
 0xdd9   :  { %13116 = vmatmul.mubr.msk.f32.gmra.mxu1 %vm7343_vm8, %v9572_v45 }
 0xdda   :  { %13118 = vmatprep.mubr.msk.f32.mxu1 %vm7343_vm8, %v9573_v44 }
 0xddd   :  { %13119 = vmatmul.mubr.msk.f32.gmra.mxu1 %vm7343_vm8, %v9574_v0 }
 0xdde   :  { %13121 = vmatprep.mubr.msk.f32.mxu1 %vm7343_vm8, %v9575_v17  ;;  %v19440_v17 = vld [vmem:[#allocation96_spill] sm:$0xff] }
 0xde1   :  { %13122 = vmatmul.mubr.msk.f32.gmra.mxu1 %vm7343_vm8, %v9576_v3 }
 0xe65   :  { %v13078_v56 = vpop.f32.mrf.mxu1 }
 0xe66   :  { %v9902_v31 = vsel %vm19416_vm14, %v13078_v56, -1e+30  ;;  %vm19426_vm14 = vmmov %vm19420_vm6 }
 0xe67   :  { %v9742_v14 = vpop.f32.mrf.mxu1  ;;  %v9934_v32 = vsel %vm19419_vm13, %v9902_v31, -inf  ;;  %vm19430_vm13 = vcmp.gt.f32.partialorder %v19429_v1, 0.0 }
 0xe68   :  { %v9901_v35 = vsel %vm19418_vm9, %v9742_v14, -1e+30  ;;  %vm19428_vm9 = vcmp.gt.f32.partialorder %v19427_v26, 0.0 }
 0xe69   :  { %v9933_v13 = vsel %vm19420_vm6, %v9901_v35, -inf  ;;  %v13081_v37 = vpop.f32.mrf.mxu1 }
 0xe6a   :  { %v9935_v53 = vmax.f32 %v9933_v13, %v9934_v32  ;;  %v9904_v63 = vsel %vm19422_vm2, %v13081_v37, -1e+30  ;;  %vm19431_vm2 = vmmov %vm19420_vm6 }
 0xe6b   :  { %v9752_v20 = vpop.f32.mrf.mxu1  ;;  %v9943_v22 = vsel %vm19425_vm7, %v9904_v63, -inf  ;;  %vm19435_vm7 = vcmp.gt.f32.partialorder %v19434_v7, 0.0 }
 0xe6c   :  { %v9936_v38 = vrot.slane %v9935_v53, 4  ;;  %v9903_v59 = vsel %vm19424_vm15, %v9752_v20, -1e+30  ;;  %vm19433_vm15 = vcmp.gt.f32.partialorder %v19432_v19, 0.0 }
 0xe6d   :  { %v9942_v30 = vsel %vm19426_vm14, %v9903_v59, -inf  ;;  %v13084_v29 = vpop.f32.mrf.mxu1  ;;  %vm19436_vm14 = vmmov %vm19431_vm2 }
 0xe6e   :  { %v9937_v55 = vmax.f32 %v9935_v53, %v9936_v38  ;;  %v9944_v25 = vmax.f32 %v9942_v30, %v9943_v22  ;;  %v17886_v52 = vsel %vm19428_vm9, %v13084_v29, -1e+30  ;;  %vm19437_vm9 = vmmov %vm19431_vm2 }
 0xe6f   :  { %v9762_v4 = vpop.f32.mrf.mxu1  ;;  %v9952_v23 = vsel %vm19420_vm6, %v17886_v52, -inf  ;;  %vm19441_vm6 = vcmp.gt.f32.partialorder %v19440_v17, 0.0 }
 0xe70   :  { %v9938_v47 = vrot.slane %v9937_v55, 2  ;;  %v9945_v6 = vrot.slane %v9944_v25, 4  ;;  %v17890_v42 = vsel %vm19430_vm13, %v9762_v4, -1e+30  ;;  %vm19439_vm13 = vcmp.gt.f32.partialorder %v19438_v60, 0.0 }
 0xe71   :  { %v9951_v50 = vsel %vm19431_vm2, %v17890_v42, -inf  ;;  %v13087_v54 = vpop.f32.mrf.mxu1 }
 0xe72   :  { %v9939_v39 = vmax.f32 %v9937_v55, %v9938_v47  ;;  %v9946_v21 = vmax.f32 %v9944_v25, %v9945_v6  ;;  %v9953_v11 = vmax.f32 %v9951_v50, %v9952_v23  ;;  %v17898_v36 = vsel %vm19433_vm15, %v13087_v54, -1e+30  ;;  %vm19442_vm15 = vmmov %vm19431_vm2 }
 0xe73   :  { %v9772_v41 = vpop.f32.mrf.mxu1  ;;  %v9961_v33 = vsel %vm19436_vm14, %v17898_v36, -inf  ;;  %vm19445_vm14 = vmmov %vm19431_vm2 }
 0xe74   :  { %v9940_v51 = vrot.slane %v9939_v39, 1  ;;  %v9947_v10 = vrot.slane %v9946_v21, 2  ;;  %v9954_v61 = vrot.slane %v9953_v11, 4  ;;  %v17902_v24 = vsel %vm19435_vm7, %v9772_v41, -1e+30 }
 0xe75   :  { %v9960_v5 = vsel %vm19437_vm9, %v17902_v24, -inf  ;;  %v13090_v12 = vpop.f32.mrf.mxu1  ;;  %vm19447_vm9 = vmmov %vm19431_vm2 }
 0xe76   :  { %v9941_v34 = vmax.f32 %v9939_v39, %v9940_v51  ;;  %v9948_v49 = vmax.f32 %v9946_v21, %v9947_v10  ;;  %v9955_v9 = vmax.f32 %v9953_v11, %v9954_v61  ;;  %v9962_v2 = vmax.f32 %v9960_v5, %v9961_v33 }
 0xe77   :  { %v17910_v45 = vsel %vm19439_vm13, %v13090_v12, -1e+30  ;;  %v9782_v62 = vpop.f32.mrf.mxu1  ;;  %v19452_v12 = vld [vmem:[#allocation100_spill] sm:$0xff] }
 0xe78   :  { %v10077_v18 = vsub.f32 %v9901_v35, %v9941_v34  ;;  %v10078_v44 = vsub.f32 %v9902_v31, %v9941_v34  ;;  %v9949_v48 = vrot.slane %v9948_v49, 1  ;;  %v9956_v0 = vrot.slane %v9955_v9, 2  ;;  %v19443_v31 = vld [vmem:[#allocation97_spill] sm:$0xff] }
 0xe79   :  { %v9963_v40 = vrot.slane %v9962_v2, 4  ;;  %v17914_v3 = vsel %vm19441_vm6, %v9782_v62, -1e+30  ;;  %v13093_v16 = vpop.f32.mrf.mxu1  ;;  %v9970_v13 = vsel %vm19431_vm2, %v17910_v45, -inf  ;;  %vm19444_vm7 = vcmp.gt.f32.partialorder %v19443_v31, 0.0 }
 0xe7a   :  { %v10109_v56 = vmul.f32 1.442695, %v10077_v18  ;;  %v10111_v28 = vmul.f32 1.442695, %v10078_v44  ;;  %v9950_v14 = vmax.f32 %v9948_v49, %v9949_v48  ;;  %v9957_v27 = vmax.f32 %v9955_v9, %v9956_v0  ;;  %v17953_v62 = vld [vmem:[%s19450_s9 + $0x18] sm:$0x3f] }
 0xe7b   :  { %v9964_v32 = vmax.f32 %v9962_v2, %v9963_v40  ;;  %v9969_v35 = vsel %vm19442_vm15, %v17914_v3, -inf  ;;  %v17922_v37 = vsel %vm19444_vm7, %v13093_v16, -1e+30  ;;  %v9792_v53 = vpop.f32.mrf.mxu1  ;;  %vm19453_vm6 = vcmp.gt.f32.partialorder %v19452_v12, 0.0  ;;  %vm19456_vm15 = vmmov %vm19447_vm9  ;;  %v19459_v16 = vld [vmem:[#allocation102_spill] sm:$0xff] }
 0xe7c   :  { %13687 = vpow2.f32 %v10109_v56  ;;  %v10079_v57 = vsub.f32 %v9903_v59, %v9950_v14  ;;  %v10080_v20 = vsub.f32 %v9904_v63, %v9950_v14  ;;  %v9958_v38 = vrot.slane %v9957_v27, 1  ;;  %v19448_v59 = vld [vmem:[#allocation99_spill] sm:$0xff]  ;;  %vm19457_vm7 = vmmov %vm19447_vm9 }
 0xe7d   :  { %13689 = vpow2.f32 %v10111_v28  ;;  %v9965_v43 = vrot.slane %v9964_v32, 2  ;;  %v9971_v22 = vmax.f32 %v9969_v35, %v9970_v13  ;;  %v9979_v30 = vsel %vm19445_vm14, %v17922_v37, -inf  ;;  %v13096_v29 = vpop.f32.mrf.mxu1  ;;  %v19461_v28 = vld [vmem:[#allocation103_spill] sm:$0xff] }
 0xe7e   :  { %v10113_v55 = vmul.f32 1.442695, %v10079_v57  ;;  %v10115_v25 = vmul.f32 1.442695, %v10080_v20  ;;  %v9959_v26 = vmax.f32 %v9957_v27, %v9958_v38  ;;  %v17928_v47 = vsel %vm7855_vm10, %v9792_v53, -1e+30  ;;  %vm19451_vm10 = vmmov %vm19431_vm2 }
 0xe7f   :  { %v9966_v6 = vmax.f32 %v9964_v32, %v9965_v43  ;;  %v9972_v1 = vrot.slane %v9971_v22, 4  ;;  %v9978_v63 = vsel %vm19447_vm9, %v17928_v47, -inf  ;;  %vm19449_vm13 = vcmp.gt.f32.partialorder %v19448_v59, 0.0  ;;  %v9802_v50 = vpop.f32.mrf.mxu1  ;;  %v19465_v43 = vld [vmem:[#allocation104_spill] sm:$0xff] }
 0xe80   :  { %v17934_v23 = vsel %vm19449_vm13, %v13096_v29, -1e+30  ;;  %13691 = vpow2.f32 %v10113_v55  ;;  %v10081_v54 = vsub.f32 %v17890_v42, %v9959_v26  ;;  %v10082_v39 = vsub.f32 %v17886_v52, %v9959_v26  ;;  %v19454_v42 = vld [vmem:[#allocation101_spill] sm:$0xff] }
 0xe81   :  { %v9980_v21 = vmax.f32 %v9978_v63, %v9979_v30  ;;  %13693 = vpow2.f32 %v10115_v25  ;;  %v9967_v11 = vrot.slane %v9966_v6, 1  ;;  %v9973_v19 = vmax.f32 %v9971_v22, %v9972_v1  ;;  %v13099_v41 = vpop.f32.mrf.mxu1 }
 0xe82   :  { %v10117_v51 = vmul.f32 1.442695, %v10081_v54  ;;  %v10119_v10 = vmul.f32 1.442695, %v10082_v39  ;;  %v9988_v7 = vsel %vm19451_vm10, %v17934_v23, -inf  ;;  %vm19455_vm2 = vcmp.gt.f32.partialorder %v19454_v42, 0.0  ;;  %vm19463_vm10 = vmmov %vm19457_vm7 }
 0xe83   :  { %v9981_v61 = vrot.slane %v9980_v21, 4  ;;  %v9968_v33 = vmax.f32 %v9966_v6, %v9967_v11  ;;  %v9974_v5 = vrot.slane %v9973_v19, 2  ;;  %v17942_v34 = vsel %vm19453_vm6, %v9802_v50, -1e+30  ;;  %v9812_v49 = vpop.f32.mrf.mxu1  ;;  %vm19464_vm6 = vmmov %vm19457_vm7 }
 0xe84   :  { %v17946_v52 = vsel %vm19455_vm2, %v13099_v41, -1e+30  ;;  %13695 = vpow2.f32 %v10117_v51  ;;  %v9987_v2 = vsel %vm19456_vm15, %v17942_v34, -inf  ;;  %vm19458_vm14 = vcmask 1045504   ;;  %vm19467_vm15 = vmmov %vm19464_vm6 }
 0xe85   :  { %v9982_v9 = vmax.f32 %v9980_v21, %v9981_v61  ;;  %v9997_v60 = vsel %vm19457_vm7, %v17946_v52, -inf  ;;  %13697 = vpow2.f32 %v10119_v10  ;;  %v10083_v18 = vsub.f32 %v17902_v24, %v9968_v33  ;;  %v13102_v0 = vpop.f32.mrf.mxu1  ;;  %13179 = vmatprep.subr.msk.mxu0 %vm19458_vm14, %v17953_v62  ;;  %vm19468_vm7 = vmmov %vm19464_vm6 }
 0xe86   :  { %v10084_v44 = vsub.f32 %v17898_v36, %v9968_v33  ;;  %v9975_v48 = vmax.f32 %v9973_v19, %v9974_v5  ;;  %v9989_v17 = vmax.f32 %v9987_v2, %v9988_v7  ;;  %vm19460_vm9 = vcmp.gt.f32.partialorder %v19459_v16, 0.0  ;;  %vm19469_vm14 = vmmov %vm19464_vm6 }
 0xe87   :  { %v9983_v40 = vrot.slane %v9982_v9, 2  ;;  %v17961_v56 = vsel %vm19460_vm9, %v9812_v49, -1e+30  ;;  %vm19462_vm13 = vcmp.gt.f32.partialorder %v19461_v28, 0.0  ;;  %v10121_v27 = vmul.f32 1.442695, %v10083_v18  ;;  %v9822_v13 = vpop.f32.mrf.mxu1  ;;  %vm19470_vm9 = vmmov %vm19464_vm6 }
 0xe88   :  { %v17965_v14 = vsel %vm19462_vm13, %v13102_v0, -1e+30  ;;  %v10123_v32 = vmul.f32 1.442695, %v10084_v44  ;;  %v9976_v24 = vrot.slane %v9975_v48, 1  ;;  %v9996_v36 = vsel %vm19463_vm10, %v17961_v56, -inf  ;;  %vm19471_vm13 = vmmov %vm19464_vm6 }
 0xe89   :  { %v9984_v35 = vmax.f32 %v9982_v9, %v9983_v40  ;;  %v9990_v31 = vrot.slane %v9989_v17, 4  ;;  %v9998_v53 = vmax.f32 %v9996_v36, %v9997_v60  ;;  %v17969_v57 = vpop.eup %13687  ;;  %13699 = vpow2.f32 %v10121_v27  ;;  %v17977_v30 = vpop.f32.mrf.mxu1  ;;  %vm19472_vm10 = vmmov %vm19464_vm6 }
 0xe8a   :  { %v9977_v20 = vmax.f32 %v9975_v48, %v9976_v24  ;;  %v10006_v38 = vsel %vm19464_vm6, %v17965_v14, -inf  ;;  %vm19466_vm2 = vcmp.gt.f32.partialorder %v19465_v43, 0.0  ;;  %v17979_v29 = vpop.eup %13689  ;;  %v10173_v55 = vsel %vm19467_vm15, %v17969_v57, 0.0 }
 0xe8b   :  { %v17975_v22 = vsel %vm19466_vm2, %v9822_v13, -1e+30  ;;  %13701 = vpow2.f32 %v10123_v32  ;;  %v9985_v25 = vrot.slane %v9984_v35, 1  ;;  %v9991_v26 = vmax.f32 %v9989_v17, %v9990_v31  ;;  %v17987_v59 = vpop.f32.mrf.mxu1  ;;  %vm19473_vm2 = vmmov %vm19464_vm6 }
 0xe8c   :  { %v10174_v4 = vsel %vm19468_vm7, %v17979_v29, 0.0  ;;  %v10085_v6 = vsub.f32 %v17914_v3, %v9977_v20  ;;  %v10086_v1 = vsub.f32 %v17910_v45, %v9977_v20  ;;  %v9999_v63 = vrot.slane %v9998_v53, 4  ;;  %vm19474_vm15 = vmmov %vm19473_vm2 }
 0xe8d   :  { %v10175_v50 = vadd.f32 %v10174_v4, %v10173_v55  ;;  %v9986_v54 = vmax.f32 %v9984_v35, %v9985_v25  ;;  %v9992_v39 = vrot.slane %v9991_v26, 2  ;;  %v10005_v21 = vsel %vm19469_vm14, %v17975_v22, -inf  ;;  %v17991_v11 = vpop.eup %13691  ;;  %v17993_v61 = vpop.f32.mrf.mxu1  ;;  %vm19477_vm14 = vmmov %vm19473_vm2 }
 0xe8e   :  { %v10125_v19 = vmul.f32 1.442695, %v10085_v6  ;;  %v10127_v41 = vmul.f32 1.442695, %v10086_v1  ;;  %v10000_v51 = vmax.f32 %v9998_v53, %v9999_v63  ;;  %v10007_v10 = vmax.f32 %v10005_v21, %v10006_v38  ;;  %v17995_v3 = vpop.eup %13693 }
 0xe8f   :  { %v10176_v45 = vrot.slane %v10175_v50, 4  ;;  %v10182_v7 = vsel %vm19470_vm9, %v17991_v11, 0.0  ;;  %v10087_v33 = vsub.f32 %v17928_v47, %v9986_v54  ;;  %v10088_v5 = vsub.f32 %v17922_v37, %v9986_v54  ;;  %v18005_v17 = vpop.f32.mrf.mxu1  ;;  %v19475_v54 = vld [vmem:[#allocation105_spill] sm:$0xff] }
 0xe90   :  { %v10183_v12 = vsel %vm19471_vm13, %v17995_v3, 0.0  ;;  %13703 = vpow2.f32 %v10125_v19  ;;  %v9993_v42 = vmax.f32 %v9991_v26, %v9992_v39  ;;  %v10001_v49 = vrot.slane %v10000_v51, 2  ;;  %vm19480_vm13 = vmmov %vm19473_vm2 }
 0xe91   :  { %v10177_v9 = vadd.f32 %v10176_v45, %v10175_v50  ;;  %v10184_v2 = vadd.f32 %v10183_v12, %v10182_v7  ;;  %13705 = vpow2.f32 %v10127_v41  ;;  %v10129_v60 = vmul.f32 1.442695, %v10087_v33  ;;  %v18003_v18 = vpop.eup %13695  ;;  %v13111_v20 = vpop.f32.mrf.mxu1  ;;  %v19478_v12 = vld [vmem:[#allocation106_spill] sm:$0xff] }
 0xe92   :  { %v10131_v44 = vmul.f32 1.442695, %v10088_v5  ;;  %v9994_v48 = vrot.slane %v9993_v42, 1  ;;  %v10002_v0 = vmax.f32 %v10000_v51, %v10001_v49  ;;  %v10008_v40 = vrot.slane %v10007_v10, 4  ;;  %v18007_v47 = vpop.eup %13697 }
 0xe93   :  { %v10185_v37 = vrot.slane %v10184_v2, 4  ;;  %v10191_v16 = vsel %vm19472_vm10, %v18003_v18, 0.0  ;;  %13707 = vpow2.f32 %v10129_v60  ;;  %v10192_v28 = vsel %vm19464_vm6, %v18007_v47, 0.0  ;;  %v9852_v51 = vpop.f32.mrf.mxu1  ;;  %vm19481_vm10 = vmmov %vm19473_vm2 }
 0xe94   :  { %13709 = vpow2.f32 %v10131_v44  ;;  %v9995_v27 = vmax.f32 %v9993_v42, %v9994_v48  ;;  %v10003_v32 = vrot.slane %v10002_v0, 1  ;;  %v10178_v24 = vrot.slane %v10177_v9, 2  ;;  %v19482_v44 = vld [vmem:[#allocation107_spill] sm:$0xff] }
 0xe95   :  { %v10193_v36 = vadd.f32 %v10192_v28, %v10191_v16  ;;  %v10009_v13 = vmax.f32 %v10007_v10, %v10008_v40  ;;  %v10186_v43 = vadd.f32 %v10185_v37, %v10184_v2  ;;  %vm19476_vm7 = vcmp.gt.f32.partialorder %v19475_v54, 0.0 }
 0xe96   :  { %v10089_v35 = vsub.f32 %v17942_v34, %v9995_v27  ;;  %v10090_v31 = vsub.f32 %v17934_v23, %v9995_v27  ;;  %v10004_v53 = vmax.f32 %v10002_v0, %v10003_v32  ;;  %v18015_v38 = vpop.eup %13699  ;;  %v18022_v50 = vadd.f32 %v10178_v24, %v10177_v9  ;;  %v13114_v0 = vpop.f32.mrf.mxu1 }
 0xe97   :  { %v10194_v55 = vrot.slane %v10193_v36, 4  ;;  %v10010_v25 = vrot.slane %v10009_v13, 2  ;;  %v10200_v4 = vsel %vm19473_vm2, %v18015_v38, 0.0  ;;  %v18030_v39 = vsel %vm19476_vm7, %v17977_v30, -1e+30  ;;  %vm19485_vm7 = vmmov %vm19473_vm2 }
 0xe98   :  { %v18017_v26 = vpop.eup %13701  ;;  %v10133_v6 = vmul.f32 1.442695, %v10089_v35  ;;  %v10135_v1 = vmul.f32 1.442695, %v10090_v31  ;;  %v10091_v63 = vsub.f32 %v17961_v56, %v10004_v53  ;;  %v10092_v34 = vsub.f32 %v17946_v52, %v10004_v53  ;;  %v19486_v53 = vld [vmem:[#allocation108_spill] sm:$0xff] }
 0xe99   :  { %v10201_v23 = vsel %vm19474_vm15, %v18017_v26, 0.0  ;;  %v10011_v41 = vmax.f32 %v10009_v13, %v10010_v25  ;;  %v10187_v10 = vrot.slane %v10186_v43, 2  ;;  %v10195_v45 = vadd.f32 %v10194_v55, %v10193_v36  ;;  %vm19484_vm15 = vmmov %vm19473_vm2 }
 0xe9a   :  { %v10202_v21 = vadd.f32 %v10201_v23, %v10200_v4  ;;  %13711 = vpow2.f32 %v10133_v6  ;;  %v10137_v19 = vmul.f32 1.442695, %v10091_v63  ;;  %v10139_v56 = vmul.f32 1.442695, %v10092_v34  ;;  %v9862_v6 = vpop.f32.mrf.mxu1 }
 0xe9b   :  { %13713 = vpow2.f32 %v10135_v1  ;;  %v10012_v33 = vrot.slane %v10011_v41, 1  ;;  %v10180_v52 = vrot.slane %v18022_v50, 1  ;;  %v10015_v30 = vsel %vm19477_vm14, %v18030_v39, -inf }
 0xe9c   :  { %v10203_v7 = vrot.slane %v10202_v21, 4  ;;  %13715 = vpow2.f32 %v10137_v19  ;;  %vm19479_vm9 = vcmp.gt.f32.partialorder %v19478_v12, 0.0  ;;  %vm19483_vm6 = vcmp.gt.f32.partialorder %v19482_v44, 0.0  ;;  %v13117_v12 = vpop.f32.mrf.mxu1 }
 0xe9d   :  { %v18032_v5 = vpop.eup %13703  ;;  %13717 = vpow2.f32 %v10139_v56  ;;  %v18040_v42 = vsel %vm19479_vm9, %v17987_v59, -1e+30  ;;  %v10013_v2 = vmax.f32 %v10011_v41, %v10012_v33  ;;  %v18051_v48 = vsel %vm19483_vm6, %v17993_v61, -1e+30  ;;  %vm19488_vm9 = vmmov %vm19473_vm2 }
 0xe9e   :  { %v18042_v49 = vpop.eup %13705  ;;  %v10209_v9 = vsel %vm19480_vm13, %v18032_v5, 0.0  ;;  %v10014_v60 = vsel %vm19481_vm10, %v18040_v42, -inf  ;;  %v18053_v40 = vadd.f32 %v10187_v10, %v10186_v43  ;;  %v10196_v37 = vrot.slane %v10195_v45, 2  ;;  %vm19491_vm10 = vmmov %vm19473_vm2 }
 0xe9f   :  { %v10210_v59 = vsel %vm19473_vm2, %v18042_v49, 0.0  ;;  %v10016_v16 = vmax.f32 %v10014_v60, %v10015_v30  ;;  %v10204_v27 = vadd.f32 %v10203_v7, %v10202_v21  ;;  %v10093_v24 = vsub.f32 %v17975_v22, %v10013_v2  ;;  %vm19492_vm6 = vmmov %vm19473_vm2 }
 0xea0   :  { %v18057_v28 = vpop.eup %13707  ;;  %v10211_v32 = vadd.f32 %v10210_v59, %v10209_v9  ;;  %v10094_v36 = vsub.f32 %v17965_v14, %v10013_v2  ;;  %v10024_v31 = vsel %vm19485_vm7, %v18051_v48, -inf  ;;  %vm19487_vm14 = vcmp.gt.f32.partialorder %v19486_v53, 0.0  ;;  %v19489_v14 = vld [vmem:[#allocation109_spill] sm:$0xff]  ;;  %v19494_v59 = vld [vmem:[#allocation111_spill] sm:$0xff]  ;;  %vm19496_vm7 = vmmov %vm19473_vm2 }
 0xea1   :  { %v18061_v13 = vpop.eup %13709  ;;  %v10218_v61 = vsel %vm19484_vm15, %v18057_v28, 0.0  ;;  %v10017_v35 = vrot.slane %v10016_v16, 4  ;;  %v18070_v43 = vsel %vm19487_vm14, %v18005_v17, -1e+30  ;;  %v10141_v25 = vmul.f32 1.442695, %v10093_v24 }
 0xea2   :  { %v10212_v55 = vrot.slane %v10211_v32, 4  ;;  %v10219_v22 = vsel %vm19488_vm9, %v18061_v13, 0.0  ;;  %vm19490_vm13 = vcmp.gt.f32.partialorder %v19489_v14, 0.0  ;;  %v10143_v63 = vmul.f32 1.442695, %v10094_v36  ;;  %v19498_v53 = vld [vmem:[#allocation112_spill] sm:$0xff]  ;;  %vm19500_vm9 = vmmov %vm19473_vm2 }
 0xea3   :  { %v18076_v4 = vsel %vm19490_vm13, %v13111_v20, -1e+30  ;;  %v10220_v1 = vadd.f32 %v10219_v22, %v10218_v61  ;;  %v10018_v23 = vmax.f32 %v10016_v16, %v10017_v35  ;;  %v10023_v34 = vsel %vm19491_vm10, %v18070_v43, -inf  ;;  %vm19501_vm13 = vmmov %vm19473_vm2 }
 0xea4   :  { %v10213_v17 = vadd.f32 %v10212_v55, %v10211_v32  ;;  %13719 = vpow2.f32 %v10141_v25  ;;  %v10025_v21 = vmax.f32 %v10023_v34, %v10024_v31  ;;  %v10205_v19 = vrot.slane %v10204_v27, 2  ;;  %vm19502_vm10 = vmmov %vm19473_vm2 }
 0xea5   :  { %v10221_v41 = vrot.slane %v10220_v1, 4  ;;  %13721 = vpow2.f32 %v10143_v63  ;;  %v10019_v10 = vrot.slane %v10018_v23, 2  ;;  %v18081_v56 = vadd.f32 %v10196_v37, %v10195_v45 }
 0xea6   :  { %v10026_v20 = vrot.slane %v10025_v21, 4  ;;  %v10033_v7 = vsel %vm19492_vm6, %v18076_v4, -inf  ;;  %v18087_v30 = vsel %vm7867_vm3, %v9852_v51, -1e+30  ;;  %v10214_v2 = vrot.slane %v10213_v17, 2  ;;  %vm19497_vm3 = vmmov %vm19473_vm2 }
 0xea7   :  { %v18089_v9 = vpop.eup %13711  ;;  %v10020_v60 = vmax.f32 %v10018_v23, %v10019_v10  ;;  %v10032_v44 = vsel %vm19473_vm2, %v18087_v30, -inf  ;;  %vm19495_vm15 = vcmp.gt.f32.partialorder %v19494_v59, 0.0  ;;  %v10222_v16 = vadd.f32 %v10221_v41, %v10220_v1  ;;  %vm19503_vm6 = vmmov %vm19473_vm2 }
 0xea8   :  { %v18095_v45 = vsel %vm19495_vm15, %v13114_v0, -1e+30  ;;  %v18097_v37 = vpop.eup %13713  ;;  %v10227_v32 = vsel %vm19496_vm7, %v18089_v9, 0.0  ;;  %v10027_v51 = vmax.f32 %v10025_v21, %v10026_v20  ;;  %v10034_v24 = vmax.f32 %v10032_v44, %v10033_v7 }
 0xea9   :  { %v18101_v36 = vpop.eup %13715  ;;  %v18103_v61 = vadd.f32 %v10205_v19, %v10204_v27  ;;  %v10228_v35 = vsel %vm19497_vm3, %v18097_v37, 0.0  ;;  %v10021_v31 = vrot.slane %v10020_v60, 1  ;;  %vm19499_vm14 = vcmp.gt.f32.partialorder %v19498_v53, 0.0  ;;  %v9872_v27 = vpop.f32.mrf.mxu1  ;;  %vm19508_vm3 = vmmov %vm19473_vm2 }
 0xeaa   :  { %v18109_v0 = vsel %vm19499_vm14, %v9862_v6, -1e+30  ;;  %v18111_v55 = vpop.eup %13717  ;;  %v10229_v22 = vadd.f32 %v10228_v35, %v10227_v32  ;;  %v10236_v25 = vsel %vm19500_vm9, %v18101_v36, 0.0  ;;  %v10028_v14 = vrot.slane %v10027_v51, 2  ;;  %vm19509_vm14 = vmmov %vm19473_vm2 }
 0xeab   :  { %v10042_v1 = vsel %vm19501_vm13, %v18095_v45, -inf  ;;  %v18117_v63 = vadd.f32 %v10214_v2, %v10213_v17  ;;  %v10237_v23 = vsel %vm19502_vm10, %v18111_v55, 0.0  ;;  %v10022_v34 = vmax.f32 %v10020_v60, %v10021_v31  ;;  %v13120_v35 = vpop.f32.mrf.mxu1  ;;  %vm19510_vm9 = vmmov %vm19473_vm2 }
 0xeac   :  { %v10035_v21 = vrot.slane %v10034_v24, 4  ;;  %v10223_v6 = vrot.slane %v10222_v16, 2  ;;  %v10230_v19 = vrot.slane %v10229_v22, 4  ;;  %v10029_v41 = vmax.f32 %v10027_v51, %v10028_v14  ;;  %vm19512_vm10 = vmmov %vm19473_vm2 }
 0xead   :  { %v10041_v10 = vsel %vm19503_vm6, %v18109_v0, -inf  ;;  %v10238_v20 = vadd.f32 %v10237_v23, %v10236_v25  ;;  %v10095_v7 = vsub.f32 %v18040_v42, %v10022_v34  ;;  %v10096_v33 = vsub.f32 %v18030_v39, %v10022_v34 }
 0xeae   :  { %v10036_v44 = vmax.f32 %v10034_v24, %v10035_v21  ;;  %v10198_v17 = vrot.slane %v18081_v56, 1  ;;  %v10231_v2 = vadd.f32 %v10230_v19, %v10229_v22  ;;  %v10030_v59 = vrot.slane %v10029_v41, 1  ;;  %v19504_v21 = vld [vmem:[#allocation113_spill] sm:$0xff] }
 0xeaf   :  { %v10043_v32 = vmax.f32 %v10041_v10, %v10042_v1  ;;  %v10145_v31 = vmul.f32 1.442695, %v10095_v7  ;;  %v10147_v53 = vmul.f32 1.442695, %v10096_v33  ;;  %v18128_v54 = vadd.f32 %v10223_v6, %v10222_v16  ;;  %v19506_v16 = vld [vmem:[#allocation48_spill] sm:$0xff] }
 0xeb0   :  { %v10037_v51 = vrot.slane %v10036_v44, 2  ;;  %v10031_v25 = vmax.f32 %v10029_v41, %v10030_v59  ;;  %v10232_v39 = vrot.slane %v10231_v2, 2  ;;  %v10239_v24 = vrot.slane %v10238_v20, 4  ;;  %v9882_v41 = vpop.f32.mrf.mxu1 }
 0xeb1   :  { %v10044_v42 = vrot.slane %v10043_v32, 4  ;;  %v18130_v23 = vpop.eup %13719  ;;  %13723 = vpow2.f32 %v10145_v31  ;;  %vm19505_vm15 = vcmp.gt.f32.partialorder %v19504_v21, 0.0  ;;  %vm19507_vm7 = vcmp.gt.f32.partialorder %v19506_v16, 0.0 }
 0xeb2   :  { %v10038_v22 = vmax.f32 %v10036_v44, %v10037_v51  ;;  %v18132_v34 = vpop.eup %13721  ;;  %v10245_v1 = vsel %vm19473_vm2, %v18130_v23, 0.0  ;;  %13725 = vpow2.f32 %v10147_v53  ;;  %v18138_v19 = vsel %vm19505_vm15, %v13117_v12, -1e+30 }
 0xeb3   :  { %v18142_v6 = vsel %vm19507_vm7, %v9872_v27, -1e+30  ;;  %v10246_v10 = vsel %vm19508_vm3, %v18132_v34, 0.0  ;;  %v10097_v7 = vsub.f32 %v18070_v43, %v10031_v25  ;;  %v10098_v33 = vsub.f32 %v18051_v48, %v10031_v25  ;;  %v13123_v25 = vpop.f32.mrf.mxu1  ;;  %vm19519_vm3 = vmmov %vm19473_vm2 }
 0xeb4   :  { %v10039_v44 = vrot.slane %v10038_v22, 1  ;;  %v10225_v59 = vrot.slane %v18128_v54, 1  ;;  %v10247_v31 = vadd.f32 %v10246_v10, %v10245_v1  ;;  %v10045_v53 = vmax.f32 %v10043_v32, %v10044_v42 }
 0xeb5   :  { %v10181_v12 = vadd.f32 %v10180_v52, %v18022_v50  ;;  %v10240_v51 = vadd.f32 %v10239_v24, %v10238_v20  ;;  %v10149_v27 = vmul.f32 1.442695, %v10097_v7  ;;  %v10151_v21 = vmul.f32 1.442695, %v10098_v33  ;;  %v9892_v33 = vpop.f32.mrf.mxu1 }
 0xeb6   :  { %v10040_v16 = vmax.f32 %v10038_v22, %v10039_v44  ;;  %v18152_v14 = vadd.f32 %v10232_v39, %v10231_v2  ;;  %v10046_v60 = vrot.slane %v10045_v53, 2  ;;  %v10051_v43 = vsel %vm19509_vm14, %v18138_v19, -inf  ;;  %vm19520_vm14 = vmmov %vm19473_vm2 }
 0xeb7   :  { %v10050_v48 = vsel %vm19510_vm9, %v18142_v6, -inf  ;;  %13727 = vpow2.f32 %v10149_v27  ;;  %v10248_v52 = vrot.slane %v10247_v31, 4  ;;  %vm19511_vm13 = vcmp.gt.f32.partialorder %v17323_v15, 0.0  ;;  %vm19521_vm9 = vmmov %vm19473_vm2 }
 0xeb8   :  { %v10099_v32 = vsub.f32 %v18087_v30, %v10040_v16  ;;  %v10100_v42 = vsub.f32 %v18076_v4, %v10040_v16  ;;  %v10052_v50 = vmax.f32 %v10050_v48, %v10051_v43  ;;  %13729 = vpow2.f32 %v10151_v21  ;;  %v19516_v43 = vld [vmem:[#allocation50_spill] sm:$0xff] }
 0xeb9   :  { %v10047_v20 = vmax.f32 %v10045_v53, %v10046_v60  ;;  %v18162_v2 = vsel %vm19511_vm13, %v13120_v35, -1e+30  ;;  %v10241_v39 = vrot.slane %v10240_v51, 2  ;;  %v10234_v10 = vrot.slane %v18152_v14, 1  ;;  %v19514_v35 = vld [vmem:[#allocation49_spill] sm:$0xff]  ;;  %vm19522_vm13 = vmmov %vm19473_vm2 }
 0xeba   :  { %v10153_v24 = vmul.f32 1.442695, %v10099_v32  ;;  %v10155_v22 = vmul.f32 1.442695, %v10100_v42  ;;  %v10053_v1 = vrot.slane %v10052_v50, 4  ;;  %v10060_v30 = vsel %vm19512_vm10, %v18162_v2, -inf  ;;  %vm19525_vm10 = vmmov %vm19473_vm2 }
 0xebb   :  { %v10048_v7 = vrot.slane %v10047_v20, 1  ;;  %vm19513_vm6 = vcmp.gt.f32.partialorder %v17325_v58, 0.0  ;;  %vm19515_vm15 = vcmp.gt.f32.partialorder %v19514_v35, 0.0  ;;  %v10249_v53 = vadd.f32 %v10248_v52, %v10247_v31 }
 0xebc   :  { %v18169_v4 = vsel %vm19513_vm6, %v9882_v41, -1e+30  ;;  %13731 = vpow2.f32 %v10153_v24  ;;  %v10054_v60 = vmax.f32 %v10052_v50, %v10053_v1  ;;  %v18175_v44 = vsel %vm19515_vm15, %v13123_v25, -1e+30  ;;  %vm19526_vm6 = vmmov %vm19473_vm2 }
 0xebd   :  { %v10059_v15 = vsel %vm19473_vm2, %v18169_v4, -inf  ;;  %13733 = vpow2.f32 %v10155_v22  ;;  %v10049_v27 = vmax.f32 %v10047_v20, %v10048_v7  ;;  %vm19517_vm7 = vcmp.gt.f32.partialorder %v19516_v43, 0.0  ;;  %vm19527_vm15 = vmmov %vm19473_vm2 }
 0xebe   :  { %v10061_v21 = vmax.f32 %v10059_v15, %v10060_v30  ;;  %v10055_v16 = vrot.slane %v10054_v60, 2  ;;  %v18179_v58 = vsel %vm19517_vm7, %v9892_v33, -1e+30  ;;  %13735 = vrcp.f32 %v10181_v12  ;;  %v18184_v32 = vpop.eup %13723  ;;  %vm19528_vm7 = vmmov %vm19473_vm2 }
 0xebf   :  { %v19518_v41 = vrot.slane %v18053_v40, 1  ;;  %v10101_v42 = vsub.f32 %v18109_v0, %v10049_v27  ;;  %v10102_v25 = vsub.f32 %v18095_v45, %v10049_v27  ;;  %v10069_v50 = vsel %vm19519_vm3, %v18175_v44, -inf  ;;  %v18190_v52 = vpop.eup %13725  ;;  %vm19529_vm3 = vmmov %vm19473_vm2 }
 0xec0   :  { %v10062_v31 = vrot.slane %v10061_v21, 4  ;;  %v10254_v20 = vsel %vm19520_vm14, %v18184_v32, 0.0  ;;  %v10056_v12 = vmax.f32 %v10054_v60, %v10055_v16  ;;  %v10068_v24 = vsel %vm19521_vm9, %v18179_v58, -inf  ;;  %vm19530_vm14 = vmmov %vm19473_vm2 }
 0xec1   :  { %v10190_v48 = vadd.f32 %v19518_v41, %v18053_v40  ;;  %v10255_v40 = vsel %vm19522_vm13, %v18190_v52, 0.0  ;;  %v10157_v0 = vmul.f32 1.442695, %v10101_v42  ;;  %v10159_v22 = vmul.f32 1.442695, %v10102_v25  ;;  %vm19531_vm9 = vmmov %vm19473_vm2 }
 0xec2   :  { %v10063_v45 = vmax.f32 %v10061_v21, %v10062_v31  ;;  %v10256_v1 = vadd.f32 %v10255_v40, %v10254_v20  ;;  %v10057_v7 = vrot.slane %v10056_v12, 1  ;;  %v10070_v30 = vmax.f32 %v10068_v24, %v10069_v50 }
 0xec3   :  { %13737 = vrcp.f32 %v10190_v48  ;;  %v10199_v33 = vadd.f32 %v10198_v17, %v18081_v56  ;;  %v18201_v15 = vadd.f32 %v10241_v39, %v10240_v51  ;;  %v19523_v35 = vrot.slane %v18103_v61, 1 }
 0xec4   :  { %13739 = vpow2.f32 %v10157_v0  ;;  %v10064_v60 = vrot.slane %v10063_v45, 2  ;;  %v10257_v16 = vrot.slane %v10256_v1, 4  ;;  %v10058_v43 = vmax.f32 %v10056_v12, %v10057_v7  ;;  %v18206_v21 = vpop.eup %13727 }
 0xec5   :  { %v10208_v27 = vadd.f32 %v19523_v35, %v18103_v61  ;;  %13741 = vpow2.f32 %v10159_v22  ;;  %v10071_v41 = vrot.slane %v10070_v30, 4  ;;  %v10250_v48 = vrot.slane %v10249_v53, 2  ;;  %v18211_v51 = vpop.eup %13729 }
 0xec6   :  { %v10065_v42 = vmax.f32 %v10063_v45, %v10064_v60  ;;  %13743 = vrcp.f32 %v10199_v33  ;;  %v19524_v56 = vrot.slane %v18117_v63, 1  ;;  %v10258_v39 = vadd.f32 %v10257_v16, %v10256_v1 }
 0xec7   :  { %v10263_v25 = vsel %vm19525_vm10, %v18206_v21, 0.0  ;;  %v10103_v61 = vsub.f32 %v18142_v6, %v10058_v43  ;;  %v10104_v31 = vsub.f32 %v18138_v19, %v10058_v43  ;;  %v10264_v50 = vsel %vm19526_vm6, %v18211_v51, 0.0  ;;  %vm19533_vm10 = vmmov %vm19473_vm2 }
 0xec8   :  { %v10217_v17 = vadd.f32 %v19524_v56, %v18117_v63  ;;  %v10066_v20 = vrot.slane %v10065_v42, 1  ;;  %v10072_v12 = vmax.f32 %v10070_v30, %v10071_v41  ;;  %13745 = vrcp.f32 %v10208_v27  ;;  %vm19535_vm6 = vmmov %vm19473_vm2 }
 0xec9   :  { %v10243_v24 = vrot.slane %v18201_v15, 1  ;;  %v10265_v40 = vadd.f32 %v10264_v50, %v10263_v25  ;;  %v10161_v63 = vmul.f32 1.442695, %v10103_v61  ;;  %v10163_v0 = vmul.f32 1.442695, %v10104_v31  ;;  %v18220_v22 = vpop.eup %13731 }
 0xeca   :  { %v18222_v45 = vadd.f32 %v10250_v48, %v10249_v53  ;;  %v10067_v1 = vmax.f32 %v10065_v42, %v10066_v20  ;;  %v10073_v7 = vrot.slane %v10072_v12, 2  ;;  %13747 = vrcp.f32 %v10217_v17  ;;  %v18224_v6 = vpop.eup %13733 }
 0xecb   :  { %v10259_v19 = vrot.slane %v10258_v39, 2  ;;  %v10266_v33 = vrot.slane %v10265_v40, 4  ;;  %v10272_v30 = vsel %vm19473_vm2, %v18220_v22, 0.0  ;;  %13749 = vpow2.f32 %v10161_v63  ;;  %v13736_v60 = vpop.eup %13735 }
 0xecc   :  { %v10273_v35 = vsel %vm19527_vm15, %v18224_v6, 0.0  ;;  %13751 = vpow2.f32 %v10163_v0  ;;  %v10105_v27 = vsub.f32 %v18169_v4, %v10067_v1  ;;  %v10106_v53 = vsub.f32 %v18162_v2, %v10067_v1  ;;  %vm19536_vm15 = vmmov %vm19473_vm2 }
 0xecd   :  { %v10267_v16 = vadd.f32 %v10266_v33, %v10265_v40  ;;  %v10274_v43 = vadd.f32 %v10273_v35, %v10272_v30  ;;  %v10074_v41 = vmax.f32 %v10072_v12, %v10073_v7  ;;  %v10226_v48 = vadd.f32 %v10225_v59, %v18128_v54  ;;  %v10943_v59 = vld [vmem:[%s19450_s9 + $0x10] sm:$0xff] }
 0xece   :  { %v10165_v56 = vmul.f32 1.442695, %v10105_v27  ;;  %v10167_v17 = vmul.f32 1.442695, %v10106_v53  ;;  %v10333_v25 = vmul.f32 %v13736_v60, %v17969_v57  ;;  %v10334_v61 = vmul.f32 %v13736_v60, %v17979_v29 }
 0xecf   :  { %v10260_v31 = vadd.f32 %v10259_v19, %v10258_v39  ;;  %v10275_v50 = vrot.slane %v10274_v43, 4  ;;  %v10075_v4 = vrot.slane %v10074_v41, 1  ;;  %v10268_v20 = vrot.slane %v10267_v16, 2 }
 0xed0   :  { %v13738_v42 = vpop.eup %13737  ;;  %13753 = vpow2.f32 %v10165_v56  ;;  %13126 = vmatprep.mubr.msk.f32.mxu0 %vm19528_vm7, %v10333_v25  ;;  %v10235_v54 = vadd.f32 %v10234_v10, %v18152_v14  ;;  %v10252_v40 = vrot.slane %v18222_v45, 1  ;;  %vm19532_vm13 = vcmask 1045504   ;;  %v10942_v14 = vld [vmem:[%s19450_s9 + $0x8] sm:$0xff]  ;;  %vm19537_vm7 = vmmov %vm19473_vm2 }
 0xed1   :  { %v10335_v2 = vmul.f32 %v13738_v42, %v17991_v11  ;;  %v18243_v12 = vpop.eup %13739  ;;  %v10276_v57 = vadd.f32 %v10275_v50, %v10274_v43  ;;  %13755 = vpow2.f32 %v10167_v17  ;;  %v10076_v29 = vmax.f32 %v10074_v41, %v10075_v4  ;;  %13127 = vmatmul.mubr.msk.f32.vlgmr.msra.gmra.mxu0 %vm19529_vm3, %v10334_v61  ;;  %vm19538_vm3 = vmmov %vm19532_vm13 }
 0xed2   :  { %v10336_v39 = vmul.f32 %v13738_v42, %v17995_v3  ;;  %v18247_v11 = vpop.eup %13741  ;;  %v10281_v63 = vsel %vm19530_vm14, %v18243_v12, 0.0  ;;  %13757 = vrcp.f32 %v10226_v48  ;;  %13180 = vmatpush3.msk.msra.mxu0 %vm19532_vm13, %v17953_v62  ;;  %v10261_v0 = vrot.slane %v10260_v31, 1  ;;  %v10941_v62 = vld [vmem:[%s19450_s9] sm:$0xff]  ;;  %vm19539_vm14 = vmmov %vm19473_vm2 }
 0xed3   :  { %13129 = vmatprep.mubr.msk.f32.mxu0 %vm19531_vm9, %v10335_v2  ;;  %v13744_v10 = vpop.eup %13743  ;;  %v10282_v3 = vsel %vm19533_vm10, %v18247_v11, 0.0  ;;  %v10107_v1 = vsub.f32 %v18179_v58, %v10076_v29  ;;  %v10244_v7 = vadd.f32 %v10243_v24, %v18201_v15  ;;  %13181 = vmatprep.subr.mxu0 %v10943_v59  ;;  %v10269_v19 = vadd.f32 %v10268_v20, %v10267_v16  ;;  %v18269_v24 = vld [vmem:[%s19534_s13 + $0x18] sm:$0x3f]  ;;  %vm19540_vm9 = vmmov %vm19473_vm2 }
 0xed4   :  { %v10283_v33 = vadd.f32 %v10282_v3, %v10281_v63  ;;  %v10108_v30 = vsub.f32 %v18175_v44, %v10076_v29  ;;  %v10337_v60 = vmul.f32 %v13744_v10, %v18003_v18  ;;  %13182 = vmatpush3.msra.mxu0 %v10943_v59  ;;  %v10277_v27 = vrot.slane %v10276_v57, 2  ;;  %vm19541_vm13 = vmmov %vm19473_vm2 }
 0xed5   :  { %v13746_v35 = vpop.eup %13745  ;;  %v10169_v53 = vmul.f32 1.442695, %v10107_v1  ;;  %13130 = vmatmul.mubr.msk.f32.gmra.mxu0 %vm19535_vm6, %v10336_v39  ;;  %v10338_v43 = vmul.f32 %v13744_v10, %v18007_v47  ;;  %13759 = vrcp.f32 %v10235_v54  ;;  %13183 = vmatprep.subr.mxu0 %v10942_v14  ;;  %v10253_v18 = vadd.f32 %v10252_v40, %v18222_v45  ;;  %vm19542_vm10 = vmmov %vm19473_vm2 }
 0xed6   :  { %v10284_v58 = vrot.slane %v10283_v33, 4  ;;  %v10171_v15 = vmul.f32 1.442695, %v10108_v30  ;;  %13132 = vmatprep.mubr.msk.f32.mxu0 %vm19473_vm2, %v10337_v60  ;;  %v10339_v44 = vmul.f32 %v13746_v35, %v18015_v38  ;;  %13184 = vmatpush3.msra.mxu0 %v10942_v14  ;;  %v10270_v48 = vrot.slane %v10269_v19, 1  ;;  %vm19543_vm6 = vmmov %vm19473_vm2 }
 0xed7   :  { %v13748_v16 = vpop.eup %13747  ;;  %13761 = vpow2.f32 %v10169_v53  ;;  %13185 = vmatprep.subr.mxu0 %v10941_v62  ;;  %v10262_v42 = vadd.f32 %v10261_v0, %v10260_v31  ;;  %v10278_v17 = vadd.f32 %v10277_v27, %v10276_v57  ;;  %v10340_v45 = vmul.f32 %v13746_v35, %v18017_v26 }
 0xed8   :  { %v18271_v41 = vpop.eup %13749  ;;  %v10285_v47 = vadd.f32 %v10284_v58, %v10283_v33  ;;  %13763 = vpow2.f32 %v10171_v15  ;;  %13186 = vmatpush3.msra.mxu0 %v10941_v62  ;;  %v10341_v31 = vmul.f32 %v13748_v16, %v18032_v5  ;;  %v10342_v26 = vmul.f32 %v13748_v16, %v18042_v49 }
 0xed9   :  { %v18273_v56 = vpop.eup %13751  ;;  %v10290_v38 = vsel %vm19536_vm15, %v18271_v41, 0.0  ;;  %13133 = vmatmul.mubr.msk.f32.gmra.mxu0 %vm19537_vm7, %v10338_v43  ;;  %13765 = vrcp.f32 %v10244_v7  ;;  %13195 = vmatprep.subr.msk.mxu0 %vm19538_vm3, %v18269_v24  ;;  %v10279_v2 = vrot.slane %v10278_v17, 1  ;;  %v10271_v5 = vadd.f32 %v10270_v48, %v10269_v19  ;;  %vm19544_vm15 = vmmov %vm19473_vm2 }
 0xeda   :  { %v10286_v25 = vrot.slane %v10285_v47, 2  ;;  %v10291_v61 = vsel %vm19539_vm14, %v18273_v56, 0.0  ;;  %13135 = vmatprep.mubr.msk.f32.mxu0 %vm19540_vm9, %v10339_v44  ;;  %13767 = vrcp.f32 %v10253_v18  ;;  %vm19545_vm7 = vmmov %vm19473_vm2 }
 0xedb   :  { %v10292_v50 = vadd.f32 %v10291_v61, %v10290_v38  ;;  %13769 = vrcp.f32 %v10262_v42  ;;  %v10280_v0 = vadd.f32 %v10279_v2, %v10278_v17  ;;  %vm19546_vm3 = vmmov %vm19473_vm2 }
 0xedc   :  { %v10287_v59 = vadd.f32 %v10286_v25, %v10285_v47  ;;  %13771 = vrcp.f32 %v10271_v5  ;;  %vm19547_vm14 = vmmov %vm19473_vm2 }
 0xedd   :  { %v18285_v4 = vpop.eup %13753  ;;  %v10293_v20 = vrot.slane %v10292_v50, 4  ;;  %13136 = vmatmul.mubr.msk.f32.gmra.mxu0 %vm19541_vm13, %v10340_v45  ;;  %13773 = vrcp.f32 %v10280_v0  ;;  %vm19548_vm9 = vmmov %vm19473_vm2 }
 0xede   :  { %v18289_v54 = vpop.eup %13755  ;;  %v10299_v57 = vsel %vm19542_vm10, %v18285_v4, 0.0  ;;  %13138 = vmatprep.mubr.msk.f32.mxu0 %vm19543_vm6, %v10341_v31  ;;  %v10288_v1 = vrot.slane %v10287_v59, 1  ;;  %vm19549_vm13 = vmmov %vm19473_vm2 }
 0xedf   :  { %v13758_v29 = vpop.eup %13757  ;;  %v10294_v39 = vadd.f32 %v10293_v20, %v10292_v50  ;;  %v10300_v40 = vsel %vm19473_vm2, %v18289_v54, 0.0  ;;  %vm19550_vm10 = vmmov %vm19473_vm2 }
 0xee0   :  { %v10301_v63 = vadd.f32 %v10300_v40, %v10299_v57  ;;  %v10343_v14 = vmul.f32 %v13758_v29, %v18057_v28  ;;  %v10344_v49 = vmul.f32 %v13758_v29, %v18061_v13  ;;  %vm19551_vm6 = vmmov %vm19473_vm2  ;;  %v19570_v40 = vld [vmem:[#allocation117_spill] sm:$0xff] }
 0xee1   :  { %v10295_v10 = vrot.slane %v10294_v39, 2  ;;  %13139 = vmatmul.mubr.msk.f32.gmra.mxu0 %vm19544_vm15, %v10342_v26  ;;  %vm19552_vm15 = vmmov %vm19473_vm2 }
 0xee2   :  { %v13760_v3 = vpop.eup %13759  ;;  %v10302_v7 = vrot.slane %v10301_v63, 4  ;;  %13141 = vmatprep.mubr.msk.f32.mxu0 %vm19545_vm7, %v10343_v14  ;;  %vm19553_vm7 = vmmov %vm19473_vm2  ;;  %v10945_v14 = vld [vmem:[%s19567_s17] sm:$0xf] }
 0xee3   :  { %v10296_v19 = vadd.f32 %v10295_v10, %v10294_v39  ;;  %v10345_v33 = vmul.f32 %v13760_v3, %v18089_v9  ;;  %v10346_v13 = vmul.f32 %v13760_v3, %v18097_v37  ;;  %v10289_v9 = vadd.f32 %v10288_v1, %v10287_v59  ;;  %13174 = vmatprep.subr.msk.mxu1 %vm7440_vm12, %v10945_v14 }
 0xee4   :  { %v18301_v30 = vpop.eup %13761  ;;  %v10303_v60 = vadd.f32 %v10302_v7, %v10301_v63  ;;  %v10946_v63 = vld [vmem:[%s19534_s13] sm:$0xff]  ;;  %13175 = vmatpush3.msk.msra.mxu1 %vm7440_vm12, %v10945_v14 }
 0xee5   :  { %v18303_v62 = vpop.eup %13763  ;;  %v10308_v28 = vsel %vm19546_vm3, %v18301_v30, 0.0  ;;  %13142 = vmatmul.mubr.msk.f32.gmra.mxu0 %vm19547_vm14, %v10344_v49  ;;  %v10297_v27 = vrot.slane %v10296_v19, 1  ;;  %13775 = vrcp.f32 %v10289_v9  ;;  %vm19554_vm3 = vmmov %vm19473_vm2 }
 0xee6   :  { %v13766_v35 = vpop.eup %13765  ;;  %v10304_v53 = vrot.slane %v10303_v60, 2  ;;  %v10309_v43 = vsel %vm19548_vm9, %v18303_v62, 0.0  ;;  %13144 = vmatprep.mubr.msk.f32.mxu0 %vm19549_vm13, %v10345_v33  ;;  %vm19555_vm14 = vmmov %vm19473_vm2 }
 0xee7   :  { %v13768_v58 = vpop.eup %13767  ;;  %v10310_v15 = vadd.f32 %v10309_v43, %v10308_v28  ;;  %v10347_v44 = vmul.f32 %v13766_v35, %v18101_v36  ;;  %v10348_v37 = vmul.f32 %v13766_v35, %v18111_v55  ;;  %v10298_v42 = vadd.f32 %v10297_v27, %v10296_v19  ;;  %vm19556_vm9 = vmmov %vm19473_vm2 }
 0xee8   :  { %v10305_v18 = vadd.f32 %v10304_v53, %v10303_v60  ;;  %v10349_v47 = vmul.f32 %v13768_v58, %v18130_v23  ;;  %v13770_v17 = vpop.eup %13769  ;;  %v10350_v36 = vmul.f32 %v13768_v58, %v18132_v34  ;;  %vm19557_vm13 = vmmov %vm19473_vm2 }
 0xee9   :  { %v10311_v16 = vrot.slane %v10310_v15, 4  ;;  %13145 = vmatmul.mubr.msk.f32.gmra.mxu0 %vm19550_vm10, %v10346_v13  ;;  %v10351_v25 = vmul.f32 %v13770_v17, %v18184_v32  ;;  %13777 = vrcp.f32 %v10298_v42  ;;  %v13772_v61 = vpop.eup %13771  ;;  %v10352_v23 = vmul.f32 %v13770_v17, %v18190_v52  ;;  %vm19558_vm10 = vmmov %vm19473_vm2 }
 0xeea   :  { %v10306_v48 = vrot.slane %v10305_v18, 1  ;;  %13147 = vmatprep.mubr.msk.f32.mxu0 %vm19551_vm6, %v10347_v44  ;;  %v13774_v2 = vpop.eup %13773  ;;  %v10353_v20 = vmul.f32 %v13772_v61, %v18206_v21  ;;  %v10354_v32 = vmul.f32 %v13772_v61, %v18211_v51  ;;  %vm19559_vm6 = vmmov %vm19473_vm2 }
 0xeeb   :  { %v10312_v38 = vadd.f32 %v10311_v16, %v10310_v15  ;;  %v10355_v26 = vmul.f32 %v13774_v2, %v18220_v22  ;;  %v10356_v52 = vmul.f32 %v13774_v2, %v18224_v6 }
 0xeec   :  { %v10307_v55 = vadd.f32 %v10306_v48, %v10305_v18 }
 0xeed   :  { %v10313_v45 = vrot.slane %v10312_v38, 2  ;;  %13148 = vmatmul.mubr.msk.f32.gmra.mxu0 %vm19473_vm2, %v10348_v37 }
 0xeee   :  { %13150 = vmatprep.mubr.msk.f32.mxu0 %vm19552_vm15, %v10349_v47  ;;  %13779 = vrcp.f32 %v10307_v55  ;;  %vm19560_vm15 = vmmov %vm19473_vm2 }
 0xeef   :  { %v10314_v31 = vadd.f32 %v10313_v45, %v10312_v38 }
 0xef1   :  { %v10315_v50 = vrot.slane %v10314_v31, 1  ;;  %13151 = vmatmul.mubr.msk.f32.gmra.mxu0 %vm19553_vm7, %v10350_v36  ;;  %vm19561_vm7 = vmmov %vm19473_vm2 }
 0xef2   :  { %13153 = vmatprep.mubr.msk.f32.mxu0 %vm19554_vm3, %v10351_v25  ;;  %v13776_v59 = vpop.eup %13775  ;;  %vm19562_vm3 = vmmov %vm19473_vm2 }
 0xef3   :  { %v10316_v34 = vadd.f32 %v10315_v50, %v10314_v31  ;;  %v10357_v21 = vmul.f32 %v13776_v59, %v18243_v12  ;;  %v10358_v5 = vmul.f32 %v13776_v59, %v18247_v11 }
 0xef5   :  { %13154 = vmatmul.mubr.msk.f32.gmra.mxu0 %vm19555_vm14, %v10352_v23  ;;  %13781 = vrcp.f32 %v10316_v34  ;;  %vm19563_vm14 = vmmov %vm19473_vm2 }
 0xef6   :  { %13156 = vmatprep.mubr.msk.f32.mxu0 %vm19556_vm9, %v10353_v20  ;;  %v13778_v57 = vpop.eup %13777  ;;  %vm19564_vm9 = vmmov %vm19473_vm2 }
 0xef7   :  { %v10359_v51 = vmul.f32 %v13778_v57, %v18271_v41  ;;  %v10360_v29 = vmul.f32 %v13778_v57, %v18273_v56  ;;  %v19568_v56 = vld [vmem:[#allocation116_spill] sm:$0xff] }
 0xef9   :  { %13157 = vmatmul.mubr.msk.f32.gmra.mxu0 %vm19557_vm13, %v10354_v32  ;;  %vm19565_vm13 = vmmov %vm19473_vm2 }
 0xefa   :  { %13159 = vmatprep.mubr.msk.f32.mxu0 %vm19558_vm10, %v10355_v26  ;;  %vm19566_vm10 = vmmov %vm19473_vm2 }
 0xefb   :  { %v13780_v22 = vpop.eup %13779 }
 0xefc   :  { %v10361_v6 = vmul.f32 %v13780_v22, %v18285_v4  ;;  %v10362_v11 = vmul.f32 %v13780_v22, %v18289_v54  ;;  %v10948_v4 = vld [vmem:[%s19534_s13 + $0x10] sm:$0xff]  ;;  %v10947_v54 = vld [vmem:[%s19534_s13 + $0x8] sm:$0xff] }
 0xefd   :  { %13160 = vmatmul.mubr.msk.f32.gmra.mxu0 %vm19559_vm6, %v10356_v52  ;;  %vm19569_vm6 = vcmask 244736  }
 0xefe   :  { %13162 = vmatprep.mubr.msk.f32.mxu0 %vm19473_vm2, %v10357_v21  ;;  %vm19571_vm2 = vmmov %vm19569_vm6 }
 0xf01   :  { %13163 = vmatmul.mubr.msk.f32.gmra.mxu0 %vm19560_vm15, %v10358_v5  ;;  %vm19573_vm15 = vcmask 1045504  }
 0xf02   :  { %13165 = vmatprep.mubr.msk.f32.mxu0 %vm19561_vm7, %v10359_v51  ;;  %v13782_v12 = vpop.eup %13781  ;;  %vm19574_vm7 = vmmov %vm19571_vm2 }
 0xf03   :  { %v10363_v41 = vmul.f32 %v13782_v12, %v18301_v30  ;;  %v10364_v39 = vmul.f32 %v13782_v12, %v18303_v62 }
 0xf05   :  { %13166 = vmatmul.mubr.msk.f32.gmra.mxu0 %vm19562_vm3, %v10360_v29  ;;  %vm19575_vm3 = vmmov %vm19571_vm2 }
 0xf06   :  { %13168 = vmatprep.mubr.msk.f32.mxu0 %vm19563_vm14, %v10361_v6 }
 0xf09   :  { %13169 = vmatmul.mubr.msk.f32.gmra.mxu0 %vm19564_vm9, %v10362_v11 }
 0xf0a   :  { %13171 = vmatprep.mubr.msk.f32.mxu0 %vm19565_vm13, %v10363_v41 }
 0xf0d   :  { %13172 = vmatmul.mubr.msk.f32.gmra.mxu0 %vm19566_vm10, %v10364_v39 }
 0xf0e   :  { %13187 = vmatprep.mubr.msk.f32.mxu0 %vm19569_vm6, %v19568_v56 }
 0xf11   :  { %13188 = vmatmul.mubr.msk.f32.vlgmr.msra.gmra.mxu0 %vm19571_vm2, %v19570_v40 }
 0xf12   :  { %13196 = vmatpush3.msk.msra.mxu0 %vm19573_vm15, %v18269_v24  ;;  %13203 = vmatprep.mubr.msk.f32.mxu0 %vm19574_vm7, %v19568_v56  ;;  %v18366_v24 = vld [vmem:[%s19572_s25] sm:$0xf] }
 0xf13   :  { %13197 = vmatprep.subr.mxu0 %v10948_v4  ;;  %13190 = vmatprep.subr.msk.mxu1 %vm7440_vm12, %v18366_v24 }
 0xf14   :  { %13198 = vmatpush3.msra.mxu0 %v10948_v4 }
 0xf15   :  { %13199 = vmatprep.subr.mxu0 %v10947_v54 }
 0xf16   :  { %13200 = vmatpush3.msra.mxu0 %v10947_v54 }
 0xf17   :  { %13201 = vmatprep.subr.mxu0 %v10946_v63 }
 0xf18   :  { %13202 = vmatpush3.msra.mxu0 %v10946_v63 }
 0xf19   :  { %13204 = vmatmul.mubr.msk.f32.vlgmr.msra.gmra.mxu0 %vm19575_vm3, %v19570_v40  ;;  %vm19577_vm3 = vcmask 1046534  }
 0xf91   :  { %v13128_v10 = vpop.f32.mrf.mxu0 }
 0xf92   :  { %v10690_v49 = vmul.f32 %v13128_v10, %v17715_v8 }
 0xf93   :  { %v10530_v0 = vpop.f32.mrf.mxu0 }
 0xf94   :  { %v10689_v3 = vmul.f32 %v10530_v0, %v17717_v46  ;;  %v10722_v7 = vsel %vm7343_vm8, %v10690_v49, 0.0 }
 0xf95   :  { %v13131_v1 = vpop.f32.mrf.mxu0 }
 0xf96   :  { %v10721_v19 = vsel %vm7343_vm8, %v10689_v3, 0.0  ;;  %v10692_v33 = vmul.f32 %v13131_v1, %v17715_v8  ;;  %v18396_v1 = vld [vmem:[%s19576_s29] ss:$0 sm:$0xff] }
 0xf97   :  { %v10723_v30 = vadd.f32 %v10722_v7, %v10721_v19  ;;  %v10540_v60 = vpop.f32.mrf.mxu0 }
 0xf98   :  { %v10691_v62 = vmul.f32 %v10540_v60, %v17717_v46  ;;  %v10731_v35 = vsel %vm7343_vm8, %v10692_v33, 0.0 }
 0xf99   :  { %v10724_v28 = vrot.slane %v10723_v30, 4  ;;  %v13134_v13 = vpop.f32.mrf.mxu0 }
 0xf9a   :  { %v10730_v27 = vsel %vm7343_vm8, %v10691_v62, 0.0  ;;  %v10694_v53 = vmul.f32 %v13134_v13, %v17715_v8 }
 0xf9b   :  { %v10732_v43 = vadd.f32 %v10731_v35, %v10730_v27  ;;  %v10550_v9 = vpop.f32.mrf.mxu0  ;;  %v10725_v58 = vadd.f32 %v10724_v28, %v10723_v30 }
 0xf9c   :  { %v10693_v15 = vmul.f32 %v10550_v9, %v17717_v46  ;;  %v10740_v16 = vsel %vm7343_vm8, %v10694_v53, 0.0 }
 0xf9d   :  { %v10733_v44 = vrot.slane %v10732_v43, 4  ;;  %v13137_v18 = vpop.f32.mrf.mxu0  ;;  %v10726_v38 = vrot.slane %v10725_v58, 2 }
 0xf9e   :  { %v10739_v37 = vsel %vm7343_vm8, %v10693_v15, 0.0  ;;  %v10696_v48 = vmul.f32 %v13137_v18, %v17715_v8 }
 0xf9f   :  { %v10734_v47 = vadd.f32 %v10733_v44, %v10732_v43  ;;  %v10741_v42 = vadd.f32 %v10740_v16, %v10739_v37  ;;  %v10560_v17 = vpop.f32.mrf.mxu0  ;;  %v10727_v32 = vadd.f32 %v10726_v38, %v10725_v58 }
 0xfa0   :  { %v10695_v45 = vmul.f32 %v10560_v17, %v17717_v46  ;;  %v10749_v61 = vsel %vm7343_vm8, %v10696_v48, 0.0 }
 0xfa1   :  { %v10735_v36 = vrot.slane %v10734_v47, 2  ;;  %v10742_v25 = vrot.slane %v10741_v42, 4  ;;  %v13140_v55 = vpop.f32.mrf.mxu0  ;;  %v10728_v12 = vrot.slane %v10727_v32, 1 }
 0xfa2   :  { %v10748_v31 = vsel %vm7343_vm8, %v10695_v45, 0.0  ;;  %v10698_v20 = vmul.f32 %v13140_v55, %v17715_v8 }
 0xfa3   :  { %v10736_v50 = vadd.f32 %v10735_v36, %v10734_v47  ;;  %v10743_v23 = vadd.f32 %v10742_v25, %v10741_v42  ;;  %v10750_v2 = vadd.f32 %v10749_v61, %v10748_v31  ;;  %v10570_v34 = vpop.f32.mrf.mxu0  ;;  %v10729_v7 = vadd.f32 %v10728_v12, %v10727_v32 }
 0xfa4   :  { %v10697_v26 = vmul.f32 %v10570_v34, %v17717_v46  ;;  %v10758_v29 = vsel %vm7343_vm8, %v10698_v20, 0.0 }
 0xfa5   :  { %v10737_v59 = vrot.slane %v10736_v50, 1  ;;  %v10744_v52 = vrot.slane %v10743_v23, 2  ;;  %v10751_v21 = vrot.slane %v10750_v2, 4  ;;  %v13143_v57 = vpop.f32.mrf.mxu0  ;;  %v10871_v15 = vadd.f32 %v18396_v1, %v10729_v7 }
 0xfa6   :  { %v10757_v5 = vsel %vm7343_vm8, %v10697_v26, 0.0  ;;  %v10700_v51 = vmul.f32 %v13143_v57, %v17715_v8 }
 0xfa7   :  { %v10745_v22 = vadd.f32 %v10744_v52, %v10743_v23  ;;  %v10580_v6 = vpop.f32.mrf.mxu0  ;;  %v10752_v11 = vadd.f32 %v10751_v21, %v10750_v2  ;;  %v10759_v41 = vadd.f32 %v10758_v29, %v10757_v5  ;;  %v10738_v56 = vadd.f32 %v10737_v59, %v10736_v50 }
 0xfa8   :  { %v10699_v39 = vmul.f32 %v10580_v6, %v17717_v46  ;;  %v10767_v40 = vsel %vm7343_vm8, %v10700_v51, 0.0  ;;  %vm10887_vm9 = vcmp.gt.f32.partialorder %v10871_v15, 0.0  ;;  %v10903_v32 = vmul.f32 0.01, %v10871_v15 }
 0xfa9   :  { %v10746_v4 = vrot.slane %v10745_v22, 1  ;;  %v13146_v54 = vpop.f32.mrf.mxu0  ;;  %v10753_v63 = vrot.slane %v10752_v11, 2  ;;  %v10760_v14 = vrot.slane %v10759_v41, 4  ;;  %v10872_v60 = vadd.f32 %v18396_v1, %v10738_v56 }
 0xfaa   :  { %v10766_v10 = vsel %vm7343_vm8, %v10699_v39, 0.0  ;;  %v10702_v49 = vmul.f32 %v13146_v54, %v17715_v8 }
 0xfab   :  { %v10768_v0 = vadd.f32 %v10767_v40, %v10766_v10  ;;  %v10590_v3 = vpop.f32.mrf.mxu0  ;;  %v10754_v19 = vadd.f32 %v10753_v63, %v10752_v11  ;;  %v10761_v33 = vadd.f32 %v10760_v14, %v10759_v41  ;;  %v10747_v13 = vadd.f32 %v10746_v4, %v10745_v22 }
 0xfac   :  { %v10701_v30 = vmul.f32 %v10590_v3, %v17717_v46  ;;  %v10776_v27 = vsel %vm7343_vm8, %v10702_v49, 0.0  ;;  %v10904_v37 = vmul.f32 0.01, %v10872_v60  ;;  %vm10888_vm14 = vcmp.gt.f32.partialorder %v10872_v60, 0.0 }
 0xfad   :  { %v10769_v62 = vrot.slane %v10768_v0, 4  ;;  %v13149_v28 = vpop.f32.mrf.mxu0  ;;  %v10762_v35 = vrot.slane %v10761_v33, 2  ;;  %v10755_v44 = vrot.slane %v10754_v19, 1  ;;  %v10873_v38 = vadd.f32 %v18396_v1, %v10747_v13 }
 0xfae   :  { %v10775_v53 = vsel %vm7343_vm8, %v10701_v30, 0.0  ;;  %v10704_v18 = vmul.f32 %v13149_v28, %v17715_v8  ;;  %v10920_v23 = vsel %vm10888_vm14, %v10872_v60, %v10904_v37  ;;  %v10919_v4 = vsel %vm10887_vm9, %v10871_v15, %v10903_v32 }
 0xfaf   :  { %v10770_v43 = vadd.f32 %v10769_v62, %v10768_v0  ;;  %v10777_v9 = vadd.f32 %v10776_v27, %v10775_v53  ;;  %v10600_v58 = vpop.f32.mrf.mxu0  ;;  %v10763_v48 = vadd.f32 %v10762_v35, %v10761_v33  ;;  %v10756_v31 = vadd.f32 %v10755_v44, %v10754_v19 }
 0xfb0   :  { %v10703_v16 = vmul.f32 %v10600_v58, %v17717_v46  ;;  %v10785_v25 = vsel %vm7343_vm8, %v10704_v18, 0.0  ;;  %v10905_v26 = vmul.f32 0.01, %v10873_v38  ;;  %vm10889_vm13 = vcmp.gt.f32.partialorder %v10873_v38, 0.0 }
 0xfb1   :  { %v10771_v47 = vrot.slane %v10770_v43, 2  ;;  %v10778_v42 = vrot.slane %v10777_v9, 4  ;;  %v13152_v17 = vpop.f32.mrf.mxu0  ;;  %v10764_v2 = vrot.slane %v10763_v48, 1  ;;  %v10977_v22 = vrot.slane %v10920_v23, 7 }
 0xfb2   :  { %v10784_v55 = vsel %vm7343_vm8, %v10703_v16, 0.0  ;;  %v10874_v29 = vadd.f32 %v18396_v1, %v10756_v31  ;;  %v10706_v41 = vmul.f32 %v13152_v17, %v17715_v8  ;;  %v18414_v40 = vsel %vm10889_vm13, %v10873_v38, %v10905_v26 }
 0xfb3   :  { %v10772_v45 = vadd.f32 %v10771_v47, %v10770_v43  ;;  %v10779_v36 = vadd.f32 %v10778_v42, %v10777_v9  ;;  %v10610_v61 = vpop.f32.mrf.mxu0  ;;  %v10786_v50 = vadd.f32 %v10785_v25, %v10784_v55  ;;  %v10765_v12 = vadd.f32 %v10764_v2, %v10763_v48 }
 0xfb4   :  { %v10705_v57 = vmul.f32 %v10610_v61, %v17717_v46  ;;  %v10978_v30 = vsel %vm2652_vm1, %v10977_v22, %v10919_v4  ;;  %v10906_v60 = vmul.f32 0.01, %v10874_v29  ;;  %v10794_v28 = vsel %vm7343_vm8, %v10706_v41, 0.0 }
 0xfb5   :  { %v10780_v20 = vrot.slane %v10779_v36, 2  ;;  %v13155_v34 = vpop.f32.mrf.mxu0  ;;  %v10773_v59 = vrot.slane %v10772_v45, 1  ;;  %v10787_v52 = vrot.slane %v10786_v50, 4  ;;  %v10875_v62 = vadd.f32 %v18396_v1, %v10765_v12 }
 0xfb6   :  { %v10708_v5 = vmul.f32 %v13155_v34, %v17715_v8  ;;  %v10793_v14 = vsel %vm7343_vm8, %v10705_v57, 0.0  ;;  %vm10890_vm10 = vcmp.gt.f32.partialorder %v10874_v29, 0.0  ;;  %v10979_v16 = vrot.slane %v18414_v40, 6 }
 0xfb7   :  { %v10781_v21 = vadd.f32 %v10780_v20, %v10779_v36  ;;  %v10620_v51 = vpop.f32.mrf.mxu0  ;;  %v10788_v6 = vadd.f32 %v10787_v52, %v10786_v50  ;;  %v10774_v54 = vadd.f32 %v10773_v59, %v10772_v45  ;;  %v10795_v53 = vadd.f32 %v10794_v28, %v10793_v14 }
 0xfb8   :  { %v10707_v39 = vmul.f32 %v10620_v51, %v17717_v46  ;;  %v10803_v10 = vsel %vm7343_vm8, %v10708_v5, 0.0  ;;  %v10922_v42 = vsel %vm10890_vm10, %v10874_v29, %v10906_v60  ;;  %vm10891_vm6 = vcmp.gt.f32.partialorder %v10875_v62, 0.0 }
 0xfb9   :  { %v10782_v11 = vrot.slane %v10781_v21, 1  ;;  %v13158_v56 = vpop.f32.mrf.mxu0  ;;  %v10789_v63 = vrot.slane %v10788_v6, 2  ;;  %v10876_v9 = vadd.f32 %v18396_v1, %v10774_v54  ;;  %v10907_v17 = vmul.f32 0.01, %v10875_v62 }
 0xfba   :  { %v10802_v49 = vsel %vm7343_vm8, %v10707_v39, 0.0  ;;  %v10710_v0 = vmul.f32 %v13158_v56, %v17715_v8  ;;  %v10796_v25 = vrot.slane %v10795_v53, 4  ;;  %v10981_v59 = vrot.slane %v10922_v42, 5 }
 0xfbb   :  { %v10630_v3 = vpop.f32.mrf.mxu0  ;;  %v10783_v7 = vadd.f32 %v10782_v11, %v10781_v21  ;;  %v10790_v19 = vadd.f32 %v10789_v63, %v10788_v6  ;;  %v10804_v33 = vadd.f32 %v10803_v10, %v10802_v49  ;;  %v10908_v31 = vmul.f32 0.01, %v10876_v9 }
 0xfbc   :  { %v10709_v13 = vmul.f32 %v10630_v3, %v17717_v46  ;;  %v10812_v58 = vsel %vm7343_vm8, %v10710_v0, 0.0  ;;  %vm10892_vm2 = vcmp.gt.f32.partialorder %v10876_v9, 0.0  ;;  %v10923_v57 = vsel %vm10891_vm6, %v10875_v62, %v10907_v17 }
 0xfbd   :  { %v13161_v35 = vpop.f32.mrf.mxu0  ;;  %v10791_v27 = vrot.slane %v10790_v19, 1  ;;  %v10805_v43 = vrot.slane %v10804_v33, 4  ;;  %v10877_v37 = vadd.f32 %v18396_v1, %v10783_v7  ;;  %v10797_v5 = vadd.f32 %v10796_v25, %v10795_v53 }
 0xfbe   :  { %v10811_v15 = vsel %vm7343_vm8, %v10709_v13, 0.0  ;;  %v10712_v44 = vmul.f32 %v13161_v35, %v17715_v8  ;;  %v10924_v41 = vsel %vm10892_vm2, %v10876_v9, %v10908_v31  ;;  %v10980_v40 = vsel %vm2655_vm0, %v10979_v16, %v10978_v30 }
 0xfbf   :  { %v10640_v18 = vpop.f32.mrf.mxu0  ;;  %v10792_v48 = vadd.f32 %v10791_v27, %v10790_v19  ;;  %v10813_v47 = vadd.f32 %v10812_v58, %v10811_v15  ;;  %v10806_v55 = vadd.f32 %v10805_v43, %v10804_v33  ;;  %v10909_v26 = vmul.f32 0.01, %v10877_v37 }
 0xfc0   :  { %v10711_v38 = vmul.f32 %v10640_v18, %v17717_v46  ;;  %v10821_v50 = vsel %vm7343_vm8, %v10712_v44, 0.0  ;;  %vm10893_vm15 = vcmp.gt.f32.partialorder %v10877_v37, 0.0  ;;  %v10983_v49 = vrot.slane %v10923_v57, 4 }
 0xfc1   :  { %v13164_v45 = vpop.f32.mrf.mxu0  ;;  %v10878_v36 = vadd.f32 %v18396_v1, %v10792_v48  ;;  %v10814_v61 = vrot.slane %v10813_v47, 4  ;;  %v10807_v51 = vrot.slane %v10806_v55, 2  ;;  %v10925_v4 = vsel %vm10893_vm15, %v10877_v37, %v10909_v26 }
 0xfc2   :  { %v10820_v23 = vsel %vm7343_vm8, %v10711_v38, 0.0  ;;  %v10714_v32 = vmul.f32 %v13164_v45, %v17715_v8  ;;  %v10985_v19 = vrot.slane %v10924_v41, 3  ;;  %v10987_v28 = vrot.slane %v10925_v4, 2 }
 0xfc3   :  { %v10650_v2 = vpop.f32.mrf.mxu0  ;;  %v10815_v20 = vadd.f32 %v10814_v61, %v10813_v47  ;;  %v10822_v34 = vadd.f32 %v10821_v50, %v10820_v23  ;;  %v10910_v29 = vmul.f32 0.01, %v10878_v36  ;;  %vm10894_vm7 = vcmp.gt.f32.partialorder %v10878_v36, 0.0 }
 0xfc4   :  { %v10713_v52 = vmul.f32 %v10650_v2, %v17717_v46  ;;  %v10830_v56 = vsel %vm7343_vm8, %v10714_v32, 0.0  ;;  %v10808_v0 = vadd.f32 %v10807_v51, %v10806_v55  ;;  %v10798_v35 = vrot.slane %v10797_v5, 2 }
 0xfc5   :  { %v13167_v21 = vpop.f32.mrf.mxu0  ;;  %v10823_v22 = vrot.slane %v10822_v34, 4  ;;  %v10816_v39 = vrot.slane %v10815_v20, 2  ;;  %v10926_v7 = vsel %vm10894_vm7, %v10878_v36, %v10910_v29  ;;  %v10982_v53 = vsel %vm2658_vm11, %v10981_v59, %v10980_v40 }
 0xfc6   :  { %v10829_v6 = vsel %vm7343_vm8, %v10713_v52, 0.0  ;;  %v10716_v12 = vmul.f32 %v13167_v21, %v17715_v8  ;;  %v10984_v15 = vsel %vm2661_vm4, %v10983_v49, %v10982_v53  ;;  %v10989_v37 = vrot.slane %v10926_v7, 1 }
 0xfc7   :  { %v10660_v11 = vpop.f32.mrf.mxu0  ;;  %v10824_v54 = vadd.f32 %v10823_v22, %v10822_v34  ;;  %v10831_v63 = vadd.f32 %v10830_v56, %v10829_v6  ;;  %v10817_v27 = vadd.f32 %v10816_v39, %v10815_v20  ;;  %v10986_v16 = vsel %vm2664_vm5, %v10985_v19, %v10984_v15 }
 0xfc8   :  { %v10715_v14 = vmul.f32 %v10660_v11, %v17717_v46  ;;  %v10839_v3 = vsel %vm7343_vm8, %v10716_v12, 0.0  ;;  %v10809_v48 = vrot.slane %v10808_v0, 1  ;;  %v10988_v42 = vsel %vm19577_vm3, %v10987_v28, %v10986_v16 }
 0xfc9   :  { %v13170_v10 = vpop.f32.mrf.mxu0  ;;  %v10825_v33 = vrot.slane %v10824_v54, 2  ;;  %v10832_v60 = vrot.slane %v10831_v63, 4  ;;  %v10799_v38 = vadd.f32 %v10798_v35, %v10797_v5  ;;  %v10818_v45 = vrot.slane %v10817_v27, 1 }
 0xfca   :  { %v10838_v62 = vsel %vm7343_vm8, %v10715_v14, 0.0  ;;  %v10718_v58 = vmul.f32 %v13170_v10, %v17715_v8  ;;  %vm19578_vm14 = vcmask 1047559   ;;  %v10810_v32 = vadd.f32 %v10809_v48, %v10808_v0 }
 0xfcb   :  { %v10670_v13 = vpop.f32.mrf.mxu0  ;;  %v10840_v30 = vadd.f32 %v10839_v3, %v10838_v62  ;;  %v10826_v43 = vadd.f32 %v10825_v33, %v10824_v54  ;;  %v10833_v9 = vadd.f32 %v10832_v60, %v10831_v63  ;;  %v18452_v25 = vsel %vm19578_vm14, %v10989_v37, %v10988_v42 }
 0xfcc   :  { %v10717_v17 = vmul.f32 %v10670_v13, %v17717_v46  ;;  %v10848_v50 = vsel %vm7343_vm8, %v10718_v58, 0.0  ;;  %13176 = vmatprep.mubr.msk.f32.mxu1 %vm7343_vm8, %v18452_v25  ;;  %v10819_v52 = vadd.f32 %v10818_v45, %v10817_v27  ;;  %v10800_v5 = vrot.slane %v10799_v38, 1 }
 0xfcd   :  { %v13173_v44 = vpop.f32.mrf.mxu0  ;;  %v10841_v18 = vrot.slane %v10840_v30, 4  ;;  %v10834_v47 = vrot.slane %v10833_v9, 2  ;;  %v10827_v61 = vrot.slane %v10826_v43, 1  ;;  %v10880_v41 = vadd.f32 %v18396_v1, %v10810_v32 }
 0xfce   :  { %v10847_v23 = vsel %vm7343_vm8, %v10717_v17, 0.0  ;;  %v10720_v34 = vmul.f32 %v13173_v44, %v17715_v8  ;;  %v10881_v8 = vadd.f32 %v18396_v1, %v10819_v52  ;;  %vm19581_vm14 = vcmask 1046534   ;;  %v10940_v52 = vld [vmem:[%s19580_s8 + $0x8] sm:$0x3] }
 0xfcf   :  { %v10842_v36 = vadd.f32 %v10841_v18, %v10840_v30  ;;  %v10680_v55 = vpop.f32.mrf.mxu0  ;;  %v10835_v31 = vadd.f32 %v10834_v47, %v10833_v9  ;;  %v10849_v20 = vadd.f32 %v10848_v50, %v10847_v23  ;;  %v10828_v51 = vadd.f32 %v10827_v61, %v10826_v43 }
 0xfd0   :  { %v10719_v59 = vmul.f32 %v10680_v55, %v17717_v46  ;;  %v10857_v22 = vsel %vm7343_vm8, %v10720_v34, 0.0  ;;  %v10801_v46 = vadd.f32 %v10800_v5, %v10799_v38  ;;  %v10912_v10 = vmul.f32 0.01, %v10880_v41 }
 0xfd1   :  { %v10843_v2 = vrot.slane %v10842_v36, 2  ;;  %v10836_v26 = vrot.slane %v10835_v31, 1  ;;  %v10850_v57 = vrot.slane %v10849_v20, 4  ;;  %v10882_v40 = vadd.f32 %v18396_v1, %v10828_v51  ;;  %v13189_v5 = vpop.f32.mrf.mxu0 }
 0xfd2   :  { %v10856_v11 = vsel %vm7343_vm8, %v10719_v59, 0.0  ;;  %vm10896_vm9 = vcmp.gt.f32.partialorder %v10880_v41, 0.0  ;;  %v10913_v3 = vmul.f32 0.01, %v10881_v8  ;;  %v10879_v19 = vadd.f32 %v18396_v1, %v10801_v46  ;;  %v10937_v59 = vld [vmem:[%s19579_s3] sm:$0xff] }
 0xfd3   :  { %v10844_v21 = vadd.f32 %v10843_v2, %v10842_v36  ;;  %v10837_v29 = vadd.f32 %v10836_v26, %v10835_v31  ;;  %v10851_v12 = vadd.f32 %v10850_v57, %v10849_v20  ;;  %v10858_v39 = vadd.f32 %v10857_v22, %v10856_v11  ;;  %v11156_v51 = vpop.f32.mrf.mxu0  ;;  %v10936_v46 = vld [vmem:[%s19584_s14 + $0x8] sm:$0x3] }
 0xfd4   :  { %vm10897_vm13 = vcmp.gt.f32.partialorder %v10881_v8, 0.0  ;;  %v10914_v33 = vmul.f32 0.01, %v10882_v40  ;;  %vm10898_vm10 = vcmp.gt.f32.partialorder %v10882_v40, 0.0  ;;  %v10928_v13 = vsel %vm10896_vm9, %v10880_v41, %v10912_v10 }
 0xfd5   :  { %v10845_v6 = vrot.slane %v10844_v21, 1  ;;  %v10852_v4 = vrot.slane %v10851_v12, 2  ;;  %v10859_v54 = vrot.slane %v10858_v39, 4  ;;  %v10883_v63 = vadd.f32 %v18396_v1, %v10837_v29 }
 0xfd6   :  { %v10929_v30 = vsel %vm10897_vm13, %v10881_v8, %v10913_v3  ;;  %vm10895_vm15 = vcmp.gt.f32.partialorder %v10879_v19, 0.0  ;;  %v10911_v43 = vmul.f32 0.01, %v10879_v19  ;;  %v10930_v9 = vsel %vm10898_vm10, %v10882_v40, %v10914_v33  ;;  %v10956_v40 = vld [vmem:[%s19585_s19 + $0x18] sm:$0x1] }
 0xfd7   :  { %v10846_v56 = vadd.f32 %v10845_v6, %v10844_v21  ;;  %v10853_v14 = vadd.f32 %v10852_v4, %v10851_v12  ;;  %v10860_v0 = vadd.f32 %v10859_v54, %v10858_v39  ;;  %v10915_v62 = vmul.f32 0.01, %v10883_v63  ;;  %v10939_v21 = vld [vmem:[%s19580_s8] sm:$0xff]  ;;  %v10938_v39 = vld [vmem:[%s19579_s3 + $0x8] sm:$0x3]  ;;  %v10955_v54 = vld [vmem:[%s19585_s19 + $0x10] sm:$0xff] }
 0xfd8   :  { %vm10899_vm6 = vcmp.gt.f32.partialorder %v10883_v63, 0.0  ;;  %v10991_v15 = vrot.slane %v10928_v13, 7  ;;  %v10993_v16 = vrot.slane %v10929_v30, 6  ;;  %v10995_v47 = vrot.slane %v10930_v9, 5 }
 0xfd9   :  { %v10884_v49 = vadd.f32 %v18396_v1, %v10846_v56  ;;  %v10854_v7 = vrot.slane %v10853_v14, 1  ;;  %v10861_v60 = vrot.slane %v10860_v0, 2  ;;  %v10931_v44 = vsel %vm10899_vm6, %v10883_v63, %v10915_v62  ;;  %v13205_v22 = vpop.f32.mrf.mxu0  ;;  %v10935_v56 = vld [vmem:[%s19584_s14] sm:$0xff]  ;;  %v10954_v63 = vld [vmem:[%s19585_s19 + $0x8] sm:$0xff] }
 0xfda   :  { %v10927_v17 = vsel %vm10895_vm15, %v10879_v19, %v10911_v43  ;;  %v10997_v38 = vrot.slane %v10931_v44, 4  ;;  %v13864_v57 = vmov 0   ;;  %vm11523_vm13 = vcmask 203776  }
 0xfdb   :  { %v10855_v28 = vadd.f32 %v10854_v7, %v10853_v14  ;;  %v10916_v35 = vmul.f32 0.01, %v10884_v49  ;;  %v10862_v27 = vadd.f32 %v10861_v60, %v10860_v0  ;;  %vm10900_vm2 = vcmp.gt.f32.partialorder %v10884_v49, 0.0  ;;  %13302 = vset.pattern.permute.xlu1 %v13864_v57  ;;  %13301 = vset.pattern.permute.xlu0 %v13864_v57  ;;  %v11312_v12 = vpop.f32.mrf.mxu0  ;;  %v10953_v14 = vld [vmem:[%s19585_s19] sm:$0xff] }
 0xfdc   :  { %v10992_v36 = vsel %vm2652_vm1, %v10991_v15, %v10927_v17  ;;  %vm19582_vm1 = vcmask 1047559   ;;  %11490 = vperm.xlu1 %13302, %v10940_v52   ;;  %11485 = vperm.xlu0 %13301, %v10939_v21   ;;  %vm13866_vm10 = vmmov 0   ;;  %vm19591_vm6 = vcmask 1041408  }
 0xfdd   :  { %v10885_v53 = vadd.f32 %v18396_v1, %v10855_v28  ;;  %v10863_v58 = vrot.slane %v10862_v27, 1  ;;  %v10932_v37 = vsel %vm10900_vm2, %v10884_v49, %v10916_v35  ;;  %v10994_v61 = vsel %vm2655_vm0, %v10993_v16, %v10992_v36  ;;  %v12170_v49 = vld [vmem:[%s19589_s24] ss:$0 sm:$0xff] }
 0xfde   :  { %v10999_v55 = vrot.slane %v10932_v37, 3  ;;  %v10996_v23 = vsel %vm2658_vm11, %v10995_v47, %v10994_v61  ;;  %vm19583_vm0 = vcmask 130048   ;;  %v12171_v28 = vld [vmem:[%s19590_s30] ss:$0 sm:$0xff]  ;;  %v13865_v16 = vmov 0.0  }
 0xfdf   :  { %vm10901_vm7 = vcmp.gt.f32.partialorder %v10885_v53, 0.0  ;;  %v10917_v18 = vmul.f32 0.01, %v10885_v53  ;;  %v10864_v48 = vadd.f32 %v10863_v58, %v10862_v27  ;;  %v10998_v20 = vsel %vm2661_vm4, %v10997_v38, %v10996_v23  ;;  %vm19586_vm4 = vmmov %vm19583_vm0  ;;  %v10958_v37 = vld [vmem:[%s14156_s12] sm:$0xff] }
 0xfe0   :  { %v11000_v34 = vsel %vm2664_vm5, %v10999_v55, %v10998_v20  ;;  %vm19587_vm5 = vmmov %vm19583_vm0  ;;  %vm11616_vm15 = vcmask 74752  }
 0xfe1   :  { %v10933_v42 = vsel %vm10901_vm7, %v10885_v53, %v10917_v18  ;;  %v10886_v45 = vadd.f32 %v18396_v1, %v10864_v48  ;;  %vm19588_vm11 = vmmov %vm19583_vm0  ;;  %v10959_v18 = vld [vmem:[%s14156_s12 + $0x8] sm:$0x3]  ;;  %v12172_v48 = vld [vmem:[%s14151_s21] ss:$0 sm:$0xff]  ;;  %s13867_s21 = smov [#allocation3]  }
 0xfe2   :  { %v11001_v31 = vrot.slane %v10933_v42, 2  ;;  %s11710_s12 = sshll.u32 %s13867_s21, 4  ;;  %s11711_s12 = int_to_ptr.vmem [resolvable:$true] %s11710_s12 }
 0xfe3   :  { %vm10902_vm3 = vcmp.gt.f32.partialorder %v10886_v45, 0.0  ;;  %v10918_v50 = vmul.f32 0.01, %v10886_v45  ;;  %s13783_s6 = scalar_lea.vmem %s11711_s12, 16  ;;  %s13787_s20 = scalar_lea.vmem %s11711_s12, 32 }
 0xfe4   :  { %v11002_v1 = vsel %vm19581_vm14, %v11001_v31, %v11000_v34  ;;  %p13784_p0 = scmp.ne.s32.totalorder %s11711_s12, %s13783_s6  ;;  %p13788_p1 = scmp.lt.s32.totalorder %s11711_s12, %s11711_s12 }
 0xfe5   :  { %v10934_v2 = vsel %vm10902_vm3, %v10886_v45, %v10918_v50  ;;  %vm19592_vm3 = vcmask 80896   ;;  %p13789_p2 = scmp.lt.s32.totalorder %s13787_s20, %s13783_s6 }
 0xfe6   :  { %v11003_v32 = vrot.slane %v10934_v2, 1  ;;  %vm19593_vm14 = vmmov %vm19592_vm3 }
 0xfe7   :  { %p13790_p3 = por %p13789_p2, %p13788_p1 }
 0xfe8   :  { %v11004_v26 = vsel %vm19582_vm1, %v11003_v32, %v11002_v1  ;;  %vm11702_vm1 = vcmask 0  }
 0xfe9   :  { %13177 = vmatmul.mubr.msk.f32.vlgmr.msra.gmra.mxu1 %vm7343_vm8, %v11004_v26  ;;  %p13791_p4 = pnand %p13790_p3, %p13784_p0 }
 0xfea   :  { %13191 = vmatpush3.msk.msra.mxu1 %vm7440_vm12, %v18366_v24  ;;  %13192 = vmatprep.mubr.msk.f32.mxu1 %vm7343_vm8, %v18452_v25  ;;  %vm11530_vm12 = vcmask 1040384  }
 0xfeb   :  { %13220 = vmatprep.subr.msk.mxu0 %vm11530_vm12, %v10956_v40 }
 0xfec   :  { %13221 = vmatpush3.msk.msra.mxu0 %vm11530_vm12, %v10956_v40 }
 0xfed   :  { %13193 = vmatmul.mubr.msk.f32.vlgmr.msra.gmra.mxu1 %vm7343_vm8, %v11004_v26  ;;  %13222 = vmatprep.subr.mxu0 %v10955_v54 }
 0xfee   :  { %13210 = vmatprep.mubr.msk.f32.mxu1 %vm19583_vm0, %v10937_v59  ;;  %13223 = vmatpush3.msra.mxu0 %v10955_v54  ;;  %v10960_v59 = vld [vmem:[#allocation2] sm:$0x1] }
 0xfef   :  { %13224 = vmatprep.subr.mxu0 %v10954_v63  ;;  %v11625_v52 = vmul.f32 10.0, %v10960_v59 }
 0xff0   :  { %13225 = vmatpush3.msra.mxu0 %v10954_v63 }
 0xff1   :  { %13226 = vmatprep.subr.mxu0 %v10953_v14 }
 0xff2   :  { %13227 = vmatpush3.msra.mxu0 %v10953_v14 }
0x1057   :  { %v11491_v0 = vpop.permute.xlu1 %11490  ;;  %v11486_v7 = vpop.permute.xlu0 %11485 }
0x1058   :  { %v11500_v19 = vmul.f32 %v12170_v49, %v11491_v0  ;;  %v11499_v62 = vmul.f32 %v12170_v49, %v11486_v7 }
0x10a9   :  { %v13178_v24 = vpop.f32.mrf.mxu1 }
0x10aa   :  { %v11162_v8 = vadd.f32 %v13189_v5, %v13178_v24 }
0x10ab   :  { %v11078_v29 = vpop.f32.mrf.mxu1 }
0x10ac   :  { %v11157_v4 = vadd.f32 %v11156_v51, %v11078_v29 }
0x10ad   :  { %v13194_v25 = vpop.f32.mrf.mxu1 }
0x10ae   :  { %v11318_v6 = vadd.f32 %v13205_v22, %v13194_v25 }
0x10af   :  { %v11234_v11 = vpop.f32.mrf.mxu1 }
0x10b0   :  { %v11313_v41 = vadd.f32 %v11312_v12, %v11234_v11  ;;  %13206 = vmatprep.subr.mxu1 %v11318_v6 }
0x10b1   :  { %13207 = vmatpush3.msra.mxu1 %v11318_v6 }
0x10b2   :  { %13208 = vmatprep.subr.mxu1 %v11313_v41 }
0x10b3   :  { %13209 = vmatpush3.msra.mxu1 %v11313_v41 }
0x10b4   :  { %13211 = vmatmul.mubr.msk.f32.vlgmr.msra.gmra.mxu1 %vm19586_vm4, %v10938_v39  ;;  %13213 = vmatprep.subr.mxu1 %v11162_v8 }
0x10b5   :  { %13214 = vmatpush3.msra.mxu1 %v11162_v8  ;;  %13217 = vmatprep.mubr.msk.f32.mxu1 %vm19587_vm5, %v10935_v56 }
0x10b6   :  { %13215 = vmatprep.subr.mxu1 %v11157_v4 }
0x10b7   :  { %13216 = vmatpush3.msra.mxu1 %v11157_v4 }
0x10b8   :  { %13218 = vmatmul.mubr.msk.f32.vlgmr.msra.gmra.mxu1 %vm19588_vm11, %v10936_v46  ;;  %13231 = vmatprep.subr.mxu1 %v13865_v16 }
0x10b9   :  { %13235 = vmatprep.mubr.msk.f32.mxu1 %vm13866_vm10, %v13865_v16  ;;  %13232 = vmatpush3.msk.msra.mxu1 %vm19591_vm6, %v10959_v18 }
0x10ba   :  { %13233 = vmatprep.subr.mxu1 %v13865_v16 }
0x10bb   :  { %13234 = vmatpush3.msra.mxu1 %v10958_v37 }
0x1174   :  { %v13212_v10 = vpop.f32.mrf.mxu1 }
0x1176   :  { %v11393_v3 = vpop.f32.mrf.mxu1 }
0x1178   :  { %v13219_v33 = vpop.f32.mrf.mxu1 }
0x1179   :  { %v11480_v60 = vadd.f32 %v13219_v33, %v13212_v10 }
0x117a   :  { %v11474_v13 = vpop.f32.mrf.mxu1 }
0x117b   :  { %v11502_v35 = vadd.f32 %v11500_v19, %v11480_v60  ;;  %v11475_v27 = vadd.f32 %v11474_v13, %v11393_v3 }
0x117d   :  { %v11510_v30 = vadd.f32 %v12171_v28, %v11502_v35  ;;  %v11501_v53 = vadd.f32 %v11499_v62, %v11475_v27 }
0x117f   :  { %v11509_v43 = vadd.f32 %v12171_v28, %v11501_v53  ;;  %v11514_v9 = vmul.f32 0.01, %v11510_v30  ;;  %vm11512_vm8 = vcmp.gt.f32.partialorder %v11510_v30, 0.0 }
0x1181   :  { %vm11511_vm9 = vcmp.gt.f32.partialorder %v11509_v43, 0.0  ;;  %v11513_v58 = vmul.f32 0.01, %v11509_v43  ;;  %v11516_v44 = vsel %vm11512_vm8, %v11510_v30, %v11514_v9 }
0x1183   :  { %v11515_v15 = vsel %vm11511_vm9, %v11509_v43, %v11513_v58 }
0x1184   :  { %13228 = vmatprep.mubr.msk.f32.mxu0 %vm11523_vm13, %v11515_v15 }
0x1185   :  { %13229 = vmatmul.mubr.msk.f32.vlgmr.msra.gmra.mxu0 %vm11523_vm13, %v11516_v44 }
0x1245   :  { %v13230_v47 = vpop.f32.mrf.mxu0 }
0x1246   :  { %v11606_v42 = vadd.f32 %v13230_v47, %v12172_v48 }
0x1247   :  { %v11600_v17 = vpop.f32.mrf.mxu0 }
0x1248   :  { %vm11610_vm2 = vcmp.gt.f32.partialorder %v11606_v42, 0.0  ;;  %v11612_v38 = vmul.f32 0.01, %v11606_v42  ;;  %v11601_v45 = vadd.f32 %v12172_v48, %v11600_v17 }
0x124a   :  { %v11614_v36 = vsel %vm11610_vm2, %v11606_v42, %v11612_v38  ;;  %vm11609_vm7 = vcmp.gt.f32.partialorder %v11601_v45, 0.0  ;;  %v11611_v55 = vmul.f32 0.01, %v11601_v45 }
0x124b   :  { %v11617_v31 = vsel %vm11616_vm15, %v11614_v36, 0.0 }
0x124c   :  { %v11613_v61 = vsel %vm11609_vm7, %v11601_v45, %v11611_v55 }
0x124d   :  { %v11615_v50 = vsel %vm19592_vm3, %v11613_v61, 0.0 }
0x124e   :  { %v11618_v23 = vadd.f32 %v11617_v31, %v11615_v50 }
0x1250   :  { %v11619_v2 = vrot.slane %v11618_v23, 4 }
0x1252   :  { %v11620_v20 = vadd.f32 %v11619_v2, %v11618_v23 }
0x1254   :  { %v11621_v34 = vrot.slane %v11620_v20, 2 }
0x1256   :  { %v11622_v32 = vadd.f32 %v11621_v34, %v11620_v20 }
0x1258   :  { %v11623_v1 = vrot.slane %v11622_v32, 1 }
0x125a   :  { %v11624_v26 = vadd.f32 %v11623_v1, %v11622_v32 }
0x125c   :  { %13236 = vmatmul.mubr.msk.f32.vlgmr.msra.gmra.mxu1 %vm19593_vm14, %v11624_v26 }
0x131c   :  { %v11698_v21 = vpop.f32.mrf.mxu1 }
0x131d   :  { %v11699_v57 = vadd.f32 %v11698_v21, %v11625_v52 }
0x131e   :  { %v13237_v5 = vpop.f32.mrf.mxu1 }
0x131f   :  { %11703 = vst.msk [vmem:[#allocation3] sm:$0x1] %vm11702_vm1, %v11699_v57 }
0x1320   :  { %13794 = shalt.err (!%p13791_p4)
}
0x1321   :  { %11713 = dma.vmem_to_hbm [thread:$0]  %s11711_s12, 16, %s14164_s27, [#allocation4]  }
0x1322   :  { %13803 = dma.done.wait [#allocation4], 16  }
0x1323   :  { %13804 = vsyncadd [#allocation4], 4294967280 }
0x1324   :  { %11717 = vsyncpa [#allocation4], 1 }

</bundles_post_ra>
